<compile_context>
chip_gen: v6e
topology: v6e:2x2x1
jax: 0.10.0
libtpu: 0.0.40
codegen_flags: <defaults>
</compile_context>

<pallas_src>
import functools
import math

import numpy as np

import jax
import jax.numpy as jnp
from jax.experimental import pallas as pl
from jax.experimental.pallas import tpu as pltpu

_BN_EPS = 1e-5
_ACT_DTYPE = jnp.bfloat16


# ---------------------------------------------------------------------------
# Pallas kernels
# ---------------------------------------------------------------------------

def _acc3(taps, w_ref):
    """Sum of three banded matmuls (bf16 operands, f32 accumulation)."""
    acc = jnp.dot(taps[0], w_ref[0], preferred_element_type=jnp.float32)
    acc += jnp.dot(taps[1], w_ref[1], preferred_element_type=jnp.float32)
    acc += jnp.dot(taps[2], w_ref[2], preferred_element_type=jnp.float32)
    return acc


def _stem_kernel(x_ref, b_ref, s_ref, o_ref, pad_ref):
    # x_ref: (H+2, W*3) bf16 (row-padded);  o_ref: (H+2, W*16) bf16 (row-padded)
    ho = o_ref.shape[0] - 2
    acc = _acc3((x_ref[0:ho, :], x_ref[1:ho + 1, :], x_ref[2:ho + 2, :]), b_ref)
    out = jnp.maximum(acc + s_ref[...], 0.0)
    pad_ref[...] = jnp.zeros_like(pad_ref)
    pad_ref[1:ho + 1, :] = out
    o_ref[...] = pad_ref[...].astype(o_ref.dtype)   # lane-dense full-tile store


def _block_id_kernel(x_ref, b1_ref, s1_ref, b2_ref, s2_ref, o_ref, pad_ref):
    # Identity BasicBlock: conv1+bn1+relu, conv2+bn2, +residual, relu.
    ho = o_ref.shape[0] - 2
    a1 = _acc3((x_ref[0:ho, :], x_ref[1:ho + 1, :], x_ref[2:ho + 2, :]), b1_ref)
    out1 = jnp.maximum(a1 + s1_ref[...], 0.0)
    # stage out1 with one zero row of vertical padding for conv2's taps
    pad_ref[...] = jnp.zeros_like(pad_ref)
    pad_ref[1:ho + 1, :] = out1
    t0 = pad_ref[0:ho, :].astype(jnp.bfloat16)
    t1 = pad_ref[1:ho + 1, :].astype(jnp.bfloat16)
    t2 = pad_ref[2:ho + 2, :].astype(jnp.bfloat16)
    a2 = _acc3((t0, t1, t2), b2_ref)
    res = x_ref[1:ho + 1, :].astype(jnp.float32)        # identity residual
    out2 = jnp.maximum(a2 + s2_ref[...] + res, 0.0)
    pad_ref[1:ho + 1, :] = out2                          # rows 0 / ho+1 stay zero
    o_ref[...] = pad_ref[...].astype(o_ref.dtype)


def _block_ds_kernel(xe_ref, xo_ref, b1_ref, s1_ref, b2_ref, s2_ref,
                     bd_ref, sd_ref, o_ref, pad_ref):
    # Stride-2 BasicBlock with 1x1 downsample; xe/xo = even/odd padded rows.
    ho = o_ref.shape[0] - 2
    a1 = _acc3((xe_ref[0:ho, :], xo_ref[0:ho, :], xe_ref[1:ho + 1, :]), b1_ref)
    out1 = jnp.maximum(a1 + s1_ref[...], 0.0)
    pad_ref[...] = jnp.zeros_like(pad_ref)
    pad_ref[1:ho + 1, :] = out1
    t0 = pad_ref[0:ho, :].astype(jnp.bfloat16)
    t1 = pad_ref[1:ho + 1, :].astype(jnp.bfloat16)
    t2 = pad_ref[2:ho + 2, :].astype(jnp.bfloat16)
    a2 = _acc3((t0, t1, t2), b2_ref)
    res = jnp.dot(xo_ref[0:ho, :], bd_ref[...],
                  preferred_element_type=jnp.float32) + sd_ref[...]
    out2 = jnp.maximum(a2 + s2_ref[...] + res, 0.0)
    pad_ref[1:ho + 1, :] = out2
    o_ref[...] = pad_ref[...].astype(o_ref.dtype)


def _block_id_fc_kernel(x_ref, b1_ref, s1_ref, b2_ref, s2_ref,
                        fcw_ref, fcb_ref, o_ref, pad_ref):
    # Last identity block with fused adaptive-avg-pool + FC classifier.
    ho = x_ref.shape[0] - 2
    a1 = _acc3((x_ref[0:ho, :], x_ref[1:ho + 1, :], x_ref[2:ho + 2, :]), b1_ref)
    out1 = jnp.maximum(a1 + s1_ref[...], 0.0)
    pad_ref[...] = jnp.zeros_like(pad_ref)
    pad_ref[1:ho + 1, :] = out1
    t0 = pad_ref[0:ho, :].astype(jnp.bfloat16)
    t1 = pad_ref[1:ho + 1, :].astype(jnp.bfloat16)
    t2 = pad_ref[2:ho + 2, :].astype(jnp.bfloat16)
    a2 = _acc3((t0, t1, t2), b2_ref)
    res = x_ref[1:ho + 1, :].astype(jnp.float32)
    out2 = jnp.maximum(a2 + s2_ref[...] + res, 0.0)
    # avg-pool over (H, W) folded into fcw (1/(H*W) already baked in): sum rows,
    # then one small matmul reduces the W*C lane blocks into logits.
    colsum = jnp.sum(out2, axis=0, keepdims=True)        # (1, W*C)
    o_ref[...] = jnp.dot(colsum, fcw_ref[...],
                         preferred_element_type=jnp.float32) + fcb_ref[...]


# ---------------------------------------------------------------------------
# pallas_call wrappers
# ---------------------------------------------------------------------------

def _compiler_params():
    return pltpu.CompilerParams(dimension_semantics=("parallel",))


def _full_spec(arr):
    nd = arr.ndim
    return pl.BlockSpec(arr.shape, lambda n, _nd=nd: (0,) * _nd)


def _img_spec(shape3d):
    _, h, wc = shape3d
    return pl.BlockSpec((None, h, wc), lambda n: (n, 0, 0))


def _run_stem(x_slab, b, s):
    n, hp, _ = x_slab.shape
    wc_out = b.shape[2]
    return pl.pallas_call(
        _stem_kernel,
        out_shape=jax.ShapeDtypeStruct((n, hp, wc_out), _ACT_DTYPE),
        grid_spec=pltpu.PrefetchScalarGridSpec(
            num_scalar_prefetch=0,
            grid=(n,),
            in_specs=[_img_spec(x_slab.shape), _full_spec(b), _full_spec(s)],
            out_specs=pl.BlockSpec((None, hp, wc_out), lambda i: (i, 0, 0)),
            scratch_shapes=[pltpu.VMEM((hp, wc_out), jnp.float32)],
        ),
        compiler_params=_compiler_params(),
    )(x_slab, b, s)


def _run_block_id(x_slab, b1, s1, b2, s2):
    n, hp, wc = x_slab.shape
    return pl.pallas_call(
        _block_id_kernel,
        out_shape=jax.ShapeDtypeStruct((n, hp, wc), _ACT_DTYPE),
        grid_spec=pltpu.PrefetchScalarGridSpec(
            num_scalar_prefetch=0,
            grid=(n,),
            in_specs=[_img_spec(x_slab.shape),
                      _full_spec(b1), _full_spec(s1),
                      _full_spec(b2), _full_spec(s2)],
            out_specs=pl.BlockSpec((None, hp, wc), lambda i: (i, 0, 0)),
            scratch_shapes=[pltpu.VMEM((hp, wc), jnp.float32)],
        ),
        compiler_params=_compiler_params(),
    )(x_slab, b1, s1, b2, s2)


def _run_block_ds(x_slab, b1, s1, b2, s2, bd, sd):
    n, hp_in, _ = x_slab.shape
    ho = (hp_in - 2) // 2
    wc_out = b1.shape[2]
    xe = x_slab[:, 0::2, :]      # even padded rows (cheap XLA strided slice)
    xo = x_slab[:, 1::2, :]      # odd padded rows
    return pl.pallas_call(
        _block_ds_kernel,
        out_shape=jax.ShapeDtypeStruct((n, ho + 2, wc_out), _ACT_DTYPE),
        grid_spec=pltpu.PrefetchScalarGridSpec(
            num_scalar_prefetch=0,
            grid=(n,),
            in_specs=[_img_spec(xe.shape), _img_spec(xo.shape),
                      _full_spec(b1), _full_spec(s1),
                      _full_spec(b2), _full_spec(s2),
                      _full_spec(bd), _full_spec(sd)],
            out_specs=pl.BlockSpec((None, ho + 2, wc_out), lambda i: (i, 0, 0)),
            scratch_shapes=[pltpu.VMEM((ho + 2, wc_out), jnp.float32)],
        ),
        compiler_params=_compiler_params(),
    )(xe, xo, b1, s1, b2, s2, bd, sd)


def _run_block_id_fc(x_slab, b1, s1, b2, s2, fcw, fcb):
    n, hp, wc = x_slab.shape
    num_classes = fcw.shape[1]
    out = pl.pallas_call(
        _block_id_fc_kernel,
        out_shape=jax.ShapeDtypeStruct((n, 1, num_classes), jnp.float32),
        grid_spec=pltpu.PrefetchScalarGridSpec(
            num_scalar_prefetch=0,
            grid=(n,),
            in_specs=[_img_spec(x_slab.shape),
                      _full_spec(b1), _full_spec(s1),
                      _full_spec(b2), _full_spec(s2),
                      _full_spec(fcw), _full_spec(fcb)],
            out_specs=pl.BlockSpec((None, 1, num_classes), lambda i: (i, 0, 0)),
            scratch_shapes=[pltpu.VMEM((hp, wc), jnp.float32)],
        ),
        compiler_params=_compiler_params(),
    )(x_slab, b1, s1, b2, s2, fcw, fcb)
    return out[:, 0, :]


# ---------------------------------------------------------------------------
# Parameter init + banded-weight construction (host-side, numpy)
# ---------------------------------------------------------------------------

def _kaiming_conv(key, cout, cin, k):
    # kaiming_normal_(mode='fan_out', nonlinearity='relu'), torch layout (O,I,kh,kw)
    fan_out = cout * k * k
    std = math.sqrt(2.0 / fan_out)
    return np.asarray(jax.random.normal(key, (cout, cin, k, k), jnp.float32)) * std


def _bn_fold(cout):
    # eval-mode BN at init: gamma=1, beta=0, mean=0, var=1
    scale = np.full((cout,), 1.0 / math.sqrt(1.0 + _BN_EPS), np.float32)
    shift = np.zeros((cout,), np.float32)
    return scale, shift


def _banded_conv3x3(w, scale, shift, w_in, stride):
    """3x3 conv (pad=1) -> 3 banded matrices (per vertical tap), BN scale folded."""
    cout, cin, _, _ = w.shape
    w_out = w_in // stride
    b = np.zeros((3, w_in * cin, w_out * cout), np.float32)
    for kh in range(3):
        for jo in range(w_out):
            for kw in range(3):
                q = stride * jo + kw - 1            # input column (horizontal pad=1)
                if 0 <= q < w_in:
                    b[kh, q * cin:(q + 1) * cin, jo * cout:(jo + 1) * cout] = (
                        w[:, :, kh, kw].T * scale[None, :])
    s = np.tile(shift, w_out).reshape(1, w_out * cout)
    return jnp.asarray(b, jnp.bfloat16), jnp.asarray(s, jnp.float32)


def _banded_conv1x1_s2(w, scale, shift, w_in):
    """1x1 stride-2 downsample conv -> banded matrix, BN scale folded."""
    cout, cin = w.shape[0], w.shape[1]
    w_out = w_in // 2
    b = np.zeros((w_in * cin, w_out * cout), np.float32)
    for jo in range(w_out):
        q = 2 * jo
        b[q * cin:(q + 1) * cin, jo * cout:(jo + 1) * cout] = (
            w[:, :, 0, 0].T * scale[None, :])
    s = np.tile(shift, w_out).reshape(1, w_out * cout)
    return jnp.asarray(b, jnp.bfloat16), jnp.asarray(s, jnp.float32)


def _pool_fc_matrix(fc_w, fc_b, w_out, h_out, cout):
    """Fold adaptive-avg-pool mean into the FC weight: (W*C, num_classes)."""
    num_classes = fc_w.shape[0]
    big = np.zeros((w_out * cout, num_classes), np.float32)
    for jo in range(w_out):
        big[jo * cout:(jo + 1) * cout, :] = fc_w.T / float(h_out * w_out)
    return jnp.asarray(big, jnp.float32), jnp.asarray(fc_b.reshape(1, -1), jnp.float32)


def init_params(key, num_classes=100, h=16, w=16):
    keys = iter(jax.random.split(key, 64))
    params = {}

    # stem: conv3x3(3 -> 16, stride 1) + BN + ReLU
    w_stem = _kaiming_conv(next(keys), 16, 3, 3)
    sc, sh = _bn_fold(16)
    params["stem"] = _banded_conv3x3(w_stem, sc, sh, w, 1)

    layers = []
    cin, cur_w, cur_h = 16, w, h
    for planes, stride in ((16, 1), (32, 2), (64, 2)):   # ResNet-20: [3, 3, 3]
        blocks = []
        for bidx in range(3):
            s = stride if bidx == 0 else 1
            w_in = cur_w
            w1 = _kaiming_conv(next(keys), planes, cin, 3)
            sc1, sh1 = _bn_fold(planes)
            b1, s1 = _banded_conv3x3(w1, sc1, sh1, w_in, s)
            w_out = w_in // s
            w2 = _kaiming_conv(next(keys), planes, planes, 3)
            sc2, sh2 = _bn_fold(planes)
            b2, s2 = _banded_conv3x3(w2, sc2, sh2, w_out, 1)
            blk = {"b1": b1, "s1": s1, "b2": b2, "s2": s2, "ds": None}
            if s != 1 or cin != planes:
                wd = _kaiming_conv(next(keys), planes, cin, 1)
                scd, shd = _bn_fold(planes)
                blk["ds"] = _banded_conv1x1_s2(wd, scd, shd, w_in)
            blocks.append(blk)
            cin, cur_w, cur_h = planes, w_out, cur_h // s
        layers.append(blocks)
    params["layers"] = layers

    # FC: normal(std=0.001) weight, zero bias (matches the module's explicit init)
    fc_w = np.asarray(jax.random.normal(next(keys), (num_classes, 64), jnp.float32)) * 0.001
    fc_b = np.zeros((num_classes,), np.float32)
    params["fc"] = _pool_fc_matrix(fc_w, fc_b, cur_w, cur_h, 64)
    return params


# ---------------------------------------------------------------------------
# Forward pass
# ---------------------------------------------------------------------------

def resnet20_forward(params, x_nchw):
    x = jnp.transpose(x_nchw, (0, 2, 3, 1))        # NCHW -> NHWC
    n, h, w, c = x.shape
    x = x.reshape(n, h, w * c)                     # pack (W, C) onto the lane axis
    x = jnp.pad(x, ((0, 0), (1, 1), (0, 0)))       # zero rows for vertical taps
    x = x.astype(_ACT_DTYPE)

    b_stem, s_stem = params["stem"]
    x = _run_stem(x, b_stem, s_stem)

    layers = params["layers"]
    for li, blocks in enumerate(layers):
        for bi, blk in enumerate(blocks):
            is_last = (li == len(layers) - 1) and (bi == len(blocks) - 1)
            if blk["ds"] is not None:
                bd, sd = blk["ds"]
                x = _run_block_ds(x, blk["b1"], blk["s1"], blk["b2"], blk["s2"], bd, sd)
            elif is_last:
                fcw, fcb = params["fc"]
                x = _run_block_id_fc(x, blk["b1"], blk["s1"], blk["b2"], blk["s2"],
                                     fcw, fcb)
            else:
                x = _run_block_id(x, blk["b1"], blk["s1"], blk["b2"], blk["s2"])
    return x                                        # (N, num_classes) f32 logits


if __name__ == "__main__":
    key = jax.random.PRNGKey(0)
    pkey, xkey = jax.random.split(key)
    # small CIFAR-like input: batch=2, 3 channels, 16x16 (survives two stride-2 stages)
    x = jax.random.normal(xkey, (2, 3, 16, 16), jnp.float32)
    params = init_params(pkey, num_classes=100, h=16, w=16)

    fwd = jax.jit(resnet20_forward)
    out = fwd(params, x)
    out = jax.block_until_ready(out)

    assert out.shape == (2, 100), out.shape
    assert bool(jnp.all(jnp.isfinite(out)))
    print("KERNEL_OK")
</pallas_src>

<mosaic_0001>
module attributes {stable_mosaic.version = 11 : i64} {
  func.func @_stem_kernel(%arg0: i32, %arg1: memref<1x18x48xbf16, #tpu.memory_space<vmem>>, %arg2: memref<3x48x256xbf16, #tpu.memory_space<vmem>>, %arg3: memref<1x256xf32, #tpu.memory_space<vmem>>, %arg4: memref<1x18x256xbf16, #tpu.memory_space<vmem>>, %arg5: memref<18x256xf32, #tpu.memory_space<vmem>>) attributes {dimension_semantics = [#tpu.dimension_semantics<parallel>], iteration_bounds = array<i64: 2>, scalar_prefetch = 0 : i64, scratch_operands = 1 : i64, tpu.core_type = #tpu.core_type<tc>, window_params = [{transform_indices = @transform_0, window_bounds = array<i64: 1, 18, 48>}, {pipeline_mode = #tpu.pipeline_mode<synchronous>, transform_indices = @transform_1, window_bounds = array<i64: 3, 48, 256>}, {pipeline_mode = #tpu.pipeline_mode<synchronous>, transform_indices = @transform_2, window_bounds = array<i64: 1, 256>}, {transform_indices = @transform_3, window_bounds = array<i64: 1, 18, 256>}]} {
    %c0 = arith.constant 0 : index
    %c0_0 = arith.constant 0 : index
    %c0_1 = arith.constant 0 : index
    %0 = vector.load %arg1[%c0, %c0_0, %c0_1] : memref<1x18x48xbf16, #tpu.memory_space<vmem>>, vector<1x16x48xbf16>
    %1 = vector.shape_cast %0 : vector<1x16x48xbf16> to vector<16x48xbf16>
    %c0_2 = arith.constant 0 : index
    %c1 = arith.constant 1 : index
    %c0_3 = arith.constant 0 : index
    %2 = vector.load %arg1[%c0_2, %c1, %c0_3] : memref<1x18x48xbf16, #tpu.memory_space<vmem>>, vector<1x16x48xbf16>
    %3 = vector.shape_cast %2 : vector<1x16x48xbf16> to vector<16x48xbf16>
    %c0_4 = arith.constant 0 : index
    %c2 = arith.constant 2 : index
    %c0_5 = arith.constant 0 : index
    %4 = vector.load %arg1[%c0_4, %c2, %c0_5] : memref<1x18x48xbf16, #tpu.memory_space<vmem>>, vector<1x16x48xbf16>
    %5 = vector.shape_cast %4 : vector<1x16x48xbf16> to vector<16x48xbf16>
    %c0_6 = arith.constant 0 : index
    %c0_7 = arith.constant 0 : index
    %c0_8 = arith.constant 0 : index
    %6 = vector.load %arg2[%c0_6, %c0_7, %c0_8] : memref<3x48x256xbf16, #tpu.memory_space<vmem>>, vector<1x48x256xbf16>
    %7 = vector.shape_cast %6 : vector<1x48x256xbf16> to vector<48x256xbf16>
    %cst = arith.constant dense<0.000000e+00> : vector<16x256xf32>
    %8 = tpu.matmul %1, %7, %cst {dimension_numbers = #tpu.dot_dimension_numbers<[1], [0], [0], [1], [0, 0, 1, 1], [], []>} : vector<16x48xbf16>, vector<48x256xbf16>, vector<16x256xf32> -> vector<16x256xf32>
    %c1_9 = arith.constant 1 : index
    %c0_10 = arith.constant 0 : index
    %c0_11 = arith.constant 0 : index
    %9 = vector.load %arg2[%c1_9, %c0_10, %c0_11] : memref<3x48x256xbf16, #tpu.memory_space<vmem>>, vector<1x48x256xbf16>
    %10 = vector.shape_cast %9 : vector<1x48x256xbf16> to vector<48x256xbf16>
    %cst_12 = arith.constant dense<0.000000e+00> : vector<16x256xf32>
    %11 = tpu.matmul %3, %10, %cst_12 {dimension_numbers = #tpu.dot_dimension_numbers<[1], [0], [0], [1], [0, 0, 1, 1], [], []>} : vector<16x48xbf16>, vector<48x256xbf16>, vector<16x256xf32> -> vector<16x256xf32>
    %12 = arith.addf %8, %11 : vector<16x256xf32>
    %c2_13 = arith.constant 2 : index
    %c0_14 = arith.constant 0 : index
    %c0_15 = arith.constant 0 : index
    %13 = vector.load %arg2[%c2_13, %c0_14, %c0_15] : memref<3x48x256xbf16, #tpu.memory_space<vmem>>, vector<1x48x256xbf16>
    %14 = vector.shape_cast %13 : vector<1x48x256xbf16> to vector<48x256xbf16>
    %cst_16 = arith.constant dense<0.000000e+00> : vector<16x256xf32>
    %15 = tpu.matmul %5, %14, %cst_16 {dimension_numbers = #tpu.dot_dimension_numbers<[1], [0], [0], [1], [0, 0, 1, 1], [], []>} : vector<16x48xbf16>, vector<48x256xbf16>, vector<16x256xf32> -> vector<16x256xf32>
    %16 = arith.addf %12, %15 : vector<16x256xf32>
    %c0_17 = arith.constant 0 : index
    %c0_18 = arith.constant 0 : index
    %17 = vector.load %arg3[%c0_17, %c0_18] : memref<1x256xf32, #tpu.memory_space<vmem>>, vector<1x256xf32>
    %18 = vector.broadcast %17 : vector<1x256xf32> to vector<16x256xf32>
    %19 = arith.addf %16, %18 : vector<16x256xf32>
    %cst_19 = arith.constant 0.000000e+00 : f32
    %20 = vector.broadcast %cst_19 : f32 to vector<16x256xf32>
    %21 = arith.maximumf %19, %20 : vector<16x256xf32>
    %cst_20 = arith.constant 0.000000e+00 : f32
    %22 = vector.broadcast %cst_20 : f32 to vector<18x256xf32>
    %c0_21 = arith.constant 0 : index
    %c0_22 = arith.constant 0 : index
    %23 = vector.load %arg5[%c0_21, %c0_22] : memref<18x256xf32, #tpu.memory_space<vmem>>, vector<18x256xf32>
    tpu.vector_store %arg5[%c0_21, %c0_22], %22 {strides = array<i32>} : memref<18x256xf32, #tpu.memory_space<vmem>>, vector<18x256xf32>,
    %c1_23 = arith.constant 1 : index
    %c0_24 = arith.constant 0 : index
    %24 = vector.load %arg5[%c1_23, %c0_24] : memref<18x256xf32, #tpu.memory_space<vmem>>, vector<16x256xf32>
    tpu.vector_store %arg5[%c1_23, %c0_24], %21 {strides = array<i32>} : memref<18x256xf32, #tpu.memory_space<vmem>>, vector<16x256xf32>,
    %c0_25 = arith.constant 0 : index
    %c0_26 = arith.constant 0 : index
    %25 = vector.load %arg5[%c0_25, %c0_26] : memref<18x256xf32, #tpu.memory_space<vmem>>, vector<18x256xf32>
    %26 = arith.truncf %25 : vector<18x256xf32> to vector<18x256xbf16>
    %c0_27 = arith.constant 0 : index
    %c0_28 = arith.constant 0 : index
    %c0_29 = arith.constant 0 : index
    %27 = vector.load %arg4[%c0_27, %c0_28, %c0_29] : memref<1x18x256xbf16, #tpu.memory_space<vmem>>, vector<1x18x256xbf16>
    %28 = vector.shape_cast %27 : vector<1x18x256xbf16> to vector<18x256xbf16>
    %29 = vector.shape_cast %26 : vector<18x256xbf16> to vector<1x18x256xbf16>
    tpu.vector_store %arg4[%c0_27, %c0_28, %c0_29], %29 {strides = array<i32>} : memref<1x18x256xbf16, #tpu.memory_space<vmem>>, vector<1x18x256xbf16>,
    return
  }
  func.func @transform_0(%arg0: i32) -> (i32, i32, i32) {
    %c0_i32 = arith.constant 0 : i32
    %c0_i32_0 = arith.constant 0 : i32
    %c0_i32_1 = arith.constant 0 : i32
    return %arg0, %c0_i32, %c0_i32_0 : i32, i32, i32
  }
  func.func @transform_1(%arg0: i32) -> (i32, i32, i32) {
    %c0_i32 = arith.constant 0 : i32
    %c0_i32_0 = arith.constant 0 : i32
    %c0_i32_1 = arith.constant 0 : i32
    %c0_i32_2 = arith.constant 0 : i32
    return %c0_i32, %c0_i32_0, %c0_i32_1 : i32, i32, i32
  }
  func.func @transform_2(%arg0: i32) -> (i32, i32) {
    %c0_i32 = arith.constant 0 : i32
    %c0_i32_0 = arith.constant 0 : i32
    %c0_i32_1 = arith.constant 0 : i32
    return %c0_i32, %c0_i32_0 : i32, i32
  }
  func.func @transform_3(%arg0: i32) -> (i32, i32, i32) {
    %c0_i32 = arith.constant 0 : i32
    %c0_i32_0 = arith.constant 0 : i32
    %c0_i32_1 = arith.constant 0 : i32
    return %arg0, %c0_i32, %c0_i32_0 : i32, i32, i32
  }
}

module attributes {stable_mosaic.version = 11 : i64} {
  func.func @_block_id_kernel(%arg0: i32, %arg1: memref<1x18x256xbf16, #tpu.memory_space<vmem>>, %arg2: memref<3x256x256xbf16, #tpu.memory_space<vmem>>, %arg3: memref<1x256xf32, #tpu.memory_space<vmem>>, %arg4: memref<3x256x256xbf16, #tpu.memory_space<vmem>>, %arg5: memref<1x256xf32, #tpu.memory_space<vmem>>, %arg6: memref<1x18x256xbf16, #tpu.memory_space<vmem>>, %arg7: memref<18x256xf32, #tpu.memory_space<vmem>>) attributes {dimension_semantics = [#tpu.dimension_semantics<parallel>], iteration_bounds = array<i64: 2>, scalar_prefetch = 0 : i64, scratch_operands = 1 : i64, tpu.core_type = #tpu.core_type<tc>, window_params = [{transform_indices = @transform_0, window_bounds = array<i64: 1, 18, 256>}, {pipeline_mode = #tpu.pipeline_mode<synchronous>, transform_indices = @transform_1, window_bounds = array<i64: 3, 256, 256>}, {pipeline_mode = #tpu.pipeline_mode<synchronous>, transform_indices = @transform_2, window_bounds = array<i64: 1, 256>}, {pipeline_mode = #tpu.pipeline_mode<synchronous>, transform_indices = @transform_3, window_bounds = array<i64: 3, 256, 256>}, {pipeline_mode = #tpu.pipeline_mode<synchronous>, transform_indices = @transform_4, window_bounds = array<i64: 1, 256>}, {transform_indices = @transform_5, window_bounds = array<i64: 1, 18, 256>}]} {
    %c0 = arith.constant 0 : index
    %c0_0 = arith.constant 0 : index
    %c0_1 = arith.constant 0 : index
    %0 = vector.load %arg1[%c0, %c0_0, %c0_1] : memref<1x18x256xbf16, #tpu.memory_space<vmem>>, vector<1x16x256xbf16>
    %1 = vector.shape_cast %0 : vector<1x16x256xbf16> to vector<16x256xbf16>
    %c0_2 = arith.constant 0 : index
    %c1 = arith.constant 1 : index
    %c0_3 = arith.constant 0 : index
    %2 = vector.load %arg1[%c0_2, %c1, %c0_3] : memref<1x18x256xbf16, #tpu.memory_space<vmem>>, vector<1x16x256xbf16>
    %3 = vector.shape_cast %2 : vector<1x16x256xbf16> to vector<16x256xbf16>
    %c0_4 = arith.constant 0 : index
    %c2 = arith.constant 2 : index
    %c0_5 = arith.constant 0 : index
    %4 = vector.load %arg1[%c0_4, %c2, %c0_5] : memref<1x18x256xbf16, #tpu.memory_space<vmem>>, vector<1x16x256xbf16>
    %5 = vector.shape_cast %4 : vector<1x16x256xbf16> to vector<16x256xbf16>
    %c0_6 = arith.constant 0 : index
    %c0_7 = arith.constant 0 : index
    %c0_8 = arith.constant 0 : index
    %6 = vector.load %arg2[%c0_6, %c0_7, %c0_8] : memref<3x256x256xbf16, #tpu.memory_space<vmem>>, vector<1x256x256xbf16>
    %7 = vector.shape_cast %6 : vector<1x256x256xbf16> to vector<256x256xbf16>
    %cst = arith.constant dense<0.000000e+00> : vector<16x256xf32>
    %8 = tpu.matmul %1, %7, %cst {dimension_numbers = #tpu.dot_dimension_numbers<[1], [0], [0], [1], [0, 0, 1, 1], [], []>} : vector<16x256xbf16>, vector<256x256xbf16>, vector<16x256xf32> -> vector<16x256xf32>
    %c1_9 = arith.constant 1 : index
    %c0_10 = arith.constant 0 : index
    %c0_11 = arith.constant 0 : index
    %9 = vector.load %arg2[%c1_9, %c0_10, %c0_11] : memref<3x256x256xbf16, #tpu.memory_space<vmem>>, vector<1x256x256xbf16>
    %10 = vector.shape_cast %9 : vector<1x256x256xbf16> to vector<256x256xbf16>
    %cst_12 = arith.constant dense<0.000000e+00> : vector<16x256xf32>
    %11 = tpu.matmul %3, %10, %cst_12 {dimension_numbers = #tpu.dot_dimension_numbers<[1], [0], [0], [1], [0, 0, 1, 1], [], []>} : vector<16x256xbf16>, vector<256x256xbf16>, vector<16x256xf32> -> vector<16x256xf32>
    %12 = arith.addf %8, %11 : vector<16x256xf32>
    %c2_13 = arith.constant 2 : index
    %c0_14 = arith.constant 0 : index
    %c0_15 = arith.constant 0 : index
    %13 = vector.load %arg2[%c2_13, %c0_14, %c0_15] : memref<3x256x256xbf16, #tpu.memory_space<vmem>>, vector<1x256x256xbf16>
    %14 = vector.shape_cast %13 : vector<1x256x256xbf16> to vector<256x256xbf16>
    %cst_16 = arith.constant dense<0.000000e+00> : vector<16x256xf32>
    %15 = tpu.matmul %5, %14, %cst_16 {dimension_numbers = #tpu.dot_dimension_numbers<[1], [0], [0], [1], [0, 0, 1, 1], [], []>} : vector<16x256xbf16>, vector<256x256xbf16>, vector<16x256xf32> -> vector<16x256xf32>
    %16 = arith.addf %12, %15 : vector<16x256xf32>
    %c0_17 = arith.constant 0 : index
    %c0_18 = arith.constant 0 : index
    %17 = vector.load %arg3[%c0_17, %c0_18] : memref<1x256xf32, #tpu.memory_space<vmem>>, vector<1x256xf32>
    %18 = vector.broadcast %17 : vector<1x256xf32> to vector<16x256xf32>
    %19 = arith.addf %16, %18 : vector<16x256xf32>
    %cst_19 = arith.constant 0.000000e+00 : f32
    %20 = vector.broadcast %cst_19 : f32 to vector<16x256xf32>
    %21 = arith.maximumf %19, %20 : vector<16x256xf32>
    %cst_20 = arith.constant 0.000000e+00 : f32
    %22 = vector.broadcast %cst_20 : f32 to vector<18x256xf32>
    %c0_21 = arith.constant 0 : index
    %c0_22 = arith.constant 0 : index
    %23 = vector.load %arg7[%c0_21, %c0_22] : memref<18x256xf32, #tpu.memory_space<vmem>>, vector<18x256xf32>
    tpu.vector_store %arg7[%c0_21, %c0_22], %22 {strides = array<i32>} : memref<18x256xf32, #tpu.memory_space<vmem>>, vector<18x256xf32>,
    %c1_23 = arith.constant 1 : index
    %c0_24 = arith.constant 0 : index
    %24 = vector.load %arg7[%c1_23, %c0_24] : memref<18x256xf32, #tpu.memory_space<vmem>>, vector<16x256xf32>
    tpu.vector_store %arg7[%c1_23, %c0_24], %21 {strides = array<i32>} : memref<18x256xf32, #tpu.memory_space<vmem>>, vector<16x256xf32>,
    %c0_25 = arith.constant 0 : index
    %c0_26 = arith.constant 0 : index
    %25 = vector.load %arg7[%c0_25, %c0_26] : memref<18x256xf32, #tpu.memory_space<vmem>>, vector<16x256xf32>
    %26 = arith.truncf %25 : vector<16x256xf32> to vector<16x256xbf16>
    %c1_27 = arith.constant 1 : index
    %c0_28 = arith.constant 0 : index
    %27 = vector.load %arg7[%c1_27, %c0_28] : memref<18x256xf32, #tpu.memory_space<vmem>>, vector<16x256xf32>
    %28 = arith.truncf %27 : vector<16x256xf32> to vector<16x256xbf16>
    %c2_29 = arith.constant 2 : index
    %c0_30 = arith.constant 0 : index
    %29 = vector.load %arg7[%c2_29, %c0_30] : memref<18x256xf32, #tpu.memory_space<vmem>>, vector<16x256xf32>
    %30 = arith.truncf %29 : vector<16x256xf32> to vector<16x256xbf16>
    %c0_31 = arith.constant 0 : index
    %c0_32 = arith.constant 0 : index
    %c0_33 = arith.constant 0 : index
    %31 = vector.load %arg4[%c0_31, %c0_32, %c0_33] : memref<3x256x256xbf16, #tpu.memory_space<vmem>>, vector<1x256x256xbf16>
    %32 = vector.shape_cast %31 : vector<1x256x256xbf16> to vector<256x256xbf16>
    %cst_34 = arith.constant dense<0.000000e+00> : vector<16x256xf32>
    %33 = tpu.matmul %26, %32, %cst_34 {dimension_numbers = #tpu.dot_dimension_numbers<[1], [0], [0], [1], [0, 0, 1, 1], [], []>} : vector<16x256xbf16>, vector<256x256xbf16>, vector<16x256xf32> -> vector<16x256xf32>
    %c1_35 = arith.constant 1 : index
    %c0_36 = arith.constant 0 : index
    %c0_37 = arith.constant 0 : index
    %34 = vector.load %arg4[%c1_35, %c0_36, %c0_37] : memref<3x256x256xbf16, #tpu.memory_space<vmem>>, vector<1x256x256xbf16>
    %35 = vector.shape_cast %34 : vector<1x256x256xbf16> to vector<256x256xbf16>
    %cst_38 = arith.constant dense<0.000000e+00> : vector<16x256xf32>
    %36 = tpu.matmul %28, %35, %cst_38 {dimension_numbers = #tpu.dot_dimension_numbers<[1], [0], [0], [1], [0, 0, 1, 1], [], []>} : vector<16x256xbf16>, vector<256x256xbf16>, vector<16x256xf32> -> vector<16x256xf32>
    %37 = arith.addf %33, %36 : vector<16x256xf32>
    %c2_39 = arith.constant 2 : index
    %c0_40 = arith.constant 0 : index
    %c0_41 = arith.constant 0 : index
    %38 = vector.load %arg4[%c2_39, %c0_40, %c0_41] : memref<3x256x256xbf16, #tpu.memory_space<vmem>>, vector<1x256x256xbf16>
    %39 = vector.shape_cast %38 : vector<1x256x256xbf16> to vector<256x256xbf16>
    %cst_42 = arith.constant dense<0.000000e+00> : vector<16x256xf32>
    %40 = tpu.matmul %30, %39, %cst_42 {dimension_numbers = #tpu.dot_dimension_numbers<[1], [0], [0], [1], [0, 0, 1, 1], [], []>} : vector<16x256xbf16>, vector<256x256xbf16>, vector<16x256xf32> -> vector<16x256xf32>
    %41 = arith.addf %37, %40 : vector<16x256xf32>
    %c0_43 = arith.constant 0 : index
    %c1_44 = arith.constant 1 : index
    %c0_45 = arith.constant 0 : index
    %42 = vector.load %arg1[%c0_43, %c1_44, %c0_45] : memref<1x18x256xbf16, #tpu.memory_space<vmem>>, vector<1x16x256xbf16>
    %43 = vector.shape_cast %42 : vector<1x16x256xbf16> to vector<16x256xbf16>
    %44 = arith.extf %43 : vector<16x256xbf16> to vector<16x256xf32>
    %c0_46 = arith.constant 0 : index
    %c0_47 = arith.constant 0 : index
    %45 = vector.load %arg5[%c0_46, %c0_47] : memref<1x256xf32, #tpu.memory_space<vmem>>, vector<1x256xf32>
    %46 = vector.broadcast %45 : vector<1x256xf32> to vector<16x256xf32>
    %47 = arith.addf %41, %46 : vector<16x256xf32>
    %48 = arith.addf %47, %44 : vector<16x256xf32>
    %cst_48 = arith.constant 0.000000e+00 : f32
    %49 = vector.broadcast %cst_48 : f32 to vector<16x256xf32>
    %50 = arith.maximumf %48, %49 : vector<16x256xf32>
    %c1_49 = arith.constant 1 : index
    %c0_50 = arith.constant 0 : index
    %51 = vector.load %arg7[%c1_49, %c0_50] : memref<18x256xf32, #tpu.memory_space<vmem>>, vector<16x256xf32>
    tpu.vector_store %arg7[%c1_49, %c0_50], %50 {strides = array<i32>} : memref<18x256xf32, #tpu.memory_space<vmem>>, vector<16x256xf32>,
    %c0_51 = arith.constant 0 : index
    %c0_52 = arith.constant 0 : index
    %52 = vector.load %arg7[%c0_51, %c0_52] : memref<18x256xf32, #tpu.memory_space<vmem>>, vector<18x256xf32>
    %53 = arith.truncf %52 : vector<18x256xf32> to vector<18x256xbf16>
    %c0_53 = arith.constant 0 : index
    %c0_54 = arith.constant 0 : index
    %c0_55 = arith.constant 0 : index
    %54 = vector.load %arg6[%c0_53, %c0_54, %c0_55] : memref<1x18x256xbf16, #tpu.memory_space<vmem>>, vector<1x18x256xbf16>
    %55 = vector.shape_cast %54 : vector<1x18x256xbf16> to vector<18x256xbf16>
    %56 = vector.shape_cast %53 : vector<18x256xbf16> to vector<1x18x256xbf16>
    tpu.vector_store %arg6[%c0_53, %c0_54, %c0_55], %56 {strides = array<i32>} : memref<1x18x256xbf16, #tpu.memory_space<vmem>>, vector<1x18x256xbf16>,
    return
  }
  func.func @transform_0(%arg0: i32) -> (i32, i32, i32) {
    %c0_i32 = arith.constant 0 : i32
    %c0_i32_0 = arith.constant 0 : i32
    %c0_i32_1 = arith.constant 0 : i32
    return %arg0, %c0_i32, %c0_i32_0 : i32, i32, i32
  }
  func.func @transform_1(%arg0: i32) -> (i32, i32, i32) {
    %c0_i32 = arith.constant 0 : i32
    %c0_i32_0 = arith.constant 0 : i32
    %c0_i32_1 = arith.constant 0 : i32
    %c0_i32_2 = arith.constant 0 : i32
    return %c0_i32, %c0_i32_0, %c0_i32_1 : i32, i32, i32
  }
  func.func @transform_2(%arg0: i32) -> (i32, i32) {
    %c0_i32 = arith.constant 0 : i32
    %c0_i32_0 = arith.constant 0 : i32
    %c0_i32_1 = arith.constant 0 : i32
    return %c0_i32, %c0_i32_0 : i32, i32
  }
  func.func @transform_3(%arg0: i32) -> (i32, i32, i32) {
    %c0_i32 = arith.constant 0 : i32
    %c0_i32_0 = arith.constant 0 : i32
    %c0_i32_1 = arith.constant 0 : i32
    %c0_i32_2 = arith.constant 0 : i32
    return %c0_i32, %c0_i32_0, %c0_i32_1 : i32, i32, i32
  }
  func.func @transform_4(%arg0: i32) -> (i32, i32) {
    %c0_i32 = arith.constant 0 : i32
    %c0_i32_0 = arith.constant 0 : i32
    %c0_i32_1 = arith.constant 0 : i32
    return %c0_i32, %c0_i32_0 : i32, i32
  }
  func.func @transform_5(%arg0: i32) -> (i32, i32, i32) {
    %c0_i32 = arith.constant 0 : i32
    %c0_i32_0 = arith.constant 0 : i32
    %c0_i32_1 = arith.constant 0 : i32
    return %arg0, %c0_i32, %c0_i32_0 : i32, i32, i32
  }
}

module attributes {stable_mosaic.version = 11 : i64} {
  func.func @_block_id_kernel(%arg0: i32, %arg1: memref<1x18x256xbf16, #tpu.memory_space<vmem>>, %arg2: memref<3x256x256xbf16, #tpu.memory_space<vmem>>, %arg3: memref<1x256xf32, #tpu.memory_space<vmem>>, %arg4: memref<3x256x256xbf16, #tpu.memory_space<vmem>>, %arg5: memref<1x256xf32, #tpu.memory_space<vmem>>, %arg6: memref<1x18x256xbf16, #tpu.memory_space<vmem>>, %arg7: memref<18x256xf32, #tpu.memory_space<vmem>>) attributes {dimension_semantics = [#tpu.dimension_semantics<parallel>], iteration_bounds = array<i64: 2>, scalar_prefetch = 0 : i64, scratch_operands = 1 : i64, tpu.core_type = #tpu.core_type<tc>, window_params = [{transform_indices = @transform_0, window_bounds = array<i64: 1, 18, 256>}, {pipeline_mode = #tpu.pipeline_mode<synchronous>, transform_indices = @transform_1, window_bounds = array<i64: 3, 256, 256>}, {pipeline_mode = #tpu.pipeline_mode<synchronous>, transform_indices = @transform_2, window_bounds = array<i64: 1, 256>}, {pipeline_mode = #tpu.pipeline_mode<synchronous>, transform_indices = @transform_3, window_bounds = array<i64: 3, 256, 256>}, {pipeline_mode = #tpu.pipeline_mode<synchronous>, transform_indices = @transform_4, window_bounds = array<i64: 1, 256>}, {transform_indices = @transform_5, window_bounds = array<i64: 1, 18, 256>}]} {
    %c0 = arith.constant 0 : index
    %c0_0 = arith.constant 0 : index
    %c0_1 = arith.constant 0 : index
    %0 = vector.load %arg1[%c0, %c0_0, %c0_1] : memref<1x18x256xbf16, #tpu.memory_space<vmem>>, vector<1x16x256xbf16>
    %1 = vector.shape_cast %0 : vector<1x16x256xbf16> to vector<16x256xbf16>
    %c0_2 = arith.constant 0 : index
    %c1 = arith.constant 1 : index
    %c0_3 = arith.constant 0 : index
    %2 = vector.load %arg1[%c0_2, %c1, %c0_3] : memref<1x18x256xbf16, #tpu.memory_space<vmem>>, vector<1x16x256xbf16>
    %3 = vector.shape_cast %2 : vector<1x16x256xbf16> to vector<16x256xbf16>
    %c0_4 = arith.constant 0 : index
    %c2 = arith.constant 2 : index
    %c0_5 = arith.constant 0 : index
    %4 = vector.load %arg1[%c0_4, %c2, %c0_5] : memref<1x18x256xbf16, #tpu.memory_space<vmem>>, vector<1x16x256xbf16>
    %5 = vector.shape_cast %4 : vector<1x16x256xbf16> to vector<16x256xbf16>
    %c0_6 = arith.constant 0 : index
    %c0_7 = arith.constant 0 : index
    %c0_8 = arith.constant 0 : index
    %6 = vector.load %arg2[%c0_6, %c0_7, %c0_8] : memref<3x256x256xbf16, #tpu.memory_space<vmem>>, vector<1x256x256xbf16>
    %7 = vector.shape_cast %6 : vector<1x256x256xbf16> to vector<256x256xbf16>
    %cst = arith.constant dense<0.000000e+00> : vector<16x256xf32>
    %8 = tpu.matmul %1, %7, %cst {dimension_numbers = #tpu.dot_dimension_numbers<[1], [0], [0], [1], [0, 0, 1, 1], [], []>} : vector<16x256xbf16>, vector<256x256xbf16>, vector<16x256xf32> -> vector<16x256xf32>
    %c1_9 = arith.constant 1 : index
    %c0_10 = arith.constant 0 : index
    %c0_11 = arith.constant 0 : index
    %9 = vector.load %arg2[%c1_9, %c0_10, %c0_11] : memref<3x256x256xbf16, #tpu.memory_space<vmem>>, vector<1x256x256xbf16>
    %10 = vector.shape_cast %9 : vector<1x256x256xbf16> to vector<256x256xbf16>
    %cst_12 = arith.constant dense<0.000000e+00> : vector<16x256xf32>
    %11 = tpu.matmul %3, %10, %cst_12 {dimension_numbers = #tpu.dot_dimension_numbers<[1], [0], [0], [1], [0, 0, 1, 1], [], []>} : vector<16x256xbf16>, vector<256x256xbf16>, vector<16x256xf32> -> vector<16x256xf32>
    %12 = arith.addf %8, %11 : vector<16x256xf32>
    %c2_13 = arith.constant 2 : index
    %c0_14 = arith.constant 0 : index
    %c0_15 = arith.constant 0 : index
    %13 = vector.load %arg2[%c2_13, %c0_14, %c0_15] : memref<3x256x256xbf16, #tpu.memory_space<vmem>>, vector<1x256x256xbf16>
    %14 = vector.shape_cast %13 : vector<1x256x256xbf16> to vector<256x256xbf16>
    %cst_16 = arith.constant dense<0.000000e+00> : vector<16x256xf32>
    %15 = tpu.matmul %5, %14, %cst_16 {dimension_numbers = #tpu.dot_dimension_numbers<[1], [0], [0], [1], [0, 0, 1, 1], [], []>} : vector<16x256xbf16>, vector<256x256xbf16>, vector<16x256xf32> -> vector<16x256xf32>
    %16 = arith.addf %12, %15 : vector<16x256xf32>
    %c0_17 = arith.constant 0 : index
    %c0_18 = arith.constant 0 : index
    %17 = vector.load %arg3[%c0_17, %c0_18] : memref<1x256xf32, #tpu.memory_space<vmem>>, vector<1x256xf32>
    %18 = vector.broadcast %17 : vector<1x256xf32> to vector<16x256xf32>
    %19 = arith.addf %16, %18 : vector<16x256xf32>
    %cst_19 = arith.constant 0.000000e+00 : f32
    %20 = vector.broadcast %cst_19 : f32 to vector<16x256xf32>
    %21 = arith.maximumf %19, %20 : vector<16x256xf32>
    %cst_20 = arith.constant 0.000000e+00 : f32
    %22 = vector.broadcast %cst_20 : f32 to vector<18x256xf32>
    %c0_21 = arith.constant 0 : index
    %c0_22 = arith.constant 0 : index
    %23 = vector.load %arg7[%c0_21, %c0_22] : memref<18x256xf32, #tpu.memory_space<vmem>>, vector<18x256xf32>
    tpu.vector_store %arg7[%c0_21, %c0_22], %22 {strides = array<i32>} : memref<18x256xf32, #tpu.memory_space<vmem>>, vector<18x256xf32>,
    %c1_23 = arith.constant 1 : index
    %c0_24 = arith.constant 0 : index
    %24 = vector.load %arg7[%c1_23, %c0_24] : memref<18x256xf32, #tpu.memory_space<vmem>>, vector<16x256xf32>
    tpu.vector_store %arg7[%c1_23, %c0_24], %21 {strides = array<i32>} : memref<18x256xf32, #tpu.memory_space<vmem>>, vector<16x256xf32>,
    %c0_25 = arith.constant 0 : index
    %c0_26 = arith.constant 0 : index
    %25 = vector.load %arg7[%c0_25, %c0_26] : memref<18x256xf32, #tpu.memory_space<vmem>>, vector<16x256xf32>
    %26 = arith.truncf %25 : vector<16x256xf32> to vector<16x256xbf16>
    %c1_27 = arith.constant 1 : index
    %c0_28 = arith.constant 0 : index
    %27 = vector.load %arg7[%c1_27, %c0_28] : memref<18x256xf32, #tpu.memory_space<vmem>>, vector<16x256xf32>
    %28 = arith.truncf %27 : vector<16x256xf32> to vector<16x256xbf16>
    %c2_29 = arith.constant 2 : index
    %c0_30 = arith.constant 0 : index
    %29 = vector.load %arg7[%c2_29, %c0_30] : memref<18x256xf32, #tpu.memory_space<vmem>>, vector<16x256xf32>
    %30 = arith.truncf %29 : vector<16x256xf32> to vector<16x256xbf16>
    %c0_31 = arith.constant 0 : index
    %c0_32 = arith.constant 0 : index
    %c0_33 = arith.constant 0 : index
    %31 = vector.load %arg4[%c0_31, %c0_32, %c0_33] : memref<3x256x256xbf16, #tpu.memory_space<vmem>>, vector<1x256x256xbf16>
    %32 = vector.shape_cast %31 : vector<1x256x256xbf16> to vector<256x256xbf16>
    %cst_34 = arith.constant dense<0.000000e+00> : vector<16x256xf32>
    %33 = tpu.matmul %26, %32, %cst_34 {dimension_numbers = #tpu.dot_dimension_numbers<[1], [0], [0], [1], [0, 0, 1, 1], [], []>} : vector<16x256xbf16>, vector<256x256xbf16>, vector<16x256xf32> -> vector<16x256xf32>
    %c1_35 = arith.constant 1 : index
    %c0_36 = arith.constant 0 : index
    %c0_37 = arith.constant 0 : index
    %34 = vector.load %arg4[%c1_35, %c0_36, %c0_37] : memref<3x256x256xbf16, #tpu.memory_space<vmem>>, vector<1x256x256xbf16>
    %35 = vector.shape_cast %34 : vector<1x256x256xbf16> to vector<256x256xbf16>
    %cst_38 = arith.constant dense<0.000000e+00> : vector<16x256xf32>
    %36 = tpu.matmul %28, %35, %cst_38 {dimension_numbers = #tpu.dot_dimension_numbers<[1], [0], [0], [1], [0, 0, 1, 1], [], []>} : vector<16x256xbf16>, vector<256x256xbf16>, vector<16x256xf32> -> vector<16x256xf32>
    %37 = arith.addf %33, %36 : vector<16x256xf32>
    %c2_39 = arith.constant 2 : index
    %c0_40 = arith.constant 0 : index
    %c0_41 = arith.constant 0 : index
    %38 = vector.load %arg4[%c2_39, %c0_40, %c0_41] : memref<3x256x256xbf16, #tpu.memory_space<vmem>>, vector<1x256x256xbf16>
    %39 = vector.shape_cast %38 : vector<1x256x256xbf16> to vector<256x256xbf16>
    %cst_42 = arith.constant dense<0.000000e+00> : vector<16x256xf32>
    %40 = tpu.matmul %30, %39, %cst_42 {dimension_numbers = #tpu.dot_dimension_numbers<[1], [0], [0], [1], [0, 0, 1, 1], [], []>} : vector<16x256xbf16>, vector<256x256xbf16>, vector<16x256xf32> -> vector<16x256xf32>
    %41 = arith.addf %37, %40 : vector<16x256xf32>
    %c0_43 = arith.constant 0 : index
    %c1_44 = arith.constant 1 : index
    %c0_45 = arith.constant 0 : index
    %42 = vector.load %arg1[%c0_43, %c1_44, %c0_45] : memref<1x18x256xbf16, #tpu.memory_space<vmem>>, vector<1x16x256xbf16>
    %43 = vector.shape_cast %42 : vector<1x16x256xbf16> to vector<16x256xbf16>
    %44 = arith.extf %43 : vector<16x256xbf16> to vector<16x256xf32>
    %c0_46 = arith.constant 0 : index
    %c0_47 = arith.constant 0 : index
    %45 = vector.load %arg5[%c0_46, %c0_47] : memref<1x256xf32, #tpu.memory_space<vmem>>, vector<1x256xf32>
    %46 = vector.broadcast %45 : vector<1x256xf32> to vector<16x256xf32>
    %47 = arith.addf %41, %46 : vector<16x256xf32>
    %48 = arith.addf %47, %44 : vector<16x256xf32>
    %cst_48 = arith.constant 0.000000e+00 : f32
    %49 = vector.broadcast %cst_48 : f32 to vector<16x256xf32>
    %50 = arith.maximumf %48, %49 : vector<16x256xf32>
    %c1_49 = arith.constant 1 : index
    %c0_50 = arith.constant 0 : index
    %51 = vector.load %arg7[%c1_49, %c0_50] : memref<18x256xf32, #tpu.memory_space<vmem>>, vector<16x256xf32>
    tpu.vector_store %arg7[%c1_49, %c0_50], %50 {strides = array<i32>} : memref<18x256xf32, #tpu.memory_space<vmem>>, vector<16x256xf32>,
    %c0_51 = arith.constant 0 : index
    %c0_52 = arith.constant 0 : index
    %52 = vector.load %arg7[%c0_51, %c0_52] : memref<18x256xf32, #tpu.memory_space<vmem>>, vector<18x256xf32>
    %53 = arith.truncf %52 : vector<18x256xf32> to vector<18x256xbf16>
    %c0_53 = arith.constant 0 : index
    %c0_54 = arith.constant 0 : index
    %c0_55 = arith.constant 0 : index
    %54 = vector.load %arg6[%c0_53, %c0_54, %c0_55] : memref<1x18x256xbf16, #tpu.memory_space<vmem>>, vector<1x18x256xbf16>
    %55 = vector.shape_cast %54 : vector<1x18x256xbf16> to vector<18x256xbf16>
    %56 = vector.shape_cast %53 : vector<18x256xbf16> to vector<1x18x256xbf16>
    tpu.vector_store %arg6[%c0_53, %c0_54, %c0_55], %56 {strides = array<i32>} : memref<1x18x256xbf16, #tpu.memory_space<vmem>>, vector<1x18x256xbf16>,
    return
  }
  func.func @transform_0(%arg0: i32) -> (i32, i32, i32) {
    %c0_i32 = arith.constant 0 : i32
    %c0_i32_0 = arith.constant 0 : i32
    %c0_i32_1 = arith.constant 0 : i32
    return %arg0, %c0_i32, %c0_i32_0 : i32, i32, i32
  }
  func.func @transform_1(%arg0: i32) -> (i32, i32, i32) {
    %c0_i32 = arith.constant 0 : i32
    %c0_i32_0 = arith.constant 0 : i32
    %c0_i32_1 = arith.constant 0 : i32
    %c0_i32_2 = arith.constant 0 : i32
    return %c0_i32, %c0_i32_0, %c0_i32_1 : i32, i32, i32
  }
  func.func @transform_2(%arg0: i32) -> (i32, i32) {
    %c0_i32 = arith.constant 0 : i32
    %c0_i32_0 = arith.constant 0 : i32
    %c0_i32_1 = arith.constant 0 : i32
    return %c0_i32, %c0_i32_0 : i32, i32
  }
  func.func @transform_3(%arg0: i32) -> (i32, i32, i32) {
    %c0_i32 = arith.constant 0 : i32
    %c0_i32_0 = arith.constant 0 : i32
    %c0_i32_1 = arith.constant 0 : i32
    %c0_i32_2 = arith.constant 0 : i32
    return %c0_i32, %c0_i32_0, %c0_i32_1 : i32, i32, i32
  }
  func.func @transform_4(%arg0: i32) -> (i32, i32) {
    %c0_i32 = arith.constant 0 : i32
    %c0_i32_0 = arith.constant 0 : i32
    %c0_i32_1 = arith.constant 0 : i32
    return %c0_i32, %c0_i32_0 : i32, i32
  }
  func.func @transform_5(%arg0: i32) -> (i32, i32, i32) {
    %c0_i32 = arith.constant 0 : i32
    %c0_i32_0 = arith.constant 0 : i32
    %c0_i32_1 = arith.constant 0 : i32
    return %arg0, %c0_i32, %c0_i32_0 : i32, i32, i32
  }
}

module attributes {stable_mosaic.version = 11 : i64} {
  func.func @_block_ds_kernel(%arg0: i32, %arg1: memref<1x9x256xbf16, #tpu.memory_space<vmem>>, %arg2: memref<1x9x256xbf16, #tpu.memory_space<vmem>>, %arg3: memref<3x256x256xbf16, #tpu.memory_space<vmem>>, %arg4: memref<1x256xf32, #tpu.memory_space<vmem>>, %arg5: memref<3x256x256xbf16, #tpu.memory_space<vmem>>, %arg6: memref<1x256xf32, #tpu.memory_space<vmem>>, %arg7: memref<256x256xbf16, #tpu.memory_space<vmem>>, %arg8: memref<1x256xf32, #tpu.memory_space<vmem>>, %arg9: memref<1x10x256xbf16, #tpu.memory_space<vmem>>, %arg10: memref<10x256xf32, #tpu.memory_space<vmem>>) attributes {dimension_semantics = [#tpu.dimension_semantics<parallel>], iteration_bounds = array<i64: 2>, scalar_prefetch = 0 : i64, scratch_operands = 1 : i64, tpu.core_type = #tpu.core_type<tc>, window_params = [{transform_indices = @transform_0, window_bounds = array<i64: 1, 9, 256>}, {transform_indices = @transform_1, window_bounds = array<i64: 1, 9, 256>}, {pipeline_mode = #tpu.pipeline_mode<synchronous>, transform_indices = @transform_2, window_bounds = array<i64: 3, 256, 256>}, {pipeline_mode = #tpu.pipeline_mode<synchronous>, transform_indices = @transform_3, window_bounds = array<i64: 1, 256>}, {pipeline_mode = #tpu.pipeline_mode<synchronous>, transform_indices = @transform_4, window_bounds = array<i64: 3, 256, 256>}, {pipeline_mode = #tpu.pipeline_mode<synchronous>, transform_indices = @transform_5, window_bounds = array<i64: 1, 256>}, {pipeline_mode = #tpu.pipeline_mode<synchronous>, transform_indices = @transform_6, window_bounds = array<i64: 256, 256>}, {pipeline_mode = #tpu.pipeline_mode<synchronous>, transform_indices = @transform_7, window_bounds = array<i64: 1, 256>}, {transform_indices = @transform_8, window_bounds = array<i64: 1, 10, 256>}]} {
    %c0 = arith.constant 0 : index
    %c0_0 = arith.constant 0 : index
    %c0_1 = arith.constant 0 : index
    %0 = vector.load %arg1[%c0, %c0_0, %c0_1] : memref<1x9x256xbf16, #tpu.memory_space<vmem>>, vector<1x8x256xbf16>
    %1 = vector.shape_cast %0 : vector<1x8x256xbf16> to vector<8x256xbf16>
    %c0_2 = arith.constant 0 : index
    %c0_3 = arith.constant 0 : index
    %c0_4 = arith.constant 0 : index
    %2 = vector.load %arg2[%c0_2, %c0_3, %c0_4] : memref<1x9x256xbf16, #tpu.memory_space<vmem>>, vector<1x8x256xbf16>
    %3 = vector.shape_cast %2 : vector<1x8x256xbf16> to vector<8x256xbf16>
    %c0_5 = arith.constant 0 : index
    %c1 = arith.constant 1 : index
    %c0_6 = arith.constant 0 : index
    %4 = vector.load %arg1[%c0_5, %c1, %c0_6] : memref<1x9x256xbf16, #tpu.memory_space<vmem>>, vector<1x8x256xbf16>
    %5 = vector.shape_cast %4 : vector<1x8x256xbf16> to vector<8x256xbf16>
    %c0_7 = arith.constant 0 : index
    %c0_8 = arith.constant 0 : index
    %c0_9 = arith.constant 0 : index
    %6 = vector.load %arg3[%c0_7, %c0_8, %c0_9] : memref<3x256x256xbf16, #tpu.memory_space<vmem>>, vector<1x256x256xbf16>
    %7 = vector.shape_cast %6 : vector<1x256x256xbf16> to vector<256x256xbf16>
    %cst = arith.constant dense<0.000000e+00> : vector<8x256xf32>
    %8 = tpu.matmul %1, %7, %cst {dimension_numbers = #tpu.dot_dimension_numbers<[1], [0], [0], [1], [0, 0, 1, 1], [], []>} : vector<8x256xbf16>, vector<256x256xbf16>, vector<8x256xf32> -> vector<8x256xf32>
    %c1_10 = arith.constant 1 : index
    %c0_11 = arith.constant 0 : index
    %c0_12 = arith.constant 0 : index
    %9 = vector.load %arg3[%c1_10, %c0_11, %c0_12] : memref<3x256x256xbf16, #tpu.memory_space<vmem>>, vector<1x256x256xbf16>
    %10 = vector.shape_cast %9 : vector<1x256x256xbf16> to vector<256x256xbf16>
    %cst_13 = arith.constant dense<0.000000e+00> : vector<8x256xf32>
    %11 = tpu.matmul %3, %10, %cst_13 {dimension_numbers = #tpu.dot_dimension_numbers<[1], [0], [0], [1], [0, 0, 1, 1], [], []>} : vector<8x256xbf16>, vector<256x256xbf16>, vector<8x256xf32> -> vector<8x256xf32>
    %12 = arith.addf %8, %11 : vector<8x256xf32>
    %c2 = arith.constant 2 : index
    %c0_14 = arith.constant 0 : index
    %c0_15 = arith.constant 0 : index
    %13 = vector.load %arg3[%c2, %c0_14, %c0_15] : memref<3x256x256xbf16, #tpu.memory_space<vmem>>, vector<1x256x256xbf16>
    %14 = vector.shape_cast %13 : vector<1x256x256xbf16> to vector<256x256xbf16>
    %cst_16 = arith.constant dense<0.000000e+00> : vector<8x256xf32>
    %15 = tpu.matmul %5, %14, %cst_16 {dimension_numbers = #tpu.dot_dimension_numbers<[1], [0], [0], [1], [0, 0, 1, 1], [], []>} : vector<8x256xbf16>, vector<256x256xbf16>, vector<8x256xf32> -> vector<8x256xf32>
    %16 = arith.addf %12, %15 : vector<8x256xf32>
    %c0_17 = arith.constant 0 : index
    %c0_18 = arith.constant 0 : index
    %17 = vector.load %arg4[%c0_17, %c0_18] : memref<1x256xf32, #tpu.memory_space<vmem>>, vector<1x256xf32>
    %18 = vector.broadcast %17 : vector<1x256xf32> to vector<8x256xf32>
    %19 = arith.addf %16, %18 : vector<8x256xf32>
    %cst_19 = arith.constant 0.000000e+00 : f32
    %20 = vector.broadcast %cst_19 : f32 to vector<8x256xf32>
    %21 = arith.maximumf %19, %20 : vector<8x256xf32>
    %cst_20 = arith.constant 0.000000e+00 : f32
    %22 = vector.broadcast %cst_20 : f32 to vector<10x256xf32>
    %c0_21 = arith.constant 0 : index
    %c0_22 = arith.constant 0 : index
    %23 = vector.load %arg10[%c0_21, %c0_22] : memref<10x256xf32, #tpu.memory_space<vmem>>, vector<10x256xf32>
    tpu.vector_store %arg10[%c0_21, %c0_22], %22 {strides = array<i32>} : memref<10x256xf32, #tpu.memory_space<vmem>>, vector<10x256xf32>,
    %c1_23 = arith.constant 1 : index
    %c0_24 = arith.constant 0 : index
    %24 = vector.load %arg10[%c1_23, %c0_24] : memref<10x256xf32, #tpu.memory_space<vmem>>, vector<8x256xf32>
    tpu.vector_store %arg10[%c1_23, %c0_24], %21 {strides = array<i32>} : memref<10x256xf32, #tpu.memory_space<vmem>>, vector<8x256xf32>,
    %c0_25 = arith.constant 0 : index
    %c0_26 = arith.constant 0 : index
    %25 = vector.load %arg10[%c0_25, %c0_26] : memref<10x256xf32, #tpu.memory_space<vmem>>, vector<8x256xf32>
    %26 = arith.truncf %25 : vector<8x256xf32> to vector<8x256xbf16>
    %c1_27 = arith.constant 1 : index
    %c0_28 = arith.constant 0 : index
    %27 = vector.load %arg10[%c1_27, %c0_28] : memref<10x256xf32, #tpu.memory_space<vmem>>, vector<8x256xf32>
    %28 = arith.truncf %27 : vector<8x256xf32> to vector<8x256xbf16>
    %c2_29 = arith.constant 2 : index
    %c0_30 = arith.constant 0 : index
    %29 = vector.load %arg10[%c2_29, %c0_30] : memref<10x256xf32, #tpu.memory_space<vmem>>, vector<8x256xf32>
    %30 = arith.truncf %29 : vector<8x256xf32> to vector<8x256xbf16>
    %c0_31 = arith.constant 0 : index
    %c0_32 = arith.constant 0 : index
    %c0_33 = arith.constant 0 : index
    %31 = vector.load %arg5[%c0_31, %c0_32, %c0_33] : memref<3x256x256xbf16, #tpu.memory_space<vmem>>, vector<1x256x256xbf16>
    %32 = vector.shape_cast %31 : vector<1x256x256xbf16> to vector<256x256xbf16>
    %cst_34 = arith.constant dense<0.000000e+00> : vector<8x256xf32>
    %33 = tpu.matmul %26, %32, %cst_34 {dimension_numbers = #tpu.dot_dimension_numbers<[1], [0], [0], [1], [0, 0, 1, 1], [], []>} : vector<8x256xbf16>, vector<256x256xbf16>, vector<8x256xf32> -> vector<8x256xf32>
    %c1_35 = arith.constant 1 : index
    %c0_36 = arith.constant 0 : index
    %c0_37 = arith.constant 0 : index
    %34 = vector.load %arg5[%c1_35, %c0_36, %c0_37] : memref<3x256x256xbf16, #tpu.memory_space<vmem>>, vector<1x256x256xbf16>
    %35 = vector.shape_cast %34 : vector<1x256x256xbf16> to vector<256x256xbf16>
    %cst_38 = arith.constant dense<0.000000e+00> : vector<8x256xf32>
    %36 = tpu.matmul %28, %35, %cst_38 {dimension_numbers = #tpu.dot_dimension_numbers<[1], [0], [0], [1], [0, 0, 1, 1], [], []>} : vector<8x256xbf16>, vector<256x256xbf16>, vector<8x256xf32> -> vector<8x256xf32>
    %37 = arith.addf %33, %36 : vector<8x256xf32>
    %c2_39 = arith.constant 2 : index
    %c0_40 = arith.constant 0 : index
    %c0_41 = arith.constant 0 : index
    %38 = vector.load %arg5[%c2_39, %c0_40, %c0_41] : memref<3x256x256xbf16, #tpu.memory_space<vmem>>, vector<1x256x256xbf16>
    %39 = vector.shape_cast %38 : vector<1x256x256xbf16> to vector<256x256xbf16>
    %cst_42 = arith.constant dense<0.000000e+00> : vector<8x256xf32>
    %40 = tpu.matmul %30, %39, %cst_42 {dimension_numbers = #tpu.dot_dimension_numbers<[1], [0], [0], [1], [0, 0, 1, 1], [], []>} : vector<8x256xbf16>, vector<256x256xbf16>, vector<8x256xf32> -> vector<8x256xf32>
    %41 = arith.addf %37, %40 : vector<8x256xf32>
    %c0_43 = arith.constant 0 : index
    %c0_44 = arith.constant 0 : index
    %c0_45 = arith.constant 0 : index
    %42 = vector.load %arg2[%c0_43, %c0_44, %c0_45] : memref<1x9x256xbf16, #tpu.memory_space<vmem>>, vector<1x8x256xbf16>
    %43 = vector.shape_cast %42 : vector<1x8x256xbf16> to vector<8x256xbf16>
    %c0_46 = arith.constant 0 : index
    %c0_47 = arith.constant 0 : index
    %44 = vector.load %arg7[%c0_46, %c0_47] : memref<256x256xbf16, #tpu.memory_space<vmem>>, vector<256x256xbf16>
    %cst_48 = arith.constant dense<0.000000e+00> : vector<8x256xf32>
    %45 = tpu.matmul %43, %44, %cst_48 {dimension_numbers = #tpu.dot_dimension_numbers<[1], [0], [0], [1], [0, 0, 1, 1], [], []>} : vector<8x256xbf16>, vector<256x256xbf16>, vector<8x256xf32> -> vector<8x256xf32>
    %c0_49 = arith.constant 0 : index
    %c0_50 = arith.constant 0 : index
    %46 = vector.load %arg8[%c0_49, %c0_50] : memref<1x256xf32, #tpu.memory_space<vmem>>, vector<1x256xf32>
    %47 = vector.broadcast %46 : vector<1x256xf32> to vector<8x256xf32>
    %48 = arith.addf %45, %47 : vector<8x256xf32>
    %c0_51 = arith.constant 0 : index
    %c0_52 = arith.constant 0 : index
    %49 = vector.load %arg6[%c0_51, %c0_52] : memref<1x256xf32, #tpu.memory_space<vmem>>, vector<1x256xf32>
    %50 = vector.broadcast %49 : vector<1x256xf32> to vector<8x256xf32>
    %51 = arith.addf %41, %50 : vector<8x256xf32>
    %52 = arith.addf %51, %48 : vector<8x256xf32>
    %cst_53 = arith.constant 0.000000e+00 : f32
    %53 = vector.broadcast %cst_53 : f32 to vector<8x256xf32>
    %54 = arith.maximumf %52, %53 : vector<8x256xf32>
    %c1_54 = arith.constant 1 : index
    %c0_55 = arith.constant 0 : index
    %55 = vector.load %arg10[%c1_54, %c0_55] : memref<10x256xf32, #tpu.memory_space<vmem>>, vector<8x256xf32>
    tpu.vector_store %arg10[%c1_54, %c0_55], %54 {strides = array<i32>} : memref<10x256xf32, #tpu.memory_space<vmem>>, vector<8x256xf32>,
    %c0_56 = arith.constant 0 : index
    %c0_57 = arith.constant 0 : index
    %56 = vector.load %arg10[%c0_56, %c0_57] : memref<10x256xf32, #tpu.memory_space<vmem>>, vector<10x256xf32>
    %57 = arith.truncf %56 : vector<10x256xf32> to vector<10x256xbf16>
    %c0_58 = arith.constant 0 : index
    %c0_59 = arith.constant 0 : index
    %c0_60 = arith.constant 0 : index
    %58 = vector.load %arg9[%c0_58, %c0_59, %c0_60] : memref<1x10x256xbf16, #tpu.memory_space<vmem>>, vector<1x10x256xbf16>
    %59 = vector.shape_cast %58 : vector<1x10x256xbf16> to vector<10x256xbf16>
    %60 = vector.shape_cast %57 : vector<10x256xbf16> to vector<1x10x256xbf16>
    tpu.vector_store %arg9[%c0_58, %c0_59, %c0_60], %60 {strides = array<i32>} : memref<1x10x256xbf16, #tpu.memory_space<vmem>>, vector<1x10x256xbf16>,
    return
  }
  func.func @transform_0(%arg0: i32) -> (i32, i32, i32) {
    %c0_i32 = arith.constant 0 : i32
    %c0_i32_0 = arith.constant 0 : i32
    %c0_i32_1 = arith.constant 0 : i32
    return %arg0, %c0_i32, %c0_i32_0 : i32, i32, i32
  }
  func.func @transform_1(%arg0: i32) -> (i32, i32, i32) {
    %c0_i32 = arith.constant 0 : i32
    %c0_i32_0 = arith.constant 0 : i32
    %c0_i32_1 = arith.constant 0 : i32
    return %arg0, %c0_i32, %c0_i32_0 : i32, i32, i32
  }
  func.func @transform_2(%arg0: i32) -> (i32, i32, i32) {
    %c0_i32 = arith.constant 0 : i32
    %c0_i32_0 = arith.constant 0 : i32
    %c0_i32_1 = arith.constant 0 : i32
    %c0_i32_2 = arith.constant 0 : i32
    return %c0_i32, %c0_i32_0, %c0_i32_1 : i32, i32, i32
  }
  func.func @transform_3(%arg0: i32) -> (i32, i32) {
    %c0_i32 = arith.constant 0 : i32
    %c0_i32_0 = arith.constant 0 : i32
    %c0_i32_1 = arith.constant 0 : i32
    return %c0_i32, %c0_i32_0 : i32, i32
  }
  func.func @transform_4(%arg0: i32) -> (i32, i32, i32) {
    %c0_i32 = arith.constant 0 : i32
    %c0_i32_0 = arith.constant 0 : i32
    %c0_i32_1 = arith.constant 0 : i32
    %c0_i32_2 = arith.constant 0 : i32
    return %c0_i32, %c0_i32_0, %c0_i32_1 : i32, i32, i32
  }
  func.func @transform_5(%arg0: i32) -> (i32, i32) {
    %c0_i32 = arith.constant 0 : i32
    %c0_i32_0 = arith.constant 0 : i32
    %c0_i32_1 = arith.constant 0 : i32
    return %c0_i32, %c0_i32_0 : i32, i32
  }
  func.func @transform_6(%arg0: i32) -> (i32, i32) {
    %c0_i32 = arith.constant 0 : i32
    %c0_i32_0 = arith.constant 0 : i32
    %c0_i32_1 = arith.constant 0 : i32
    return %c0_i32, %c0_i32_0 : i32, i32
  }
  func.func @transform_7(%arg0: i32) -> (i32, i32) {
    %c0_i32 = arith.constant 0 : i32
    %c0_i32_0 = arith.constant 0 : i32
    %c0_i32_1 = arith.constant 0 : i32
    return %c0_i32, %c0_i32_0 : i32, i32
  }
  func.func @transform_8(%arg0: i32) -> (i32, i32, i32) {
    %c0_i32 = arith.constant 0 : i32
    %c0_i32_0 = arith.constant 0 : i32
    %c0_i32_1 = arith.constant 0 : i32
    return %arg0, %c0_i32, %c0_i32_0 : i32, i32, i32
  }
}

module attributes {stable_mosaic.version = 11 : i64} {
  func.func @_block_id_kernel(%arg0: i32, %arg1: memref<1x10x256xbf16, #tpu.memory_space<vmem>>, %arg2: memref<3x256x256xbf16, #tpu.memory_space<vmem>>, %arg3: memref<1x256xf32, #tpu.memory_space<vmem>>, %arg4: memref<3x256x256xbf16, #tpu.memory_space<vmem>>, %arg5: memref<1x256xf32, #tpu.memory_space<vmem>>, %arg6: memref<1x10x256xbf16, #tpu.memory_space<vmem>>, %arg7: memref<10x256xf32, #tpu.memory_space<vmem>>) attributes {dimension_semantics = [#tpu.dimension_semantics<parallel>], iteration_bounds = array<i64: 2>, scalar_prefetch = 0 : i64, scratch_operands = 1 : i64, tpu.core_type = #tpu.core_type<tc>, window_params = [{transform_indices = @transform_0, window_bounds = array<i64: 1, 10, 256>}, {pipeline_mode = #tpu.pipeline_mode<synchronous>, transform_indices = @transform_1, window_bounds = array<i64: 3, 256, 256>}, {pipeline_mode = #tpu.pipeline_mode<synchronous>, transform_indices = @transform_2, window_bounds = array<i64: 1, 256>}, {pipeline_mode = #tpu.pipeline_mode<synchronous>, transform_indices = @transform_3, window_bounds = array<i64: 3, 256, 256>}, {pipeline_mode = #tpu.pipeline_mode<synchronous>, transform_indices = @transform_4, window_bounds = array<i64: 1, 256>}, {transform_indices = @transform_5, window_bounds = array<i64: 1, 10, 256>}]} {
    %c0 = arith.constant 0 : index
    %c0_0 = arith.constant 0 : index
    %c0_1 = arith.constant 0 : index
    %0 = vector.load %arg1[%c0, %c0_0, %c0_1] : memref<1x10x256xbf16, #tpu.memory_space<vmem>>, vector<1x8x256xbf16>
    %1 = vector.shape_cast %0 : vector<1x8x256xbf16> to vector<8x256xbf16>
    %c0_2 = arith.constant 0 : index
    %c1 = arith.constant 1 : index
    %c0_3 = arith.constant 0 : index
    %2 = vector.load %arg1[%c0_2, %c1, %c0_3] : memref<1x10x256xbf16, #tpu.memory_space<vmem>>, vector<1x8x256xbf16>
    %3 = vector.shape_cast %2 : vector<1x8x256xbf16> to vector<8x256xbf16>
    %c0_4 = arith.constant 0 : index
    %c2 = arith.constant 2 : index
    %c0_5 = arith.constant 0 : index
    %4 = vector.load %arg1[%c0_4, %c2, %c0_5] : memref<1x10x256xbf16, #tpu.memory_space<vmem>>, vector<1x8x256xbf16>
    %5 = vector.shape_cast %4 : vector<1x8x256xbf16> to vector<8x256xbf16>
    %c0_6 = arith.constant 0 : index
    %c0_7 = arith.constant 0 : index
    %c0_8 = arith.constant 0 : index
    %6 = vector.load %arg2[%c0_6, %c0_7, %c0_8] : memref<3x256x256xbf16, #tpu.memory_space<vmem>>, vector<1x256x256xbf16>
    %7 = vector.shape_cast %6 : vector<1x256x256xbf16> to vector<256x256xbf16>
    %cst = arith.constant dense<0.000000e+00> : vector<8x256xf32>
    %8 = tpu.matmul %1, %7, %cst {dimension_numbers = #tpu.dot_dimension_numbers<[1], [0], [0], [1], [0, 0, 1, 1], [], []>} : vector<8x256xbf16>, vector<256x256xbf16>, vector<8x256xf32> -> vector<8x256xf32>
    %c1_9 = arith.constant 1 : index
    %c0_10 = arith.constant 0 : index
    %c0_11 = arith.constant 0 : index
    %9 = vector.load %arg2[%c1_9, %c0_10, %c0_11] : memref<3x256x256xbf16, #tpu.memory_space<vmem>>, vector<1x256x256xbf16>
    %10 = vector.shape_cast %9 : vector<1x256x256xbf16> to vector<256x256xbf16>
    %cst_12 = arith.constant dense<0.000000e+00> : vector<8x256xf32>
    %11 = tpu.matmul %3, %10, %cst_12 {dimension_numbers = #tpu.dot_dimension_numbers<[1], [0], [0], [1], [0, 0, 1, 1], [], []>} : vector<8x256xbf16>, vector<256x256xbf16>, vector<8x256xf32> -> vector<8x256xf32>
    %12 = arith.addf %8, %11 : vector<8x256xf32>
    %c2_13 = arith.constant 2 : index
    %c0_14 = arith.constant 0 : index
    %c0_15 = arith.constant 0 : index
    %13 = vector.load %arg2[%c2_13, %c0_14, %c0_15] : memref<3x256x256xbf16, #tpu.memory_space<vmem>>, vector<1x256x256xbf16>
    %14 = vector.shape_cast %13 : vector<1x256x256xbf16> to vector<256x256xbf16>
    %cst_16 = arith.constant dense<0.000000e+00> : vector<8x256xf32>
    %15 = tpu.matmul %5, %14, %cst_16 {dimension_numbers = #tpu.dot_dimension_numbers<[1], [0], [0], [1], [0, 0, 1, 1], [], []>} : vector<8x256xbf16>, vector<256x256xbf16>, vector<8x256xf32> -> vector<8x256xf32>
    %16 = arith.addf %12, %15 : vector<8x256xf32>
    %c0_17 = arith.constant 0 : index
    %c0_18 = arith.constant 0 : index
    %17 = vector.load %arg3[%c0_17, %c0_18] : memref<1x256xf32, #tpu.memory_space<vmem>>, vector<1x256xf32>
    %18 = vector.broadcast %17 : vector<1x256xf32> to vector<8x256xf32>
    %19 = arith.addf %16, %18 : vector<8x256xf32>
    %cst_19 = arith.constant 0.000000e+00 : f32
    %20 = vector.broadcast %cst_19 : f32 to vector<8x256xf32>
    %21 = arith.maximumf %19, %20 : vector<8x256xf32>
    %cst_20 = arith.constant 0.000000e+00 : f32
    %22 = vector.broadcast %cst_20 : f32 to vector<10x256xf32>
    %c0_21 = arith.constant 0 : index
    %c0_22 = arith.constant 0 : index
    %23 = vector.load %arg7[%c0_21, %c0_22] : memref<10x256xf32, #tpu.memory_space<vmem>>, vector<10x256xf32>
    tpu.vector_store %arg7[%c0_21, %c0_22], %22 {strides = array<i32>} : memref<10x256xf32, #tpu.memory_space<vmem>>, vector<10x256xf32>,
    %c1_23 = arith.constant 1 : index
    %c0_24 = arith.constant 0 : index
    %24 = vector.load %arg7[%c1_23, %c0_24] : memref<10x256xf32, #tpu.memory_space<vmem>>, vector<8x256xf32>
    tpu.vector_store %arg7[%c1_23, %c0_24], %21 {strides = array<i32>} : memref<10x256xf32, #tpu.memory_space<vmem>>, vector<8x256xf32>,
    %c0_25 = arith.constant 0 : index
    %c0_26 = arith.constant 0 : index
    %25 = vector.load %arg7[%c0_25, %c0_26] : memref<10x256xf32, #tpu.memory_space<vmem>>, vector<8x256xf32>
    %26 = arith.truncf %25 : vector<8x256xf32> to vector<8x256xbf16>
    %c1_27 = arith.constant 1 : index
    %c0_28 = arith.constant 0 : index
    %27 = vector.load %arg7[%c1_27, %c0_28] : memref<10x256xf32, #tpu.memory_space<vmem>>, vector<8x256xf32>
    %28 = arith.truncf %27 : vector<8x256xf32> to vector<8x256xbf16>
    %c2_29 = arith.constant 2 : index
    %c0_30 = arith.constant 0 : index
    %29 = vector.load %arg7[%c2_29, %c0_30] : memref<10x256xf32, #tpu.memory_space<vmem>>, vector<8x256xf32>
    %30 = arith.truncf %29 : vector<8x256xf32> to vector<8x256xbf16>
    %c0_31 = arith.constant 0 : index
    %c0_32 = arith.constant 0 : index
    %c0_33 = arith.constant 0 : index
    %31 = vector.load %arg4[%c0_31, %c0_32, %c0_33] : memref<3x256x256xbf16, #tpu.memory_space<vmem>>, vector<1x256x256xbf16>
    %32 = vector.shape_cast %31 : vector<1x256x256xbf16> to vector<256x256xbf16>
    %cst_34 = arith.constant dense<0.000000e+00> : vector<8x256xf32>
    %33 = tpu.matmul %26, %32, %cst_34 {dimension_numbers = #tpu.dot_dimension_numbers<[1], [0], [0], [1], [0, 0, 1, 1], [], []>} : vector<8x256xbf16>, vector<256x256xbf16>, vector<8x256xf32> -> vector<8x256xf32>
    %c1_35 = arith.constant 1 : index
    %c0_36 = arith.constant 0 : index
    %c0_37 = arith.constant 0 : index
    %34 = vector.load %arg4[%c1_35, %c0_36, %c0_37] : memref<3x256x256xbf16, #tpu.memory_space<vmem>>, vector<1x256x256xbf16>
    %35 = vector.shape_cast %34 : vector<1x256x256xbf16> to vector<256x256xbf16>
    %cst_38 = arith.constant dense<0.000000e+00> : vector<8x256xf32>
    %36 = tpu.matmul %28, %35, %cst_38 {dimension_numbers = #tpu.dot_dimension_numbers<[1], [0], [0], [1], [0, 0, 1, 1], [], []>} : vector<8x256xbf16>, vector<256x256xbf16>, vector<8x256xf32> -> vector<8x256xf32>
    %37 = arith.addf %33, %36 : vector<8x256xf32>
    %c2_39 = arith.constant 2 : index
    %c0_40 = arith.constant 0 : index
    %c0_41 = arith.constant 0 : index
    %38 = vector.load %arg4[%c2_39, %c0_40, %c0_41] : memref<3x256x256xbf16, #tpu.memory_space<vmem>>, vector<1x256x256xbf16>
    %39 = vector.shape_cast %38 : vector<1x256x256xbf16> to vector<256x256xbf16>
    %cst_42 = arith.constant dense<0.000000e+00> : vector<8x256xf32>
    %40 = tpu.matmul %30, %39, %cst_42 {dimension_numbers = #tpu.dot_dimension_numbers<[1], [0], [0], [1], [0, 0, 1, 1], [], []>} : vector<8x256xbf16>, vector<256x256xbf16>, vector<8x256xf32> -> vector<8x256xf32>
    %41 = arith.addf %37, %40 : vector<8x256xf32>
    %c0_43 = arith.constant 0 : index
    %c1_44 = arith.constant 1 : index
    %c0_45 = arith.constant 0 : index
    %42 = vector.load %arg1[%c0_43, %c1_44, %c0_45] : memref<1x10x256xbf16, #tpu.memory_space<vmem>>, vector<1x8x256xbf16>
    %43 = vector.shape_cast %42 : vector<1x8x256xbf16> to vector<8x256xbf16>
    %44 = arith.extf %43 : vector<8x256xbf16> to vector<8x256xf32>
    %c0_46 = arith.constant 0 : index
    %c0_47 = arith.constant 0 : index
    %45 = vector.load %arg5[%c0_46, %c0_47] : memref<1x256xf32, #tpu.memory_space<vmem>>, vector<1x256xf32>
    %46 = vector.broadcast %45 : vector<1x256xf32> to vector<8x256xf32>
    %47 = arith.addf %41, %46 : vector<8x256xf32>
    %48 = arith.addf %47, %44 : vector<8x256xf32>
    %cst_48 = arith.constant 0.000000e+00 : f32
    %49 = vector.broadcast %cst_48 : f32 to vector<8x256xf32>
    %50 = arith.maximumf %48, %49 : vector<8x256xf32>
    %c1_49 = arith.constant 1 : index
    %c0_50 = arith.constant 0 : index
    %51 = vector.load %arg7[%c1_49, %c0_50] : memref<10x256xf32, #tpu.memory_space<vmem>>, vector<8x256xf32>
    tpu.vector_store %arg7[%c1_49, %c0_50], %50 {strides = array<i32>} : memref<10x256xf32, #tpu.memory_space<vmem>>, vector<8x256xf32>,
    %c0_51 = arith.constant 0 : index
    %c0_52 = arith.constant 0 : index
    %52 = vector.load %arg7[%c0_51, %c0_52] : memref<10x256xf32, #tpu.memory_space<vmem>>, vector<10x256xf32>
    %53 = arith.truncf %52 : vector<10x256xf32> to vector<10x256xbf16>
    %c0_53 = arith.constant 0 : index
    %c0_54 = arith.constant 0 : index
    %c0_55 = arith.constant 0 : index
    %54 = vector.load %arg6[%c0_53, %c0_54, %c0_55] : memref<1x10x256xbf16, #tpu.memory_space<vmem>>, vector<1x10x256xbf16>
    %55 = vector.shape_cast %54 : vector<1x10x256xbf16> to vector<10x256xbf16>
    %56 = vector.shape_cast %53 : vector<10x256xbf16> to vector<1x10x256xbf16>
    tpu.vector_store %arg6[%c0_53, %c0_54, %c0_55], %56 {strides = array<i32>} : memref<1x10x256xbf16, #tpu.memory_space<vmem>>, vector<1x10x256xbf16>,
    return
  }
  func.func @transform_0(%arg0: i32) -> (i32, i32, i32) {
    %c0_i32 = arith.constant 0 : i32
    %c0_i32_0 = arith.constant 0 : i32
    %c0_i32_1 = arith.constant 0 : i32
    return %arg0, %c0_i32, %c0_i32_0 : i32, i32, i32
  }
  func.func @transform_1(%arg0: i32) -> (i32, i32, i32) {
    %c0_i32 = arith.constant 0 : i32
    %c0_i32_0 = arith.constant 0 : i32
    %c0_i32_1 = arith.constant 0 : i32
    %c0_i32_2 = arith.constant 0 : i32
    return %c0_i32, %c0_i32_0, %c0_i32_1 : i32, i32, i32
  }
  func.func @transform_2(%arg0: i32) -> (i32, i32) {
    %c0_i32 = arith.constant 0 : i32
    %c0_i32_0 = arith.constant 0 : i32
    %c0_i32_1 = arith.constant 0 : i32
    return %c0_i32, %c0_i32_0 : i32, i32
  }
  func.func @transform_3(%arg0: i32) -> (i32, i32, i32) {
    %c0_i32 = arith.constant 0 : i32
    %c0_i32_0 = arith.constant 0 : i32
    %c0_i32_1 = arith.constant 0 : i32
    %c0_i32_2 = arith.constant 0 : i32
    return %c0_i32, %c0_i32_0, %c0_i32_1 : i32, i32, i32
  }
  func.func @transform_4(%arg0: i32) -> (i32, i32) {
    %c0_i32 = arith.constant 0 : i32
    %c0_i32_0 = arith.constant 0 : i32
    %c0_i32_1 = arith.constant 0 : i32
    return %c0_i32, %c0_i32_0 : i32, i32
  }
  func.func @transform_5(%arg0: i32) -> (i32, i32, i32) {
    %c0_i32 = arith.constant 0 : i32
    %c0_i32_0 = arith.constant 0 : i32
    %c0_i32_1 = arith.constant 0 : i32
    return %arg0, %c0_i32, %c0_i32_0 : i32, i32, i32
  }
}

module attributes {stable_mosaic.version = 11 : i64} {
  func.func @_block_ds_kernel(%arg0: i32, %arg1: memref<1x5x256xbf16, #tpu.memory_space<vmem>>, %arg2: memref<1x5x256xbf16, #tpu.memory_space<vmem>>, %arg3: memref<3x256x256xbf16, #tpu.memory_space<vmem>>, %arg4: memref<1x256xf32, #tpu.memory_space<vmem>>, %arg5: memref<3x256x256xbf16, #tpu.memory_space<vmem>>, %arg6: memref<1x256xf32, #tpu.memory_space<vmem>>, %arg7: memref<256x256xbf16, #tpu.memory_space<vmem>>, %arg8: memref<1x256xf32, #tpu.memory_space<vmem>>, %arg9: memref<1x6x256xbf16, #tpu.memory_space<vmem>>, %arg10: memref<6x256xf32, #tpu.memory_space<vmem>>) attributes {dimension_semantics = [#tpu.dimension_semantics<parallel>], iteration_bounds = array<i64: 2>, scalar_prefetch = 0 : i64, scratch_operands = 1 : i64, tpu.core_type = #tpu.core_type<tc>, window_params = [{transform_indices = @transform_0, window_bounds = array<i64: 1, 5, 256>}, {transform_indices = @transform_1, window_bounds = array<i64: 1, 5, 256>}, {pipeline_mode = #tpu.pipeline_mode<synchronous>, transform_indices = @transform_2, window_bounds = array<i64: 3, 256, 256>}, {pipeline_mode = #tpu.pipeline_mode<synchronous>, transform_indices = @transform_3, window_bounds = array<i64: 1, 256>}, {pipeline_mode = #tpu.pipeline_mode<synchronous>, transform_indices = @transform_4, window_bounds = array<i64: 3, 256, 256>}, {pipeline_mode = #tpu.pipeline_mode<synchronous>, transform_indices = @transform_5, window_bounds = array<i64: 1, 256>}, {pipeline_mode = #tpu.pipeline_mode<synchronous>, transform_indices = @transform_6, window_bounds = array<i64: 256, 256>}, {pipeline_mode = #tpu.pipeline_mode<synchronous>, transform_indices = @transform_7, window_bounds = array<i64: 1, 256>}, {transform_indices = @transform_8, window_bounds = array<i64: 1, 6, 256>}]} {
    %c0 = arith.constant 0 : index
    %c0_0 = arith.constant 0 : index
    %c0_1 = arith.constant 0 : index
    %0 = vector.load %arg1[%c0, %c0_0, %c0_1] : memref<1x5x256xbf16, #tpu.memory_space<vmem>>, vector<1x4x256xbf16>
    %1 = vector.shape_cast %0 : vector<1x4x256xbf16> to vector<4x256xbf16>
    %c0_2 = arith.constant 0 : index
    %c0_3 = arith.constant 0 : index
    %c0_4 = arith.constant 0 : index
    %2 = vector.load %arg2[%c0_2, %c0_3, %c0_4] : memref<1x5x256xbf16, #tpu.memory_space<vmem>>, vector<1x4x256xbf16>
    %3 = vector.shape_cast %2 : vector<1x4x256xbf16> to vector<4x256xbf16>
    %c0_5 = arith.constant 0 : index
    %c1 = arith.constant 1 : index
    %c0_6 = arith.constant 0 : index
    %4 = vector.load %arg1[%c0_5, %c1, %c0_6] : memref<1x5x256xbf16, #tpu.memory_space<vmem>>, vector<1x4x256xbf16>
    %5 = vector.shape_cast %4 : vector<1x4x256xbf16> to vector<4x256xbf16>
    %c0_7 = arith.constant 0 : index
    %c0_8 = arith.constant 0 : index
    %c0_9 = arith.constant 0 : index
    %6 = vector.load %arg3[%c0_7, %c0_8, %c0_9] : memref<3x256x256xbf16, #tpu.memory_space<vmem>>, vector<1x256x256xbf16>
    %7 = vector.shape_cast %6 : vector<1x256x256xbf16> to vector<256x256xbf16>
    %cst = arith.constant dense<0.000000e+00> : vector<4x256xf32>
    %8 = tpu.matmul %1, %7, %cst {dimension_numbers = #tpu.dot_dimension_numbers<[1], [0], [0], [1], [0, 0, 1, 1], [], []>} : vector<4x256xbf16>, vector<256x256xbf16>, vector<4x256xf32> -> vector<4x256xf32>
    %c1_10 = arith.constant 1 : index
    %c0_11 = arith.constant 0 : index
    %c0_12 = arith.constant 0 : index
    %9 = vector.load %arg3[%c1_10, %c0_11, %c0_12] : memref<3x256x256xbf16, #tpu.memory_space<vmem>>, vector<1x256x256xbf16>
    %10 = vector.shape_cast %9 : vector<1x256x256xbf16> to vector<256x256xbf16>
    %cst_13 = arith.constant dense<0.000000e+00> : vector<4x256xf32>
    %11 = tpu.matmul %3, %10, %cst_13 {dimension_numbers = #tpu.dot_dimension_numbers<[1], [0], [0], [1], [0, 0, 1, 1], [], []>} : vector<4x256xbf16>, vector<256x256xbf16>, vector<4x256xf32> -> vector<4x256xf32>
    %12 = arith.addf %8, %11 : vector<4x256xf32>
    %c2 = arith.constant 2 : index
    %c0_14 = arith.constant 0 : index
    %c0_15 = arith.constant 0 : index
    %13 = vector.load %arg3[%c2, %c0_14, %c0_15] : memref<3x256x256xbf16, #tpu.memory_space<vmem>>, vector<1x256x256xbf16>
    %14 = vector.shape_cast %13 : vector<1x256x256xbf16> to vector<256x256xbf16>
    %cst_16 = arith.constant dense<0.000000e+00> : vector<4x256xf32>
    %15 = tpu.matmul %5, %14, %cst_16 {dimension_numbers = #tpu.dot_dimension_numbers<[1], [0], [0], [1], [0, 0, 1, 1], [], []>} : vector<4x256xbf16>, vector<256x256xbf16>, vector<4x256xf32> -> vector<4x256xf32>
    %16 = arith.addf %12, %15 : vector<4x256xf32>
    %c0_17 = arith.constant 0 : index
    %c0_18 = arith.constant 0 : index
    %17 = vector.load %arg4[%c0_17, %c0_18] : memref<1x256xf32, #tpu.memory_space<vmem>>, vector<1x256xf32>
    %18 = vector.broadcast %17 : vector<1x256xf32> to vector<4x256xf32>
    %19 = arith.addf %16, %18 : vector<4x256xf32>
    %cst_19 = arith.constant 0.000000e+00 : f32
    %20 = vector.broadcast %cst_19 : f32 to vector<4x256xf32>
    %21 = arith.maximumf %19, %20 : vector<4x256xf32>
    %cst_20 = arith.constant 0.000000e+00 : f32
    %22 = vector.broadcast %cst_20 : f32 to vector<6x256xf32>
    %c0_21 = arith.constant 0 : index
    %c0_22 = arith.constant 0 : index
    %23 = vector.load %arg10[%c0_21, %c0_22] : memref<6x256xf32, #tpu.memory_space<vmem>>, vector<6x256xf32>
    tpu.vector_store %arg10[%c0_21, %c0_22], %22 {strides = array<i32>} : memref<6x256xf32, #tpu.memory_space<vmem>>, vector<6x256xf32>,
    %c1_23 = arith.constant 1 : index
    %c0_24 = arith.constant 0 : index
    %24 = vector.load %arg10[%c1_23, %c0_24] : memref<6x256xf32, #tpu.memory_space<vmem>>, vector<4x256xf32>
    tpu.vector_store %arg10[%c1_23, %c0_24], %21 {strides = array<i32>} : memref<6x256xf32, #tpu.memory_space<vmem>>, vector<4x256xf32>,
    %c0_25 = arith.constant 0 : index
    %c0_26 = arith.constant 0 : index
    %25 = vector.load %arg10[%c0_25, %c0_26] : memref<6x256xf32, #tpu.memory_space<vmem>>, vector<4x256xf32>
    %26 = arith.truncf %25 : vector<4x256xf32> to vector<4x256xbf16>
    %c1_27 = arith.constant 1 : index
    %c0_28 = arith.constant 0 : index
    %27 = vector.load %arg10[%c1_27, %c0_28] : memref<6x256xf32, #tpu.memory_space<vmem>>, vector<4x256xf32>
    %28 = arith.truncf %27 : vector<4x256xf32> to vector<4x256xbf16>
    %c2_29 = arith.constant 2 : index
    %c0_30 = arith.constant 0 : index
    %29 = vector.load %arg10[%c2_29, %c0_30] : memref<6x256xf32, #tpu.memory_space<vmem>>, vector<4x256xf32>
    %30 = arith.truncf %29 : vector<4x256xf32> to vector<4x256xbf16>
    %c0_31 = arith.constant 0 : index
    %c0_32 = arith.constant 0 : index
    %c0_33 = arith.constant 0 : index
    %31 = vector.load %arg5[%c0_31, %c0_32, %c0_33] : memref<3x256x256xbf16, #tpu.memory_space<vmem>>, vector<1x256x256xbf16>
    %32 = vector.shape_cast %31 : vector<1x256x256xbf16> to vector<256x256xbf16>
    %cst_34 = arith.constant dense<0.000000e+00> : vector<4x256xf32>
    %33 = tpu.matmul %26, %32, %cst_34 {dimension_numbers = #tpu.dot_dimension_numbers<[1], [0], [0], [1], [0, 0, 1, 1], [], []>} : vector<4x256xbf16>, vector<256x256xbf16>, vector<4x256xf32> -> vector<4x256xf32>
    %c1_35 = arith.constant 1 : index
    %c0_36 = arith.constant 0 : index
    %c0_37 = arith.constant 0 : index
    %34 = vector.load %arg5[%c1_35, %c0_36, %c0_37] : memref<3x256x256xbf16, #tpu.memory_space<vmem>>, vector<1x256x256xbf16>
    %35 = vector.shape_cast %34 : vector<1x256x256xbf16> to vector<256x256xbf16>
    %cst_38 = arith.constant dense<0.000000e+00> : vector<4x256xf32>
    %36 = tpu.matmul %28, %35, %cst_38 {dimension_numbers = #tpu.dot_dimension_numbers<[1], [0], [0], [1], [0, 0, 1, 1], [], []>} : vector<4x256xbf16>, vector<256x256xbf16>, vector<4x256xf32> -> vector<4x256xf32>
    %37 = arith.addf %33, %36 : vector<4x256xf32>
    %c2_39 = arith.constant 2 : index
    %c0_40 = arith.constant 0 : index
    %c0_41 = arith.constant 0 : index
    %38 = vector.load %arg5[%c2_39, %c0_40, %c0_41] : memref<3x256x256xbf16, #tpu.memory_space<vmem>>, vector<1x256x256xbf16>
    %39 = vector.shape_cast %38 : vector<1x256x256xbf16> to vector<256x256xbf16>
    %cst_42 = arith.constant dense<0.000000e+00> : vector<4x256xf32>
    %40 = tpu.matmul %30, %39, %cst_42 {dimension_numbers = #tpu.dot_dimension_numbers<[1], [0], [0], [1], [0, 0, 1, 1], [], []>} : vector<4x256xbf16>, vector<256x256xbf16>, vector<4x256xf32> -> vector<4x256xf32>
    %41 = arith.addf %37, %40 : vector<4x256xf32>
    %c0_43 = arith.constant 0 : index
    %c0_44 = arith.constant 0 : index
    %c0_45 = arith.constant 0 : index
    %42 = vector.load %arg2[%c0_43, %c0_44, %c0_45] : memref<1x5x256xbf16, #tpu.memory_space<vmem>>, vector<1x4x256xbf16>
    %43 = vector.shape_cast %42 : vector<1x4x256xbf16> to vector<4x256xbf16>
    %c0_46 = arith.constant 0 : index
    %c0_47 = arith.constant 0 : index
    %44 = vector.load %arg7[%c0_46, %c0_47] : memref<256x256xbf16, #tpu.memory_space<vmem>>, vector<256x256xbf16>
    %cst_48 = arith.constant dense<0.000000e+00> : vector<4x256xf32>
    %45 = tpu.matmul %43, %44, %cst_48 {dimension_numbers = #tpu.dot_dimension_numbers<[1], [0], [0], [1], [0, 0, 1, 1], [], []>} : vector<4x256xbf16>, vector<256x256xbf16>, vector<4x256xf32> -> vector<4x256xf32>
    %c0_49 = arith.constant 0 : index
    %c0_50 = arith.constant 0 : index
    %46 = vector.load %arg8[%c0_49, %c0_50] : memref<1x256xf32, #tpu.memory_space<vmem>>, vector<1x256xf32>
    %47 = vector.broadcast %46 : vector<1x256xf32> to vector<4x256xf32>
    %48 = arith.addf %45, %47 : vector<4x256xf32>
    %c0_51 = arith.constant 0 : index
    %c0_52 = arith.constant 0 : index
    %49 = vector.load %arg6[%c0_51, %c0_52] : memref<1x256xf32, #tpu.memory_space<vmem>>, vector<1x256xf32>
    %50 = vector.broadcast %49 : vector<1x256xf32> to vector<4x256xf32>
    %51 = arith.addf %41, %50 : vector<4x256xf32>
    %52 = arith.addf %51, %48 : vector<4x256xf32>
    %cst_53 = arith.constant 0.000000e+00 : f32
    %53 = vector.broadcast %cst_53 : f32 to vector<4x256xf32>
    %54 = arith.maximumf %52, %53 : vector<4x256xf32>
    %c1_54 = arith.constant 1 : index
    %c0_55 = arith.constant 0 : index
    %55 = vector.load %arg10[%c1_54, %c0_55] : memref<6x256xf32, #tpu.memory_space<vmem>>, vector<4x256xf32>
    tpu.vector_store %arg10[%c1_54, %c0_55], %54 {strides = array<i32>} : memref<6x256xf32, #tpu.memory_space<vmem>>, vector<4x256xf32>,
    %c0_56 = arith.constant 0 : index
    %c0_57 = arith.constant 0 : index
    %56 = vector.load %arg10[%c0_56, %c0_57] : memref<6x256xf32, #tpu.memory_space<vmem>>, vector<6x256xf32>
    %57 = arith.truncf %56 : vector<6x256xf32> to vector<6x256xbf16>
    %c0_58 = arith.constant 0 : index
    %c0_59 = arith.constant 0 : index
    %c0_60 = arith.constant 0 : index
    %58 = vector.load %arg9[%c0_58, %c0_59, %c0_60] : memref<1x6x256xbf16, #tpu.memory_space<vmem>>, vector<1x6x256xbf16>
    %59 = vector.shape_cast %58 : vector<1x6x256xbf16> to vector<6x256xbf16>
    %60 = vector.shape_cast %57 : vector<6x256xbf16> to vector<1x6x256xbf16>
    tpu.vector_store %arg9[%c0_58, %c0_59, %c0_60], %60 {strides = array<i32>} : memref<1x6x256xbf16, #tpu.memory_space<vmem>>, vector<1x6x256xbf16>,
    return
  }
  func.func @transform_0(%arg0: i32) -> (i32, i32, i32) {
    %c0_i32 = arith.constant 0 : i32
    %c0_i32_0 = arith.constant 0 : i32
    %c0_i32_1 = arith.constant 0 : i32
    return %arg0, %c0_i32, %c0_i32_0 : i32, i32, i32
  }
  func.func @transform_1(%arg0: i32) -> (i32, i32, i32) {
    %c0_i32 = arith.constant 0 : i32
    %c0_i32_0 = arith.constant 0 : i32
    %c0_i32_1 = arith.constant 0 : i32
    return %arg0, %c0_i32, %c0_i32_0 : i32, i32, i32
  }
  func.func @transform_2(%arg0: i32) -> (i32, i32, i32) {
    %c0_i32 = arith.constant 0 : i32
    %c0_i32_0 = arith.constant 0 : i32
    %c0_i32_1 = arith.constant 0 : i32
    %c0_i32_2 = arith.constant 0 : i32
    return %c0_i32, %c0_i32_0, %c0_i32_1 : i32, i32, i32
  }
  func.func @transform_3(%arg0: i32) -> (i32, i32) {
    %c0_i32 = arith.constant 0 : i32
    %c0_i32_0 = arith.constant 0 : i32
    %c0_i32_1 = arith.constant 0 : i32
    return %c0_i32, %c0_i32_0 : i32, i32
  }
  func.func @transform_4(%arg0: i32) -> (i32, i32, i32) {
    %c0_i32 = arith.constant 0 : i32
    %c0_i32_0 = arith.constant 0 : i32
    %c0_i32_1 = arith.constant 0 : i32
    %c0_i32_2 = arith.constant 0 : i32
    return %c0_i32, %c0_i32_0, %c0_i32_1 : i32, i32, i32
  }
  func.func @transform_5(%arg0: i32) -> (i32, i32) {
    %c0_i32 = arith.constant 0 : i32
    %c0_i32_0 = arith.constant 0 : i32
    %c0_i32_1 = arith.constant 0 : i32
    return %c0_i32, %c0_i32_0 : i32, i32
  }
  func.func @transform_6(%arg0: i32) -> (i32, i32) {
    %c0_i32 = arith.constant 0 : i32
    %c0_i32_0 = arith.constant 0 : i32
    %c0_i32_1 = arith.constant 0 : i32
    return %c0_i32, %c0_i32_0 : i32, i32
  }
  func.func @transform_7(%arg0: i32) -> (i32, i32) {
    %c0_i32 = arith.constant 0 : i32
    %c0_i32_0 = arith.constant 0 : i32
    %c0_i32_1 = arith.constant 0 : i32
    return %c0_i32, %c0_i32_0 : i32, i32
  }
  func.func @transform_8(%arg0: i32) -> (i32, i32, i32) {
    %c0_i32 = arith.constant 0 : i32
    %c0_i32_0 = arith.constant 0 : i32
    %c0_i32_1 = arith.constant 0 : i32
    return %arg0, %c0_i32, %c0_i32_0 : i32, i32, i32
  }
}

module attributes {stable_mosaic.version = 11 : i64} {
  func.func @_block_id_kernel(%arg0: i32, %arg1: memref<1x6x256xbf16, #tpu.memory_space<vmem>>, %arg2: memref<3x256x256xbf16, #tpu.memory_space<vmem>>, %arg3: memref<1x256xf32, #tpu.memory_space<vmem>>, %arg4: memref<3x256x256xbf16, #tpu.memory_space<vmem>>, %arg5: memref<1x256xf32, #tpu.memory_space<vmem>>, %arg6: memref<1x6x256xbf16, #tpu.memory_space<vmem>>, %arg7: memref<6x256xf32, #tpu.memory_space<vmem>>) attributes {dimension_semantics = [#tpu.dimension_semantics<parallel>], iteration_bounds = array<i64: 2>, scalar_prefetch = 0 : i64, scratch_operands = 1 : i64, tpu.core_type = #tpu.core_type<tc>, window_params = [{transform_indices = @transform_0, window_bounds = array<i64: 1, 6, 256>}, {pipeline_mode = #tpu.pipeline_mode<synchronous>, transform_indices = @transform_1, window_bounds = array<i64: 3, 256, 256>}, {pipeline_mode = #tpu.pipeline_mode<synchronous>, transform_indices = @transform_2, window_bounds = array<i64: 1, 256>}, {pipeline_mode = #tpu.pipeline_mode<synchronous>, transform_indices = @transform_3, window_bounds = array<i64: 3, 256, 256>}, {pipeline_mode = #tpu.pipeline_mode<synchronous>, transform_indices = @transform_4, window_bounds = array<i64: 1, 256>}, {transform_indices = @transform_5, window_bounds = array<i64: 1, 6, 256>}]} {
    %c0 = arith.constant 0 : index
    %c0_0 = arith.constant 0 : index
    %c0_1 = arith.constant 0 : index
    %0 = vector.load %arg1[%c0, %c0_0, %c0_1] : memref<1x6x256xbf16, #tpu.memory_space<vmem>>, vector<1x4x256xbf16>
    %1 = vector.shape_cast %0 : vector<1x4x256xbf16> to vector<4x256xbf16>
    %c0_2 = arith.constant 0 : index
    %c1 = arith.constant 1 : index
    %c0_3 = arith.constant 0 : index
    %2 = vector.load %arg1[%c0_2, %c1, %c0_3] : memref<1x6x256xbf16, #tpu.memory_space<vmem>>, vector<1x4x256xbf16>
    %3 = vector.shape_cast %2 : vector<1x4x256xbf16> to vector<4x256xbf16>
    %c0_4 = arith.constant 0 : index
    %c2 = arith.constant 2 : index
    %c0_5 = arith.constant 0 : index
    %4 = vector.load %arg1[%c0_4, %c2, %c0_5] : memref<1x6x256xbf16, #tpu.memory_space<vmem>>, vector<1x4x256xbf16>
    %5 = vector.shape_cast %4 : vector<1x4x256xbf16> to vector<4x256xbf16>
    %c0_6 = arith.constant 0 : index
    %c0_7 = arith.constant 0 : index
    %c0_8 = arith.constant 0 : index
    %6 = vector.load %arg2[%c0_6, %c0_7, %c0_8] : memref<3x256x256xbf16, #tpu.memory_space<vmem>>, vector<1x256x256xbf16>
    %7 = vector.shape_cast %6 : vector<1x256x256xbf16> to vector<256x256xbf16>
    %cst = arith.constant dense<0.000000e+00> : vector<4x256xf32>
    %8 = tpu.matmul %1, %7, %cst {dimension_numbers = #tpu.dot_dimension_numbers<[1], [0], [0], [1], [0, 0, 1, 1], [], []>} : vector<4x256xbf16>, vector<256x256xbf16>, vector<4x256xf32> -> vector<4x256xf32>
    %c1_9 = arith.constant 1 : index
    %c0_10 = arith.constant 0 : index
    %c0_11 = arith.constant 0 : index
    %9 = vector.load %arg2[%c1_9, %c0_10, %c0_11] : memref<3x256x256xbf16, #tpu.memory_space<vmem>>, vector<1x256x256xbf16>
    %10 = vector.shape_cast %9 : vector<1x256x256xbf16> to vector<256x256xbf16>
    %cst_12 = arith.constant dense<0.000000e+00> : vector<4x256xf32>
    %11 = tpu.matmul %3, %10, %cst_12 {dimension_numbers = #tpu.dot_dimension_numbers<[1], [0], [0], [1], [0, 0, 1, 1], [], []>} : vector<4x256xbf16>, vector<256x256xbf16>, vector<4x256xf32> -> vector<4x256xf32>
    %12 = arith.addf %8, %11 : vector<4x256xf32>
    %c2_13 = arith.constant 2 : index
    %c0_14 = arith.constant 0 : index
    %c0_15 = arith.constant 0 : index
    %13 = vector.load %arg2[%c2_13, %c0_14, %c0_15] : memref<3x256x256xbf16, #tpu.memory_space<vmem>>, vector<1x256x256xbf16>
    %14 = vector.shape_cast %13 : vector<1x256x256xbf16> to vector<256x256xbf16>
    %cst_16 = arith.constant dense<0.000000e+00> : vector<4x256xf32>
    %15 = tpu.matmul %5, %14, %cst_16 {dimension_numbers = #tpu.dot_dimension_numbers<[1], [0], [0], [1], [0, 0, 1, 1], [], []>} : vector<4x256xbf16>, vector<256x256xbf16>, vector<4x256xf32> -> vector<4x256xf32>
    %16 = arith.addf %12, %15 : vector<4x256xf32>
    %c0_17 = arith.constant 0 : index
    %c0_18 = arith.constant 0 : index
    %17 = vector.load %arg3[%c0_17, %c0_18] : memref<1x256xf32, #tpu.memory_space<vmem>>, vector<1x256xf32>
    %18 = vector.broadcast %17 : vector<1x256xf32> to vector<4x256xf32>
    %19 = arith.addf %16, %18 : vector<4x256xf32>
    %cst_19 = arith.constant 0.000000e+00 : f32
    %20 = vector.broadcast %cst_19 : f32 to vector<4x256xf32>
    %21 = arith.maximumf %19, %20 : vector<4x256xf32>
    %cst_20 = arith.constant 0.000000e+00 : f32
    %22 = vector.broadcast %cst_20 : f32 to vector<6x256xf32>
    %c0_21 = arith.constant 0 : index
    %c0_22 = arith.constant 0 : index
    %23 = vector.load %arg7[%c0_21, %c0_22] : memref<6x256xf32, #tpu.memory_space<vmem>>, vector<6x256xf32>
    tpu.vector_store %arg7[%c0_21, %c0_22], %22 {strides = array<i32>} : memref<6x256xf32, #tpu.memory_space<vmem>>, vector<6x256xf32>,
    %c1_23 = arith.constant 1 : index
    %c0_24 = arith.constant 0 : index
    %24 = vector.load %arg7[%c1_23, %c0_24] : memref<6x256xf32, #tpu.memory_space<vmem>>, vector<4x256xf32>
    tpu.vector_store %arg7[%c1_23, %c0_24], %21 {strides = array<i32>} : memref<6x256xf32, #tpu.memory_space<vmem>>, vector<4x256xf32>,
    %c0_25 = arith.constant 0 : index
    %c0_26 = arith.constant 0 : index
    %25 = vector.load %arg7[%c0_25, %c0_26] : memref<6x256xf32, #tpu.memory_space<vmem>>, vector<4x256xf32>
    %26 = arith.truncf %25 : vector<4x256xf32> to vector<4x256xbf16>
    %c1_27 = arith.constant 1 : index
    %c0_28 = arith.constant 0 : index
    %27 = vector.load %arg7[%c1_27, %c0_28] : memref<6x256xf32, #tpu.memory_space<vmem>>, vector<4x256xf32>
    %28 = arith.truncf %27 : vector<4x256xf32> to vector<4x256xbf16>
    %c2_29 = arith.constant 2 : index
    %c0_30 = arith.constant 0 : index
    %29 = vector.load %arg7[%c2_29, %c0_30] : memref<6x256xf32, #tpu.memory_space<vmem>>, vector<4x256xf32>
    %30 = arith.truncf %29 : vector<4x256xf32> to vector<4x256xbf16>
    %c0_31 = arith.constant 0 : index
    %c0_32 = arith.constant 0 : index
    %c0_33 = arith.constant 0 : index
    %31 = vector.load %arg4[%c0_31, %c0_32, %c0_33] : memref<3x256x256xbf16, #tpu.memory_space<vmem>>, vector<1x256x256xbf16>
    %32 = vector.shape_cast %31 : vector<1x256x256xbf16> to vector<256x256xbf16>
    %cst_34 = arith.constant dense<0.000000e+00> : vector<4x256xf32>
    %33 = tpu.matmul %26, %32, %cst_34 {dimension_numbers = #tpu.dot_dimension_numbers<[1], [0], [0], [1], [0, 0, 1, 1], [], []>} : vector<4x256xbf16>, vector<256x256xbf16>, vector<4x256xf32> -> vector<4x256xf32>
    %c1_35 = arith.constant 1 : index
    %c0_36 = arith.constant 0 : index
    %c0_37 = arith.constant 0 : index
    %34 = vector.load %arg4[%c1_35, %c0_36, %c0_37] : memref<3x256x256xbf16, #tpu.memory_space<vmem>>, vector<1x256x256xbf16>
    %35 = vector.shape_cast %34 : vector<1x256x256xbf16> to vector<256x256xbf16>
    %cst_38 = arith.constant dense<0.000000e+00> : vector<4x256xf32>
    %36 = tpu.matmul %28, %35, %cst_38 {dimension_numbers = #tpu.dot_dimension_numbers<[1], [0], [0], [1], [0, 0, 1, 1], [], []>} : vector<4x256xbf16>, vector<256x256xbf16>, vector<4x256xf32> -> vector<4x256xf32>
    %37 = arith.addf %33, %36 : vector<4x256xf32>
    %c2_39 = arith.constant 2 : index
    %c0_40 = arith.constant 0 : index
    %c0_41 = arith.constant 0 : index
    %38 = vector.load %arg4[%c2_39, %c0_40, %c0_41] : memref<3x256x256xbf16, #tpu.memory_space<vmem>>, vector<1x256x256xbf16>
    %39 = vector.shape_cast %38 : vector<1x256x256xbf16> to vector<256x256xbf16>
    %cst_42 = arith.constant dense<0.000000e+00> : vector<4x256xf32>
    %40 = tpu.matmul %30, %39, %cst_42 {dimension_numbers = #tpu.dot_dimension_numbers<[1], [0], [0], [1], [0, 0, 1, 1], [], []>} : vector<4x256xbf16>, vector<256x256xbf16>, vector<4x256xf32> -> vector<4x256xf32>
    %41 = arith.addf %37, %40 : vector<4x256xf32>
    %c0_43 = arith.constant 0 : index
    %c1_44 = arith.constant 1 : index
    %c0_45 = arith.constant 0 : index
    %42 = vector.load %arg1[%c0_43, %c1_44, %c0_45] : memref<1x6x256xbf16, #tpu.memory_space<vmem>>, vector<1x4x256xbf16>
    %43 = vector.shape_cast %42 : vector<1x4x256xbf16> to vector<4x256xbf16>
    %44 = arith.extf %43 : vector<4x256xbf16> to vector<4x256xf32>
    %c0_46 = arith.constant 0 : index
    %c0_47 = arith.constant 0 : index
    %45 = vector.load %arg5[%c0_46, %c0_47] : memref<1x256xf32, #tpu.memory_space<vmem>>, vector<1x256xf32>
    %46 = vector.broadcast %45 : vector<1x256xf32> to vector<4x256xf32>
    %47 = arith.addf %41, %46 : vector<4x256xf32>
    %48 = arith.addf %47, %44 : vector<4x256xf32>
    %cst_48 = arith.constant 0.000000e+00 : f32
    %49 = vector.broadcast %cst_48 : f32 to vector<4x256xf32>
    %50 = arith.maximumf %48, %49 : vector<4x256xf32>
    %c1_49 = arith.constant 1 : index
    %c0_50 = arith.constant 0 : index
    %51 = vector.load %arg7[%c1_49, %c0_50] : memref<6x256xf32, #tpu.memory_space<vmem>>, vector<4x256xf32>
    tpu.vector_store %arg7[%c1_49, %c0_50], %50 {strides = array<i32>} : memref<6x256xf32, #tpu.memory_space<vmem>>, vector<4x256xf32>,
    %c0_51 = arith.constant 0 : index
    %c0_52 = arith.constant 0 : index
    %52 = vector.load %arg7[%c0_51, %c0_52] : memref<6x256xf32, #tpu.memory_space<vmem>>, vector<6x256xf32>
    %53 = arith.truncf %52 : vector<6x256xf32> to vector<6x256xbf16>
    %c0_53 = arith.constant 0 : index
    %c0_54 = arith.constant 0 : index
    %c0_55 = arith.constant 0 : index
    %54 = vector.load %arg6[%c0_53, %c0_54, %c0_55] : memref<1x6x256xbf16, #tpu.memory_space<vmem>>, vector<1x6x256xbf16>
    %55 = vector.shape_cast %54 : vector<1x6x256xbf16> to vector<6x256xbf16>
    %56 = vector.shape_cast %53 : vector<6x256xbf16> to vector<1x6x256xbf16>
    tpu.vector_store %arg6[%c0_53, %c0_54, %c0_55], %56 {strides = array<i32>} : memref<1x6x256xbf16, #tpu.memory_space<vmem>>, vector<1x6x256xbf16>,
    return
  }
  func.func @transform_0(%arg0: i32) -> (i32, i32, i32) {
    %c0_i32 = arith.constant 0 : i32
    %c0_i32_0 = arith.constant 0 : i32
    %c0_i32_1 = arith.constant 0 : i32
    return %arg0, %c0_i32, %c0_i32_0 : i32, i32, i32
  }
  func.func @transform_1(%arg0: i32) -> (i32, i32, i32) {
    %c0_i32 = arith.constant 0 : i32
    %c0_i32_0 = arith.constant 0 : i32
    %c0_i32_1 = arith.constant 0 : i32
    %c0_i32_2 = arith.constant 0 : i32
    return %c0_i32, %c0_i32_0, %c0_i32_1 : i32, i32, i32
  }
  func.func @transform_2(%arg0: i32) -> (i32, i32) {
    %c0_i32 = arith.constant 0 : i32
    %c0_i32_0 = arith.constant 0 : i32
    %c0_i32_1 = arith.constant 0 : i32
    return %c0_i32, %c0_i32_0 : i32, i32
  }
  func.func @transform_3(%arg0: i32) -> (i32, i32, i32) {
    %c0_i32 = arith.constant 0 : i32
    %c0_i32_0 = arith.constant 0 : i32
    %c0_i32_1 = arith.constant 0 : i32
    %c0_i32_2 = arith.constant 0 : i32
    return %c0_i32, %c0_i32_0, %c0_i32_1 : i32, i32, i32
  }
  func.func @transform_4(%arg0: i32) -> (i32, i32) {
    %c0_i32 = arith.constant 0 : i32
    %c0_i32_0 = arith.constant 0 : i32
    %c0_i32_1 = arith.constant 0 : i32
    return %c0_i32, %c0_i32_0 : i32, i32
  }
  func.func @transform_5(%arg0: i32) -> (i32, i32, i32) {
    %c0_i32 = arith.constant 0 : i32
    %c0_i32_0 = arith.constant 0 : i32
    %c0_i32_1 = arith.constant 0 : i32
    return %arg0, %c0_i32, %c0_i32_0 : i32, i32, i32
  }
}

module attributes {stable_mosaic.version = 11 : i64} {
  func.func @_block_id_fc_kernel(%arg0: i32, %arg1: memref<1x6x256xbf16, #tpu.memory_space<vmem>>, %arg2: memref<3x256x256xbf16, #tpu.memory_space<vmem>>, %arg3: memref<1x256xf32, #tpu.memory_space<vmem>>, %arg4: memref<3x256x256xbf16, #tpu.memory_space<vmem>>, %arg5: memref<1x256xf32, #tpu.memory_space<vmem>>, %arg6: memref<256x100xf32, #tpu.memory_space<vmem>>, %arg7: memref<1x100xf32, #tpu.memory_space<vmem>>, %arg8: memref<1x1x100xf32, #tpu.memory_space<vmem>>, %arg9: memref<6x256xf32, #tpu.memory_space<vmem>>) attributes {dimension_semantics = [#tpu.dimension_semantics<parallel>], iteration_bounds = array<i64: 2>, scalar_prefetch = 0 : i64, scratch_operands = 1 : i64, tpu.core_type = #tpu.core_type<tc>, window_params = [{transform_indices = @transform_0, window_bounds = array<i64: 1, 6, 256>}, {pipeline_mode = #tpu.pipeline_mode<synchronous>, transform_indices = @transform_1, window_bounds = array<i64: 3, 256, 256>}, {pipeline_mode = #tpu.pipeline_mode<synchronous>, transform_indices = @transform_2, window_bounds = array<i64: 1, 256>}, {pipeline_mode = #tpu.pipeline_mode<synchronous>, transform_indices = @transform_3, window_bounds = array<i64: 3, 256, 256>}, {pipeline_mode = #tpu.pipeline_mode<synchronous>, transform_indices = @transform_4, window_bounds = array<i64: 1, 256>}, {pipeline_mode = #tpu.pipeline_mode<synchronous>, transform_indices = @transform_5, window_bounds = array<i64: 256, 100>}, {pipeline_mode = #tpu.pipeline_mode<synchronous>, transform_indices = @transform_6, window_bounds = array<i64: 1, 100>}, {transform_indices = @transform_7, window_bounds = array<i64: 1, 1, 100>}]} {
    %c0 = arith.constant 0 : index
    %c0_0 = arith.constant 0 : index
    %c0_1 = arith.constant 0 : index
    %0 = vector.load %arg1[%c0, %c0_0, %c0_1] : memref<1x6x256xbf16, #tpu.memory_space<vmem>>, vector<1x4x256xbf16>
    %1 = vector.shape_cast %0 : vector<1x4x256xbf16> to vector<4x256xbf16>
    %c0_2 = arith.constant 0 : index
    %c1 = arith.constant 1 : index
    %c0_3 = arith.constant 0 : index
    %2 = vector.load %arg1[%c0_2, %c1, %c0_3] : memref<1x6x256xbf16, #tpu.memory_space<vmem>>, vector<1x4x256xbf16>
    %3 = vector.shape_cast %2 : vector<1x4x256xbf16> to vector<4x256xbf16>
    %c0_4 = arith.constant 0 : index
    %c2 = arith.constant 2 : index
    %c0_5 = arith.constant 0 : index
    %4 = vector.load %arg1[%c0_4, %c2, %c0_5] : memref<1x6x256xbf16, #tpu.memory_space<vmem>>, vector<1x4x256xbf16>
    %5 = vector.shape_cast %4 : vector<1x4x256xbf16> to vector<4x256xbf16>
    %c0_6 = arith.constant 0 : index
    %c0_7 = arith.constant 0 : index
    %c0_8 = arith.constant 0 : index
    %6 = vector.load %arg2[%c0_6, %c0_7, %c0_8] : memref<3x256x256xbf16, #tpu.memory_space<vmem>>, vector<1x256x256xbf16>
    %7 = vector.shape_cast %6 : vector<1x256x256xbf16> to vector<256x256xbf16>
    %cst = arith.constant dense<0.000000e+00> : vector<4x256xf32>
    %8 = tpu.matmul %1, %7, %cst {dimension_numbers = #tpu.dot_dimension_numbers<[1], [0], [0], [1], [0, 0, 1, 1], [], []>} : vector<4x256xbf16>, vector<256x256xbf16>, vector<4x256xf32> -> vector<4x256xf32>
    %c1_9 = arith.constant 1 : index
    %c0_10 = arith.constant 0 : index
    %c0_11 = arith.constant 0 : index
    %9 = vector.load %arg2[%c1_9, %c0_10, %c0_11] : memref<3x256x256xbf16, #tpu.memory_space<vmem>>, vector<1x256x256xbf16>
    %10 = vector.shape_cast %9 : vector<1x256x256xbf16> to vector<256x256xbf16>
    %cst_12 = arith.constant dense<0.000000e+00> : vector<4x256xf32>
    %11 = tpu.matmul %3, %10, %cst_12 {dimension_numbers = #tpu.dot_dimension_numbers<[1], [0], [0], [1], [0, 0, 1, 1], [], []>} : vector<4x256xbf16>, vector<256x256xbf16>, vector<4x256xf32> -> vector<4x256xf32>
    %12 = arith.addf %8, %11 : vector<4x256xf32>
    %c2_13 = arith.constant 2 : index
    %c0_14 = arith.constant 0 : index
    %c0_15 = arith.constant 0 : index
    %13 = vector.load %arg2[%c2_13, %c0_14, %c0_15] : memref<3x256x256xbf16, #tpu.memory_space<vmem>>, vector<1x256x256xbf16>
    %14 = vector.shape_cast %13 : vector<1x256x256xbf16> to vector<256x256xbf16>
    %cst_16 = arith.constant dense<0.000000e+00> : vector<4x256xf32>
    %15 = tpu.matmul %5, %14, %cst_16 {dimension_numbers = #tpu.dot_dimension_numbers<[1], [0], [0], [1], [0, 0, 1, 1], [], []>} : vector<4x256xbf16>, vector<256x256xbf16>, vector<4x256xf32> -> vector<4x256xf32>
    %16 = arith.addf %12, %15 : vector<4x256xf32>
    %c0_17 = arith.constant 0 : index
    %c0_18 = arith.constant 0 : index
    %17 = vector.load %arg3[%c0_17, %c0_18] : memref<1x256xf32, #tpu.memory_space<vmem>>, vector<1x256xf32>
    %18 = vector.broadcast %17 : vector<1x256xf32> to vector<4x256xf32>
    %19 = arith.addf %16, %18 : vector<4x256xf32>
    %cst_19 = arith.constant 0.000000e+00 : f32
    %20 = vector.broadcast %cst_19 : f32 to vector<4x256xf32>
    %21 = arith.maximumf %19, %20 : vector<4x256xf32>
    %cst_20 = arith.constant 0.000000e+00 : f32
    %22 = vector.broadcast %cst_20 : f32 to vector<6x256xf32>
    %c0_21 = arith.constant 0 : index
    %c0_22 = arith.constant 0 : index
    %23 = vector.load %arg9[%c0_21, %c0_22] : memref<6x256xf32, #tpu.memory_space<vmem>>, vector<6x256xf32>
    tpu.vector_store %arg9[%c0_21, %c0_22], %22 {strides = array<i32>} : memref<6x256xf32, #tpu.memory_space<vmem>>, vector<6x256xf32>,
    %c1_23 = arith.constant 1 : index
    %c0_24 = arith.constant 0 : index
    %24 = vector.load %arg9[%c1_23, %c0_24] : memref<6x256xf32, #tpu.memory_space<vmem>>, vector<4x256xf32>
    tpu.vector_store %arg9[%c1_23, %c0_24], %21 {strides = array<i32>} : memref<6x256xf32, #tpu.memory_space<vmem>>, vector<4x256xf32>,
    %c0_25 = arith.constant 0 : index
    %c0_26 = arith.constant 0 : index
    %25 = vector.load %arg9[%c0_25, %c0_26] : memref<6x256xf32, #tpu.memory_space<vmem>>, vector<4x256xf32>
    %26 = arith.truncf %25 : vector<4x256xf32> to vector<4x256xbf16>
    %c1_27 = arith.constant 1 : index
    %c0_28 = arith.constant 0 : index
    %27 = vector.load %arg9[%c1_27, %c0_28] : memref<6x256xf32, #tpu.memory_space<vmem>>, vector<4x256xf32>
    %28 = arith.truncf %27 : vector<4x256xf32> to vector<4x256xbf16>
    %c2_29 = arith.constant 2 : index
    %c0_30 = arith.constant 0 : index
    %29 = vector.load %arg9[%c2_29, %c0_30] : memref<6x256xf32, #tpu.memory_space<vmem>>, vector<4x256xf32>
    %30 = arith.truncf %29 : vector<4x256xf32> to vector<4x256xbf16>
    %c0_31 = arith.constant 0 : index
    %c0_32 = arith.constant 0 : index
    %c0_33 = arith.constant 0 : index
    %31 = vector.load %arg4[%c0_31, %c0_32, %c0_33] : memref<3x256x256xbf16, #tpu.memory_space<vmem>>, vector<1x256x256xbf16>
    %32 = vector.shape_cast %31 : vector<1x256x256xbf16> to vector<256x256xbf16>
    %cst_34 = arith.constant dense<0.000000e+00> : vector<4x256xf32>
    %33 = tpu.matmul %26, %32, %cst_34 {dimension_numbers = #tpu.dot_dimension_numbers<[1], [0], [0], [1], [0, 0, 1, 1], [], []>} : vector<4x256xbf16>, vector<256x256xbf16>, vector<4x256xf32> -> vector<4x256xf32>
    %c1_35 = arith.constant 1 : index
    %c0_36 = arith.constant 0 : index
    %c0_37 = arith.constant 0 : index
    %34 = vector.load %arg4[%c1_35, %c0_36, %c0_37] : memref<3x256x256xbf16, #tpu.memory_space<vmem>>, vector<1x256x256xbf16>
    %35 = vector.shape_cast %34 : vector<1x256x256xbf16> to vector<256x256xbf16>
    %cst_38 = arith.constant dense<0.000000e+00> : vector<4x256xf32>
    %36 = tpu.matmul %28, %35, %cst_38 {dimension_numbers = #tpu.dot_dimension_numbers<[1], [0], [0], [1], [0, 0, 1, 1], [], []>} : vector<4x256xbf16>, vector<256x256xbf16>, vector<4x256xf32> -> vector<4x256xf32>
    %37 = arith.addf %33, %36 : vector<4x256xf32>
    %c2_39 = arith.constant 2 : index
    %c0_40 = arith.constant 0 : index
    %c0_41 = arith.constant 0 : index
    %38 = vector.load %arg4[%c2_39, %c0_40, %c0_41] : memref<3x256x256xbf16, #tpu.memory_space<vmem>>, vector<1x256x256xbf16>
    %39 = vector.shape_cast %38 : vector<1x256x256xbf16> to vector<256x256xbf16>
    %cst_42 = arith.constant dense<0.000000e+00> : vector<4x256xf32>
    %40 = tpu.matmul %30, %39, %cst_42 {dimension_numbers = #tpu.dot_dimension_numbers<[1], [0], [0], [1], [0, 0, 1, 1], [], []>} : vector<4x256xbf16>, vector<256x256xbf16>, vector<4x256xf32> -> vector<4x256xf32>
    %41 = arith.addf %37, %40 : vector<4x256xf32>
    %c0_43 = arith.constant 0 : index
    %c1_44 = arith.constant 1 : index
    %c0_45 = arith.constant 0 : index
    %42 = vector.load %arg1[%c0_43, %c1_44, %c0_45] : memref<1x6x256xbf16, #tpu.memory_space<vmem>>, vector<1x4x256xbf16>
    %43 = vector.shape_cast %42 : vector<1x4x256xbf16> to vector<4x256xbf16>
    %44 = arith.extf %43 : vector<4x256xbf16> to vector<4x256xf32>
    %c0_46 = arith.constant 0 : index
    %c0_47 = arith.constant 0 : index
    %45 = vector.load %arg5[%c0_46, %c0_47] : memref<1x256xf32, #tpu.memory_space<vmem>>, vector<1x256xf32>
    %46 = vector.broadcast %45 : vector<1x256xf32> to vector<4x256xf32>
    %47 = arith.addf %41, %46 : vector<4x256xf32>
    %48 = arith.addf %47, %44 : vector<4x256xf32>
    %cst_48 = arith.constant 0.000000e+00 : f32
    %49 = vector.broadcast %cst_48 : f32 to vector<4x256xf32>
    %50 = arith.maximumf %48, %49 : vector<4x256xf32>
    %cst_49 = arith.constant dense<0.000000e+00> : vector<256xf32>
    %51 = vector.multi_reduction <add>, %50, %cst_49 [0] : vector<4x256xf32> to vector<256xf32>
    %52 = vector.shape_cast %51 : vector<256xf32> to vector<1x256xf32>
    %c0_50 = arith.constant 0 : index
    %c0_51 = arith.constant 0 : index
    %53 = vector.load %arg6[%c0_50, %c0_51] : memref<256x100xf32, #tpu.memory_space<vmem>>, vector<256x100xf32>
    %cst_52 = arith.constant dense<0.000000e+00> : vector<1x100xf32>
    %54 = tpu.matmul %52, %53, %cst_52 {dimension_numbers = #tpu.dot_dimension_numbers<[1], [0], [0], [1], [0, 0, 1, 1], [], []>} : vector<1x256xf32>, vector<256x100xf32>, vector<1x100xf32> -> vector<1x100xf32>
    %c0_53 = arith.constant 0 : index
    %c0_54 = arith.constant 0 : index
    %55 = vector.load %arg7[%c0_53, %c0_54] : memref<1x100xf32, #tpu.memory_space<vmem>>, vector<1x100xf32>
    %56 = arith.addf %54, %55 : vector<1x100xf32>
    %c0_55 = arith.constant 0 : index
    %c0_56 = arith.constant 0 : index
    %c0_57 = arith.constant 0 : index
    %57 = vector.load %arg8[%c0_55, %c0_56, %c0_57] : memref<1x1x100xf32, #tpu.memory_space<vmem>>, vector<1x1x100xf32>
    %58 = vector.shape_cast %57 : vector<1x1x100xf32> to vector<1x100xf32>
    %59 = vector.shape_cast %56 : vector<1x100xf32> to vector<1x1x100xf32>
    tpu.vector_store %arg8[%c0_55, %c0_56, %c0_57], %59 {strides = array<i32>} : memref<1x1x100xf32, #tpu.memory_space<vmem>>, vector<1x1x100xf32>,
    return
  }
  func.func @transform_0(%arg0: i32) -> (i32, i32, i32) {
    %c0_i32 = arith.constant 0 : i32
    %c0_i32_0 = arith.constant 0 : i32
    %c0_i32_1 = arith.constant 0 : i32
    return %arg0, %c0_i32, %c0_i32_0 : i32, i32, i32
  }
  func.func @transform_1(%arg0: i32) -> (i32, i32, i32) {
    %c0_i32 = arith.constant 0 : i32
    %c0_i32_0 = arith.constant 0 : i32
    %c0_i32_1 = arith.constant 0 : i32
    %c0_i32_2 = arith.constant 0 : i32
    return %c0_i32, %c0_i32_0, %c0_i32_1 : i32, i32, i32
  }
  func.func @transform_2(%arg0: i32) -> (i32, i32) {
    %c0_i32 = arith.constant 0 : i32
    %c0_i32_0 = arith.constant 0 : i32
    %c0_i32_1 = arith.constant 0 : i32
    return %c0_i32, %c0_i32_0 : i32, i32
  }
  func.func @transform_3(%arg0: i32) -> (i32, i32, i32) {
    %c0_i32 = arith.constant 0 : i32
    %c0_i32_0 = arith.constant 0 : i32
    %c0_i32_1 = arith.constant 0 : i32
    %c0_i32_2 = arith.constant 0 : i32
    return %c0_i32, %c0_i32_0, %c0_i32_1 : i32, i32, i32
  }
  func.func @transform_4(%arg0: i32) -> (i32, i32) {
    %c0_i32 = arith.constant 0 : i32
    %c0_i32_0 = arith.constant 0 : i32
    %c0_i32_1 = arith.constant 0 : i32
    return %c0_i32, %c0_i32_0 : i32, i32
  }
  func.func @transform_5(%arg0: i32) -> (i32, i32) {
    %c0_i32 = arith.constant 0 : i32
    %c0_i32_0 = arith.constant 0 : i32
    %c0_i32_1 = arith.constant 0 : i32
    return %c0_i32, %c0_i32_0 : i32, i32
  }
  func.func @transform_6(%arg0: i32) -> (i32, i32) {
    %c0_i32 = arith.constant 0 : i32
    %c0_i32_0 = arith.constant 0 : i32
    %c0_i32_1 = arith.constant 0 : i32
    return %c0_i32, %c0_i32_0 : i32, i32
  }
  func.func @transform_7(%arg0: i32) -> (i32, i32, i32) {
    %c0_i32 = arith.constant 0 : i32
    %c0_i32_0 = arith.constant 0 : i32
    %c0_i32_1 = arith.constant 0 : i32
    return %arg0, %c0_i32, %c0_i32_0 : i32, i32, i32
  }
}

</mosaic_0001>

<bundles_post_ra>
// kernel: resnet20_forward.10
= control target key start
LH: loop header
LB: loop body
LE: loop exit
PB: predicated region body
PF: predicated region fallthrough
CT: control target
= control target key end

     0   :  { %s712_s12 = smov 0   ;;  %s793_s0 = inlined_call_operand.vmem [shape: bf16[2,18,48], index: 0, kind: input, shape index: {}]   ;;  %s794_s1 = inlined_call_operand.vmem [shape: bf16[3,48,256], index: 1, kind: input, shape index: {}]   ;;  %s795_s2 = inlined_call_operand.vmem [shape: f32[1,256], index: 2, kind: input, shape index: {}]   ;;  %s796_s3 = inlined_call_operand.vmem [shape: bf16[2,18,256], index: 3, kind: output, shape index: {}]  }
   0x1 LB: > { %s589_s13 = sadd.s32 4294967295, %s688_s12   ;;  %p593_p0 = scmp.ge.s32.totalorder %s688_s12, 1  ;;  %s688_s12 = sphi %s712_s12, %s13_s12  }
   0x2   : > { %p137_p1 = scmp.lt.s32.totalorder %s688_s12, 3 }
   0x4   : > { %p138_p2 = pnand %p593_p0, %p137_p1 }
   0x5   : > { %p161_p3 = scmp.lt.s32.totalorder (!%p138_p2), %s589_s13, 1 }
   0x6   : > { %141 = sbr.rel (%p138_p2) target bundleno = 256 (0x100), region = 32 }
   0xb   : > { %v652_v0 = vld [vmem:[%s794_s1 + $0x54] ss:$8 sps:$4 sm:$0xff]   ;;  %v654_v1 = vld [vmem:[%s794_s1 + $0x50] ss:$8 sps:$4 sm:$0xff]   ;;  %v690_v2 = vmov 0   ;;  %s798_s13 = smov (!%p161_p3, %s589_s13), 1  ;;  %v458_v36 = vlaneseq }
   0xc   : > { %276 = vmatprep.mubr.bf16.mxu0 %v690_v2  ;;  %351 = vmatprep.mubr.bf16.mxu1 %v690_v2  ;;  %v655_v3 = vld [vmem:[%s794_s1 + $0x24] ss:$8 sps:$4 sm:$0xff]   ;;  %v657_v4 = vld [vmem:[%s794_s1 + $0x20] ss:$8 sps:$4 sm:$0xff]   ;;  %v661_v7 = vld [vmem:[%s794_s1 + $0x14] ss:$8 sps:$4 sm:$0xff]  }
   0xd   : > { %254 = vmatprep.subr.bf16.mxu0 %v652_v0  ;;  %v658_v5 = vld [vmem:[%s794_s1 + $0x44] ss:$8 sps:$4 sm:$0xff]   ;;  %v660_v6 = vld [vmem:[%s794_s1 + $0x40] ss:$8 sps:$4 sm:$0xff]   ;;  %329 = vmatprep.subr.bf16.mxu1 %v655_v3  ;;  %s640_s28 = smul.u32 12, %s798_s13  ;;  %vm240_vm0 = vcmask 392192  }
   0xe   : > { %255 = vmatpush1.bf16.msra.mxu0 %v654_v1  ;;  %330 = vmatpush1.bf16.msra.mxu1 %v657_v4  ;;  %v663_v8 = vld [vmem:[%s794_s1 + $0x10] ss:$8 sps:$4 sm:$0xff]   ;;  %v664_v9 = vld [vmem:[%s794_s1 + $0x34] ss:$8 sps:$4 sm:$0xff]   ;;  %v667_v11 = vld [vmem:[%s794_s1 + $0x4] ss:$8 sps:$4 sm:$0xff]  }
   0xf   : > { %256 = vmatprep.subr.bf16.mxu0 %v658_v5  ;;  %331 = vmatprep.subr.bf16.mxu1 %v661_v7  ;;  %s165_s8 = scalar_lea.vmem %s793_s0, %s640_s28  ;;  %v666_v10 = vld [vmem:[%s794_s1 + $0x30] ss:$8 sps:$4 sm:$0xff]   ;;  %v669_v12 = vld [vmem:[%s794_s1] ss:$8 sps:$4 sm:$0xff]   ;;  %v672_v13 = vld [vmem:[%s794_s1 + $0x84] ss:$8 sps:$4 sm:$0xff]  }
  0x10   : > { %v172_v14 = vld [vmem:[%s165_s8] sm:$0xf]  ;;  %v173_v15 = vld [vmem:[%s165_s8 + $0x4] sm:$0xf]  ;;  %vm197_vm1 = vsmask.f32 7424 }
  0x11   : > { %v602_v16 = vcombine.low %v172_v14, %v173_v15  ;;  %v674_v17 = vld [vmem:[%s165_s8 + $0x8] ss:$0 sps:$4 sm:$0x11]   ;;  %v677_v25 = vld [vmem:[%s794_s1 + $0x74] ss:$8 sps:$4 sm:$0xff]   ;;  %vm372_vm2 = vcmask 1046528  }
  0x12   : > { %257 = vmatpush1.bf16.msra.mxu0 %v660_v6  ;;  %332 = vmatpush1.bf16.msra.mxu1 %v663_v8  ;;  %v206_v20 = vshll.u32 %v674_v17, 16  ;;  %v670_v23 = vld [vmem:[%s794_s1 + $0x80] ss:$8 sps:$4 sm:$0xff]   ;;  %v675_v28 = vld [vmem:[%s794_s1 + $0x70] ss:$8 sps:$4 sm:$0xff]   ;;  %v374_v33 = vrot.slane %v674_v17, 1 }
  0x13   : > { %258 = vmatprep.subr.bf16.mxu0 %v664_v9  ;;  %333 = vmatprep.subr.bf16.mxu1 %v667_v11  ;;  %v199_v18 = vshrl.u32 %v602_v16, 16  ;;  %v201_v19 = vshll.u32 %v602_v16, 16  ;;  %v175_v26 = vld [vmem:[%s165_s8] sm:$0xe]  ;;  %v680_v30 = vld [vmem:[%s794_s1 + $0x64] ss:$8 sps:$4 sm:$0xff]  }
  0x14   : > { %v208_v22 = vrot.slane %v206_v20, 1  ;;  %v624_v29 = vcombine.low %v175_v26, %v173_v15  ;;  %v678_v31 = vld [vmem:[%s794_s1 + $0x60] ss:$8 sps:$4 sm:$0xff]   ;;  %v691_v35 = vmov 0.0   ;;  %v459_v40 = vshrl.u32 %v458_v36, 7  ;;  %s641_s4 = smul.u32 24, %s798_s13 }
  0x15   : > { %v203_v21 = vrot.slane %v201_v19, 1  ;;  %476 = vst [vmem:[#allocation2 + $0x28] sm:$0xff] %v691_v35  ;;  %477 = vst [vmem:[#allocation2 + $0x10] sm:$0xff] %v691_v35  ;;  %v456_v44 = vld [vmem:[%s795_s2] sm:$0x3]  ;;  %vm486_vm3 = vcmask 1040384  }
  0x16   : > { %259 = vmatpush1.bf16.msra.mxu0 %v666_v10  ;;  %334 = vmatpush1.bf16.msra.mxu1 %v669_v12  ;;  %v373_v32 = vrot.slane %v624_v29, 1  ;;  %480 = vst [vmem:[#allocation2 + $0x18] sm:$0x3] %v691_v35  ;;  %481 = vst [vmem:[#allocation2 + $0x20] sm:$0x3] %v691_v35  ;;  %v460_v43 = vsub.s32 0, %v459_v40  ;;  %s170_s7 = scalar_lea.vmem %s796_s3, %s641_s4 }
  0x17   : > { %419 = vmatprep.subr.bf16.mxu0 %v672_v13  ;;  %v204_v24 = vor.u32 %v203_v21, %v199_v18  ;;  %v464_v45 = vsub.s32 1, %v459_v40 }
  0x18   : > { %v375_v34 = vsel %vm372_vm2, %v373_v32, %v374_v33  ;;  %v461_v49 = vrot.slane %v456_v44, %v460_v43 }
  0x19   : > { %617 = vmatmul.mubr.msk.bf16.vlgmr.msra.gmra.mxu1 %vm240_vm0, %v602_v16  ;;  %v209_v27 = vsel %vm197_vm1, %v204_v24, %v208_v22  ;;  %v465_v53 = vrot.slane %v456_v44, %v464_v45 }
  0x1a   : > { %610 = vmatmul.mubr.msk.bf16.vlgmr.msra.gmra.mxu0 %vm240_vm0, %v209_v27 }
  0x1b   : > { %420 = vmatpush1.bf16.msra.mxu0 %v670_v23  ;;  %441 = vmatprep.mubr.bf16.mxu0 %v690_v2 }
  0x1c   : > { %421 = vmatprep.subr.bf16.mxu0 %v677_v25 }
  0x1f   : > { %422 = vmatpush1.bf16.msra.mxu0 %v675_v28 }
  0x20   : > { %423 = vmatprep.subr.bf16.mxu0 %v680_v30 }
  0x23   : > { %424 = vmatpush1.bf16.msra.mxu0 %v678_v31 }
  0x26   : > { %631 = vmatmul.mubr.msk.bf16.vlgmr.msra.gmra.mxu0 %vm240_vm0, %v375_v34 }
  0xd9   : > { %v353_v38 = vpop.f32.mrf.mxu1 }
  0xda   : > { %v278_v37 = vpop.f32.mrf.mxu0 }
  0xdb   : > { %v355_v41 = vpop.f32.mrf.mxu1  ;;  %v354_v48 = vadd.f32 %v353_v38, %v278_v37 }
  0xdc   : > { %v280_v39 = vpop.f32.mrf.mxu0 }
  0xdd   : > { %v357_v46 = vpop.f32.mrf.mxu1  ;;  %v356_v51 = vadd.f32 %v355_v41, %v280_v39 }
  0xde   : > { %v282_v42 = vpop.f32.mrf.mxu0 }
  0xdf   : > { %v359_v54 = vpop.f32.mrf.mxu1  ;;  %v358_v56 = vadd.f32 %v357_v46, %v282_v42 }
  0xe0   : > { %v284_v47 = vpop.f32.mrf.mxu0 }
  0xe1   : > { %v360_v60 = vadd.f32 %v359_v54, %v284_v47 }
  0xe6   : > { %v443_v50 = vpop.f32.mrf.mxu0 }
  0xe7   : > { %v452_v52 = vadd.f32 %v443_v50, %v354_v48 }
  0xe8   : > { %v445_v55 = vpop.f32.mrf.mxu0 }
  0xe9   : > { %v468_v57 = vadd.f32 %v461_v49, %v452_v52  ;;  %v453_v58 = vadd.f32 %v445_v55, %v356_v51 }
  0xea   : > { %v447_v59 = vpop.f32.mrf.mxu0 }
  0xeb   : > { %v472_v61 = vmax.f32 %v468_v57, 0.0  ;;  %v469_v62 = vadd.f32 %v465_v53, %v453_v58  ;;  %v454_v63 = vadd.f32 %v447_v59, %v358_v56 }
  0xec   : > { %v449_v0 = vpop.f32.mrf.mxu0 }
  0xed   : > { %v487_v1 = vrot.slane %v472_v61, 7  ;;  %v473_v2 = vmax.f32 %v469_v62, 0.0  ;;  %v470_v3 = vadd.f32 %v461_v49, %v454_v63  ;;  %v455_v4 = vadd.f32 %v449_v0, %v360_v60 }
  0xef   : > { %499 = vst [vmem:[#allocation2 + $0x28] sm:$0xfe] %v487_v1  ;;  %v488_v5 = vrot.slane %v473_v2, 7  ;;  %v474_v6 = vmax.f32 %v470_v3, 0.0  ;;  %v471_v7 = vadd.f32 %v465_v53, %v455_v4 }
  0xf1   : > { %500 = vst [vmem:[#allocation2 + $0x10] sm:$0xfe] %v488_v5  ;;  %v489_v8 = vrot.slane %v474_v6, 7  ;;  %v475_v9 = vmax.f32 %v471_v7, 0.0 }
  0xf3   : > { %v490_v10 = vsel %vm486_vm3, %v487_v1, %v489_v8  ;;  %503 = vst [vmem:[#allocation2 + $0x18] sm:$0x1] %v489_v8  ;;  %v491_v11 = vrot.slane %v475_v9, 7 }
  0xf5   : > { %v492_v12 = vsel %vm486_vm3, %v488_v5, %v491_v11  ;;  %504 = vst [vmem:[#allocation2 + $0x20] sm:$0x1] %v491_v11 }
  0xf6   : > { %v638_v13 = vpack.c.bf16 %v492_v12, %v490_v10  ;;  %v505_v14 = vld [vmem:[#allocation2 + $0x28] sm:$0xff] }
  0xf8   : > { %v506_v15 = vld [vmem:[#allocation2 + $0x10] sm:$0xff]  ;;  %532 = vst [vmem:[%s170_s7 + $0x8] sm:$0xff] %v638_v13 }
  0xf9   : > { %v637_v16 = vpack.c.bf16 %v506_v15, %v505_v14 }
  0xfa   : > { %v509_v17 = vld [vmem:[#allocation2 + $0x18] sm:$0x3] }
  0xfb   : > { %531 = vst [vmem:[%s170_s7] sm:$0xff] %v637_v16 }
  0xfc   : > { %v510_v18 = vld [vmem:[#allocation2 + $0x20] sm:$0x3] }
  0xfd   : > { %v639_v19 = vpack.c.bf16 %v510_v18, %v509_v17 }
  0xff   : > { %533 = vst [vmem:[%s170_s7 + $0x10] sm:$0x11] %v639_v19 }
 0x100 PF: > { %s13_s12 = sadd.s32 1, %s688_s12  }
 0x101   : > { %p10_p4 = scmp.ge.s32.totalorder %s13_s12, 4  }
 0x103   :  { %12 = sbr.rel (!%p10_p4) target bundleno = 1 (0x1), region = 64 }

// kernel: resnet20_forward.12
= control target key start
LH: loop header
LB: loop body
LE: loop exit
PB: predicated region body
PF: predicated region fallthrough
CT: control target
= control target key end

     0   :  { %s2660_s18 = smov 0   ;;  %s3322_s0 = inlined_call_operand.vmem [shape: bf16[2,18,256], index: 0, kind: input, shape index: {}]   ;;  %s3323_s1 = inlined_call_operand.vmem [shape: bf16[3,256,256], index: 1, kind: input, shape index: {}]   ;;  %s3324_s2 = inlined_call_operand.vmem [shape: f32[1,256], index: 2, kind: input, shape index: {}]   ;;  %s3325_s3 = inlined_call_operand.vmem [shape: bf16[3,256,256], index: 3, kind: input, shape index: {}]   ;;  %s3326_s4 = inlined_call_operand.vmem [shape: f32[1,256], index: 4, kind: input, shape index: {}]   ;;  %s3327_s5 = inlined_call_operand.vmem [shape: bf16[2,18,256], index: 5, kind: output, shape index: {}]  }
   0x1 LB: > { %s1976_s19 = sadd.s32 4294967295, %s2627_s18   ;;  %p1980_p0 = scmp.ge.s32.totalorder %s2627_s18, 1  ;;  %s2627_s18 = sphi %s2660_s18, %s15_s18  }
   0x2   : > { %p187_p1 = scmp.lt.s32.totalorder %s2627_s18, 3 }
   0x4   : > { %p188_p2 = pnand %p1980_p0, %p187_p1 }
   0x5   : > { %p215_p3 = scmp.lt.s32.totalorder (!%p188_p2), %s1976_s19, 1 }
   0x6   : > { %191 = sbr.rel (%p188_p2) target bundleno = 647 (0x287), region = 40 }
   0xb   : > { %v2327_v0 = vld [vmem:[%s3323_s1 + $0x174] ss:$8 sps:$4 sm:$0xff]   ;;  %v2331_v2 = vld [vmem:[%s3323_s1 + $0x170] ss:$8 sps:$4 sm:$0xff]   ;;  %v2333_v4 = vld [vmem:[%s3323_s1 + $0x164] ss:$8 sps:$4 sm:$0xff]  }
   0xc   : > { %v2329_v1 = vld [vmem:[%s3323_s1 + $0x74] ss:$8 sps:$4 sm:$0xff]   ;;  %494 = vmatprep.subr.bf16.mxu0 %v2327_v0  ;;  %v2332_v3 = vld [vmem:[%s3323_s1 + $0x70] ss:$8 sps:$4 sm:$0xff]   ;;  %v2335_v5 = vld [vmem:[%s3323_s1 + $0x64] ss:$8 sps:$4 sm:$0xff]  }
   0xd   : > { %699 = vmatprep.subr.bf16.mxu1 %v2329_v1  ;;  %495 = vmatpush1.bf16.msra.mxu0 %v2331_v2  ;;  %v2337_v6 = vld [vmem:[%s3323_s1 + $0x160] ss:$8 sps:$4 sm:$0xff]   ;;  %v2339_v8 = vld [vmem:[%s3323_s1 + $0x154] ss:$8 sps:$4 sm:$0xff]   ;;  %v2343_v10 = vld [vmem:[%s3323_s1 + $0x150] ss:$8 sps:$4 sm:$0xff]  }
   0xe   : > { %700 = vmatpush1.bf16.msra.mxu1 %v2332_v3  ;;  %496 = vmatprep.subr.bf16.mxu0 %v2333_v4  ;;  %v2338_v7 = vld [vmem:[%s3323_s1 + $0x60] ss:$8 sps:$4 sm:$0xff]   ;;  %v2341_v9 = vld [vmem:[%s3323_s1 + $0x54] ss:$8 sps:$4 sm:$0xff]   ;;  %v2344_v11 = vld [vmem:[%s3323_s1 + $0x50] ss:$8 sps:$4 sm:$0xff]  }
   0xf   : > { %701 = vmatprep.subr.bf16.mxu1 %v2335_v5  ;;  %v2345_v12 = vld [vmem:[%s3323_s1 + $0x144] ss:$8 sps:$4 sm:$0xff]   ;;  %v2349_v14 = vld [vmem:[%s3323_s1 + $0x140] ss:$8 sps:$4 sm:$0xff]   ;;  %v2351_v16 = vld [vmem:[%s3323_s1 + $0x134] ss:$8 sps:$4 sm:$0xff]  }
  0x10   : > { %v2347_v13 = vld [vmem:[%s3323_s1 + $0x44] ss:$8 sps:$4 sm:$0xff]   ;;  %v2350_v15 = vld [vmem:[%s3323_s1 + $0x40] ss:$8 sps:$4 sm:$0xff]   ;;  %v2353_v17 = vld [vmem:[%s3323_s1 + $0x34] ss:$8 sps:$4 sm:$0xff]  }
  0x11   : > { %497 = vmatpush1.bf16.msra.mxu0 %v2337_v6  ;;  %v2355_v18 = vld [vmem:[%s3323_s1 + $0x130] ss:$8 sps:$4 sm:$0xff]   ;;  %v2357_v20 = vld [vmem:[%s3323_s1 + $0x124] ss:$8 sps:$4 sm:$0xff]   ;;  %v2361_v22 = vld [vmem:[%s3323_s1 + $0x120] ss:$8 sps:$4 sm:$0xff]  }
  0x12   : > { %702 = vmatpush1.bf16.msra.mxu1 %v2338_v7  ;;  %498 = vmatprep.subr.bf16.mxu0 %v2339_v8  ;;  %v2356_v19 = vld [vmem:[%s3323_s1 + $0x30] ss:$8 sps:$4 sm:$0xff]   ;;  %v2359_v21 = vld [vmem:[%s3323_s1 + $0x24] ss:$8 sps:$4 sm:$0xff]   ;;  %v2362_v23 = vld [vmem:[%s3323_s1 + $0x20] ss:$8 sps:$4 sm:$0xff]  }
  0x13   : > { %703 = vmatprep.subr.bf16.mxu1 %v2341_v9  ;;  %v2363_v24 = vld [vmem:[%s3323_s1 + $0x114] ss:$8 sps:$4 sm:$0xff]   ;;  %v2367_v26 = vld [vmem:[%s3323_s1 + $0x110] ss:$8 sps:$4 sm:$0xff]   ;;  %v2369_v28 = vld [vmem:[%s3323_s1 + $0x104] ss:$8 sps:$4 sm:$0xff]  }
  0x14   : > { %v2365_v25 = vld [vmem:[%s3323_s1 + $0x14] ss:$8 sps:$4 sm:$0xff]   ;;  %v2368_v27 = vld [vmem:[%s3323_s1 + $0x10] ss:$8 sps:$4 sm:$0xff]   ;;  %v2371_v29 = vld [vmem:[%s3323_s1 + $0x4] ss:$8 sps:$4 sm:$0xff]  }
  0x15   : > { %499 = vmatpush1.bf16.msra.mxu0 %v2343_v10  ;;  %v2373_v30 = vld [vmem:[%s3323_s1 + $0x100] ss:$8 sps:$4 sm:$0xff]   ;;  %v2375_v32 = vld [vmem:[%s3323_s1 + $0x1f4] ss:$8 sps:$4 sm:$0xff]   ;;  %v2379_v34 = vld [vmem:[%s3323_s1 + $0x1f0] ss:$8 sps:$4 sm:$0xff]  }
  0x16   : > { %704 = vmatpush1.bf16.msra.mxu1 %v2344_v11  ;;  %500 = vmatprep.subr.bf16.mxu0 %v2345_v12  ;;  %v2374_v31 = vld [vmem:[%s3323_s1] ss:$8 sps:$4 sm:$0xff]   ;;  %v2377_v33 = vld [vmem:[%s3323_s1 + $0xf4] ss:$8 sps:$4 sm:$0xff]   ;;  %v2380_v35 = vld [vmem:[%s3323_s1 + $0xf0] ss:$8 sps:$4 sm:$0xff]  }
  0x17   : > { %705 = vmatprep.subr.bf16.mxu1 %v2347_v13  ;;  %s3329_s19 = smov (!%p215_p3, %s1976_s19), 1  ;;  %v2381_v36 = vld [vmem:[%s3323_s1 + $0x1e4] ss:$8 sps:$4 sm:$0xff]   ;;  %v2385_v38 = vld [vmem:[%s3323_s1 + $0x1e0] ss:$8 sps:$4 sm:$0xff]   ;;  %vm780_vm1 = vcmask 1046528  }
  0x18   : > { %v2383_v37 = vld [vmem:[%s3323_s1 + $0xe4] ss:$8 sps:$4 sm:$0xff]   ;;  %s2317_s29 = smul.u32 24, %s3329_s19  ;;  %v2386_v39 = vld [vmem:[%s3323_s1 + $0xe0] ss:$8 sps:$4 sm:$0xff]   ;;  %vm1026_vm2 = vcmask 1040384  }
  0x19   : > { %501 = vmatpush1.bf16.msra.mxu0 %v2349_v14  ;;  %v2387_v40 = vld [vmem:[%s3323_s1 + $0x1d4] ss:$8 sps:$4 sm:$0xff]   ;;  %v2391_v42 = vld [vmem:[%s3323_s1 + $0x1d0] ss:$8 sps:$4 sm:$0xff]   ;;  %v2393_v44 = vld [vmem:[%s3323_s1 + $0x1c4] ss:$8 sps:$4 sm:$0xff]  }
  0x1a   : > { %706 = vmatpush1.bf16.msra.mxu1 %v2350_v15  ;;  %502 = vmatprep.subr.bf16.mxu0 %v2351_v16  ;;  %v2389_v41 = vld [vmem:[%s3323_s1 + $0xd4] ss:$8 sps:$4 sm:$0xff]   ;;  %v2392_v43 = vld [vmem:[%s3323_s1 + $0xd0] ss:$8 sps:$4 sm:$0xff]   ;;  %s2812_s17 = scalar_lea.vmem %s3322_s0, %s2317_s29  ;;  %v2395_v45 = vld [vmem:[%s3323_s1 + $0xc4] ss:$8 sps:$4 sm:$0xff]   ;;  %s224_s27 = scalar_lea.vmem %s3327_s5, %s2317_s29 }
  0x1b   : > { %707 = vmatprep.subr.bf16.mxu1 %v2353_v17  ;;  %v2397_v46 = vld [vmem:[%s3323_s1 + $0x1c0] ss:$8 sps:$4 sm:$0xff]   ;;  %v227_v49 = vld [vmem:[%s2812_s17 + $0x10] sm:$0x11]  ;;  %v2405_v63 = vld [vmem:[%s3323_s1 + $0x1a4] ss:$8 sps:$4 sm:$0xff]  }
  0x1c   : > { %v225_v47 = vld [vmem:[%s2812_s17] sm:$0xff]  ;;  %v2825_v48 = vld [vmem:[%s2812_s17 + $0x8] sm:$0xff]  ;;  %v2399_v51 = vld [vmem:[%s3323_s1 + $0x1b4] ss:$8 sps:$4 sm:$0xff]   ;;  %v2835_v53 = vcombine.high %v227_v49, %v227_v49  ;;  %vm307_vm0 = vsmask.f32 7424  ;;  %v2017_v5 = vcombine.low %v227_v49, %v227_v49 }
  0x1d   : > { %503 = vmatpush1.bf16.msra.mxu0 %v2355_v18  ;;  %v2398_v50 = vld [vmem:[%s3323_s1 + $0xc0] ss:$8 sps:$4 sm:$0xff]   ;;  %v2016_v52 = vcombine.high %v225_v47, %v2825_v48  ;;  %v2401_v54 = vld [vmem:[%s3323_s1 + $0xb4] ss:$8 sps:$4 sm:$0xff]   ;;  %v2403_v58 = vld [vmem:[%s3323_s1 + $0x1b0] ss:$8 sps:$4 sm:$0xff]   ;;  %v2015_v62 = vcombine.low %v225_v47, %v2825_v48 }
  0x1e   : > { %708 = vmatpush1.bf16.msra.mxu1 %v2356_v19  ;;  %504 = vmatprep.subr.bf16.mxu0 %v2357_v20  ;;  %v328_v57 = vshll.u32 %v2835_v53, 16  ;;  %v2404_v59 = vld [vmem:[%s3323_s1 + $0xb0] ss:$8 sps:$4 sm:$0xff]   ;;  %v2407_v0 = vld [vmem:[%s3323_s1 + $0xa4] ss:$8 sps:$4 sm:$0xff]   ;;  %v316_v13 = vshll.u32 %v2017_v5, 16 }
  0x1f   : > { %709 = vmatprep.subr.bf16.mxu1 %v2359_v21  ;;  %v321_v55 = vshrl.u32 %v2016_v52, 16  ;;  %v323_v56 = vshll.u32 %v2016_v52, 16  ;;  %731 = vmatprep.mubr.bf16.mxu1 %v2016_v52  ;;  %v2409_v2 = vld [vmem:[%s3323_s1 + $0x1a0] ss:$8 sps:$4 sm:$0xff]   ;;  %v311_v6 = vshll.u32 %v2015_v62, 16  ;;  %v309_v11 = vshrl.u32 %v2015_v62, 16 }
  0x20   : > { %v330_v61 = vrot.slane %v328_v57, 1  ;;  %v2410_v3 = vld [vmem:[%s3323_s1 + $0xa0] ss:$8 sps:$4 sm:$0xff]   ;;  %v2411_v7 = vld [vmem:[%s3323_s1 + $0x194] ss:$8 sps:$4 sm:$0xff]   ;;  %v318_v19 = vrot.slane %v316_v13, 1 }
  0x21   : > { %505 = vmatpush1.bf16.msra.mxu0 %v2361_v22  ;;  %v325_v60 = vrot.slane %v323_v56, 1  ;;  %v2413_v8 = vld [vmem:[%s3323_s1 + $0x94] ss:$8 sps:$4 sm:$0xff]   ;;  %v2415_v9 = vld [vmem:[%s3323_s1 + $0x190] ss:$8 sps:$4 sm:$0xff]   ;;  %v313_v12 = vrot.slane %v311_v6, 1 }
  0x22   : > { %710 = vmatpush1.bf16.msra.mxu1 %v2362_v23  ;;  %506 = vmatprep.subr.bf16.mxu0 %v2363_v24  ;;  %v2416_v10 = vld [vmem:[%s3323_s1 + $0x90] ss:$8 sps:$4 sm:$0xff]   ;;  %v2417_v14 = vld [vmem:[%s3323_s1 + $0x184] ss:$8 sps:$4 sm:$0xff]   ;;  %v2421_v16 = vld [vmem:[%s3323_s1 + $0x180] ss:$8 sps:$4 sm:$0xff]  }
  0x23   : > { %711 = vmatprep.subr.bf16.mxu1 %v2365_v25  ;;  %v326_v1 = vor.u32 %v325_v60, %v321_v55  ;;  %v2419_v15 = vld [vmem:[%s3323_s1 + $0x84] ss:$8 sps:$4 sm:$0xff]   ;;  %v2422_v17 = vld [vmem:[%s3323_s1 + $0x80] ss:$8 sps:$4 sm:$0xff]   ;;  %v314_v18 = vor.u32 %v313_v12, %v309_v11  ;;  %v2429_v20 = vld [vmem:[%s3323_s1 + $0x274] ss:$8 sps:$4 sm:$0xff]  }
  0x24   : > { %v2427_v22 = vld [vmem:[%s3323_s1 + $0x270] ss:$8 sps:$4 sm:$0xff]   ;;  %v2432_v23 = vld [vmem:[%s3323_s1 + $0x264] ss:$8 sps:$4 sm:$0xff]   ;;  %v2430_v24 = vld [vmem:[%s3323_s1 + $0x260] ss:$8 sps:$4 sm:$0xff]  }
  0x25   : > { %507 = vmatpush1.bf16.msra.mxu0 %v2367_v26  ;;  %v331_v4 = vsel %vm307_vm0, %v326_v1, %v330_v61  ;;  %v319_v21 = vsel %vm307_vm0, %v314_v18, %v318_v19  ;;  %v228_v25 = vld [vmem:[%s2812_s17] sm:$0xee]  ;;  %v2435_v26 = vld [vmem:[%s3323_s1 + $0x254] ss:$8 sps:$4 sm:$0xff]   ;;  %v2451_v47 = vld [vmem:[%s3323_s1 + $0x2f0] ss:$8 sps:$4 sm:$0xff]  }
  0x26   : > { %712 = vmatpush1.bf16.msra.mxu1 %v2368_v27  ;;  %508 = vmatprep.subr.bf16.mxu0 %v2369_v28  ;;  %v2116_v27 = vcombine.high %v228_v25, %v2825_v48  ;;  %v785_v28 = vrot.slane %v2835_v53, 1  ;;  %v2454_v49 = vld [vmem:[%s3323_s1 + $0x2e0] ss:$8 sps:$4 sm:$0xff]   ;;  %v2462_v52 = vld [vmem:[%s3323_s1 + $0x2c4] ss:$8 sps:$4 sm:$0xff]  }
  0x27   : > { %713 = vmatprep.subr.bf16.mxu1 %v2371_v29  ;;  %526 = vmatprep.mubr.bf16.mxu0 %v331_v4  ;;  %v2115_v29 = vcombine.low %v228_v25, %v2825_v48  ;;  %v2456_v48 = vld [vmem:[%s3323_s1 + $0x2e4] ss:$8 sps:$4 sm:$0xff]   ;;  %v2460_v53 = vld [vmem:[%s3323_s1 + $0x2c0] ss:$8 sps:$4 sm:$0xff]   ;;  %v2463_v55 = vld [vmem:[%s3323_s1 + $0x2b0] ss:$8 sps:$4 sm:$0xff]  }
  0x28   : > { %v2468_v56 = vld [vmem:[%s3323_s1 + $0x2a4] ss:$8 sps:$4 sm:$0xff]   ;;  %v2466_v57 = vld [vmem:[%s3323_s1 + $0x2a0] ss:$8 sps:$4 sm:$0xff]   ;;  %v2483_v1 = vld [vmem:[%s3325_s3 + $0x170] ss:$8 sps:$4 sm:$0xff]  }
  0x29   : > { %509 = vmatpush1.bf16.msra.mxu0 %v2373_v30  ;;  %v782_v30 = vrot.slane %v2017_v5, 1  ;;  %v2474_v60 = vld [vmem:[%s3323_s1 + $0x284] ss:$8 sps:$4 sm:$0xff]   ;;  %v2472_v61 = vld [vmem:[%s3323_s1 + $0x280] ss:$8 sps:$4 sm:$0xff]  }
  0x2a   : > { %714 = vmatpush1.bf16.msra.mxu1 %v2374_v31  ;;  %510 = vmatprep.subr.bf16.mxu0 %v2375_v32  ;;  %v784_v31 = vrot.slane %v2116_v27, 1  ;;  %v781_v32 = vrot.slane %v2115_v29, 1  ;;  %v2491_v4 = vld [vmem:[%s3325_s3 + $0x164] ss:$8 sps:$4 sm:$0xff]   ;;  %v2488_v5 = vld [vmem:[%s3325_s3 + $0x54] ss:$8 sps:$4 sm:$0xff]  }
  0x2b   : > { %715 = vmatprep.subr.bf16.mxu1 %v2377_v33  ;;  %v2433_v33 = vld [vmem:[%s3323_s1 + $0x250] ss:$8 sps:$4 sm:$0xff]   ;;  %v2489_v6 = vld [vmem:[%s3325_s3 + $0x160] ss:$8 sps:$4 sm:$0xff]   ;;  %v2503_v11 = vld [vmem:[%s3325_s3 + $0x144] ss:$8 sps:$4 sm:$0xff]  }
  0x2c   : > { %v2492_v12 = vld [vmem:[%s3325_s3 + $0x40] ss:$8 sps:$4 sm:$0xff]   ;;  %v2500_v13 = vld [vmem:[%s3325_s3 + $0x34] ss:$8 sps:$4 sm:$0xff]   ;;  %v2507_v18 = vld [vmem:[%s3325_s3 + $0x130] ss:$8 sps:$4 sm:$0xff]  }
  0x2d   : > { %511 = vmatpush2.bf16.msra.mxu0 %v2379_v34  ;;  %v2438_v34 = vld [vmem:[%s3323_s1 + $0x244] ss:$8 sps:$4 sm:$0xff]   ;;  %v2524_v29 = vld [vmem:[%s3325_s3 + $0xf4] ss:$8 sps:$4 sm:$0xff]  }
  0x2e   : > { %716 = vmatpush2.bf16.msra.mxu1 %v2380_v35  ;;  %512 = vmatprep.subr.bf16.mxu0 %v2381_v36  ;;  %v786_v35 = vsel %vm780_vm1, %v784_v31, %v785_v28  ;;  %v783_v36 = vsel %vm780_vm1, %v781_v32, %v782_v30  ;;  %v2515_v19 = vld [vmem:[%s3325_s3 + $0x124] ss:$8 sps:$4 sm:$0xff]   ;;  %v2516_v28 = vld [vmem:[%s3325_s3] ss:$8 sps:$4 sm:$0xff]   ;;  %v2522_v31 = vld [vmem:[%s3325_s3 + $0xf0] ss:$8 sps:$4 sm:$0xff]  }
  0x2f   : > { %717 = vmatprep.subr.bf16.mxu1 %v2383_v37  ;;  %v2436_v37 = vld [vmem:[%s3323_s1 + $0x240] ss:$8 sps:$4 sm:$0xff]   ;;  %v2518_v25 = vld [vmem:[%s3325_s3 + $0x4] ss:$8 sps:$4 sm:$0xff]  }
  0x30   : > { %v2527_v27 = vld [vmem:[%s3325_s3 + $0x104] ss:$8 sps:$4 sm:$0xff]   ;;  %v2525_v30 = vld [vmem:[%s3325_s3 + $0x100] ss:$8 sps:$4 sm:$0xff]  }
  0x31   : > { %513 = vmatpush2.bf16.msra.mxu0 %v2385_v38  ;;  %v2441_v38 = vld [vmem:[%s3323_s1 + $0x234] ss:$8 sps:$4 sm:$0xff]   ;;  %v2530_v32 = vld [vmem:[%s3325_s3 + $0xe4] ss:$8 sps:$4 sm:$0xff]  }
  0x32   : > { %718 = vmatpush2.bf16.msra.mxu1 %v2386_v39  ;;  %514 = vmatprep.subr.bf16.mxu0 %v2387_v40  ;;  %v2439_v39 = vld [vmem:[%s3323_s1 + $0x230] ss:$8 sps:$4 sm:$0xff]   ;;  %v2444_v40 = vld [vmem:[%s3323_s1 + $0x224] ss:$8 sps:$4 sm:$0xff]  }
  0x33   : > { %719 = vmatprep.subr.bf16.mxu1 %v2389_v41  ;;  %v2442_v41 = vld [vmem:[%s3323_s1 + $0x220] ss:$8 sps:$4 sm:$0xff]  }
  0x35   : > { %515 = vmatpush2.bf16.msra.mxu0 %v2391_v42  ;;  %v2447_v42 = vld [vmem:[%s3323_s1 + $0x214] ss:$8 sps:$4 sm:$0xff]  }
  0x36   : > { %720 = vmatpush2.bf16.msra.mxu1 %v2392_v43  ;;  %516 = vmatprep.subr.bf16.mxu0 %v2393_v44  ;;  %v2445_v43 = vld [vmem:[%s3323_s1 + $0x210] ss:$8 sps:$4 sm:$0xff]   ;;  %v2450_v44 = vld [vmem:[%s3323_s1 + $0x204] ss:$8 sps:$4 sm:$0xff]  }
  0x37   : > { %721 = vmatprep.subr.bf16.mxu1 %v2395_v45  ;;  %v2448_v45 = vld [vmem:[%s3323_s1 + $0x200] ss:$8 sps:$4 sm:$0xff]  }
  0x39   : > { %517 = vmatpush2.bf16.msra.mxu0 %v2397_v46  ;;  %v2453_v46 = vld [vmem:[%s3323_s1 + $0x2f4] ss:$8 sps:$4 sm:$0xff]  }
  0x3a   : > { %722 = vmatpush2.bf16.msra.mxu1 %v2398_v50  ;;  %518 = vmatprep.subr.bf16.mxu0 %v2399_v51  ;;  %v2459_v50 = vld [vmem:[%s3323_s1 + $0x2d4] ss:$8 sps:$4 sm:$0xff]   ;;  %v2457_v51 = vld [vmem:[%s3323_s1 + $0x2d0] ss:$8 sps:$4 sm:$0xff]  }
  0x3b   : > { %723 = vmatprep.subr.bf16.mxu1 %v2401_v54  ;;  %v2465_v54 = vld [vmem:[%s3323_s1 + $0x2b4] ss:$8 sps:$4 sm:$0xff]  }
  0x3d   : > { %519 = vmatpush2.bf16.msra.mxu0 %v2403_v58  ;;  %v2471_v58 = vld [vmem:[%s3323_s1 + $0x294] ss:$8 sps:$4 sm:$0xff]  }
  0x3e   : > { %724 = vmatpush2.bf16.msra.mxu1 %v2404_v59  ;;  %520 = vmatprep.subr.bf16.mxu0 %v2405_v63  ;;  %v2469_v59 = vld [vmem:[%s3323_s1 + $0x290] ss:$8 sps:$4 sm:$0xff]   ;;  %v2479_v63 = vld [vmem:[%s3325_s3 + $0x74] ss:$8 sps:$4 sm:$0xff]  }
  0x3f   : > { %725 = vmatprep.subr.bf16.mxu1 %v2407_v0  ;;  %v2482_v0 = vld [vmem:[%s3325_s3 + $0x64] ss:$8 sps:$4 sm:$0xff]  }
  0x41   : > { %521 = vmatpush2.bf16.msra.mxu0 %v2409_v2  ;;  %v2485_v2 = vld [vmem:[%s3325_s3 + $0x174] ss:$8 sps:$4 sm:$0xff]  }
  0x42   : > { %726 = vmatpush2.bf16.msra.mxu1 %v2410_v3  ;;  %522 = vmatprep.subr.bf16.mxu0 %v2411_v7  ;;  %v2480_v3 = vld [vmem:[%s3325_s3 + $0x60] ss:$8 sps:$4 sm:$0xff]   ;;  %v2497_v7 = vld [vmem:[%s3325_s3 + $0x154] ss:$8 sps:$4 sm:$0xff]  }
  0x43   : > { %727 = vmatprep.subr.bf16.mxu1 %v2413_v8  ;;  %v2486_v8 = vld [vmem:[%s3325_s3 + $0x50] ss:$8 sps:$4 sm:$0xff]  }
  0x45   : > { %523 = vmatpush2.bf16.msra.mxu0 %v2415_v9  ;;  %v2494_v9 = vld [vmem:[%s3325_s3 + $0x44] ss:$8 sps:$4 sm:$0xff]  }
  0x46   : > { %728 = vmatpush2.bf16.msra.mxu1 %v2416_v10  ;;  %524 = vmatprep.subr.bf16.mxu0 %v2417_v14  ;;  %v2495_v10 = vld [vmem:[%s3325_s3 + $0x150] ss:$8 sps:$4 sm:$0xff]   ;;  %v2501_v14 = vld [vmem:[%s3325_s3 + $0x140] ss:$8 sps:$4 sm:$0xff]  }
  0x47   : > { %729 = vmatprep.subr.bf16.mxu1 %v2419_v15  ;;  %v2509_v15 = vld [vmem:[%s3325_s3 + $0x134] ss:$8 sps:$4 sm:$0xff]  }
  0x49   : > { %525 = vmatpush2.bf16.msra.mxu0 %v2421_v16  ;;  %v2498_v16 = vld [vmem:[%s3325_s3 + $0x30] ss:$8 sps:$4 sm:$0xff]  }
  0x4a   : > { %730 = vmatpush2.bf16.msra.mxu1 %v2422_v17  ;;  %949 = vmatprep.subr.bf16.mxu0 %v2429_v20  ;;  %v2506_v17 = vld [vmem:[%s3325_s3 + $0x24] ss:$8 sps:$4 sm:$0xff]   ;;  %v2504_v20 = vld [vmem:[%s3325_s3 + $0x20] ss:$8 sps:$4 sm:$0xff]  }
  0x4b   : > { %1318 = vmatprep.subr.bf16.mxu1 %v2485_v2 }
  0x4c   : > { %527 = vmatmul.mubr.bf16.vlgmr.msra.gmra.mxu0 %v319_v21  ;;  %v2512_v21 = vld [vmem:[%s3325_s3 + $0x14] ss:$8 sps:$4 sm:$0xff]  }
  0x4d   : > { %732 = vmatmul.mubr.bf16.vlgmr.msra.gmra.mxu1 %v2015_v62  ;;  %950 = vmatpush1.bf16.msra.mxu0 %v2427_v22  ;;  %v2477_v62 = vld [vmem:[%s3325_s3 + $0x70] ss:$8 sps:$4 sm:$0xff]   ;;  %v2513_v22 = vld [vmem:[%s3325_s3 + $0x120] ss:$8 sps:$4 sm:$0xff]  }
  0x4e   : > { %951 = vmatprep.subr.bf16.mxu0 %v2432_v23  ;;  %981 = vmatprep.mubr.bf16.mxu0 %v786_v35  ;;  %v2521_v23 = vld [vmem:[%s3325_s3 + $0x114] ss:$8 sps:$4 sm:$0xff]  }
  0x4f   : > { %1319 = vmatpush1.bf16.msra.mxu1 %v2483_v1  ;;  %v2536_v35 = vld [vmem:[%s3325_s3 + $0xd4] ss:$8 sps:$4 sm:$0xff]   ;;  %v998_v1 = vlaneseq }
  0x50   : > { %1320 = vmatprep.subr.bf16.mxu1 %v2491_v4 }
  0x51   : > { %952 = vmatpush1.bf16.msra.mxu0 %v2430_v24  ;;  %v2510_v24 = vld [vmem:[%s3325_s3 + $0x10] ss:$8 sps:$4 sm:$0xff]   ;;  %v3183_v4 = vshrl.u32 %v998_v1, 7 }
  0x52   : > { %953 = vmatprep.subr.bf16.mxu0 %v2435_v26  ;;  %v2519_v26 = vld [vmem:[%s3325_s3 + $0x110] ss:$8 sps:$4 sm:$0xff]  }
  0x53   : > { %1321 = vmatpush1.bf16.msra.mxu1 %v2489_v6 }
  0x54   : > { %1322 = vmatprep.subr.bf16.mxu1 %v2497_v7  ;;  %v1000_v7 = vsub.s32 0, %v3183_v4 }
  0x55   : > { %954 = vmatpush1.bf16.msra.mxu0 %v2433_v33  ;;  %v2528_v33 = vld [vmem:[%s3325_s3 + $0xe0] ss:$8 sps:$4 sm:$0xff]  }
  0x56   : > { %955 = vmatprep.subr.bf16.mxu0 %v2438_v34  ;;  %v2533_v34 = vld [vmem:[%s3325_s3 + $0x1f4] ss:$8 sps:$4 sm:$0xff]  }
  0x57   : > { %1323 = vmatpush1.bf16.msra.mxu1 %v2495_v10 }
  0x58   : > { %1324 = vmatprep.subr.bf16.mxu1 %v2503_v11 }
  0x59   : > { %956 = vmatpush1.bf16.msra.mxu0 %v2436_v37  ;;  %v2534_v37 = vld [vmem:[%s3325_s3 + $0xd0] ss:$8 sps:$4 sm:$0xff]  }
  0x5a   : > { %957 = vmatprep.subr.bf16.mxu0 %v2441_v38  ;;  %v2539_v38 = vld [vmem:[%s3325_s3 + $0x1e4] ss:$8 sps:$4 sm:$0xff]  }
  0x5b   : > { %1325 = vmatpush1.bf16.msra.mxu1 %v2501_v14 }
  0x5c   : > { %1326 = vmatprep.subr.bf16.mxu1 %v2509_v15 }
  0x5d   : > { %958 = vmatpush1.bf16.msra.mxu0 %v2439_v39  ;;  %v2542_v39 = vld [vmem:[%s3325_s3 + $0xc4] ss:$8 sps:$4 sm:$0xff]  }
  0x5e   : > { %959 = vmatprep.subr.bf16.mxu0 %v2444_v40  ;;  %v2537_v40 = vld [vmem:[%s3325_s3 + $0x1e0] ss:$8 sps:$4 sm:$0xff]  }
  0x5f   : > { %1327 = vmatpush1.bf16.msra.mxu1 %v2507_v18 }
  0x60   : > { %1328 = vmatprep.subr.bf16.mxu1 %v2515_v19 }
  0x61   : > { %960 = vmatpush1.bf16.msra.mxu0 %v2442_v41  ;;  %v2540_v41 = vld [vmem:[%s3325_s3 + $0xc0] ss:$8 sps:$4 sm:$0xff]  }
  0x62   : > { %961 = vmatprep.subr.bf16.mxu0 %v2447_v42  ;;  %v2545_v42 = vld [vmem:[%s3325_s3 + $0x1d4] ss:$8 sps:$4 sm:$0xff]  }
  0x63   : > { %1329 = vmatpush1.bf16.msra.mxu1 %v2513_v22 }
  0x64   : > { %1330 = vmatprep.subr.bf16.mxu1 %v2521_v23 }
  0x65   : > { %962 = vmatpush1.bf16.msra.mxu0 %v2445_v43  ;;  %v2548_v43 = vld [vmem:[%s3325_s3 + $0xb4] ss:$8 sps:$4 sm:$0xff]  }
  0x66   : > { %963 = vmatprep.subr.bf16.mxu0 %v2450_v44  ;;  %v2543_v44 = vld [vmem:[%s3325_s3 + $0x1d0] ss:$8 sps:$4 sm:$0xff]  }
  0x67   : > { %1331 = vmatpush1.bf16.msra.mxu1 %v2519_v26 }
  0x68   : > { %1332 = vmatprep.subr.bf16.mxu1 %v2527_v27 }
  0x69   : > { %964 = vmatpush1.bf16.msra.mxu0 %v2448_v45  ;;  %v2546_v45 = vld [vmem:[%s3325_s3 + $0xb0] ss:$8 sps:$4 sm:$0xff]  }
  0x6a   : > { %965 = vmatprep.subr.bf16.mxu0 %v2453_v46  ;;  %v2629_v46 = vmov 0.0  }
  0x6b   : > { %1333 = vmatpush1.bf16.msra.mxu1 %v2525_v30  ;;  %1016 = vst [vmem:[#allocation2 + $0x28] sm:$0xff] %v2629_v46  ;;  %1017 = vst [vmem:[#allocation2 + $0x10] sm:$0xff] %v2629_v46 }
  0x6c   : > { %1334 = vmatprep.subr.bf16.mxu1 %v2533_v34  ;;  %1020 = vst [vmem:[#allocation2 + $0x18] sm:$0x3] %v2629_v46  ;;  %1021 = vst [vmem:[#allocation2 + $0x20] sm:$0x3] %v2629_v46 }
  0x6d   : > { %966 = vmatpush2.bf16.msra.mxu0 %v2451_v47  ;;  %v2551_v47 = vld [vmem:[%s3325_s3 + $0x1c4] ss:$8 sps:$4 sm:$0xff]  }
  0x6e   : > { %967 = vmatprep.subr.bf16.mxu0 %v2456_v48  ;;  %v2554_v48 = vld [vmem:[%s3325_s3 + $0xa4] ss:$8 sps:$4 sm:$0xff]  }
  0x71   : > { %968 = vmatpush2.bf16.msra.mxu0 %v2454_v49  ;;  %v2549_v49 = vld [vmem:[%s3325_s3 + $0x1c0] ss:$8 sps:$4 sm:$0xff]  }
  0x72   : > { %969 = vmatprep.subr.bf16.mxu0 %v2459_v50  ;;  %v2552_v50 = vld [vmem:[%s3325_s3 + $0xa0] ss:$8 sps:$4 sm:$0xff]  }
  0x75   : > { %970 = vmatpush2.bf16.msra.mxu0 %v2457_v51  ;;  %v2557_v51 = vld [vmem:[%s3325_s3 + $0x1b4] ss:$8 sps:$4 sm:$0xff]  }
  0x76   : > { %971 = vmatprep.subr.bf16.mxu0 %v2462_v52  ;;  %v2560_v52 = vld [vmem:[%s3325_s3 + $0x94] ss:$8 sps:$4 sm:$0xff]  }
  0x79   : > { %972 = vmatpush2.bf16.msra.mxu0 %v2460_v53  ;;  %v2555_v53 = vld [vmem:[%s3325_s3 + $0x1b0] ss:$8 sps:$4 sm:$0xff]  }
  0x7a   : > { %973 = vmatprep.subr.bf16.mxu0 %v2465_v54  ;;  %v2558_v54 = vld [vmem:[%s3325_s3 + $0x90] ss:$8 sps:$4 sm:$0xff]  }
  0x7d   : > { %974 = vmatpush2.bf16.msra.mxu0 %v2463_v55  ;;  %v2561_v55 = vld [vmem:[%s3325_s3 + $0x1a0] ss:$8 sps:$4 sm:$0xff]  }
  0x7e   : > { %975 = vmatprep.subr.bf16.mxu0 %v2468_v56  ;;  %v2563_v56 = vld [vmem:[%s3325_s3 + $0x1a4] ss:$8 sps:$4 sm:$0xff]  }
  0x81   : > { %976 = vmatpush2.bf16.msra.mxu0 %v2466_v57  ;;  %v2564_v57 = vld [vmem:[%s3325_s3 + $0x80] ss:$8 sps:$4 sm:$0xff]  }
  0x82   : > { %977 = vmatprep.subr.bf16.mxu0 %v2471_v58  ;;  %v2566_v58 = vld [vmem:[%s3325_s3 + $0x84] ss:$8 sps:$4 sm:$0xff]  }
  0x85   : > { %978 = vmatpush2.bf16.msra.mxu0 %v2469_v59  ;;  %v2569_v59 = vld [vmem:[%s3325_s3 + $0x194] ss:$8 sps:$4 sm:$0xff]  }
  0x86   : > { %979 = vmatprep.subr.bf16.mxu0 %v2474_v60  ;;  %v2567_v60 = vld [vmem:[%s3325_s3 + $0x190] ss:$8 sps:$4 sm:$0xff]  }
  0x89   : > { %980 = vmatpush2.bf16.msra.mxu0 %v2472_v61  ;;  %v2572_v61 = vld [vmem:[%s3325_s3 + $0x184] ss:$8 sps:$4 sm:$0xff]  }
  0x8a   : > { %1521 = vmatprep.subr.bf16.mxu0 %v2479_v63  ;;  %v2575_v63 = vld [vmem:[%s3325_s3 + $0x274] ss:$8 sps:$4 sm:$0xff]  }
  0x8c   : > { %982 = vmatmul.mubr.bf16.vlgmr.msra.gmra.mxu0 %v783_v36  ;;  %v2531_v36 = vld [vmem:[%s3325_s3 + $0x1f0] ss:$8 sps:$4 sm:$0xff]  }
  0x8d   : > { %1522 = vmatpush1.bf16.msra.mxu0 %v2477_v62  ;;  %1335 = vmatpush2.bf16.msra.mxu1 %v2531_v36  ;;  %v2570_v62 = vld [vmem:[%s3325_s3 + $0x180] ss:$8 sps:$4 sm:$0xff]  }
  0x8e   : > { %1523 = vmatprep.subr.bf16.mxu0 %v2482_v0  ;;  %1336 = vmatprep.subr.bf16.mxu1 %v2539_v38 }
  0x91   : > { %1524 = vmatpush1.bf16.msra.mxu0 %v2480_v3  ;;  %1337 = vmatpush2.bf16.msra.mxu1 %v2537_v40 }
  0x92   : > { %1525 = vmatprep.subr.bf16.mxu0 %v2488_v5  ;;  %1338 = vmatprep.subr.bf16.mxu1 %v2545_v42 }
  0x95   : > { %1526 = vmatpush1.bf16.msra.mxu0 %v2486_v8  ;;  %1339 = vmatpush2.bf16.msra.mxu1 %v2543_v44  ;;  %v996_v8 = vld [vmem:[%s3324_s2] sm:$0x3] }
  0x96   : > { %1527 = vmatprep.subr.bf16.mxu0 %v2494_v9  ;;  %1340 = vmatprep.subr.bf16.mxu1 %v2551_v47  ;;  %v1004_v9 = vsub.s32 1, %v3183_v4 }
  0x99   : > { %1528 = vmatpush1.bf16.msra.mxu0 %v2492_v12  ;;  %1341 = vmatpush2.bf16.msra.mxu1 %v2549_v49 }
  0x9a   : > { %1529 = vmatprep.subr.bf16.mxu0 %v2500_v13  ;;  %1342 = vmatprep.subr.bf16.mxu1 %v2557_v51  ;;  %v1001_v13 = vrot.slane %v996_v8, %v1000_v7 }
  0x9d   : > { %1530 = vmatpush1.bf16.msra.mxu0 %v2498_v16  ;;  %1343 = vmatpush2.bf16.msra.mxu1 %v2555_v53 }
  0x9e   : > { %1531 = vmatprep.subr.bf16.mxu0 %v2506_v17  ;;  %1344 = vmatprep.subr.bf16.mxu1 %v2563_v56  ;;  %v1005_v17 = vrot.slane %v996_v8, %v1004_v9 }
  0xa1   : > { %1532 = vmatpush1.bf16.msra.mxu0 %v2504_v20  ;;  %1345 = vmatpush2.bf16.msra.mxu1 %v2561_v55 }
  0xa2   : > { %1533 = vmatprep.subr.bf16.mxu0 %v2512_v21  ;;  %1346 = vmatprep.subr.bf16.mxu1 %v2569_v59 }
  0xa5   : > { %1534 = vmatpush1.bf16.msra.mxu0 %v2510_v24  ;;  %1347 = vmatpush2.bf16.msra.mxu1 %v2567_v60 }
  0xa6   : > { %1535 = vmatprep.subr.bf16.mxu0 %v2518_v25  ;;  %1348 = vmatprep.subr.bf16.mxu1 %v2572_v61 }
  0xa9   : > { %1536 = vmatpush1.bf16.msra.mxu0 %v2516_v28  ;;  %1349 = vmatpush2.bf16.msra.mxu1 %v2570_v62 }
  0xaa   : > { %1537 = vmatprep.subr.bf16.mxu0 %v2524_v29  ;;  %1769 = vmatprep.subr.bf16.mxu1 %v2575_v63 }
  0xad   : > { %1538 = vmatpush2.bf16.msra.mxu0 %v2522_v31 }
  0xae   : > { %1539 = vmatprep.subr.bf16.mxu0 %v2530_v32 }
  0xb1   : > { %1540 = vmatpush2.bf16.msra.mxu0 %v2528_v33 }
  0xb2   : > { %1541 = vmatprep.subr.bf16.mxu0 %v2536_v35 }
  0xb5   : > { %1542 = vmatpush2.bf16.msra.mxu0 %v2534_v37 }
  0xb6   : > { %1543 = vmatprep.subr.bf16.mxu0 %v2542_v39 }
  0xb9   : > { %1544 = vmatpush2.bf16.msra.mxu0 %v2540_v41 }
  0xba   : > { %1545 = vmatprep.subr.bf16.mxu0 %v2548_v43 }
  0xbd   : > { %1546 = vmatpush2.bf16.msra.mxu0 %v2546_v45 }
  0xbe   : > { %1547 = vmatprep.subr.bf16.mxu0 %v2554_v48 }
  0xc1   : > { %1548 = vmatpush2.bf16.msra.mxu0 %v2552_v50 }
  0xc2   : > { %1549 = vmatprep.subr.bf16.mxu0 %v2560_v52 }
  0xc5   : > { %1550 = vmatpush2.bf16.msra.mxu0 %v2558_v54 }
  0xc6   : > { %1551 = vmatprep.subr.bf16.mxu0 %v2566_v58 }
  0xc9   : > { %1552 = vmatpush2.bf16.msra.mxu0 %v2564_v57 }
 0x10c   : > { %v528_v0 = vpop.f32.mrf.mxu0 }
 0x10d   : > { %v733_v2 = vpop.f32.mrf.mxu1 }
 0x10e   : > { %v530_v3 = vpop.f32.mrf.mxu0  ;;  %v734_v12 = vadd.f32 %v733_v2, %v528_v0 }
 0x10f   : > { %v735_v5 = vpop.f32.mrf.mxu1 }
 0x110   : > { %v532_v6 = vpop.f32.mrf.mxu0  ;;  %v736_v15 = vadd.f32 %v735_v5, %v530_v3 }
 0x111   : > { %v737_v10 = vpop.f32.mrf.mxu1 }
 0x112   : > { %v534_v11 = vpop.f32.mrf.mxu0  ;;  %v738_v20 = vadd.f32 %v737_v10, %v532_v6  ;;  %v2573_v6 = vld [vmem:[%s3325_s3 + $0x270] ss:$8 sps:$4 sm:$0xff]  }
 0x113   : > { %v739_v18 = vpop.f32.mrf.mxu1 }
 0x114   : > { %v740_v24 = vadd.f32 %v739_v18, %v534_v11  ;;  %v2584_v18 = vld [vmem:[%s3325_s3 + $0x244] ss:$8 sps:$4 sm:$0xff]  }
 0x14c   : > { %v983_v14 = vpop.f32.mrf.mxu0 }
 0x14d   : > { %v992_v16 = vadd.f32 %v983_v14, %v734_v12  ;;  %v2578_v12 = vld [vmem:[%s3325_s3 + $0x264] ss:$8 sps:$4 sm:$0xff]  }
 0x14e   : > { %v985_v19 = vpop.f32.mrf.mxu0 }
 0x14f   : > { %v1008_v21 = vadd.f32 %v1001_v13, %v992_v16  ;;  %v993_v22 = vadd.f32 %v985_v19, %v736_v15  ;;  %v2576_v15 = vld [vmem:[%s3325_s3 + $0x260] ss:$8 sps:$4 sm:$0xff]   ;;  %v2581_v16 = vld [vmem:[%s3325_s3 + $0x254] ss:$8 sps:$4 sm:$0xff]  }
 0x150   : > { %v987_v23 = vpop.f32.mrf.mxu0  ;;  %v2582_v19 = vld [vmem:[%s3325_s3 + $0x240] ss:$8 sps:$4 sm:$0xff]  }
 0x151   : > { %v1012_v25 = vmax.f32 %v1008_v21, 0.0  ;;  %v1009_v26 = vadd.f32 %v1005_v17, %v993_v22  ;;  %v994_v27 = vadd.f32 %v987_v23, %v738_v20  ;;  %v2587_v20 = vld [vmem:[%s3325_s3 + $0x234] ss:$8 sps:$4 sm:$0xff]   ;;  %v2585_v21 = vld [vmem:[%s3325_s3 + $0x230] ss:$8 sps:$4 sm:$0xff]  }
 0x152   : > { %v989_v28 = vpop.f32.mrf.mxu0  ;;  %v2590_v22 = vld [vmem:[%s3325_s3 + $0x224] ss:$8 sps:$4 sm:$0xff]   ;;  %v2588_v23 = vld [vmem:[%s3325_s3 + $0x220] ss:$8 sps:$4 sm:$0xff]  }
 0x153   : > { %v1027_v29 = vrot.slane %v1012_v25, 7  ;;  %v1013_v30 = vmax.f32 %v1009_v26, 0.0  ;;  %v1010_v31 = vadd.f32 %v1001_v13, %v994_v27  ;;  %v995_v32 = vadd.f32 %v989_v28, %v740_v24  ;;  %v2593_v24 = vld [vmem:[%s3325_s3 + $0x214] ss:$8 sps:$4 sm:$0xff]   ;;  %v2591_v25 = vld [vmem:[%s3325_s3 + $0x210] ss:$8 sps:$4 sm:$0xff]  }
 0x154   : > { %v2596_v26 = vld [vmem:[%s3325_s3 + $0x204] ss:$8 sps:$4 sm:$0xff]   ;;  %v2594_v27 = vld [vmem:[%s3325_s3 + $0x200] ss:$8 sps:$4 sm:$0xff]   ;;  %v2599_v28 = vld [vmem:[%s3325_s3 + $0x2f4] ss:$8 sps:$4 sm:$0xff]  }
 0x155   : > { %1039 = vst [vmem:[#allocation2 + $0x28] sm:$0xfe] %v1027_v29  ;;  %v1028_v33 = vrot.slane %v1013_v30, 7  ;;  %v1014_v34 = vmax.f32 %v1010_v31, 0.0  ;;  %v1011_v35 = vadd.f32 %v1005_v17, %v995_v32  ;;  %v2579_v17 = vld [vmem:[%s3325_s3 + $0x250] ss:$8 sps:$4 sm:$0xff]  }
 0x156   : > { %v2602_v30 = vld [vmem:[%s3325_s3 + $0x2e4] ss:$8 sps:$4 sm:$0xff]   ;;  %v2600_v31 = vld [vmem:[%s3325_s3 + $0x2e0] ss:$8 sps:$4 sm:$0xff]   ;;  %v2605_v32 = vld [vmem:[%s3325_s3 + $0x2d4] ss:$8 sps:$4 sm:$0xff]  }
 0x157   : > { %1040 = vst [vmem:[#allocation2 + $0x10] sm:$0xfe] %v1028_v33  ;;  %v1029_v36 = vrot.slane %v1014_v34, 7  ;;  %v1015_v37 = vmax.f32 %v1011_v35, 0.0  ;;  %v2608_v34 = vld [vmem:[%s3325_s3 + $0x2c4] ss:$8 sps:$4 sm:$0xff]  }
 0x158   : > { %v2606_v35 = vld [vmem:[%s3325_s3 + $0x2c0] ss:$8 sps:$4 sm:$0xff]  }
 0x159   : > { %1043 = vst [vmem:[#allocation2 + $0x18] sm:$0x1] %v1029_v36  ;;  %v1031_v38 = vrot.slane %v1015_v37, 7  ;;  %v3195_v39 = vsel %vm1026_vm2, %v1027_v29, %v1029_v36  ;;  %v2597_v29 = vld [vmem:[%s3325_s3 + $0x2f0] ss:$8 sps:$4 sm:$0xff]  }
 0x15a   : > { %v2611_v36 = vld [vmem:[%s3325_s3 + $0x2b4] ss:$8 sps:$4 sm:$0xff]   ;;  %v2609_v37 = vld [vmem:[%s3325_s3 + $0x2b0] ss:$8 sps:$4 sm:$0xff]  }
 0x15b   : > { %1044 = vst [vmem:[#allocation2 + $0x20] sm:$0x1] %v1031_v38  ;;  %v1032_v43 = vsel %vm1026_vm2, %v1028_v33, %v1031_v38  ;;  %v2603_v33 = vld [vmem:[%s3325_s3 + $0x2d0] ss:$8 sps:$4 sm:$0xff]   ;;  %v2614_v38 = vld [vmem:[%s3325_s3 + $0x2a4] ss:$8 sps:$4 sm:$0xff]  }
 0x15c   : > { %v1051_v40 = vld [vmem:[#allocation2 + $0x28] sm:$0xfe] }
 0x15d   : > { %v1045_v41 = vld [vmem:[#allocation2 + $0x28] sm:$0xff]  ;;  %v1055_v42 = vpack.c.bf16 %v3195_v39, %v1051_v40 }
 0x15e   : > { %v1046_v44 = vld [vmem:[#allocation2 + $0x10] sm:$0xff]  ;;  %v1049_v48 = vpack.c.bf16 %v3195_v39, %v1045_v41  ;;  %v2612_v40 = vld [vmem:[%s3325_s3 + $0x2a0] ss:$8 sps:$4 sm:$0xff]  }
 0x15f   : > { %v1052_v45 = vld [vmem:[#allocation2 + $0x10] sm:$0xfe]  ;;  %v1050_v46 = vpack.c.bf16 %v1032_v43, %v1046_v44  ;;  %v1135_v50 = vshll.u32 %v1055_v42, 16  ;;  %v1133_v0 = vshrl.u32 %v1055_v42, 16  ;;  %v2620_v44 = vld [vmem:[%s3325_s3 + $0x284] ss:$8 sps:$4 sm:$0xff]  }
 0x160   : > { %v1056_v47 = vpack.c.bf16 %v1032_v43, %v1052_v45  ;;  %v1053_v49 = vld [vmem:[#allocation2 + $0x18] sm:$0x1]  ;;  %v1060_v54 = vld [vmem:[#allocation2 + $0x10] sm:$0xfc]  ;;  %v1059_v45 = vld [vmem:[#allocation2 + $0x28] sm:$0xfc] }
 0x161   : > { %1553 = vmatprep.mubr.bf16.mxu0 %v1050_v46  ;;  %v1057_v52 = vpack.c.bf16 %v1053_v49, %v1053_v49  ;;  %v1137_v59 = vrot.slane %v1135_v50, 1  ;;  %v1064_v63 = vpack.c.bf16 %v1032_v43, %v1060_v54  ;;  %v2617_v41 = vld [vmem:[%s3325_s3 + $0x294] ss:$8 sps:$4 sm:$0xff]   ;;  %v1061_v42 = vld [vmem:[#allocation2 + $0x18] sm:$0x3]  ;;  %v1816_v54 = vld [vmem:[%s2812_s17] sm:$0xff] }
 0x162   : > { %v1147_v51 = vshll.u32 %v1056_v47, 16  ;;  %1554 = vmatmul.mubr.bf16.vlgmr.msra.gmra.mxu0 %v1049_v48  ;;  %v1054_v53 = vld [vmem:[#allocation2 + $0x20] sm:$0x1]  ;;  %v1145_v61 = vshrl.u32 %v1056_v47, 16  ;;  %v2615_v43 = vld [vmem:[%s3325_s3 + $0x290] ss:$8 sps:$4 sm:$0xff]   ;;  %v1065_v46 = vpack.c.bf16 %v1061_v42, %v1061_v42  ;;  %v1063_v48 = vpack.c.bf16 %v3195_v39, %v1059_v45 }
 0x163   : > { %v1062_v55 = vld [vmem:[#allocation2 + $0x20] sm:$0x3]  ;;  %v1058_v56 = vpack.c.bf16 %v1054_v53, %v1054_v53  ;;  %v1140_v58 = vshll.u32 %v1057_v52, 16  ;;  %v1138_v8 = vor.u32 %v1137_v59, %v1133_v0  ;;  %v1604_v11 = vrot.slane %v1064_v63, 1 }
 0x164   : > { %v1149_v57 = vrot.slane %v1147_v51, 1  ;;  %v1066_v60 = vpack.c.bf16 %v1062_v55, %v1062_v55  ;;  %v2618_v47 = vld [vmem:[%s3325_s3 + $0x280] ss:$8 sps:$4 sm:$0xff]   ;;  %v1602_v49 = vrot.slane %v1065_v46, 1  ;;  %v1601_v50 = vrot.slane %v1063_v48, 1 }
 0x165   : > { %v1152_v62 = vshll.u32 %v1058_v56, 16  ;;  %v1142_v1 = vrot.slane %v1140_v58, 1  ;;  %v1817_v55 = vld [vmem:[%s2812_s17 + $0x8] sm:$0xff]  ;;  %v1819_v58 = vunpack.c.l.bf16 %v1816_v54  ;;  %v1825_v39 = vld [vmem:[%s3326_s4] sm:$0x3] }
 0x166   : > { %v1150_v2 = vor.u32 %v1149_v57, %v1145_v61  ;;  %v1605_v5 = vrot.slane %v1066_v60, 1  ;;  %v1603_v51 = vsel %vm780_vm1, %v1601_v50, %v1602_v49  ;;  %v1821_v59 = vunpack.c.l.bf16 %v1817_v55  ;;  %v1818_v60 = vld [vmem:[%s2812_s17 + $0x10] sm:$0x11] }
 0x167   : > { %v1154_v3 = vrot.slane %v1152_v62, 1  ;;  %v1143_v13 = vsel %vm307_vm0, %v1138_v8, %v1142_v1  ;;  %v1820_v62 = vunpack.c.h.bf16 %v1816_v54  ;;  %v1822_v63 = vunpack.c.h.bf16 %v1817_v55 }
 0x168   : > { %v1606_v14 = vsel %vm780_vm1, %v1604_v11, %v1605_v5  ;;  %v1848_v1 = vrot.slane %v1819_v58, 1 }
 0x169   : > { %v1155_v10 = vsel %vm307_vm0, %v1150_v2, %v1154_v3  ;;  %v1849_v2 = vrot.slane %v1821_v59, 1  ;;  %v1823_v3 = vunpack.c.l.bf16 %v1818_v60  ;;  %v1851_v11 = vrot.slane %v1820_v62, 1 }
 0x16a   : > { %1350 = vmatprep.mubr.bf16.mxu1 %v1155_v10 }
 0x16b   : > { %1351 = vmatmul.mubr.bf16.vlgmr.msra.gmra.mxu1 %v1143_v13  ;;  %v1824_v13 = vunpack.c.h.bf16 %v1818_v60 }
 0x16c   : > { %1770 = vmatpush1.bf16.msra.mxu1 %v2573_v6  ;;  %1801 = vmatprep.mubr.bf16.mxu1 %v1606_v14  ;;  %v1830_v6 = vrot.slane %v1825_v39, %v1000_v7 }
 0x16d   : > { %1771 = vmatprep.subr.bf16.mxu1 %v2578_v12  ;;  %v1852_v12 = vrot.slane %v1822_v63, 1 }
 0x16f   : > { %v1853_v7 = vsel %vm780_vm1, %v1851_v11, %v1852_v12 }
 0x170   : > { %1772 = vmatpush1.bf16.msra.mxu1 %v2576_v15 }
 0x171   : > { %1773 = vmatprep.subr.bf16.mxu1 %v2581_v16  ;;  %v1834_v16 = vrot.slane %v1825_v39, %v1004_v9 }
 0x174   : > { %1774 = vmatpush1.bf16.msra.mxu1 %v2579_v17  ;;  %v1850_v17 = vsel %vm780_vm1, %v1848_v1, %v1849_v2 }
 0x175   : > { %1775 = vmatprep.subr.bf16.mxu1 %v2584_v18 }
 0x178   : > { %1776 = vmatpush1.bf16.msra.mxu1 %v2582_v19  ;;  %v1854_v19 = vrot.slane %v1823_v3, 1 }
 0x179   : > { %1777 = vmatprep.subr.bf16.mxu1 %v2587_v20 }
 0x17c   : > { %1778 = vmatpush1.bf16.msra.mxu1 %v2585_v21 }
 0x17d   : > { %1779 = vmatprep.subr.bf16.mxu1 %v2590_v22 }
 0x180   : > { %1780 = vmatpush1.bf16.msra.mxu1 %v2588_v23 }
 0x181   : > { %1781 = vmatprep.subr.bf16.mxu1 %v2593_v24 }
 0x184   : > { %1782 = vmatpush1.bf16.msra.mxu1 %v2591_v25  ;;  %v1856_v25 = vrot.slane %v1824_v13, 1 }
 0x185   : > { %1783 = vmatprep.subr.bf16.mxu1 %v2596_v26 }
 0x188   : > { %1784 = vmatpush1.bf16.msra.mxu1 %v2594_v27 }
 0x189   : > { %1785 = vmatprep.subr.bf16.mxu1 %v2599_v28 }
 0x18c   : > { %1786 = vmatpush2.bf16.msra.mxu1 %v2597_v29 }
 0x18d   : > { %1787 = vmatprep.subr.bf16.mxu1 %v2602_v30  ;;  %v1855_v30 = vsel %vm780_vm1, %v1849_v2, %v1854_v19 }
 0x190   : > { %1788 = vmatpush2.bf16.msra.mxu1 %v2600_v31 }
 0x191   : > { %1789 = vmatprep.subr.bf16.mxu1 %v2605_v32 }
 0x194   : > { %1790 = vmatpush2.bf16.msra.mxu1 %v2603_v33 }
 0x195   : > { %1791 = vmatprep.subr.bf16.mxu1 %v2608_v34  ;;  %v1857_v34 = vsel %vm780_vm1, %v1852_v12, %v1856_v25 }
 0x198   : > { %1792 = vmatpush2.bf16.msra.mxu1 %v2606_v35 }
 0x199   : > { %1793 = vmatprep.subr.bf16.mxu1 %v2611_v36 }
 0x19c   : > { %1794 = vmatpush2.bf16.msra.mxu1 %v2609_v37 }
 0x19d   : > { %1795 = vmatprep.subr.bf16.mxu1 %v2614_v38 }
 0x1a0   : > { %1796 = vmatpush2.bf16.msra.mxu1 %v2612_v40 }
 0x1a1   : > { %1797 = vmatprep.subr.bf16.mxu1 %v2617_v41 }
 0x1a4   : > { %1798 = vmatpush2.bf16.msra.mxu1 %v2615_v43 }
 0x1a5   : > { %1799 = vmatprep.subr.bf16.mxu1 %v2620_v44 }
 0x1a8   : > { %1800 = vmatpush2.bf16.msra.mxu1 %v2618_v47 }
 0x1ab   : > { %1802 = vmatmul.mubr.bf16.vlgmr.msra.gmra.mxu1 %v1603_v51 }
 0x222   : > { %v1555_v56 = vpop.f32.mrf.mxu0 }
 0x224   : > { %v1557_v61 = vpop.f32.mrf.mxu0 }
 0x226   : > { %v1559_v8 = vpop.f32.mrf.mxu0 }
 0x228   : > { %v1561_v23 = vpop.f32.mrf.mxu0 }
 0x22b   : > { %v1352_v52 = vpop.f32.mrf.mxu1 }
 0x22c   : > { %v1556_v5 = vadd.f32 %v1555_v56, %v1352_v52 }
 0x22d   : > { %v1354_v53 = vpop.f32.mrf.mxu1 }
 0x22e   : > { %v1558_v14 = vadd.f32 %v1557_v61, %v1354_v53 }
 0x22f   : > { %v1356_v57 = vpop.f32.mrf.mxu1 }
 0x230   : > { %v1560_v20 = vadd.f32 %v1559_v8, %v1356_v57 }
 0x231   : > { %v1358_v0 = vpop.f32.mrf.mxu1 }
 0x232   : > { %v1562_v26 = vadd.f32 %v1561_v23, %v1358_v0 }
 0x26b   : > { %v1803_v10 = vpop.f32.mrf.mxu1 }
 0x26c   : > { %v1812_v15 = vadd.f32 %v1803_v10, %v1556_v5 }
 0x26d   : > { %v1805_v18 = vpop.f32.mrf.mxu1 }
 0x26e   : > { %v1837_v21 = vadd.f32 %v1830_v6, %v1812_v15  ;;  %v1813_v22 = vadd.f32 %v1805_v18, %v1558_v14 }
 0x26f   : > { %v1807_v24 = vpop.f32.mrf.mxu1 }
 0x270   : > { %v1862_v27 = vadd.f32 %v1850_v17, %v1837_v21  ;;  %v1838_v28 = vadd.f32 %v1834_v16, %v1813_v22  ;;  %v1814_v29 = vadd.f32 %v1807_v24, %v1560_v20 }
 0x271   : > { %v1809_v4 = vpop.f32.mrf.mxu1 }
 0x272   : > { %v1866_v9 = vmax.f32 %v1862_v27, 0.0  ;;  %v1863_v31 = vadd.f32 %v1853_v7, %v1838_v28  ;;  %v1839_v32 = vadd.f32 %v1830_v6, %v1814_v29  ;;  %v1815_v33 = vadd.f32 %v1809_v4, %v1562_v26 }
 0x274   : > { %v1874_v35 = vrot.slane %v1866_v9, 7  ;;  %v1867_v36 = vmax.f32 %v1863_v31, 0.0  ;;  %v1864_v37 = vadd.f32 %v1855_v30, %v1839_v32  ;;  %v1840_v38 = vadd.f32 %v1834_v16, %v1815_v33 }
 0x276   : > { %1886 = vst [vmem:[#allocation2 + $0x28] sm:$0xfe] %v1874_v35  ;;  %v1875_v40 = vrot.slane %v1867_v36, 7  ;;  %v1868_v41 = vmax.f32 %v1864_v37, 0.0  ;;  %v1865_v42 = vadd.f32 %v1857_v34, %v1840_v38 }
 0x278   : > { %1887 = vst [vmem:[#allocation2 + $0x10] sm:$0xfe] %v1875_v40  ;;  %v1876_v43 = vrot.slane %v1868_v41, 7  ;;  %v1869_v44 = vmax.f32 %v1865_v42, 0.0 }
 0x27a   : > { %v1877_v45 = vsel %vm1026_vm2, %v1874_v35, %v1876_v43  ;;  %1890 = vst [vmem:[#allocation2 + $0x18] sm:$0x1] %v1876_v43  ;;  %v1878_v46 = vrot.slane %v1869_v44, 7 }
 0x27c   : > { %v1879_v47 = vsel %vm1026_vm2, %v1875_v40, %v1878_v46  ;;  %1891 = vst [vmem:[#allocation2 + $0x20] sm:$0x1] %v1878_v46 }
 0x27d   : > { %v2315_v48 = vpack.c.bf16 %v1879_v47, %v1877_v45  ;;  %v1892_v49 = vld [vmem:[#allocation2 + $0x28] sm:$0xff] }
 0x27f   : > { %v1893_v50 = vld [vmem:[#allocation2 + $0x10] sm:$0xff]  ;;  %1919 = vst [vmem:[%s224_s27 + $0x8] sm:$0xff] %v2315_v48 }
 0x280   : > { %v2314_v51 = vpack.c.bf16 %v1893_v50, %v1892_v49 }
 0x281   : > { %v1896_v52 = vld [vmem:[#allocation2 + $0x18] sm:$0x3] }
 0x282   : > { %1918 = vst [vmem:[%s224_s27] sm:$0xff] %v2314_v51 }
 0x283   : > { %v1897_v53 = vld [vmem:[#allocation2 + $0x20] sm:$0x3] }
 0x284   : > { %v2316_v54 = vpack.c.bf16 %v1897_v53, %v1896_v52 }
 0x286   : > { %1920 = vst [vmem:[%s224_s27 + $0x10] sm:$0x11] %v2316_v54 }
 0x287 PF: > { %s15_s18 = sadd.s32 1, %s2627_s18  }
 0x288   : > { %p12_p4 = scmp.ge.s32.totalorder %s15_s18, 4  }
 0x28a   :  { %14 = sbr.rel (!%p12_p4) target bundleno = 1 (0x1), region = 74 }

// kernel: resnet20_forward.11
= control target key start
LH: loop header
LB: loop body
LE: loop exit
PB: predicated region body
PF: predicated region fallthrough
CT: control target
= control target key end

     0   :  { %10 = vsyncpa [#allocation4], 0  ;;  %s2802_s0 = inlined_call_operand.vmem [shape: bf16[2,18,256], index: 0, kind: input, shape index: {}]   ;;  %s2803_s1 = inlined_call_operand.hbm [shape: bf16[3,256,256], index: 1, kind: input, shape index: {}]   ;;  %s2804_s2 = inlined_call_operand.vmem [shape: f32[1,256], index: 2, kind: input, shape index: {}]   ;;  %s2805_s3 = inlined_call_operand.hbm [shape: bf16[3,256,256], index: 3, kind: input, shape index: {}]   ;;  %s2806_s4 = inlined_call_operand.vmem [shape: f32[1,256], index: 4, kind: input, shape index: {}]   ;;  %s2807_s5 = inlined_call_operand.vmem [shape: bf16[2,18,256], index: 5, kind: output, shape index: {}]  }
   0x1   :  { %11 = vsyncpa [#allocation6], 0  ;;  %s2675_s18 = smov 0  }
   0x2 LB: > { %s2681_s19 = sadd.s32 4294967295, %s2638_s18   ;;  %p2030_p0 = scmp.ge.s32.totalorder %s2638_s18, 1  ;;  %s2638_s18 = sphi %s2675_s18, %s17_s18  }
   0x3   : > { %p158_p1 = scmp.lt.s32.totalorder %s2638_s18, 3  ;;  %s2640_s20 = smov [#allocation3]  }
   0x4   : > { %s170_s21 = sshll.u32 %s2640_s20, 4  ;;  %p2261_p3 = scmp.eq.s32.totalorder %s2681_s19, 0  ;;  %s171_s21 = int_to_ptr.vmem [resolvable:$true] %s170_s21 }
   0x5   : > { %p2685_p2 = pnand %p2030_p0, %p158_p1  ;;  %s2641_s23 = smov [#allocation5]  }
   0x6   : > { %s186_s24 = sshll.u32 %s2641_s23, 4  ;;  %s2583_s26 = scalar_lea.vmem %s171_s21, 12288  ;;  %s187_s24 = int_to_ptr.vmem [resolvable:$true] %s186_s24 }
   0x7   : > { %p2254_p4 = pneg %p2685_p2  ;;  %p2584_p7 = scmp.ne.s32.totalorder %s171_s21, %s2583_s26 }
   0x8   : > { %p2591_p10 = scmp.lt.s32.totalorder %s171_s21, %s171_s21  ;;  %p2592_p11 = scmp.lt.s32.totalorder %s2583_s26, %s2583_s26 }
   0x9   : > { %p2694_p5 = pnand %p2261_p3, %p2254_p4 }
   0xa   : > { %p2593_p12 = por %p2592_p11, %p2591_p10 }
   0xb   : > { %p2574_p6 = pneg %p2694_p5 }
   0xd   : > { %p2586_p8 = pnand %p2584_p7, %p2574_p6 }
   0xf   : > { %p2587_p9 = pneg %p2586_p8 }
  0x11   : > { %p2594_p13 = pnand %p2593_p12, %p2587_p9 }
  0x13   : > { %2597 = shalt.err (!%p2594_p13)
}
  0x14   : > { %s2642_s27 = smov 128   ;;  %s2643_s28 = smov 8  }
  0x15   : > { %2257 = dma.hbm_to_vmem [thread:$0]  (!%p2694_p5), %s2803_s1, 12288, %s171_s21, [#allocation4], %s2642_s27, %s2642_s27, %s2643_s28  }
  0x16   : > { %s2609_s6 = scalar_lea.vmem %s187_s24, 12288  ;;  %p2617_p7 = scmp.lt.s32.totalorder %s187_s24, %s187_s24 }
  0x17   : > { %p2610_p0 = scmp.ne.s32.totalorder %s187_s24, %s2609_s6  ;;  %p2618_p8 = scmp.lt.s32.totalorder %s2609_s6, %s2609_s6 }
  0x19   : > { %p2612_p1 = pnand %p2610_p0, %p2574_p6  ;;  %p2619_p10 = por %p2618_p8, %p2617_p7 }
  0x1b   : > { %p2613_p4 = pneg %p2612_p1 }
  0x1d   : > { %p2620_p9 = pnand %p2619_p10, %p2613_p4 }
  0x1f   : > { %2623 = shalt.err (!%p2620_p9)
}
  0x20   : > { %2260 = dma.hbm_to_vmem [thread:$0]  (!%p2694_p5), %s2805_s3, 12288, %s187_s24, [#allocation6], %s2642_s27, %s2642_s27, %s2643_s28  }
  0x21   : > { %213 = sbr.rel (%p2685_p2) target bundleno = 677 (0x2a5), region = 40 }
  0x26   : > { %2629 = dma.done.wait (%p2261_p3), [#allocation4], 12288  }
  0x27   : > { %2631 = vsyncadd (%p2261_p3), [#allocation4], 4294955008 }
  0x28   : > { %2633 = dma.done.wait (%p2261_p3), [#allocation6], 12288  }
  0x29   : > { %2635 = vsyncadd (%p2261_p3), [#allocation6], 4294955008  ;;  %v2278_v0 = vld [vmem:[#allocation3 + $0x174] ss:$8 sps:$4 sm:$0xff]   ;;  %v2282_v2 = vld [vmem:[#allocation3 + $0x170] ss:$8 sps:$4 sm:$0xff]  }
  0x2a   : > { %v2280_v1 = vld [vmem:[#allocation3 + $0x74] ss:$8 sps:$4 sm:$0xff]   ;;  %524 = vmatprep.subr.bf16.mxu0 %v2278_v0  ;;  %v2283_v3 = vld [vmem:[#allocation3 + $0x70] ss:$8 sps:$4 sm:$0xff]   ;;  %v2284_v4 = vld [vmem:[#allocation3 + $0x164] ss:$8 sps:$4 sm:$0xff]  }
  0x2b   : > { %729 = vmatprep.subr.bf16.mxu1 %v2280_v1  ;;  %525 = vmatpush1.bf16.msra.mxu0 %v2282_v2  ;;  %v2286_v5 = vld [vmem:[#allocation3 + $0x64] ss:$8 sps:$4 sm:$0xff]   ;;  %v2288_v6 = vld [vmem:[#allocation3 + $0x160] ss:$8 sps:$4 sm:$0xff]   ;;  %v2290_v8 = vld [vmem:[#allocation3 + $0x154] ss:$8 sps:$4 sm:$0xff]  }
  0x2c   : > { %730 = vmatpush1.bf16.msra.mxu1 %v2283_v3  ;;  %526 = vmatprep.subr.bf16.mxu0 %v2284_v4  ;;  %v2289_v7 = vld [vmem:[#allocation3 + $0x60] ss:$8 sps:$4 sm:$0xff]   ;;  %v2292_v9 = vld [vmem:[#allocation3 + $0x54] ss:$8 sps:$4 sm:$0xff]   ;;  %v2294_v10 = vld [vmem:[#allocation3 + $0x150] ss:$8 sps:$4 sm:$0xff]  }
  0x2d   : > { %731 = vmatprep.subr.bf16.mxu1 %v2286_v5  ;;  %v2295_v11 = vld [vmem:[#allocation3 + $0x50] ss:$8 sps:$4 sm:$0xff]   ;;  %v2296_v12 = vld [vmem:[#allocation3 + $0x144] ss:$8 sps:$4 sm:$0xff]   ;;  %v2300_v14 = vld [vmem:[#allocation3 + $0x140] ss:$8 sps:$4 sm:$0xff]  }
  0x2e   : > { %v2298_v13 = vld [vmem:[#allocation3 + $0x44] ss:$8 sps:$4 sm:$0xff]   ;;  %v2301_v15 = vld [vmem:[#allocation3 + $0x40] ss:$8 sps:$4 sm:$0xff]   ;;  %v2302_v16 = vld [vmem:[#allocation3 + $0x134] ss:$8 sps:$4 sm:$0xff]  }
  0x2f   : > { %527 = vmatpush1.bf16.msra.mxu0 %v2288_v6  ;;  %v2304_v17 = vld [vmem:[#allocation3 + $0x34] ss:$8 sps:$4 sm:$0xff]   ;;  %v2306_v18 = vld [vmem:[#allocation3 + $0x130] ss:$8 sps:$4 sm:$0xff]   ;;  %v2308_v20 = vld [vmem:[#allocation3 + $0x124] ss:$8 sps:$4 sm:$0xff]  }
  0x30   : > { %732 = vmatpush1.bf16.msra.mxu1 %v2289_v7  ;;  %528 = vmatprep.subr.bf16.mxu0 %v2290_v8  ;;  %v2307_v19 = vld [vmem:[#allocation3 + $0x30] ss:$8 sps:$4 sm:$0xff]   ;;  %v2310_v21 = vld [vmem:[#allocation3 + $0x24] ss:$8 sps:$4 sm:$0xff]   ;;  %v2312_v22 = vld [vmem:[#allocation3 + $0x120] ss:$8 sps:$4 sm:$0xff]  }
  0x31   : > { %733 = vmatprep.subr.bf16.mxu1 %v2292_v9  ;;  %v2313_v23 = vld [vmem:[#allocation3 + $0x20] ss:$8 sps:$4 sm:$0xff]   ;;  %v2314_v24 = vld [vmem:[#allocation3 + $0x114] ss:$8 sps:$4 sm:$0xff]   ;;  %v2318_v26 = vld [vmem:[#allocation3 + $0x110] ss:$8 sps:$4 sm:$0xff]  }
  0x32   : > { %v2316_v25 = vld [vmem:[#allocation3 + $0x14] ss:$8 sps:$4 sm:$0xff]   ;;  %v2319_v27 = vld [vmem:[#allocation3 + $0x10] ss:$8 sps:$4 sm:$0xff]   ;;  %v2320_v28 = vld [vmem:[#allocation3 + $0x104] ss:$8 sps:$4 sm:$0xff]  }
  0x33   : > { %529 = vmatpush1.bf16.msra.mxu0 %v2294_v10  ;;  %v2322_v29 = vld [vmem:[#allocation3 + $0x4] ss:$8 sps:$4 sm:$0xff]   ;;  %v2324_v30 = vld [vmem:[#allocation3 + $0x100] ss:$8 sps:$4 sm:$0xff]   ;;  %p245_p2 = scmp.lt.s32.totalorder %s2681_s19, 1  ;;  %vm810_vm1 = vcmask 1046528  }
  0x34   : > { %734 = vmatpush1.bf16.msra.mxu1 %v2295_v11  ;;  %530 = vmatprep.subr.bf16.mxu0 %v2296_v12  ;;  %v2325_v31 = vld [vmem:[#allocation3] ss:$8 sps:$4 sm:$0xff]   ;;  %v2326_v32 = vld [vmem:[#allocation3 + $0x1f4] ss:$8 sps:$4 sm:$0xff]   ;;  %v2330_v34 = vld [vmem:[#allocation3 + $0x1f0] ss:$8 sps:$4 sm:$0xff]  }
  0x35   : > { %735 = vmatprep.subr.bf16.mxu1 %v2298_v13  ;;  %v2328_v33 = vld [vmem:[#allocation3 + $0xf4] ss:$8 sps:$4 sm:$0xff]   ;;  %v2331_v35 = vld [vmem:[#allocation3 + $0xf0] ss:$8 sps:$4 sm:$0xff]   ;;  %s2811_s19 = smov (!%p245_p2, %s2681_s19), 1  ;;  %vm1056_vm2 = vcmask 1040384  }
  0x36   : > { %v2332_v36 = vld [vmem:[#allocation3 + $0x1e4] ss:$8 sps:$4 sm:$0xff]   ;;  %v2336_v38 = vld [vmem:[#allocation3 + $0x1e0] ss:$8 sps:$4 sm:$0xff]   ;;  %s2245_s9 = smul.u32 24, %s2811_s19 }
  0x37   : > { %531 = vmatpush1.bf16.msra.mxu0 %v2300_v14  ;;  %v2334_v37 = vld [vmem:[#allocation3 + $0xe4] ss:$8 sps:$4 sm:$0xff]   ;;  %v2337_v39 = vld [vmem:[#allocation3 + $0xe0] ss:$8 sps:$4 sm:$0xff]   ;;  %v2338_v40 = vld [vmem:[#allocation3 + $0x1d4] ss:$8 sps:$4 sm:$0xff]  }
  0x38   : > { %736 = vmatpush1.bf16.msra.mxu1 %v2301_v15  ;;  %532 = vmatprep.subr.bf16.mxu0 %v2302_v16  ;;  %v2340_v41 = vld [vmem:[#allocation3 + $0xd4] ss:$8 sps:$4 sm:$0xff]   ;;  %v2342_v42 = vld [vmem:[#allocation3 + $0x1d0] ss:$8 sps:$4 sm:$0xff]   ;;  %s2736_s12 = scalar_lea.vmem %s2802_s0, %s2245_s9  ;;  %v2344_v44 = vld [vmem:[#allocation3 + $0x1c4] ss:$8 sps:$4 sm:$0xff]   ;;  %s254_s21 = scalar_lea.vmem %s2807_s5, %s2245_s9 }
  0x39   : > { %737 = vmatprep.subr.bf16.mxu1 %v2304_v17  ;;  %v2343_v43 = vld [vmem:[#allocation3 + $0xd0] ss:$8 sps:$4 sm:$0xff]   ;;  %v2346_v45 = vld [vmem:[#allocation3 + $0xc4] ss:$8 sps:$4 sm:$0xff]   ;;  %v2348_v46 = vld [vmem:[#allocation3 + $0x1c0] ss:$8 sps:$4 sm:$0xff]  }
  0x3a   : > { %v255_v47 = vld [vmem:[%s2736_s12] sm:$0xff]  ;;  %v2740_v48 = vld [vmem:[%s2736_s12 + $0x8] sm:$0xff]  ;;  %v257_v49 = vld [vmem:[%s2736_s12 + $0x10] sm:$0x11]  ;;  %vm337_vm0 = vsmask.f32 7424 }
  0x3b   : > { %533 = vmatpush1.bf16.msra.mxu0 %v2306_v18  ;;  %v2349_v50 = vld [vmem:[#allocation3 + $0xc0] ss:$8 sps:$4 sm:$0xff]   ;;  %v2350_v51 = vld [vmem:[#allocation3 + $0x1b4] ss:$8 sps:$4 sm:$0xff]   ;;  %v2040_v52 = vcombine.high %v255_v47, %v2740_v48  ;;  %v2744_v53 = vcombine.high %v257_v49, %v257_v49  ;;  %v2354_v58 = vld [vmem:[#allocation3 + $0x1b0] ss:$8 sps:$4 sm:$0xff]   ;;  %v2039_v62 = vcombine.low %v255_v47, %v2740_v48  ;;  %v2041_v5 = vcombine.low %v257_v49, %v257_v49 }
  0x3c   : > { %738 = vmatpush1.bf16.msra.mxu1 %v2307_v19  ;;  %534 = vmatprep.subr.bf16.mxu0 %v2308_v20  ;;  %v2352_v54 = vld [vmem:[#allocation3 + $0xb4] ss:$8 sps:$4 sm:$0xff]   ;;  %v2355_v59 = vld [vmem:[#allocation3 + $0xb0] ss:$8 sps:$4 sm:$0xff]   ;;  %v2356_v63 = vld [vmem:[#allocation3 + $0x1a4] ss:$8 sps:$4 sm:$0xff]  }
  0x3d   : > { %739 = vmatprep.subr.bf16.mxu1 %v2310_v21  ;;  %v351_v55 = vshrl.u32 %v2040_v52, 16  ;;  %v353_v56 = vshll.u32 %v2040_v52, 16  ;;  %v358_v57 = vshll.u32 %v2744_v53, 16  ;;  %761 = vmatprep.mubr.bf16.mxu1 %v2040_v52  ;;  %v2358_v0 = vld [vmem:[#allocation3 + $0xa4] ss:$8 sps:$4 sm:$0xff]   ;;  %v341_v6 = vshll.u32 %v2039_v62, 16 }
  0x3e   : > { %v2360_v2 = vld [vmem:[#allocation3 + $0x1a0] ss:$8 sps:$4 sm:$0xff]   ;;  %v2362_v7 = vld [vmem:[#allocation3 + $0x194] ss:$8 sps:$4 sm:$0xff]   ;;  %v2366_v9 = vld [vmem:[#allocation3 + $0x190] ss:$8 sps:$4 sm:$0xff]  }
  0x3f   : > { %535 = vmatpush1.bf16.msra.mxu0 %v2312_v22  ;;  %v355_v60 = vrot.slane %v353_v56, 1  ;;  %v360_v61 = vrot.slane %v358_v57, 1  ;;  %v2361_v3 = vld [vmem:[#allocation3 + $0xa0] ss:$8 sps:$4 sm:$0xff]   ;;  %v2364_v8 = vld [vmem:[#allocation3 + $0x94] ss:$8 sps:$4 sm:$0xff]  }
  0x40   : > { %740 = vmatpush1.bf16.msra.mxu1 %v2313_v23  ;;  %536 = vmatprep.subr.bf16.mxu0 %v2314_v24  ;;  %v2367_v10 = vld [vmem:[#allocation3 + $0x90] ss:$8 sps:$4 sm:$0xff]   ;;  %v339_v11 = vshrl.u32 %v2039_v62, 16  ;;  %v343_v12 = vrot.slane %v341_v6, 1  ;;  %v346_v13 = vshll.u32 %v2041_v5, 16 }
  0x41   : > { %741 = vmatprep.subr.bf16.mxu1 %v2316_v25  ;;  %v356_v1 = vor.u32 %v355_v60, %v351_v55  ;;  %v2368_v14 = vld [vmem:[#allocation3 + $0x184] ss:$8 sps:$4 sm:$0xff]   ;;  %v2372_v16 = vld [vmem:[#allocation3 + $0x180] ss:$8 sps:$4 sm:$0xff]   ;;  %v2380_v20 = vld [vmem:[#allocation3 + $0x274] ss:$8 sps:$4 sm:$0xff]  }
  0x42   : > { %v2370_v15 = vld [vmem:[#allocation3 + $0x84] ss:$8 sps:$4 sm:$0xff]   ;;  %v2373_v17 = vld [vmem:[#allocation3 + $0x80] ss:$8 sps:$4 sm:$0xff]   ;;  %v344_v18 = vor.u32 %v343_v12, %v339_v11  ;;  %v348_v19 = vrot.slane %v346_v13, 1 }
  0x43   : > { %537 = vmatpush1.bf16.msra.mxu0 %v2318_v26  ;;  %v361_v4 = vsel %vm337_vm0, %v356_v1, %v360_v61  ;;  %v2378_v22 = vld [vmem:[#allocation3 + $0x270] ss:$8 sps:$4 sm:$0xff]   ;;  %v2383_v23 = vld [vmem:[#allocation3 + $0x264] ss:$8 sps:$4 sm:$0xff]   ;;  %v2381_v24 = vld [vmem:[#allocation3 + $0x260] ss:$8 sps:$4 sm:$0xff]  }
  0x44   : > { %742 = vmatpush1.bf16.msra.mxu1 %v2319_v27  ;;  %538 = vmatprep.subr.bf16.mxu0 %v2320_v28  ;;  %v349_v21 = vsel %vm337_vm0, %v344_v18, %v348_v19  ;;  %v258_v25 = vld [vmem:[%s2736_s12] sm:$0xee]  ;;  %v815_v28 = vrot.slane %v2744_v53, 1  ;;  %v2405_v49 = vld [vmem:[#allocation3 + $0x2e0] ss:$8 sps:$4 sm:$0xff]  }
  0x45   : > { %743 = vmatprep.subr.bf16.mxu1 %v2322_v29  ;;  %556 = vmatprep.mubr.bf16.mxu0 %v361_v4  ;;  %v2386_v26 = vld [vmem:[#allocation3 + $0x254] ss:$8 sps:$4 sm:$0xff]   ;;  %v2108_v27 = vcombine.high %v258_v25, %v2740_v48  ;;  %v2107_v29 = vcombine.low %v258_v25, %v2740_v48  ;;  %v2402_v47 = vld [vmem:[#allocation3 + $0x2f0] ss:$8 sps:$4 sm:$0xff]   ;;  %v2407_v48 = vld [vmem:[#allocation3 + $0x2e4] ss:$8 sps:$4 sm:$0xff]  }
  0x46   : > { %v2413_v52 = vld [vmem:[#allocation3 + $0x2c4] ss:$8 sps:$4 sm:$0xff]   ;;  %v2411_v53 = vld [vmem:[#allocation3 + $0x2c0] ss:$8 sps:$4 sm:$0xff]   ;;  %v2414_v55 = vld [vmem:[#allocation3 + $0x2b0] ss:$8 sps:$4 sm:$0xff]  }
  0x47   : > { %539 = vmatpush1.bf16.msra.mxu0 %v2324_v30  ;;  %v812_v30 = vrot.slane %v2041_v5, 1  ;;  %v2419_v56 = vld [vmem:[#allocation3 + $0x2a4] ss:$8 sps:$4 sm:$0xff]   ;;  %v2417_v57 = vld [vmem:[#allocation3 + $0x2a0] ss:$8 sps:$4 sm:$0xff]  }
  0x48   : > { %744 = vmatpush1.bf16.msra.mxu1 %v2325_v31  ;;  %540 = vmatprep.subr.bf16.mxu0 %v2326_v32  ;;  %v814_v31 = vrot.slane %v2108_v27, 1  ;;  %v811_v32 = vrot.slane %v2107_v29, 1  ;;  %v2425_v60 = vld [vmem:[#allocation3 + $0x284] ss:$8 sps:$4 sm:$0xff]   ;;  %v2423_v61 = vld [vmem:[#allocation3 + $0x280] ss:$8 sps:$4 sm:$0xff]  }
  0x49   : > { %745 = vmatprep.subr.bf16.mxu1 %v2328_v33  ;;  %v2384_v33 = vld [vmem:[#allocation3 + $0x250] ss:$8 sps:$4 sm:$0xff]   ;;  %v2442_v4 = vld [vmem:[#allocation5 + $0x164] ss:$8 sps:$4 sm:$0xff]   ;;  %v2439_v5 = vld [vmem:[#allocation5 + $0x54] ss:$8 sps:$4 sm:$0xff]  }
  0x4a   : > { %v2434_v1 = vld [vmem:[#allocation5 + $0x170] ss:$8 sps:$4 sm:$0xff]   ;;  %v2440_v6 = vld [vmem:[#allocation5 + $0x160] ss:$8 sps:$4 sm:$0xff]   ;;  %v2454_v11 = vld [vmem:[#allocation5 + $0x144] ss:$8 sps:$4 sm:$0xff]  }
  0x4b   : > { %541 = vmatpush2.bf16.msra.mxu0 %v2330_v34  ;;  %v2389_v34 = vld [vmem:[#allocation3 + $0x244] ss:$8 sps:$4 sm:$0xff]   ;;  %v2443_v12 = vld [vmem:[#allocation5 + $0x40] ss:$8 sps:$4 sm:$0xff]   ;;  %v2451_v13 = vld [vmem:[#allocation5 + $0x34] ss:$8 sps:$4 sm:$0xff]  }
  0x4c   : > { %746 = vmatpush2.bf16.msra.mxu1 %v2331_v35  ;;  %542 = vmatprep.subr.bf16.mxu0 %v2332_v36  ;;  %v816_v35 = vsel %vm810_vm1, %v814_v31, %v815_v28  ;;  %v813_v36 = vsel %vm810_vm1, %v811_v32, %v812_v30  ;;  %v2458_v18 = vld [vmem:[#allocation5 + $0x130] ss:$8 sps:$4 sm:$0xff]   ;;  %v2466_v19 = vld [vmem:[#allocation5 + $0x124] ss:$8 sps:$4 sm:$0xff]   ;;  %v2467_v28 = vld [vmem:[#allocation5] ss:$8 sps:$4 sm:$0xff]  }
  0x4d   : > { %747 = vmatprep.subr.bf16.mxu1 %v2334_v37  ;;  %v2387_v37 = vld [vmem:[#allocation3 + $0x240] ss:$8 sps:$4 sm:$0xff]   ;;  %v2469_v25 = vld [vmem:[#allocation5 + $0x4] ss:$8 sps:$4 sm:$0xff]   ;;  %v2475_v29 = vld [vmem:[#allocation5 + $0xf4] ss:$8 sps:$4 sm:$0xff]  }
  0x4e   : > { %v2478_v27 = vld [vmem:[#allocation5 + $0x104] ss:$8 sps:$4 sm:$0xff]   ;;  %v2476_v30 = vld [vmem:[#allocation5 + $0x100] ss:$8 sps:$4 sm:$0xff]   ;;  %v2473_v31 = vld [vmem:[#allocation5 + $0xf0] ss:$8 sps:$4 sm:$0xff]  }
  0x4f   : > { %543 = vmatpush2.bf16.msra.mxu0 %v2336_v38  ;;  %v2392_v38 = vld [vmem:[#allocation3 + $0x234] ss:$8 sps:$4 sm:$0xff]   ;;  %v2481_v32 = vld [vmem:[#allocation5 + $0xe4] ss:$8 sps:$4 sm:$0xff]  }
  0x50   : > { %748 = vmatpush2.bf16.msra.mxu1 %v2337_v39  ;;  %544 = vmatprep.subr.bf16.mxu0 %v2338_v40  ;;  %v2390_v39 = vld [vmem:[#allocation3 + $0x230] ss:$8 sps:$4 sm:$0xff]   ;;  %v2395_v40 = vld [vmem:[#allocation3 + $0x224] ss:$8 sps:$4 sm:$0xff]  }
  0x51   : > { %749 = vmatprep.subr.bf16.mxu1 %v2340_v41  ;;  %v2393_v41 = vld [vmem:[#allocation3 + $0x220] ss:$8 sps:$4 sm:$0xff]  }
  0x53   : > { %545 = vmatpush2.bf16.msra.mxu0 %v2342_v42  ;;  %v2398_v42 = vld [vmem:[#allocation3 + $0x214] ss:$8 sps:$4 sm:$0xff]  }
  0x54   : > { %750 = vmatpush2.bf16.msra.mxu1 %v2343_v43  ;;  %546 = vmatprep.subr.bf16.mxu0 %v2344_v44  ;;  %v2396_v43 = vld [vmem:[#allocation3 + $0x210] ss:$8 sps:$4 sm:$0xff]   ;;  %v2401_v44 = vld [vmem:[#allocation3 + $0x204] ss:$8 sps:$4 sm:$0xff]  }
  0x55   : > { %751 = vmatprep.subr.bf16.mxu1 %v2346_v45  ;;  %v2399_v45 = vld [vmem:[#allocation3 + $0x200] ss:$8 sps:$4 sm:$0xff]  }
  0x57   : > { %547 = vmatpush2.bf16.msra.mxu0 %v2348_v46  ;;  %v2404_v46 = vld [vmem:[#allocation3 + $0x2f4] ss:$8 sps:$4 sm:$0xff]  }
  0x58   : > { %752 = vmatpush2.bf16.msra.mxu1 %v2349_v50  ;;  %548 = vmatprep.subr.bf16.mxu0 %v2350_v51  ;;  %v2410_v50 = vld [vmem:[#allocation3 + $0x2d4] ss:$8 sps:$4 sm:$0xff]   ;;  %v2408_v51 = vld [vmem:[#allocation3 + $0x2d0] ss:$8 sps:$4 sm:$0xff]  }
  0x59   : > { %753 = vmatprep.subr.bf16.mxu1 %v2352_v54  ;;  %v2416_v54 = vld [vmem:[#allocation3 + $0x2b4] ss:$8 sps:$4 sm:$0xff]  }
  0x5b   : > { %549 = vmatpush2.bf16.msra.mxu0 %v2354_v58  ;;  %v2422_v58 = vld [vmem:[#allocation3 + $0x294] ss:$8 sps:$4 sm:$0xff]  }
  0x5c   : > { %754 = vmatpush2.bf16.msra.mxu1 %v2355_v59  ;;  %550 = vmatprep.subr.bf16.mxu0 %v2356_v63  ;;  %v2420_v59 = vld [vmem:[#allocation3 + $0x290] ss:$8 sps:$4 sm:$0xff]   ;;  %v2430_v63 = vld [vmem:[#allocation5 + $0x74] ss:$8 sps:$4 sm:$0xff]  }
  0x5d   : > { %755 = vmatprep.subr.bf16.mxu1 %v2358_v0  ;;  %v2433_v0 = vld [vmem:[#allocation5 + $0x64] ss:$8 sps:$4 sm:$0xff]  }
  0x5f   : > { %551 = vmatpush2.bf16.msra.mxu0 %v2360_v2  ;;  %v2436_v2 = vld [vmem:[#allocation5 + $0x174] ss:$8 sps:$4 sm:$0xff]  }
  0x60   : > { %756 = vmatpush2.bf16.msra.mxu1 %v2361_v3  ;;  %552 = vmatprep.subr.bf16.mxu0 %v2362_v7  ;;  %v2431_v3 = vld [vmem:[#allocation5 + $0x60] ss:$8 sps:$4 sm:$0xff]   ;;  %v2448_v7 = vld [vmem:[#allocation5 + $0x154] ss:$8 sps:$4 sm:$0xff]  }
  0x61   : > { %757 = vmatprep.subr.bf16.mxu1 %v2364_v8  ;;  %v2437_v8 = vld [vmem:[#allocation5 + $0x50] ss:$8 sps:$4 sm:$0xff]  }
  0x63   : > { %553 = vmatpush2.bf16.msra.mxu0 %v2366_v9  ;;  %v2445_v9 = vld [vmem:[#allocation5 + $0x44] ss:$8 sps:$4 sm:$0xff]  }
  0x64   : > { %758 = vmatpush2.bf16.msra.mxu1 %v2367_v10  ;;  %554 = vmatprep.subr.bf16.mxu0 %v2368_v14  ;;  %v2446_v10 = vld [vmem:[#allocation5 + $0x150] ss:$8 sps:$4 sm:$0xff]   ;;  %v2452_v14 = vld [vmem:[#allocation5 + $0x140] ss:$8 sps:$4 sm:$0xff]  }
  0x65   : > { %759 = vmatprep.subr.bf16.mxu1 %v2370_v15  ;;  %v2460_v15 = vld [vmem:[#allocation5 + $0x134] ss:$8 sps:$4 sm:$0xff]  }
  0x67   : > { %555 = vmatpush2.bf16.msra.mxu0 %v2372_v16  ;;  %v2449_v16 = vld [vmem:[#allocation5 + $0x30] ss:$8 sps:$4 sm:$0xff]  }
  0x68   : > { %760 = vmatpush2.bf16.msra.mxu1 %v2373_v17  ;;  %979 = vmatprep.subr.bf16.mxu0 %v2380_v20  ;;  %v2457_v17 = vld [vmem:[#allocation5 + $0x24] ss:$8 sps:$4 sm:$0xff]   ;;  %v2455_v20 = vld [vmem:[#allocation5 + $0x20] ss:$8 sps:$4 sm:$0xff]  }
  0x69   : > { %1348 = vmatprep.subr.bf16.mxu1 %v2436_v2 }
  0x6a   : > { %557 = vmatmul.mubr.bf16.vlgmr.msra.gmra.mxu0 %v349_v21  ;;  %v2463_v21 = vld [vmem:[#allocation5 + $0x14] ss:$8 sps:$4 sm:$0xff]  }
  0x6b   : > { %762 = vmatmul.mubr.bf16.vlgmr.msra.gmra.mxu1 %v2039_v62  ;;  %980 = vmatpush1.bf16.msra.mxu0 %v2378_v22  ;;  %v2428_v62 = vld [vmem:[#allocation5 + $0x70] ss:$8 sps:$4 sm:$0xff]   ;;  %v2464_v22 = vld [vmem:[#allocation5 + $0x120] ss:$8 sps:$4 sm:$0xff]  }
  0x6c   : > { %981 = vmatprep.subr.bf16.mxu0 %v2383_v23  ;;  %1011 = vmatprep.mubr.bf16.mxu0 %v816_v35  ;;  %v2472_v23 = vld [vmem:[#allocation5 + $0x114] ss:$8 sps:$4 sm:$0xff]  }
  0x6d   : > { %1349 = vmatpush1.bf16.msra.mxu1 %v2434_v1  ;;  %v2487_v35 = vld [vmem:[#allocation5 + $0xd4] ss:$8 sps:$4 sm:$0xff]   ;;  %v1028_v1 = vlaneseq }
  0x6e   : > { %1350 = vmatprep.subr.bf16.mxu1 %v2442_v4 }
  0x6f   : > { %982 = vmatpush1.bf16.msra.mxu0 %v2381_v24  ;;  %v2461_v24 = vld [vmem:[#allocation5 + $0x10] ss:$8 sps:$4 sm:$0xff]   ;;  %v2756_v4 = vshrl.u32 %v1028_v1, 7 }
  0x70   : > { %983 = vmatprep.subr.bf16.mxu0 %v2386_v26  ;;  %v2470_v26 = vld [vmem:[#allocation5 + $0x110] ss:$8 sps:$4 sm:$0xff]  }
  0x71   : > { %1351 = vmatpush1.bf16.msra.mxu1 %v2440_v6 }
  0x72   : > { %1352 = vmatprep.subr.bf16.mxu1 %v2448_v7  ;;  %v1030_v7 = vsub.s32 0, %v2756_v4 }
  0x73   : > { %984 = vmatpush1.bf16.msra.mxu0 %v2384_v33  ;;  %v2479_v33 = vld [vmem:[#allocation5 + $0xe0] ss:$8 sps:$4 sm:$0xff]  }
  0x74   : > { %985 = vmatprep.subr.bf16.mxu0 %v2389_v34  ;;  %v2484_v34 = vld [vmem:[#allocation5 + $0x1f4] ss:$8 sps:$4 sm:$0xff]  }
  0x75   : > { %1353 = vmatpush1.bf16.msra.mxu1 %v2446_v10 }
  0x76   : > { %1354 = vmatprep.subr.bf16.mxu1 %v2454_v11 }
  0x77   : > { %986 = vmatpush1.bf16.msra.mxu0 %v2387_v37  ;;  %v2485_v37 = vld [vmem:[#allocation5 + $0xd0] ss:$8 sps:$4 sm:$0xff]  }
  0x78   : > { %987 = vmatprep.subr.bf16.mxu0 %v2392_v38  ;;  %v2490_v38 = vld [vmem:[#allocation5 + $0x1e4] ss:$8 sps:$4 sm:$0xff]  }
  0x79   : > { %1355 = vmatpush1.bf16.msra.mxu1 %v2452_v14 }
  0x7a   : > { %1356 = vmatprep.subr.bf16.mxu1 %v2460_v15 }
  0x7b   : > { %988 = vmatpush1.bf16.msra.mxu0 %v2390_v39  ;;  %v2493_v39 = vld [vmem:[#allocation5 + $0xc4] ss:$8 sps:$4 sm:$0xff]  }
  0x7c   : > { %989 = vmatprep.subr.bf16.mxu0 %v2395_v40  ;;  %v2488_v40 = vld [vmem:[#allocation5 + $0x1e0] ss:$8 sps:$4 sm:$0xff]  }
  0x7d   : > { %1357 = vmatpush1.bf16.msra.mxu1 %v2458_v18 }
  0x7e   : > { %1358 = vmatprep.subr.bf16.mxu1 %v2466_v19 }
  0x7f   : > { %990 = vmatpush1.bf16.msra.mxu0 %v2393_v41  ;;  %v2491_v41 = vld [vmem:[#allocation5 + $0xc0] ss:$8 sps:$4 sm:$0xff]  }
  0x80   : > { %991 = vmatprep.subr.bf16.mxu0 %v2398_v42  ;;  %v2496_v42 = vld [vmem:[#allocation5 + $0x1d4] ss:$8 sps:$4 sm:$0xff]  }
  0x81   : > { %1359 = vmatpush1.bf16.msra.mxu1 %v2464_v22 }
  0x82   : > { %1360 = vmatprep.subr.bf16.mxu1 %v2472_v23 }
  0x83   : > { %992 = vmatpush1.bf16.msra.mxu0 %v2396_v43  ;;  %v2499_v43 = vld [vmem:[#allocation5 + $0xb4] ss:$8 sps:$4 sm:$0xff]  }
  0x84   : > { %993 = vmatprep.subr.bf16.mxu0 %v2401_v44  ;;  %v2494_v44 = vld [vmem:[#allocation5 + $0x1d0] ss:$8 sps:$4 sm:$0xff]  }
  0x85   : > { %1361 = vmatpush1.bf16.msra.mxu1 %v2470_v26 }
  0x86   : > { %1362 = vmatprep.subr.bf16.mxu1 %v2478_v27 }
  0x87   : > { %994 = vmatpush1.bf16.msra.mxu0 %v2399_v45  ;;  %v2497_v45 = vld [vmem:[#allocation5 + $0xb0] ss:$8 sps:$4 sm:$0xff]  }
  0x88   : > { %995 = vmatprep.subr.bf16.mxu0 %v2404_v46  ;;  %v2644_v46 = vmov 0.0  }
  0x89   : > { %1363 = vmatpush1.bf16.msra.mxu1 %v2476_v30  ;;  %1046 = vst [vmem:[#allocation2 + $0x28] sm:$0xff] %v2644_v46  ;;  %1047 = vst [vmem:[#allocation2 + $0x10] sm:$0xff] %v2644_v46 }
  0x8a   : > { %1364 = vmatprep.subr.bf16.mxu1 %v2484_v34  ;;  %1050 = vst [vmem:[#allocation2 + $0x18] sm:$0x3] %v2644_v46  ;;  %1051 = vst [vmem:[#allocation2 + $0x20] sm:$0x3] %v2644_v46 }
  0x8b   : > { %996 = vmatpush2.bf16.msra.mxu0 %v2402_v47  ;;  %v2502_v47 = vld [vmem:[#allocation5 + $0x1c4] ss:$8 sps:$4 sm:$0xff]  }
  0x8c   : > { %997 = vmatprep.subr.bf16.mxu0 %v2407_v48  ;;  %v2505_v48 = vld [vmem:[#allocation5 + $0xa4] ss:$8 sps:$4 sm:$0xff]  }
  0x8f   : > { %998 = vmatpush2.bf16.msra.mxu0 %v2405_v49  ;;  %v2500_v49 = vld [vmem:[#allocation5 + $0x1c0] ss:$8 sps:$4 sm:$0xff]  }
  0x90   : > { %999 = vmatprep.subr.bf16.mxu0 %v2410_v50  ;;  %v2503_v50 = vld [vmem:[#allocation5 + $0xa0] ss:$8 sps:$4 sm:$0xff]  }
  0x93   : > { %1000 = vmatpush2.bf16.msra.mxu0 %v2408_v51  ;;  %v2508_v51 = vld [vmem:[#allocation5 + $0x1b4] ss:$8 sps:$4 sm:$0xff]  }
  0x94   : > { %1001 = vmatprep.subr.bf16.mxu0 %v2413_v52  ;;  %v2511_v52 = vld [vmem:[#allocation5 + $0x94] ss:$8 sps:$4 sm:$0xff]  }
  0x97   : > { %1002 = vmatpush2.bf16.msra.mxu0 %v2411_v53  ;;  %v2506_v53 = vld [vmem:[#allocation5 + $0x1b0] ss:$8 sps:$4 sm:$0xff]  }
  0x98   : > { %1003 = vmatprep.subr.bf16.mxu0 %v2416_v54  ;;  %v2509_v54 = vld [vmem:[#allocation5 + $0x90] ss:$8 sps:$4 sm:$0xff]  }
  0x9b   : > { %1004 = vmatpush2.bf16.msra.mxu0 %v2414_v55  ;;  %v2512_v55 = vld [vmem:[#allocation5 + $0x1a0] ss:$8 sps:$4 sm:$0xff]  }
  0x9c   : > { %1005 = vmatprep.subr.bf16.mxu0 %v2419_v56  ;;  %v2514_v56 = vld [vmem:[#allocation5 + $0x1a4] ss:$8 sps:$4 sm:$0xff]  }
  0x9f   : > { %1006 = vmatpush2.bf16.msra.mxu0 %v2417_v57  ;;  %v2515_v57 = vld [vmem:[#allocation5 + $0x80] ss:$8 sps:$4 sm:$0xff]  }
  0xa0   : > { %1007 = vmatprep.subr.bf16.mxu0 %v2422_v58  ;;  %v2517_v58 = vld [vmem:[#allocation5 + $0x84] ss:$8 sps:$4 sm:$0xff]  }
  0xa3   : > { %1008 = vmatpush2.bf16.msra.mxu0 %v2420_v59  ;;  %v2520_v59 = vld [vmem:[#allocation5 + $0x194] ss:$8 sps:$4 sm:$0xff]  }
  0xa4   : > { %1009 = vmatprep.subr.bf16.mxu0 %v2425_v60  ;;  %v2518_v60 = vld [vmem:[#allocation5 + $0x190] ss:$8 sps:$4 sm:$0xff]  }
  0xa7   : > { %1010 = vmatpush2.bf16.msra.mxu0 %v2423_v61  ;;  %v2523_v61 = vld [vmem:[#allocation5 + $0x184] ss:$8 sps:$4 sm:$0xff]  }
  0xa8   : > { %1551 = vmatprep.subr.bf16.mxu0 %v2430_v63  ;;  %v2526_v63 = vld [vmem:[#allocation5 + $0x274] ss:$8 sps:$4 sm:$0xff]  }
  0xaa   : > { %1012 = vmatmul.mubr.bf16.vlgmr.msra.gmra.mxu0 %v813_v36  ;;  %v2482_v36 = vld [vmem:[#allocation5 + $0x1f0] ss:$8 sps:$4 sm:$0xff]  }
  0xab   : > { %1552 = vmatpush1.bf16.msra.mxu0 %v2428_v62  ;;  %1365 = vmatpush2.bf16.msra.mxu1 %v2482_v36  ;;  %v2521_v62 = vld [vmem:[#allocation5 + $0x180] ss:$8 sps:$4 sm:$0xff]  }
  0xac   : > { %1553 = vmatprep.subr.bf16.mxu0 %v2433_v0  ;;  %1366 = vmatprep.subr.bf16.mxu1 %v2490_v38 }
  0xaf   : > { %1554 = vmatpush1.bf16.msra.mxu0 %v2431_v3  ;;  %1367 = vmatpush2.bf16.msra.mxu1 %v2488_v40 }
  0xb0   : > { %1555 = vmatprep.subr.bf16.mxu0 %v2439_v5  ;;  %1368 = vmatprep.subr.bf16.mxu1 %v2496_v42 }
  0xb3   : > { %1556 = vmatpush1.bf16.msra.mxu0 %v2437_v8  ;;  %1369 = vmatpush2.bf16.msra.mxu1 %v2494_v44  ;;  %v1026_v8 = vld [vmem:[%s2804_s2] sm:$0x3] }
  0xb4   : > { %1557 = vmatprep.subr.bf16.mxu0 %v2445_v9  ;;  %1370 = vmatprep.subr.bf16.mxu1 %v2502_v47  ;;  %v1034_v9 = vsub.s32 1, %v2756_v4 }
  0xb7   : > { %1558 = vmatpush1.bf16.msra.mxu0 %v2443_v12  ;;  %1371 = vmatpush2.bf16.msra.mxu1 %v2500_v49 }
  0xb8   : > { %1559 = vmatprep.subr.bf16.mxu0 %v2451_v13  ;;  %1372 = vmatprep.subr.bf16.mxu1 %v2508_v51  ;;  %v1031_v13 = vrot.slane %v1026_v8, %v1030_v7 }
  0xbb   : > { %1560 = vmatpush1.bf16.msra.mxu0 %v2449_v16  ;;  %1373 = vmatpush2.bf16.msra.mxu1 %v2506_v53 }
  0xbc   : > { %1561 = vmatprep.subr.bf16.mxu0 %v2457_v17  ;;  %1374 = vmatprep.subr.bf16.mxu1 %v2514_v56  ;;  %v1035_v17 = vrot.slane %v1026_v8, %v1034_v9 }
  0xbf   : > { %1562 = vmatpush1.bf16.msra.mxu0 %v2455_v20  ;;  %1375 = vmatpush2.bf16.msra.mxu1 %v2512_v55 }
  0xc0   : > { %1563 = vmatprep.subr.bf16.mxu0 %v2463_v21  ;;  %1376 = vmatprep.subr.bf16.mxu1 %v2520_v59 }
  0xc3   : > { %1564 = vmatpush1.bf16.msra.mxu0 %v2461_v24  ;;  %1377 = vmatpush2.bf16.msra.mxu1 %v2518_v60 }
  0xc4   : > { %1565 = vmatprep.subr.bf16.mxu0 %v2469_v25  ;;  %1378 = vmatprep.subr.bf16.mxu1 %v2523_v61 }
  0xc7   : > { %1566 = vmatpush1.bf16.msra.mxu0 %v2467_v28  ;;  %1379 = vmatpush2.bf16.msra.mxu1 %v2521_v62 }
  0xc8   : > { %1567 = vmatprep.subr.bf16.mxu0 %v2475_v29  ;;  %1799 = vmatprep.subr.bf16.mxu1 %v2526_v63 }
  0xcb   : > { %1568 = vmatpush2.bf16.msra.mxu0 %v2473_v31 }
  0xcc   : > { %1569 = vmatprep.subr.bf16.mxu0 %v2481_v32 }
  0xcf   : > { %1570 = vmatpush2.bf16.msra.mxu0 %v2479_v33 }
  0xd0   : > { %1571 = vmatprep.subr.bf16.mxu0 %v2487_v35 }
  0xd3   : > { %1572 = vmatpush2.bf16.msra.mxu0 %v2485_v37 }
  0xd4   : > { %1573 = vmatprep.subr.bf16.mxu0 %v2493_v39 }
  0xd7   : > { %1574 = vmatpush2.bf16.msra.mxu0 %v2491_v41 }
  0xd8   : > { %1575 = vmatprep.subr.bf16.mxu0 %v2499_v43 }
  0xdb   : > { %1576 = vmatpush2.bf16.msra.mxu0 %v2497_v45 }
  0xdc   : > { %1577 = vmatprep.subr.bf16.mxu0 %v2505_v48 }
  0xdf   : > { %1578 = vmatpush2.bf16.msra.mxu0 %v2503_v50 }
  0xe0   : > { %1579 = vmatprep.subr.bf16.mxu0 %v2511_v52 }
  0xe3   : > { %1580 = vmatpush2.bf16.msra.mxu0 %v2509_v54 }
  0xe4   : > { %1581 = vmatprep.subr.bf16.mxu0 %v2517_v58 }
  0xe7   : > { %1582 = vmatpush2.bf16.msra.mxu0 %v2515_v57 }
 0x12a   : > { %v558_v0 = vpop.f32.mrf.mxu0 }
 0x12b   : > { %v763_v2 = vpop.f32.mrf.mxu1 }
 0x12c   : > { %v560_v3 = vpop.f32.mrf.mxu0  ;;  %v764_v12 = vadd.f32 %v763_v2, %v558_v0 }
 0x12d   : > { %v765_v5 = vpop.f32.mrf.mxu1 }
 0x12e   : > { %v562_v6 = vpop.f32.mrf.mxu0  ;;  %v766_v15 = vadd.f32 %v765_v5, %v560_v3 }
 0x12f   : > { %v767_v10 = vpop.f32.mrf.mxu1 }
 0x130   : > { %v564_v11 = vpop.f32.mrf.mxu0  ;;  %v768_v20 = vadd.f32 %v767_v10, %v562_v6  ;;  %v2524_v6 = vld [vmem:[#allocation5 + $0x270] ss:$8 sps:$4 sm:$0xff]  }
 0x131   : > { %v769_v18 = vpop.f32.mrf.mxu1 }
 0x132   : > { %v770_v24 = vadd.f32 %v769_v18, %v564_v11  ;;  %v2535_v18 = vld [vmem:[#allocation5 + $0x244] ss:$8 sps:$4 sm:$0xff]  }
 0x16a   : > { %v1013_v14 = vpop.f32.mrf.mxu0 }
 0x16b   : > { %v1022_v16 = vadd.f32 %v1013_v14, %v764_v12  ;;  %v2529_v12 = vld [vmem:[#allocation5 + $0x264] ss:$8 sps:$4 sm:$0xff]  }
 0x16c   : > { %v1015_v19 = vpop.f32.mrf.mxu0 }
 0x16d   : > { %v1038_v21 = vadd.f32 %v1031_v13, %v1022_v16  ;;  %v1023_v22 = vadd.f32 %v1015_v19, %v766_v15  ;;  %v2527_v15 = vld [vmem:[#allocation5 + $0x260] ss:$8 sps:$4 sm:$0xff]   ;;  %v2532_v16 = vld [vmem:[#allocation5 + $0x254] ss:$8 sps:$4 sm:$0xff]  }
 0x16e   : > { %v1017_v23 = vpop.f32.mrf.mxu0  ;;  %v2533_v19 = vld [vmem:[#allocation5 + $0x240] ss:$8 sps:$4 sm:$0xff]  }
 0x16f   : > { %v1042_v25 = vmax.f32 %v1038_v21, 0.0  ;;  %v1039_v26 = vadd.f32 %v1035_v17, %v1023_v22  ;;  %v1024_v27 = vadd.f32 %v1017_v23, %v768_v20  ;;  %v2538_v20 = vld [vmem:[#allocation5 + $0x234] ss:$8 sps:$4 sm:$0xff]   ;;  %v2536_v21 = vld [vmem:[#allocation5 + $0x230] ss:$8 sps:$4 sm:$0xff]  }
 0x170   : > { %v1019_v28 = vpop.f32.mrf.mxu0  ;;  %v2541_v22 = vld [vmem:[#allocation5 + $0x224] ss:$8 sps:$4 sm:$0xff]   ;;  %v2539_v23 = vld [vmem:[#allocation5 + $0x220] ss:$8 sps:$4 sm:$0xff]  }
 0x171   : > { %v1057_v29 = vrot.slane %v1042_v25, 7  ;;  %v1043_v30 = vmax.f32 %v1039_v26, 0.0  ;;  %v1040_v31 = vadd.f32 %v1031_v13, %v1024_v27  ;;  %v1025_v32 = vadd.f32 %v1019_v28, %v770_v24  ;;  %v2544_v24 = vld [vmem:[#allocation5 + $0x214] ss:$8 sps:$4 sm:$0xff]   ;;  %v2542_v25 = vld [vmem:[#allocation5 + $0x210] ss:$8 sps:$4 sm:$0xff]  }
 0x172   : > { %v2547_v26 = vld [vmem:[#allocation5 + $0x204] ss:$8 sps:$4 sm:$0xff]   ;;  %v2545_v27 = vld [vmem:[#allocation5 + $0x200] ss:$8 sps:$4 sm:$0xff]   ;;  %v2550_v28 = vld [vmem:[#allocation5 + $0x2f4] ss:$8 sps:$4 sm:$0xff]  }
 0x173   : > { %1069 = vst [vmem:[#allocation2 + $0x28] sm:$0xfe] %v1057_v29  ;;  %v1058_v33 = vrot.slane %v1043_v30, 7  ;;  %v1044_v34 = vmax.f32 %v1040_v31, 0.0  ;;  %v1041_v35 = vadd.f32 %v1035_v17, %v1025_v32  ;;  %v2530_v17 = vld [vmem:[#allocation5 + $0x250] ss:$8 sps:$4 sm:$0xff]  }
 0x174   : > { %v2553_v30 = vld [vmem:[#allocation5 + $0x2e4] ss:$8 sps:$4 sm:$0xff]   ;;  %v2551_v31 = vld [vmem:[#allocation5 + $0x2e0] ss:$8 sps:$4 sm:$0xff]   ;;  %v2556_v32 = vld [vmem:[#allocation5 + $0x2d4] ss:$8 sps:$4 sm:$0xff]  }
 0x175   : > { %1070 = vst [vmem:[#allocation2 + $0x10] sm:$0xfe] %v1058_v33  ;;  %v1059_v36 = vrot.slane %v1044_v34, 7  ;;  %v1045_v37 = vmax.f32 %v1041_v35, 0.0  ;;  %v2559_v34 = vld [vmem:[#allocation5 + $0x2c4] ss:$8 sps:$4 sm:$0xff]  }
 0x176   : > { %v2557_v35 = vld [vmem:[#allocation5 + $0x2c0] ss:$8 sps:$4 sm:$0xff]  }
 0x177   : > { %1073 = vst [vmem:[#allocation2 + $0x18] sm:$0x1] %v1059_v36  ;;  %v1061_v38 = vrot.slane %v1045_v37, 7  ;;  %v2768_v39 = vsel %vm1056_vm2, %v1057_v29, %v1059_v36  ;;  %v2548_v29 = vld [vmem:[#allocation5 + $0x2f0] ss:$8 sps:$4 sm:$0xff]  }
 0x178   : > { %v2562_v36 = vld [vmem:[#allocation5 + $0x2b4] ss:$8 sps:$4 sm:$0xff]   ;;  %v2560_v37 = vld [vmem:[#allocation5 + $0x2b0] ss:$8 sps:$4 sm:$0xff]  }
 0x179   : > { %1074 = vst [vmem:[#allocation2 + $0x20] sm:$0x1] %v1061_v38  ;;  %v1062_v43 = vsel %vm1056_vm2, %v1058_v33, %v1061_v38  ;;  %v2554_v33 = vld [vmem:[#allocation5 + $0x2d0] ss:$8 sps:$4 sm:$0xff]   ;;  %v2565_v38 = vld [vmem:[#allocation5 + $0x2a4] ss:$8 sps:$4 sm:$0xff]  }
 0x17a   : > { %v1081_v40 = vld [vmem:[#allocation2 + $0x28] sm:$0xfe] }
 0x17b   : > { %v1075_v41 = vld [vmem:[#allocation2 + $0x28] sm:$0xff]  ;;  %v1085_v42 = vpack.c.bf16 %v2768_v39, %v1081_v40  ;;  %v2563_v40 = vld [vmem:[#allocation5 + $0x2a0] ss:$8 sps:$4 sm:$0xff]  }
 0x17c   : > { %v1076_v44 = vld [vmem:[#allocation2 + $0x10] sm:$0xff]  ;;  %v1079_v48 = vpack.c.bf16 %v2768_v39, %v1075_v41  ;;  %v2568_v41 = vld [vmem:[#allocation5 + $0x294] ss:$8 sps:$4 sm:$0xff]  }
 0x17d   : > { %v1082_v45 = vld [vmem:[#allocation2 + $0x10] sm:$0xfe]  ;;  %v1080_v46 = vpack.c.bf16 %v1062_v43, %v1076_v44  ;;  %v1165_v50 = vshll.u32 %v1085_v42, 16  ;;  %v1163_v0 = vshrl.u32 %v1085_v42, 16 }
 0x17e   : > { %v1086_v47 = vpack.c.bf16 %v1062_v43, %v1082_v45  ;;  %v1083_v49 = vld [vmem:[#allocation2 + $0x18] sm:$0x1]  ;;  %v1090_v54 = vld [vmem:[#allocation2 + $0x10] sm:$0xfc]  ;;  %v1089_v45 = vld [vmem:[#allocation2 + $0x28] sm:$0xfc] }
 0x17f   : > { %1583 = vmatprep.mubr.bf16.mxu0 %v1080_v46  ;;  %v1087_v52 = vpack.c.bf16 %v1083_v49, %v1083_v49  ;;  %v1167_v59 = vrot.slane %v1165_v50, 1  ;;  %v1094_v63 = vpack.c.bf16 %v1062_v43, %v1090_v54  ;;  %v1091_v42 = vld [vmem:[#allocation2 + $0x18] sm:$0x3]  ;;  %v2566_v43 = vld [vmem:[#allocation5 + $0x290] ss:$8 sps:$4 sm:$0xff]  }
 0x180   : > { %v1177_v51 = vshll.u32 %v1086_v47, 16  ;;  %1584 = vmatmul.mubr.bf16.vlgmr.msra.gmra.mxu0 %v1079_v48  ;;  %v1084_v53 = vld [vmem:[#allocation2 + $0x20] sm:$0x1]  ;;  %v1175_v61 = vshrl.u32 %v1086_v47, 16  ;;  %v2571_v44 = vld [vmem:[#allocation5 + $0x284] ss:$8 sps:$4 sm:$0xff]   ;;  %v1095_v46 = vpack.c.bf16 %v1091_v42, %v1091_v42  ;;  %v1093_v48 = vpack.c.bf16 %v2768_v39, %v1089_v45 }
 0x181   : > { %v1092_v55 = vld [vmem:[#allocation2 + $0x20] sm:$0x3]  ;;  %v1088_v56 = vpack.c.bf16 %v1084_v53, %v1084_v53  ;;  %v1170_v58 = vshll.u32 %v1087_v52, 16  ;;  %v1168_v8 = vor.u32 %v1167_v59, %v1163_v0  ;;  %v1634_v11 = vrot.slane %v1094_v63, 1  ;;  %v2569_v47 = vld [vmem:[#allocation5 + $0x280] ss:$8 sps:$4 sm:$0xff]  }
 0x182   : > { %v1179_v57 = vrot.slane %v1177_v51, 1  ;;  %v1096_v60 = vpack.c.bf16 %v1092_v55, %v1092_v55  ;;  %v1632_v49 = vrot.slane %v1095_v46, 1  ;;  %v1631_v50 = vrot.slane %v1093_v48, 1  ;;  %v1846_v54 = vld [vmem:[%s2736_s12] sm:$0xff]  ;;  %v1847_v55 = vld [vmem:[%s2736_s12 + $0x8] sm:$0xff] }
 0x183   : > { %v1182_v62 = vshll.u32 %v1088_v56, 16  ;;  %v1172_v1 = vrot.slane %v1170_v58, 1  ;;  %v1849_v58 = vunpack.c.l.bf16 %v1846_v54  ;;  %v1851_v59 = vunpack.c.l.bf16 %v1847_v55  ;;  %v1855_v39 = vld [vmem:[%s2806_s4] sm:$0x3] }
 0x184   : > { %v1180_v2 = vor.u32 %v1179_v57, %v1175_v61  ;;  %v1635_v5 = vrot.slane %v1096_v60, 1  ;;  %v1633_v51 = vsel %vm810_vm1, %v1631_v50, %v1632_v49  ;;  %v1848_v60 = vld [vmem:[%s2736_s12 + $0x10] sm:$0x11]  ;;  %v1852_v63 = vunpack.c.h.bf16 %v1847_v55 }
 0x185   : > { %v1184_v3 = vrot.slane %v1182_v62, 1  ;;  %v1173_v13 = vsel %vm337_vm0, %v1168_v8, %v1172_v1  ;;  %v1850_v62 = vunpack.c.h.bf16 %v1846_v54  ;;  %v1878_v1 = vrot.slane %v1849_v58, 1 }
 0x186   : > { %v1636_v14 = vsel %vm810_vm1, %v1634_v11, %v1635_v5 }
 0x187   : > { %v1185_v10 = vsel %vm337_vm0, %v1180_v2, %v1184_v3  ;;  %v1879_v2 = vrot.slane %v1851_v59, 1  ;;  %v1853_v3 = vunpack.c.l.bf16 %v1848_v60  ;;  %v1881_v11 = vrot.slane %v1850_v62, 1 }
 0x188   : > { %1380 = vmatprep.mubr.bf16.mxu1 %v1185_v10 }
 0x189   : > { %1381 = vmatmul.mubr.bf16.vlgmr.msra.gmra.mxu1 %v1173_v13  ;;  %v1854_v13 = vunpack.c.h.bf16 %v1848_v60 }
 0x18a   : > { %1800 = vmatpush1.bf16.msra.mxu1 %v2524_v6  ;;  %1831 = vmatprep.mubr.bf16.mxu1 %v1636_v14  ;;  %v1860_v6 = vrot.slane %v1855_v39, %v1030_v7 }
 0x18b   : > { %1801 = vmatprep.subr.bf16.mxu1 %v2529_v12  ;;  %v1882_v12 = vrot.slane %v1852_v63, 1 }
 0x18d   : > { %v1883_v7 = vsel %vm810_vm1, %v1881_v11, %v1882_v12 }
 0x18e   : > { %1802 = vmatpush1.bf16.msra.mxu1 %v2527_v15 }
 0x18f   : > { %1803 = vmatprep.subr.bf16.mxu1 %v2532_v16  ;;  %v1864_v16 = vrot.slane %v1855_v39, %v1034_v9 }
 0x192   : > { %1804 = vmatpush1.bf16.msra.mxu1 %v2530_v17  ;;  %v1880_v17 = vsel %vm810_vm1, %v1878_v1, %v1879_v2 }
 0x193   : > { %1805 = vmatprep.subr.bf16.mxu1 %v2535_v18 }
 0x196   : > { %1806 = vmatpush1.bf16.msra.mxu1 %v2533_v19  ;;  %v1884_v19 = vrot.slane %v1853_v3, 1 }
 0x197   : > { %1807 = vmatprep.subr.bf16.mxu1 %v2538_v20 }
 0x19a   : > { %1808 = vmatpush1.bf16.msra.mxu1 %v2536_v21 }
 0x19b   : > { %1809 = vmatprep.subr.bf16.mxu1 %v2541_v22 }
 0x19e   : > { %1810 = vmatpush1.bf16.msra.mxu1 %v2539_v23 }
 0x19f   : > { %1811 = vmatprep.subr.bf16.mxu1 %v2544_v24 }
 0x1a2   : > { %1812 = vmatpush1.bf16.msra.mxu1 %v2542_v25  ;;  %v1886_v25 = vrot.slane %v1854_v13, 1 }
 0x1a3   : > { %1813 = vmatprep.subr.bf16.mxu1 %v2547_v26 }
 0x1a6   : > { %1814 = vmatpush1.bf16.msra.mxu1 %v2545_v27 }
 0x1a7   : > { %1815 = vmatprep.subr.bf16.mxu1 %v2550_v28 }
 0x1aa   : > { %1816 = vmatpush2.bf16.msra.mxu1 %v2548_v29 }
 0x1ab   : > { %1817 = vmatprep.subr.bf16.mxu1 %v2553_v30  ;;  %v1885_v30 = vsel %vm810_vm1, %v1879_v2, %v1884_v19 }
 0x1ae   : > { %1818 = vmatpush2.bf16.msra.mxu1 %v2551_v31 }
 0x1af   : > { %1819 = vmatprep.subr.bf16.mxu1 %v2556_v32 }
 0x1b2   : > { %1820 = vmatpush2.bf16.msra.mxu1 %v2554_v33 }
 0x1b3   : > { %1821 = vmatprep.subr.bf16.mxu1 %v2559_v34  ;;  %v1887_v34 = vsel %vm810_vm1, %v1882_v12, %v1886_v25 }
 0x1b6   : > { %1822 = vmatpush2.bf16.msra.mxu1 %v2557_v35 }
 0x1b7   : > { %1823 = vmatprep.subr.bf16.mxu1 %v2562_v36 }
 0x1ba   : > { %1824 = vmatpush2.bf16.msra.mxu1 %v2560_v37 }
 0x1bb   : > { %1825 = vmatprep.subr.bf16.mxu1 %v2565_v38 }
 0x1be   : > { %1826 = vmatpush2.bf16.msra.mxu1 %v2563_v40 }
 0x1bf   : > { %1827 = vmatprep.subr.bf16.mxu1 %v2568_v41 }
 0x1c2   : > { %1828 = vmatpush2.bf16.msra.mxu1 %v2566_v43 }
 0x1c3   : > { %1829 = vmatprep.subr.bf16.mxu1 %v2571_v44 }
 0x1c6   : > { %1830 = vmatpush2.bf16.msra.mxu1 %v2569_v47 }
 0x1c9   : > { %1832 = vmatmul.mubr.bf16.vlgmr.msra.gmra.mxu1 %v1633_v51 }
 0x240   : > { %v1585_v56 = vpop.f32.mrf.mxu0 }
 0x242   : > { %v1587_v61 = vpop.f32.mrf.mxu0 }
 0x244   : > { %v1589_v8 = vpop.f32.mrf.mxu0 }
 0x246   : > { %v1591_v23 = vpop.f32.mrf.mxu0 }
 0x249   : > { %v1382_v52 = vpop.f32.mrf.mxu1 }
 0x24a   : > { %v1586_v5 = vadd.f32 %v1585_v56, %v1382_v52 }
 0x24b   : > { %v1384_v53 = vpop.f32.mrf.mxu1 }
 0x24c   : > { %v1588_v14 = vadd.f32 %v1587_v61, %v1384_v53 }
 0x24d   : > { %v1386_v57 = vpop.f32.mrf.mxu1 }
 0x24e   : > { %v1590_v20 = vadd.f32 %v1589_v8, %v1386_v57 }
 0x24f   : > { %v1388_v0 = vpop.f32.mrf.mxu1 }
 0x250   : > { %v1592_v26 = vadd.f32 %v1591_v23, %v1388_v0 }
 0x289   : > { %v1833_v10 = vpop.f32.mrf.mxu1 }
 0x28a   : > { %v1842_v15 = vadd.f32 %v1833_v10, %v1586_v5 }
 0x28b   : > { %v1835_v18 = vpop.f32.mrf.mxu1 }
 0x28c   : > { %v1867_v21 = vadd.f32 %v1860_v6, %v1842_v15  ;;  %v1843_v22 = vadd.f32 %v1835_v18, %v1588_v14 }
 0x28d   : > { %v1837_v24 = vpop.f32.mrf.mxu1 }
 0x28e   : > { %v1892_v27 = vadd.f32 %v1880_v17, %v1867_v21  ;;  %v1868_v28 = vadd.f32 %v1864_v16, %v1843_v22  ;;  %v1844_v29 = vadd.f32 %v1837_v24, %v1590_v20 }
 0x28f   : > { %v1839_v4 = vpop.f32.mrf.mxu1 }
 0x290   : > { %v1896_v9 = vmax.f32 %v1892_v27, 0.0  ;;  %v1893_v31 = vadd.f32 %v1883_v7, %v1868_v28  ;;  %v1869_v32 = vadd.f32 %v1860_v6, %v1844_v29  ;;  %v1845_v33 = vadd.f32 %v1839_v4, %v1592_v26 }
 0x292   : > { %v1904_v35 = vrot.slane %v1896_v9, 7  ;;  %v1897_v36 = vmax.f32 %v1893_v31, 0.0  ;;  %v1894_v37 = vadd.f32 %v1885_v30, %v1869_v32  ;;  %v1870_v38 = vadd.f32 %v1864_v16, %v1845_v33 }
 0x294   : > { %1916 = vst [vmem:[#allocation2 + $0x28] sm:$0xfe] %v1904_v35  ;;  %v1905_v40 = vrot.slane %v1897_v36, 7  ;;  %v1898_v41 = vmax.f32 %v1894_v37, 0.0  ;;  %v1895_v42 = vadd.f32 %v1887_v34, %v1870_v38 }
 0x296   : > { %1917 = vst [vmem:[#allocation2 + $0x10] sm:$0xfe] %v1905_v40  ;;  %v1906_v43 = vrot.slane %v1898_v41, 7  ;;  %v1899_v44 = vmax.f32 %v1895_v42, 0.0 }
 0x298   : > { %v1907_v45 = vsel %vm1056_vm2, %v1904_v35, %v1906_v43  ;;  %1920 = vst [vmem:[#allocation2 + $0x18] sm:$0x1] %v1906_v43  ;;  %v1908_v46 = vrot.slane %v1899_v44, 7 }
 0x29a   : > { %v1909_v47 = vsel %vm1056_vm2, %v1905_v40, %v1908_v46  ;;  %1921 = vst [vmem:[#allocation2 + $0x20] sm:$0x1] %v1908_v46 }
 0x29b   : > { %v2243_v48 = vpack.c.bf16 %v1909_v47, %v1907_v45  ;;  %v1922_v49 = vld [vmem:[#allocation2 + $0x28] sm:$0xff] }
 0x29d   : > { %v1923_v50 = vld [vmem:[#allocation2 + $0x10] sm:$0xff]  ;;  %1949 = vst [vmem:[%s254_s21 + $0x8] sm:$0xff] %v2243_v48 }
 0x29e   : > { %v2242_v51 = vpack.c.bf16 %v1923_v50, %v1922_v49 }
 0x29f   : > { %v1926_v52 = vld [vmem:[#allocation2 + $0x18] sm:$0x3] }
 0x2a0   : > { %1948 = vst [vmem:[%s254_s21] sm:$0xff] %v2242_v51 }
 0x2a1   : > { %v1927_v53 = vld [vmem:[#allocation2 + $0x20] sm:$0x3] }
 0x2a2   : > { %v2244_v54 = vpack.c.bf16 %v1927_v53, %v1926_v52 }
 0x2a4   : > { %1950 = vst [vmem:[%s254_s21 + $0x10] sm:$0x11] %v2244_v54 }
 0x2a5 PF: > { %s17_s18 = sadd.s32 1, %s2638_s18  }
 0x2a6   : > { %p14_p3 = scmp.ge.s32.totalorder %s17_s18, 4  }
 0x2a8   :  { %16 = sbr.rel (!%p14_p3) target bundleno = 2 (0x2), region = 83 }
 0x2ad   :  { %1972 = vsyncpa [#allocation4], 1 }
 0x2ae   :  { %1974 = vsyncpa [#allocation4 + $0x1], 1 }
 0x2af   :  { %1975 = vsyncpa [#allocation6], 1 }

// kernel: resnet20_forward.14
= control target key start
LH: loop header
LB: loop body
LE: loop exit
PB: predicated region body
PF: predicated region fallthrough
CT: control target
= control target key end

     0   :  { %s2990_s27 = smov 0   ;;  %s3730_s0 = inlined_call_operand.vmem [shape: bf16[2,9,256], index: 0, kind: input, shape index: {}]   ;;  %s3731_s1 = inlined_call_operand.vmem [shape: bf16[2,9,256], index: 1, kind: input, shape index: {}]   ;;  %s3732_s2 = inlined_call_operand.vmem [shape: bf16[3,256,256], index: 2, kind: input, shape index: {}]   ;;  %s3733_s3 = inlined_call_operand.vmem [shape: f32[1,256], index: 3, kind: input, shape index: {}]   ;;  %s3734_s4 = inlined_call_operand.vmem [shape: bf16[3,256,256], index: 4, kind: input, shape index: {}]   ;;  %s3735_s5 = inlined_call_operand.vmem [shape: f32[1,256], index: 5, kind: input, shape index: {}]   ;;  %s3736_s6 = inlined_call_operand.vmem [shape: bf16[256,256], index: 6, kind: input, shape index: {}]   ;;  %s3737_s7 = inlined_call_operand.vmem [shape: f32[1,256], index: 7, kind: input, shape index: {}]   ;;  %s3738_s8 = inlined_call_operand.vmem [shape: bf16[2,10,256], index: 8, kind: output, shape index: {}]  }
   0x1 LB: > { %s2204_s28 = sadd.s32 4294967295, %s2942_s27   ;;  %p2208_p0 = scmp.ge.s32.totalorder %s2942_s27, 1  ;;  %s2942_s27 = sphi %s2990_s27, %s18_s27  }
   0x2   : > { %p272_p1 = scmp.lt.s32.totalorder %s2942_s27, 3 }
   0x4   : > { %p273_p2 = pnand %p2208_p0, %p272_p1 }
   0x5   : > { %p311_p3 = scmp.lt.s32.totalorder (!%p273_p2), %s2204_s28, 1 }
   0x6   : > { %276 = sbr.rel (%p273_p2) target bundleno = 641 (0x281), region = 52 }
   0xb   : > { %v2593_v0 = vld [vmem:[%s3732_s2 + $0x174] ss:$8 sps:$4 sm:$0xff]   ;;  %v2597_v2 = vld [vmem:[%s3732_s2 + $0x170] ss:$8 sps:$4 sm:$0xff]   ;;  %v2599_v4 = vld [vmem:[%s3732_s2 + $0x164] ss:$8 sps:$4 sm:$0xff]  }
   0xc   : > { %v2595_v1 = vld [vmem:[%s3732_s2 + $0x74] ss:$8 sps:$4 sm:$0xff]   ;;  %561 = vmatprep.subr.bf16.mxu0 %v2593_v0  ;;  %v2598_v3 = vld [vmem:[%s3732_s2 + $0x70] ss:$8 sps:$4 sm:$0xff]   ;;  %v2601_v5 = vld [vmem:[%s3732_s2 + $0x64] ss:$8 sps:$4 sm:$0xff]  }
   0xd   : > { %769 = vmatprep.subr.bf16.mxu1 %v2595_v1  ;;  %562 = vmatpush1.bf16.msra.mxu0 %v2597_v2  ;;  %v2603_v6 = vld [vmem:[%s3732_s2 + $0x160] ss:$8 sps:$4 sm:$0xff]   ;;  %v2605_v8 = vld [vmem:[%s3732_s2 + $0x154] ss:$8 sps:$4 sm:$0xff]   ;;  %v2609_v10 = vld [vmem:[%s3732_s2 + $0x150] ss:$8 sps:$4 sm:$0xff]  }
   0xe   : > { %770 = vmatpush1.bf16.msra.mxu1 %v2598_v3  ;;  %563 = vmatprep.subr.bf16.mxu0 %v2599_v4  ;;  %v2604_v7 = vld [vmem:[%s3732_s2 + $0x60] ss:$8 sps:$4 sm:$0xff]   ;;  %v2607_v9 = vld [vmem:[%s3732_s2 + $0x54] ss:$8 sps:$4 sm:$0xff]   ;;  %v2610_v11 = vld [vmem:[%s3732_s2 + $0x50] ss:$8 sps:$4 sm:$0xff]  }
   0xf   : > { %771 = vmatprep.subr.bf16.mxu1 %v2601_v5  ;;  %v2611_v12 = vld [vmem:[%s3732_s2 + $0x144] ss:$8 sps:$4 sm:$0xff]   ;;  %v2615_v14 = vld [vmem:[%s3732_s2 + $0x140] ss:$8 sps:$4 sm:$0xff]   ;;  %v2617_v16 = vld [vmem:[%s3732_s2 + $0x134] ss:$8 sps:$4 sm:$0xff]  }
  0x10   : > { %v2613_v13 = vld [vmem:[%s3732_s2 + $0x44] ss:$8 sps:$4 sm:$0xff]   ;;  %v2616_v15 = vld [vmem:[%s3732_s2 + $0x40] ss:$8 sps:$4 sm:$0xff]   ;;  %v2619_v17 = vld [vmem:[%s3732_s2 + $0x34] ss:$8 sps:$4 sm:$0xff]  }
  0x11   : > { %564 = vmatpush1.bf16.msra.mxu0 %v2603_v6  ;;  %v2621_v18 = vld [vmem:[%s3732_s2 + $0x130] ss:$8 sps:$4 sm:$0xff]   ;;  %v2623_v20 = vld [vmem:[%s3732_s2 + $0x124] ss:$8 sps:$4 sm:$0xff]   ;;  %v2627_v22 = vld [vmem:[%s3732_s2 + $0x120] ss:$8 sps:$4 sm:$0xff]  }
  0x12   : > { %772 = vmatpush1.bf16.msra.mxu1 %v2604_v7  ;;  %565 = vmatprep.subr.bf16.mxu0 %v2605_v8  ;;  %v2622_v19 = vld [vmem:[%s3732_s2 + $0x30] ss:$8 sps:$4 sm:$0xff]   ;;  %v2625_v21 = vld [vmem:[%s3732_s2 + $0x24] ss:$8 sps:$4 sm:$0xff]   ;;  %v2628_v23 = vld [vmem:[%s3732_s2 + $0x20] ss:$8 sps:$4 sm:$0xff]  }
  0x13   : > { %773 = vmatprep.subr.bf16.mxu1 %v2607_v9  ;;  %v2629_v24 = vld [vmem:[%s3732_s2 + $0x114] ss:$8 sps:$4 sm:$0xff]   ;;  %v2633_v26 = vld [vmem:[%s3732_s2 + $0x110] ss:$8 sps:$4 sm:$0xff]   ;;  %v2635_v28 = vld [vmem:[%s3732_s2 + $0x104] ss:$8 sps:$4 sm:$0xff]  }
  0x14   : > { %v2631_v25 = vld [vmem:[%s3732_s2 + $0x14] ss:$8 sps:$4 sm:$0xff]   ;;  %v2634_v27 = vld [vmem:[%s3732_s2 + $0x10] ss:$8 sps:$4 sm:$0xff]   ;;  %v2637_v29 = vld [vmem:[%s3732_s2 + $0x4] ss:$8 sps:$4 sm:$0xff]  }
  0x15   : > { %566 = vmatpush1.bf16.msra.mxu0 %v2609_v10  ;;  %v2639_v30 = vld [vmem:[%s3732_s2 + $0x100] ss:$8 sps:$4 sm:$0xff]   ;;  %v2641_v32 = vld [vmem:[%s3732_s2 + $0x1f4] ss:$8 sps:$4 sm:$0xff]   ;;  %v2645_v34 = vld [vmem:[%s3732_s2 + $0x1f0] ss:$8 sps:$4 sm:$0xff]  }
  0x16   : > { %774 = vmatpush1.bf16.msra.mxu1 %v2610_v11  ;;  %567 = vmatprep.subr.bf16.mxu0 %v2611_v12  ;;  %v2640_v31 = vld [vmem:[%s3732_s2] ss:$8 sps:$4 sm:$0xff]   ;;  %v2643_v33 = vld [vmem:[%s3732_s2 + $0xf4] ss:$8 sps:$4 sm:$0xff]   ;;  %v2646_v35 = vld [vmem:[%s3732_s2 + $0xf0] ss:$8 sps:$4 sm:$0xff]  }
  0x17   : > { %775 = vmatprep.subr.bf16.mxu1 %v2613_v13  ;;  %v2647_v36 = vld [vmem:[%s3732_s2 + $0x1e4] ss:$8 sps:$4 sm:$0xff]   ;;  %s3740_s28 = smov (!%p311_p3, %s2204_s28), 1  ;;  %v2651_v38 = vld [vmem:[%s3732_s2 + $0x1e0] ss:$8 sps:$4 sm:$0xff]  }
  0x18   : > { %v2649_v37 = vld [vmem:[%s3732_s2 + $0xe4] ss:$8 sps:$4 sm:$0xff]   ;;  %v2652_v39 = vld [vmem:[%s3732_s2 + $0xe0] ss:$8 sps:$4 sm:$0xff]   ;;  %v2653_v40 = vld [vmem:[%s3732_s2 + $0x1d4] ss:$8 sps:$4 sm:$0xff]  }
  0x19   : > { %568 = vmatpush1.bf16.msra.mxu0 %v2615_v14  ;;  %s3125_s9 = sshll.u32 %s3740_s28, 4  ;;  %v2655_v41 = vld [vmem:[%s3732_s2 + $0xd4] ss:$8 sps:$4 sm:$0xff]   ;;  %v2657_v42 = vld [vmem:[%s3732_s2 + $0x1d0] ss:$8 sps:$4 sm:$0xff]  }
  0x1a   : > { %776 = vmatpush1.bf16.msra.mxu1 %v2616_v15  ;;  %569 = vmatprep.subr.bf16.mxu0 %v2617_v16  ;;  %v2658_v43 = vld [vmem:[%s3732_s2 + $0xd0] ss:$8 sps:$4 sm:$0xff]   ;;  %s320_s28 = scalar_lea.vmem %s3731_s1, %s3125_s9  ;;  %v2659_v44 = vld [vmem:[%s3732_s2 + $0x1c4] ss:$8 sps:$4 sm:$0xff]   ;;  %s315_s22 = scalar_lea.vmem %s3730_s0, %s3125_s9  ;;  %v2663_v47 = vld [vmem:[%s3732_s2 + $0x1c0] ss:$8 sps:$4 sm:$0xff]  }
  0x1b   : > { %777 = vmatprep.subr.bf16.mxu1 %v2619_v17  ;;  %v2661_v45 = vld [vmem:[%s3732_s2 + $0xc4] ss:$8 sps:$4 sm:$0xff]   ;;  %v2664_v50 = vld [vmem:[%s3732_s2 + $0xc0] ss:$8 sps:$4 sm:$0xff]   ;;  %v2665_v51 = vld [vmem:[%s3732_s2 + $0x1b4] ss:$8 sps:$4 sm:$0xff]   ;;  %s325_s10 = scalar_lea.vmem %s3738_s8, %s3125_s9 }
  0x1c   : > { %v327_v46 = vld [vmem:[%s320_s28] sm:$0xff]  ;;  %v2667_v53 = vld [vmem:[%s3732_s2 + $0xb4] ss:$8 sps:$4 sm:$0xff]   ;;  %v2669_v54 = vld [vmem:[%s3732_s2 + $0x1b0] ss:$8 sps:$4 sm:$0xff]  }
  0x1d   : > { %570 = vmatpush1.bf16.msra.mxu0 %v2621_v18  ;;  %v3153_v48 = vcombine.high %v327_v46, %v327_v46  ;;  %v3155_v49 = vld [vmem:[%s315_s22] sm:$0xff]  ;;  %v2670_v55 = vld [vmem:[%s3732_s2 + $0xb0] ss:$8 sps:$4 sm:$0xff]   ;;  %v3181_v58 = vld [vmem:[%s315_s22 + $0x8] sm:$0x11]  ;;  %v3218_v10 = vcombine.low %v327_v46, %v327_v46 }
  0x1e   : > { %778 = vmatpush1.bf16.msra.mxu1 %v2622_v19  ;;  %571 = vmatprep.subr.bf16.mxu0 %v2623_v20  ;;  %v2282_v52 = vcombine.high %v3155_v49, %v3155_v49  ;;  %v2671_v56 = vld [vmem:[%s3732_s2 + $0x1a4] ss:$8 sps:$4 sm:$0xff]   ;;  %v2675_v59 = vld [vmem:[%s3732_s2 + $0x1a0] ss:$8 sps:$4 sm:$0xff]   ;;  %v2677_v61 = vld [vmem:[%s3732_s2 + $0x194] ss:$8 sps:$4 sm:$0xff]   ;;  %v2348_v62 = vcombine.high %v3155_v49, %v3181_v58  ;;  %v2281_v11 = vcombine.low %v3155_v49, %v3155_v49 }
  0x1f   : > { %779 = vmatprep.subr.bf16.mxu1 %v2625_v21  ;;  %593 = vmatprep.mubr.bf16.mxu0 %v3153_v48  ;;  %v2673_v57 = vld [vmem:[%s3732_s2 + $0xa4] ss:$8 sps:$4 sm:$0xff]   ;;  %v2676_v60 = vld [vmem:[%s3732_s2 + $0xa0] ss:$8 sps:$4 sm:$0xff]   ;;  %v2679_v63 = vld [vmem:[%s3732_s2 + $0x94] ss:$8 sps:$4 sm:$0xff]  }
  0x20   : > { %801 = vmatprep.mubr.bf16.mxu1 %v2282_v52  ;;  %v2681_v0 = vld [vmem:[%s3732_s2 + $0x190] ss:$8 sps:$4 sm:$0xff]   ;;  %v2683_v2 = vld [vmem:[%s3732_s2 + $0x184] ss:$8 sps:$4 sm:$0xff]   ;;  %v858_v3 = vshll.u32 %v2348_v62, 16  ;;  %v856_v7 = vshrl.u32 %v2348_v62, 16 }
  0x21   : > { %572 = vmatpush1.bf16.msra.mxu0 %v2627_v22  ;;  %v2682_v1 = vld [vmem:[%s3732_s2 + $0x90] ss:$8 sps:$4 sm:$0xff]   ;;  %v2685_v4 = vld [vmem:[%s3732_s2 + $0x84] ss:$8 sps:$4 sm:$0xff]   ;;  %v2687_v5 = vld [vmem:[%s3732_s2 + $0x180] ss:$8 sps:$4 sm:$0xff]  }
  0x22   : > { %780 = vmatpush1.bf16.msra.mxu1 %v2628_v23  ;;  %573 = vmatprep.subr.bf16.mxu0 %v2629_v24  ;;  %v2688_v6 = vld [vmem:[%s3732_s2 + $0x80] ss:$8 sps:$4 sm:$0xff]   ;;  %v860_v8 = vrot.slane %v858_v3, 1  ;;  %v2697_v9 = vld [vmem:[%s3732_s2 + $0x274] ss:$8 sps:$4 sm:$0xff]  }
  0x23   : > { %781 = vmatprep.subr.bf16.mxu1 %v2631_v25  ;;  %v2695_v12 = vld [vmem:[%s3732_s2 + $0x270] ss:$8 sps:$4 sm:$0xff]   ;;  %v2700_v13 = vld [vmem:[%s3732_s2 + $0x264] ss:$8 sps:$4 sm:$0xff]   ;;  %v2698_v15 = vld [vmem:[%s3732_s2 + $0x260] ss:$8 sps:$4 sm:$0xff]  }
  0x24   : > { %v861_v14 = vor.u32 %v860_v8, %v856_v7  ;;  %v2703_v16 = vld [vmem:[%s3732_s2 + $0x254] ss:$8 sps:$4 sm:$0xff]   ;;  %v2701_v17 = vld [vmem:[%s3732_s2 + $0x250] ss:$8 sps:$4 sm:$0xff]   ;;  %v2706_v18 = vld [vmem:[%s3732_s2 + $0x244] ss:$8 sps:$4 sm:$0xff]  }
  0x25   : > { %574 = vmatpush1.bf16.msra.mxu0 %v2633_v26  ;;  %v2704_v19 = vld [vmem:[%s3732_s2 + $0x240] ss:$8 sps:$4 sm:$0xff]   ;;  %v2709_v20 = vld [vmem:[%s3732_s2 + $0x234] ss:$8 sps:$4 sm:$0xff]   ;;  %v2707_v21 = vld [vmem:[%s3732_s2 + $0x230] ss:$8 sps:$4 sm:$0xff]  }
  0x26   : > { %782 = vmatpush1.bf16.msra.mxu1 %v2634_v27  ;;  %575 = vmatprep.subr.bf16.mxu0 %v2635_v28  ;;  %v2712_v22 = vld [vmem:[%s3732_s2 + $0x224] ss:$8 sps:$4 sm:$0xff]   ;;  %v2710_v23 = vld [vmem:[%s3732_s2 + $0x220] ss:$8 sps:$4 sm:$0xff]   ;;  %v2715_v24 = vld [vmem:[%s3732_s2 + $0x214] ss:$8 sps:$4 sm:$0xff]  }
  0x27   : > { %783 = vmatprep.subr.bf16.mxu1 %v2637_v29  ;;  %v2713_v25 = vld [vmem:[%s3732_s2 + $0x210] ss:$8 sps:$4 sm:$0xff]   ;;  %v2718_v26 = vld [vmem:[%s3732_s2 + $0x204] ss:$8 sps:$4 sm:$0xff]   ;;  %v2716_v27 = vld [vmem:[%s3732_s2 + $0x200] ss:$8 sps:$4 sm:$0xff]  }
  0x28   : > { %v2721_v28 = vld [vmem:[%s3732_s2 + $0x2f4] ss:$8 sps:$4 sm:$0xff]   ;;  %v2719_v29 = vld [vmem:[%s3732_s2 + $0x2f0] ss:$8 sps:$4 sm:$0xff]   ;;  %v2748_v52 = vld [vmem:[%s3734_s4 + $0x64] ss:$8 sps:$4 sm:$0xff]  }
  0x29   : > { %576 = vmatpush1.bf16.msra.mxu0 %v2639_v30  ;;  %v2724_v30 = vld [vmem:[%s3732_s2 + $0x2e4] ss:$8 sps:$4 sm:$0xff]   ;;  %v2761_v62 = vld [vmem:[%s3734_s4 + $0x150] ss:$8 sps:$4 sm:$0xff]   ;;  %v2775_v3 = vld [vmem:[%s3734_s4 + $0x134] ss:$8 sps:$4 sm:$0xff]  }
  0x2a   : > { %784 = vmatpush1.bf16.msra.mxu1 %v2640_v31  ;;  %577 = vmatprep.subr.bf16.mxu0 %v2641_v32  ;;  %v2722_v31 = vld [vmem:[%s3732_s2 + $0x2e0] ss:$8 sps:$4 sm:$0xff]   ;;  %v2727_v32 = vld [vmem:[%s3732_s2 + $0x2d4] ss:$8 sps:$4 sm:$0xff]   ;;  %v2781_v7 = vld [vmem:[%s3734_s4 + $0x124] ss:$8 sps:$4 sm:$0xff]  }
  0x2b   : > { %785 = vmatprep.subr.bf16.mxu1 %v2643_v33  ;;  %v2725_v33 = vld [vmem:[%s3732_s2 + $0x2d0] ss:$8 sps:$4 sm:$0xff]   ;;  %v2770_v8 = vld [vmem:[%s3734_s4 + $0x20] ss:$8 sps:$4 sm:$0xff]  }
  0x2d   : > { %578 = vmatpush2.bf16.msra.mxu0 %v2645_v34  ;;  %v2730_v34 = vld [vmem:[%s3732_s2 + $0x2c4] ss:$8 sps:$4 sm:$0xff]  }
  0x2e   : > { %786 = vmatpush2.bf16.msra.mxu1 %v2646_v35  ;;  %579 = vmatprep.subr.bf16.mxu0 %v2647_v36  ;;  %v2728_v35 = vld [vmem:[%s3732_s2 + $0x2c0] ss:$8 sps:$4 sm:$0xff]   ;;  %v2733_v36 = vld [vmem:[%s3732_s2 + $0x2b4] ss:$8 sps:$4 sm:$0xff]  }
  0x2f   : > { %787 = vmatprep.subr.bf16.mxu1 %v2649_v37  ;;  %v2731_v37 = vld [vmem:[%s3732_s2 + $0x2b0] ss:$8 sps:$4 sm:$0xff]  }
  0x31   : > { %580 = vmatpush2.bf16.msra.mxu0 %v2651_v38  ;;  %v2736_v38 = vld [vmem:[%s3732_s2 + $0x2a4] ss:$8 sps:$4 sm:$0xff]  }
  0x32   : > { %788 = vmatpush2.bf16.msra.mxu1 %v2652_v39  ;;  %581 = vmatprep.subr.bf16.mxu0 %v2653_v40  ;;  %v2347_v39 = vcombine.low %v3155_v49, %v3181_v58  ;;  %v2734_v40 = vld [vmem:[%s3732_s2 + $0x2a0] ss:$8 sps:$4 sm:$0xff]  }
  0x33   : > { %789 = vmatprep.subr.bf16.mxu1 %v2655_v41  ;;  %v2739_v41 = vld [vmem:[%s3732_s2 + $0x294] ss:$8 sps:$4 sm:$0xff]   ;;  %v2755_v58 = vld [vmem:[%s3734_s4 + $0x160] ss:$8 sps:$4 sm:$0xff]  }
  0x35   : > { %582 = vmatpush2.bf16.msra.mxu0 %v2657_v42  ;;  %v851_v42 = vshll.u32 %v2347_v39, 16 }
  0x36   : > { %790 = vmatpush2.bf16.msra.mxu1 %v2658_v43  ;;  %583 = vmatprep.subr.bf16.mxu0 %v2659_v44  ;;  %v2737_v43 = vld [vmem:[%s3732_s2 + $0x290] ss:$8 sps:$4 sm:$0xff]   ;;  %v2742_v44 = vld [vmem:[%s3732_s2 + $0x284] ss:$8 sps:$4 sm:$0xff]  }
  0x37   : > { %791 = vmatprep.subr.bf16.mxu1 %v2661_v45  ;;  %v849_v45 = vshrl.u32 %v2347_v39, 16  ;;  %v853_v46 = vrot.slane %v851_v42, 1  ;;  %v2818_v39 = vld [vmem:[%s3734_s4 + $0xa0] ss:$8 sps:$4 sm:$0xff]   ;;  %v2824_v42 = vld [vmem:[%s3734_s4 + $0x90] ss:$8 sps:$4 sm:$0xff]  }
  0x39   : > { %584 = vmatpush2.bf16.msra.mxu0 %v2663_v47  ;;  %v2740_v47 = vld [vmem:[%s3732_s2 + $0x280] ss:$8 sps:$4 sm:$0xff]   ;;  %v854_v49 = vor.u32 %v853_v46, %v849_v45  ;;  %v2829_v45 = vld [vmem:[%s3734_s4 + $0x1a4] ss:$8 sps:$4 sm:$0xff]  }
  0x3a   : > { %792 = vmatpush2.bf16.msra.mxu1 %v2664_v50  ;;  %585 = vmatprep.subr.bf16.mxu0 %v2665_v51  ;;  %v2743_v50 = vld [vmem:[%s3734_s4 + $0x70] ss:$8 sps:$4 sm:$0xff]   ;;  %v2745_v51 = vld [vmem:[%s3734_s4 + $0x74] ss:$8 sps:$4 sm:$0xff]   ;;  %v2832_v46 = vld [vmem:[%s3734_s4 + $0x84] ss:$8 sps:$4 sm:$0xff]  }
  0x3b   : > { %793 = vmatprep.subr.bf16.mxu1 %v2667_v53  ;;  %v2749_v53 = vld [vmem:[%s3734_s4 + $0x170] ss:$8 sps:$4 sm:$0xff]  }
  0x3d   : > { %586 = vmatpush2.bf16.msra.mxu0 %v2669_v54  ;;  %v2751_v54 = vld [vmem:[%s3734_s4 + $0x174] ss:$8 sps:$4 sm:$0xff]  }
  0x3e   : > { %794 = vmatpush2.bf16.msra.mxu1 %v2670_v55  ;;  %587 = vmatprep.subr.bf16.mxu0 %v2671_v56  ;;  %v2746_v55 = vld [vmem:[%s3734_s4 + $0x60] ss:$8 sps:$4 sm:$0xff]   ;;  %v2757_v56 = vld [vmem:[%s3734_s4 + $0x164] ss:$8 sps:$4 sm:$0xff]  }
  0x3f   : > { %795 = vmatprep.subr.bf16.mxu1 %v2673_v57  ;;  %v2754_v57 = vld [vmem:[%s3734_s4 + $0x54] ss:$8 sps:$4 sm:$0xff]  }
  0x41   : > { %588 = vmatpush2.bf16.msra.mxu0 %v2675_v59  ;;  %v2763_v59 = vld [vmem:[%s3734_s4 + $0x154] ss:$8 sps:$4 sm:$0xff]  }
  0x42   : > { %796 = vmatpush2.bf16.msra.mxu1 %v2676_v60  ;;  %589 = vmatprep.subr.bf16.mxu0 %v2677_v61  ;;  %v2752_v60 = vld [vmem:[%s3734_s4 + $0x50] ss:$8 sps:$4 sm:$0xff]   ;;  %v2760_v61 = vld [vmem:[%s3734_s4 + $0x44] ss:$8 sps:$4 sm:$0xff]  }
  0x43   : > { %797 = vmatprep.subr.bf16.mxu1 %v2679_v63  ;;  %v2769_v63 = vld [vmem:[%s3734_s4 + $0x144] ss:$8 sps:$4 sm:$0xff]  }
  0x45   : > { %590 = vmatpush2.bf16.msra.mxu0 %v2681_v0  ;;  %v2758_v0 = vld [vmem:[%s3734_s4 + $0x40] ss:$8 sps:$4 sm:$0xff]  }
  0x46   : > { %798 = vmatpush2.bf16.msra.mxu1 %v2682_v1  ;;  %591 = vmatprep.subr.bf16.mxu0 %v2683_v2  ;;  %v2766_v1 = vld [vmem:[%s3734_s4 + $0x34] ss:$8 sps:$4 sm:$0xff]   ;;  %v2767_v2 = vld [vmem:[%s3734_s4 + $0x140] ss:$8 sps:$4 sm:$0xff]  }
  0x47   : > { %799 = vmatprep.subr.bf16.mxu1 %v2685_v4  ;;  %v2764_v4 = vld [vmem:[%s3734_s4 + $0x30] ss:$8 sps:$4 sm:$0xff]  }
  0x49   : > { %592 = vmatpush2.bf16.msra.mxu0 %v2687_v5  ;;  %v2772_v5 = vld [vmem:[%s3734_s4 + $0x24] ss:$8 sps:$4 sm:$0xff]  }
  0x4a   : > { %800 = vmatpush2.bf16.msra.mxu1 %v2688_v6  ;;  %1024 = vmatprep.subr.bf16.mxu0 %v2697_v9  ;;  %v2773_v6 = vld [vmem:[%s3734_s4 + $0x130] ss:$8 sps:$4 sm:$0xff]   ;;  %v2778_v9 = vld [vmem:[%s3734_s4 + $0x14] ss:$8 sps:$4 sm:$0xff]  }
  0x4b   : > { %1354 = vmatprep.subr.bf16.mxu1 %v2751_v54  ;;  %v2844_v54 = vld [vmem:[%s3734_s4 + $0x274] ss:$8 sps:$4 sm:$0xff]  }
  0x4c   : > { %594 = vmatmul.mubr.bf16.vlgmr.msra.gmra.mxu0 %v3218_v10 }
  0x4d   : > { %802 = vmatmul.mubr.bf16.vlgmr.msra.gmra.mxu1 %v2281_v11  ;;  %1025 = vmatpush1.bf16.msra.mxu0 %v2695_v12  ;;  %v2779_v11 = vld [vmem:[%s3734_s4 + $0x120] ss:$8 sps:$4 sm:$0xff]   ;;  %v2787_v12 = vld [vmem:[%s3734_s4 + $0x114] ss:$8 sps:$4 sm:$0xff]  }
  0x4e   : > { %1056 = vmatprep.mubr.bf16.mxu0 %v861_v14  ;;  %1026 = vmatprep.subr.bf16.mxu0 %v2700_v13  ;;  %v2776_v13 = vld [vmem:[%s3734_s4 + $0x10] ss:$8 sps:$4 sm:$0xff]   ;;  %v2784_v14 = vld [vmem:[%s3734_s4 + $0x4] ss:$8 sps:$4 sm:$0xff]  }
  0x4f   : > { %1355 = vmatpush1.bf16.msra.mxu1 %v2749_v53  ;;  %v2836_v53 = vld [vmem:[%s3734_s4 + $0x180] ss:$8 sps:$4 sm:$0xff]  }
  0x50   : > { %1356 = vmatprep.subr.bf16.mxu1 %v2757_v56 }
  0x51   : > { %1027 = vmatpush1.bf16.msra.mxu0 %v2698_v15  ;;  %v2785_v15 = vld [vmem:[%s3734_s4 + $0x110] ss:$8 sps:$4 sm:$0xff]  }
  0x52   : > { %1028 = vmatprep.subr.bf16.mxu0 %v2703_v16  ;;  %v2793_v16 = vld [vmem:[%s3734_s4 + $0x104] ss:$8 sps:$4 sm:$0xff]  }
  0x53   : > { %1357 = vmatpush1.bf16.msra.mxu1 %v2755_v58 }
  0x54   : > { %1358 = vmatprep.subr.bf16.mxu1 %v2763_v59 }
  0x55   : > { %1029 = vmatpush1.bf16.msra.mxu0 %v2701_v17  ;;  %v2782_v17 = vld [vmem:[%s3734_s4] ss:$8 sps:$4 sm:$0xff]  }
  0x56   : > { %1030 = vmatprep.subr.bf16.mxu0 %v2706_v18  ;;  %v2790_v18 = vld [vmem:[%s3734_s4 + $0xf4] ss:$8 sps:$4 sm:$0xff]  }
  0x57   : > { %1359 = vmatpush1.bf16.msra.mxu1 %v2761_v62 }
  0x58   : > { %1360 = vmatprep.subr.bf16.mxu1 %v2769_v63  ;;  %v1069_v63 = vlaneseq }
  0x59   : > { %1031 = vmatpush1.bf16.msra.mxu0 %v2704_v19  ;;  %v2791_v19 = vld [vmem:[%s3734_s4 + $0x100] ss:$8 sps:$4 sm:$0xff]  }
  0x5a   : > { %1032 = vmatprep.subr.bf16.mxu0 %v2709_v20  ;;  %v2799_v20 = vld [vmem:[%s3734_s4 + $0x1f4] ss:$8 sps:$4 sm:$0xff]  }
  0x5b   : > { %1361 = vmatpush1.bf16.msra.mxu1 %v2767_v2  ;;  %v1067_v2 = vld [vmem:[%s3733_s3] sm:$0x3] }
  0x5c   : > { %1362 = vmatprep.subr.bf16.mxu1 %v2775_v3 }
  0x5d   : > { %1033 = vmatpush1.bf16.msra.mxu0 %v2707_v21  ;;  %v2788_v21 = vld [vmem:[%s3734_s4 + $0xf0] ss:$8 sps:$4 sm:$0xff]  }
  0x5e   : > { %1034 = vmatprep.subr.bf16.mxu0 %v2712_v22  ;;  %v2796_v22 = vld [vmem:[%s3734_s4 + $0xe4] ss:$8 sps:$4 sm:$0xff]  }
  0x5f   : > { %1363 = vmatpush1.bf16.msra.mxu1 %v2773_v6 }
  0x60   : > { %1364 = vmatprep.subr.bf16.mxu1 %v2781_v7 }
  0x61   : > { %1035 = vmatpush1.bf16.msra.mxu0 %v2710_v23  ;;  %v2797_v23 = vld [vmem:[%s3734_s4 + $0x1f0] ss:$8 sps:$4 sm:$0xff]  }
  0x62   : > { %1036 = vmatprep.subr.bf16.mxu0 %v2715_v24  ;;  %v2805_v24 = vld [vmem:[%s3734_s4 + $0x1e4] ss:$8 sps:$4 sm:$0xff]  }
  0x63   : > { %1365 = vmatpush1.bf16.msra.mxu1 %v2779_v11 }
  0x64   : > { %1366 = vmatprep.subr.bf16.mxu1 %v2787_v12 }
  0x65   : > { %1037 = vmatpush1.bf16.msra.mxu0 %v2713_v25  ;;  %v2794_v25 = vld [vmem:[%s3734_s4 + $0xe0] ss:$8 sps:$4 sm:$0xff]  }
  0x66   : > { %1038 = vmatprep.subr.bf16.mxu0 %v2718_v26  ;;  %v2802_v26 = vld [vmem:[%s3734_s4 + $0xd4] ss:$8 sps:$4 sm:$0xff]  }
  0x67   : > { %1367 = vmatpush1.bf16.msra.mxu1 %v2785_v15 }
  0x68   : > { %1368 = vmatprep.subr.bf16.mxu1 %v2793_v16 }
  0x69   : > { %1039 = vmatpush1.bf16.msra.mxu0 %v2716_v27  ;;  %v2803_v27 = vld [vmem:[%s3734_s4 + $0x1e0] ss:$8 sps:$4 sm:$0xff]  }
  0x6a   : > { %1040 = vmatprep.subr.bf16.mxu0 %v2721_v28  ;;  %v2800_v28 = vld [vmem:[%s3734_s4 + $0xd0] ss:$8 sps:$4 sm:$0xff]  }
  0x6b   : > { %1369 = vmatpush1.bf16.msra.mxu1 %v2791_v19 }
  0x6c   : > { %1370 = vmatprep.subr.bf16.mxu1 %v2799_v20 }
  0x6d   : > { %1041 = vmatpush2.bf16.msra.mxu0 %v2719_v29  ;;  %v2808_v29 = vld [vmem:[%s3734_s4 + $0xc4] ss:$8 sps:$4 sm:$0xff]  }
  0x6e   : > { %1042 = vmatprep.subr.bf16.mxu0 %v2724_v30  ;;  %v2806_v30 = vld [vmem:[%s3734_s4 + $0xc0] ss:$8 sps:$4 sm:$0xff]  }
  0x6f   : > { %1371 = vmatpush2.bf16.msra.mxu1 %v2797_v23 }
  0x70   : > { %1372 = vmatprep.subr.bf16.mxu1 %v2805_v24 }
  0x71   : > { %1043 = vmatpush2.bf16.msra.mxu0 %v2722_v31  ;;  %v2811_v31 = vld [vmem:[%s3734_s4 + $0x1d4] ss:$8 sps:$4 sm:$0xff]  }
  0x72   : > { %1044 = vmatprep.subr.bf16.mxu0 %v2727_v32  ;;  %v2809_v32 = vld [vmem:[%s3734_s4 + $0x1d0] ss:$8 sps:$4 sm:$0xff]  }
  0x73   : > { %1373 = vmatpush2.bf16.msra.mxu1 %v2803_v27 }
  0x74   : > { %1374 = vmatprep.subr.bf16.mxu1 %v2811_v31 }
  0x75   : > { %1045 = vmatpush2.bf16.msra.mxu0 %v2725_v33  ;;  %v2814_v33 = vld [vmem:[%s3734_s4 + $0xb4] ss:$8 sps:$4 sm:$0xff]  }
  0x76   : > { %1046 = vmatprep.subr.bf16.mxu0 %v2730_v34  ;;  %v2812_v34 = vld [vmem:[%s3734_s4 + $0xb0] ss:$8 sps:$4 sm:$0xff]  }
  0x77   : > { %1375 = vmatpush2.bf16.msra.mxu1 %v2809_v32 }
  0x79   : > { %1047 = vmatpush2.bf16.msra.mxu0 %v2728_v35  ;;  %v2817_v35 = vld [vmem:[%s3734_s4 + $0x1c4] ss:$8 sps:$4 sm:$0xff]  }
  0x7a   : > { %1048 = vmatprep.subr.bf16.mxu0 %v2733_v36  ;;  %v2944_v36 = vmov 0.0   ;;  %1376 = vmatprep.subr.bf16.mxu1 %v2817_v35 }
  0x7b   : > { %1083 = vst [vmem:[#allocation2 + $0x10] sm:$0xff] %v2944_v36  ;;  %1085 = vst [vmem:[#allocation2 + $0x18] sm:$0x3] %v2944_v36 }
  0x7c   : > { %1084 = vst [vmem:[#allocation2] sm:$0xff] %v2944_v36  ;;  %1086 = vst [vmem:[#allocation2 + $0x8] sm:$0x3] %v2944_v36 }
  0x7d   : > { %1049 = vmatpush2.bf16.msra.mxu0 %v2731_v37  ;;  %v2815_v37 = vld [vmem:[%s3734_s4 + $0x1c0] ss:$8 sps:$4 sm:$0xff]  }
  0x7e   : > { %1050 = vmatprep.subr.bf16.mxu0 %v2736_v38  ;;  %1377 = vmatpush2.bf16.msra.mxu1 %v2815_v37  ;;  %v2820_v38 = vld [vmem:[%s3734_s4 + $0xa4] ss:$8 sps:$4 sm:$0xff]  }
  0x81   : > { %1051 = vmatpush2.bf16.msra.mxu0 %v2734_v40  ;;  %v2823_v40 = vld [vmem:[%s3734_s4 + $0x1b4] ss:$8 sps:$4 sm:$0xff]  }
  0x82   : > { %1052 = vmatprep.subr.bf16.mxu0 %v2739_v41  ;;  %v2821_v41 = vld [vmem:[%s3734_s4 + $0x1b0] ss:$8 sps:$4 sm:$0xff]   ;;  %1378 = vmatprep.subr.bf16.mxu1 %v2823_v40  ;;  %v2845_v40 = vld [vmem:[%s3736_s6 + $0x60] ss:$8 sps:$4 sm:$0xff]  }
  0x83   : > { %1379 = vmatpush2.bf16.msra.mxu1 %v2821_v41 }
  0x84   : > { %1380 = vmatprep.subr.bf16.mxu1 %v2829_v45  ;;  %v2842_v45 = vld [vmem:[%s3734_s4 + $0x270] ss:$8 sps:$4 sm:$0xff]  }
  0x85   : > { %1053 = vmatpush2.bf16.msra.mxu0 %v2737_v43  ;;  %v2826_v43 = vld [vmem:[%s3734_s4 + $0x94] ss:$8 sps:$4 sm:$0xff]  }
  0x86   : > { %1054 = vmatprep.subr.bf16.mxu0 %v2742_v44  ;;  %v2827_v44 = vld [vmem:[%s3734_s4 + $0x1a0] ss:$8 sps:$4 sm:$0xff]  }
  0x87   : > { %1381 = vmatpush2.bf16.msra.mxu1 %v2827_v44 }
  0x89   : > { %1055 = vmatpush2.bf16.msra.mxu0 %v2740_v47  ;;  %v2835_v47 = vld [vmem:[%s3734_s4 + $0x194] ss:$8 sps:$4 sm:$0xff]  }
  0x8a   : > { %1555 = vmatprep.subr.bf16.mxu0 %v2745_v51  ;;  %1382 = vmatprep.subr.bf16.mxu1 %v2835_v47  ;;  %v2838_v51 = vld [vmem:[%s3734_s4 + $0x184] ss:$8 sps:$4 sm:$0xff]  }
  0x8b   : > { %v2850_v47 = vld [vmem:[%s3734_s4 + $0x264] ss:$8 sps:$4 sm:$0xff]  }
  0x8c   : > { %1057 = vmatmul.mubr.bf16.vlgmr.msra.gmra.mxu0 %v854_v49  ;;  %v2830_v49 = vld [vmem:[%s3734_s4 + $0x80] ss:$8 sps:$4 sm:$0xff]  }
  0x8d   : > { %1556 = vmatpush1.bf16.msra.mxu0 %v2743_v50  ;;  %v2833_v50 = vld [vmem:[%s3734_s4 + $0x190] ss:$8 sps:$4 sm:$0xff]  }
  0x8e   : > { %1557 = vmatprep.subr.bf16.mxu0 %v2748_v52  ;;  %1383 = vmatpush2.bf16.msra.mxu1 %v2833_v50  ;;  %v2841_v52 = vld [vmem:[%s3736_s6 + $0x74] ss:$8 sps:$4 sm:$0xff]   ;;  %v2859_v50 = vld [vmem:[%s3736_s6 + $0x44] ss:$8 sps:$4 sm:$0xff]  }
  0x8f   : > { %1384 = vmatprep.subr.bf16.mxu1 %v2838_v51  ;;  %v2848_v51 = vld [vmem:[%s3734_s4 + $0x260] ss:$8 sps:$4 sm:$0xff]  }
  0x91   : > { %1558 = vmatpush1.bf16.msra.mxu0 %v2746_v55 }
  0x92   : > { %1559 = vmatprep.subr.bf16.mxu0 %v2754_v57  ;;  %1385 = vmatpush2.bf16.msra.mxu1 %v2836_v53  ;;  %v2857_v53 = vld [vmem:[%s3736_s6 + $0x40] ss:$8 sps:$4 sm:$0xff]  }
  0x93   : > { %1795 = vmatprep.subr.bf16.mxu1 %v2844_v54  ;;  %v2865_v54 = vld [vmem:[%s3736_s6 + $0x34] ss:$8 sps:$4 sm:$0xff]  }
  0x95   : > { %1560 = vmatpush1.bf16.msra.mxu0 %v2752_v60 }
  0x96   : > { %1561 = vmatprep.subr.bf16.mxu0 %v2760_v61 }
  0x99   : > { %1562 = vmatpush1.bf16.msra.mxu0 %v2758_v0  ;;  %v1070_v0 = vshrl.u32 %v1069_v63, 7  ;;  %v2866_v63 = vld [vmem:[%s3734_s4 + $0x230] ss:$8 sps:$4 sm:$0xff]  }
  0x9a   : > { %1563 = vmatprep.subr.bf16.mxu0 %v2766_v1 }
  0x9b   : > { %v3516_v1 = vsub.s32 0, %v1070_v0  ;;  %v3521_v3 = vsub.s32 1, %v1070_v0  ;;  %v2874_v0 = vld [vmem:[%s3734_s4 + $0x224] ss:$8 sps:$4 sm:$0xff]  }
  0x9d   : > { %1564 = vmatpush1.bf16.msra.mxu0 %v2764_v4 }
  0x9e   : > { %1565 = vmatprep.subr.bf16.mxu0 %v2772_v5  ;;  %v1072_v5 = vrot.slane %v1067_v2, %v3516_v1 }
  0xa1   : > { %1566 = vmatpush1.bf16.msra.mxu0 %v2770_v8 }
  0xa2   : > { %1567 = vmatprep.subr.bf16.mxu0 %v2778_v9  ;;  %v1076_v9 = vrot.slane %v1067_v2, %v3521_v3  ;;  %v2875_v2 = vld [vmem:[%s3736_s6 + $0x10] ss:$8 sps:$4 sm:$0xff]  }
  0xa5   : > { %1568 = vmatpush1.bf16.msra.mxu0 %v2776_v13 }
  0xa6   : > { %1569 = vmatprep.subr.bf16.mxu0 %v2784_v14 }
  0xa9   : > { %1570 = vmatpush1.bf16.msra.mxu0 %v2782_v17 }
  0xaa   : > { %1571 = vmatprep.subr.bf16.mxu0 %v2790_v18 }
  0xad   : > { %1572 = vmatpush2.bf16.msra.mxu0 %v2788_v21 }
  0xae   : > { %1573 = vmatprep.subr.bf16.mxu0 %v2796_v22 }
  0xb1   : > { %1574 = vmatpush2.bf16.msra.mxu0 %v2794_v25 }
  0xb2   : > { %1575 = vmatprep.subr.bf16.mxu0 %v2802_v26 }
  0xb5   : > { %1576 = vmatpush2.bf16.msra.mxu0 %v2800_v28 }
  0xb6   : > { %1577 = vmatprep.subr.bf16.mxu0 %v2808_v29  ;;  %v2839_v29 = vld [vmem:[%s3736_s6 + $0x70] ss:$8 sps:$4 sm:$0xff]  }
  0xb9   : > { %1578 = vmatpush2.bf16.msra.mxu0 %v2806_v30 }
  0xba   : > { %1579 = vmatprep.subr.bf16.mxu0 %v2814_v33  ;;  %v2847_v33 = vld [vmem:[%s3736_s6 + $0x64] ss:$8 sps:$4 sm:$0xff]  }
  0xbd   : > { %1580 = vmatpush2.bf16.msra.mxu0 %v2812_v34 }
  0xbe   : > { %1581 = vmatprep.subr.bf16.mxu0 %v2820_v38 }
  0xc1   : > { %1582 = vmatpush2.bf16.msra.mxu0 %v2818_v39 }
  0xc2   : > { %1583 = vmatprep.subr.bf16.mxu0 %v2826_v43  ;;  %v2853_v43 = vld [vmem:[%s3736_s6 + $0x54] ss:$8 sps:$4 sm:$0xff]  }
  0xc5   : > { %1584 = vmatpush2.bf16.msra.mxu0 %v2824_v42 }
  0xc6   : > { %1585 = vmatprep.subr.bf16.mxu0 %v2832_v46 }
  0xc9   : > { %1586 = vmatpush2.bf16.msra.mxu0 %v2830_v49 }
  0xca   : > { %2050 = vmatprep.subr.bf16.mxu0 %v2841_v52  ;;  %v2856_v52 = vld [vmem:[%s3734_s4 + $0x254] ss:$8 sps:$4 sm:$0xff]  }
 0x10c   : > { %v595_v55 = vpop.f32.mrf.mxu0 }
 0x10d   : > { %v803_v56 = vpop.f32.mrf.mxu1 }
 0x10e   : > { %v597_v57 = vpop.f32.mrf.mxu0  ;;  %v804_v4 = vadd.f32 %v803_v56, %v595_v55  ;;  %v2854_v55 = vld [vmem:[%s3734_s4 + $0x250] ss:$8 sps:$4 sm:$0xff]   ;;  %v2862_v56 = vld [vmem:[%s3734_s4 + $0x244] ss:$8 sps:$4 sm:$0xff]  }
 0x10f   : > { %v805_v58 = vpop.f32.mrf.mxu1 }
 0x110   : > { %v599_v59 = vpop.f32.mrf.mxu0  ;;  %v806_v7 = vadd.f32 %v805_v58, %v597_v57  ;;  %v2863_v57 = vld [vmem:[%s3736_s6 + $0x30] ss:$8 sps:$4 sm:$0xff]   ;;  %v2871_v58 = vld [vmem:[%s3736_s6 + $0x24] ss:$8 sps:$4 sm:$0xff]  }
 0x111   : > { %v807_v60 = vpop.f32.mrf.mxu1  ;;  %v2860_v59 = vld [vmem:[%s3734_s4 + $0x240] ss:$8 sps:$4 sm:$0xff]  }
 0x112   : > { %v600_v61 = vpop.f32.mrf.mxu0  ;;  %v2868_v60 = vld [vmem:[%s3734_s4 + $0x234] ss:$8 sps:$4 sm:$0xff]  }
 0x113   : > { %v808_v62 = vpop.f32.mrf.mxu1  ;;  %v2869_v61 = vld [vmem:[%s3736_s6 + $0x20] ss:$8 sps:$4 sm:$0xff]  }
 0x114   : > { %v2877_v62 = vld [vmem:[%s3736_s6 + $0x14] ss:$8 sps:$4 sm:$0xff]  }
 0x14c   : > { %v1058_v6 = vpop.f32.mrf.mxu0 }
 0x14d   : > { %v1065_v8 = vadd.f32 %v1058_v6, %v804_v4  ;;  %v2883_v4 = vld [vmem:[%s3736_s6 + $0x4] ss:$8 sps:$4 sm:$0xff]   ;;  %v2880_v6 = vld [vmem:[%s3734_s4 + $0x214] ss:$8 sps:$4 sm:$0xff]  }
 0x14e   : > { %v1060_v11 = vpop.f32.mrf.mxu0 }
 0x14f   : > { %v1079_v12 = vadd.f32 %v1072_v5, %v1065_v8  ;;  %v1066_v13 = vadd.f32 %v1060_v11, %v806_v7  ;;  %v2872_v5 = vld [vmem:[%s3734_s4 + $0x220] ss:$8 sps:$4 sm:$0xff]   ;;  %v2889_v8 = vld [vmem:[%s3736_s6 + $0xf4] ss:$8 sps:$4 sm:$0xff]   ;;  %v2886_v11 = vld [vmem:[%s3734_s4 + $0x204] ss:$8 sps:$4 sm:$0xff]  }
 0x150   : > { %v1062_v14 = vpop.f32.mrf.mxu0  ;;  %v2881_v7 = vld [vmem:[%s3736_s6] ss:$8 sps:$4 sm:$0xff]  }
 0x151   : > { %v1081_v15 = vmax.f32 %v1079_v12, 0.0  ;;  %v1080_v16 = vadd.f32 %v1076_v9, %v1066_v13  ;;  %v2878_v9 = vld [vmem:[%s3734_s4 + $0x210] ss:$8 sps:$4 sm:$0xff]   ;;  %v2895_v13 = vld [vmem:[%s3736_s6 + $0xe4] ss:$8 sps:$4 sm:$0xff]  }
 0x152   : > { %v1063_v17 = vpop.f32.mrf.mxu0  ;;  %v2887_v12 = vld [vmem:[%s3736_s6 + $0xf0] ss:$8 sps:$4 sm:$0xff]   ;;  %v2884_v14 = vld [vmem:[%s3734_s4 + $0x200] ss:$8 sps:$4 sm:$0xff]  }
 0x153   : > { %v1089_v18 = vrot.slane %v1081_v15, 7  ;;  %v1082_v19 = vmax.f32 %v1080_v16, 0.0  ;;  %v2892_v15 = vld [vmem:[%s3734_s4 + $0x2f4] ss:$8 sps:$4 sm:$0xff]   ;;  %v2893_v16 = vld [vmem:[%s3736_s6 + $0xe0] ss:$8 sps:$4 sm:$0xff]  }
 0x154   : > { %v2901_v17 = vld [vmem:[%s3736_s6 + $0xd4] ss:$8 sps:$4 sm:$0xff]  }
 0x155   : > { %1093 = vst [vmem:[#allocation2 + $0x10] sm:$0xfe] %v1089_v18  ;;  %1095 = vst [vmem:[#allocation2 + $0x18] sm:$0x1] %v1089_v18  ;;  %v1090_v20 = vrot.slane %v1082_v19, 7 }
 0x156   : > { %v2890_v18 = vld [vmem:[%s3734_s4 + $0x2f0] ss:$8 sps:$4 sm:$0xff]   ;;  %v2898_v19 = vld [vmem:[%s3734_s4 + $0x2e4] ss:$8 sps:$4 sm:$0xff]  }
 0x157   : > { %1094 = vst [vmem:[#allocation2] sm:$0xfe] %v1090_v20  ;;  %1096 = vst [vmem:[#allocation2 + $0x8] sm:$0x1] %v1090_v20  ;;  %v2899_v20 = vld [vmem:[%s3736_s6 + $0xd0] ss:$8 sps:$4 sm:$0xff]  }
 0x15c   : > { %v1101_v21 = vld [vmem:[#allocation2 + $0x10] sm:$0xfe]  ;;  %v1103_v22 = vld [vmem:[#allocation2 + $0x18] sm:$0x1] }
 0x15d   : > { %v1097_v23 = vld [vmem:[#allocation2 + $0x10] sm:$0xff]  ;;  %v1105_v24 = vpack.c.bf16 %v1103_v22, %v1101_v21  ;;  %v2907_v21 = vld [vmem:[%s3736_s6 + $0xc4] ss:$8 sps:$4 sm:$0xff]   ;;  %v2896_v22 = vld [vmem:[%s3734_s4 + $0x2e0] ss:$8 sps:$4 sm:$0xff]  }
 0x15e   : > { %v1098_v25 = vld [vmem:[#allocation2] sm:$0xff]  ;;  %v1104_v27 = vld [vmem:[#allocation2 + $0x8] sm:$0x1]  ;;  %v1099_v32 = vpack.c.bf16 %v1097_v23, %v1097_v23  ;;  %v2904_v23 = vld [vmem:[%s3734_s4 + $0x2d4] ss:$8 sps:$4 sm:$0xff]  }
 0x15f   : > { %v1102_v26 = vld [vmem:[#allocation2] sm:$0xfe]  ;;  %v1100_v28 = vpack.c.bf16 %v1098_v25, %v1098_v25  ;;  %v1181_v31 = vshll.u32 %v1105_v24, 16  ;;  %v1110_v35 = vld [vmem:[#allocation2 + $0x8] sm:$0x3]  ;;  %v1179_v42 = vshrl.u32 %v1105_v24, 16 }
 0x160   : > { %v1106_v30 = vpack.c.bf16 %v1104_v27, %v1102_v26  ;;  %v1108_v34 = vld [vmem:[#allocation2] sm:$0xfc]  ;;  %v2913_v25 = vld [vmem:[%s3736_s6 + $0xb4] ss:$8 sps:$4 sm:$0xff]   ;;  %v2902_v26 = vld [vmem:[%s3734_s4 + $0x2d0] ss:$8 sps:$4 sm:$0xff]  }
 0x161   : > { %1587 = vmatprep.mubr.bf16.mxu0 %v1100_v28  ;;  %v1183_v37 = vrot.slane %v1181_v31, 1  ;;  %v1112_v41 = vpack.c.bf16 %v1110_v35, %v1108_v34  ;;  %v2905_v24 = vld [vmem:[%s3736_s6 + $0xc0] ss:$8 sps:$4 sm:$0xff]   ;;  %v2910_v27 = vld [vmem:[%s3734_s4 + $0x2c4] ss:$8 sps:$4 sm:$0xff]  }
 0x162   : > { %v1188_v36 = vshll.u32 %v1106_v30, 16  ;;  %1588 = vmatmul.mubr.bf16.vlgmr.msra.gmra.mxu0 %v1099_v32  ;;  %v1186_v38 = vshrl.u32 %v1106_v30, 16  ;;  %v2911_v28 = vld [vmem:[%s3736_s6 + $0xb0] ss:$8 sps:$4 sm:$0xff]   ;;  %v2908_v30 = vld [vmem:[%s3734_s4 + $0x2c0] ss:$8 sps:$4 sm:$0xff]  }
 0x163   : > { %2051 = vmatpush1.bf16.msra.mxu0 %v2839_v29  ;;  %2082 = vmatprep.mubr.bf16.mxu0 %v3153_v48  ;;  %v1184_v46 = vor.u32 %v1183_v37, %v1179_v42  ;;  %v1632_v49 = vrot.slane %v1112_v41, 1  ;;  %v2851_v48 = vld [vmem:[%s3736_s6 + $0x50] ss:$8 sps:$4 sm:$0xff]   ;;  %v2919_v29 = vld [vmem:[%s3736_s6 + $0xa4] ss:$8 sps:$4 sm:$0xff]  }
 0x164   : > { %v1190_v39 = vrot.slane %v1188_v36, 1  ;;  %2052 = vmatprep.subr.bf16.mxu0 %v2847_v33  ;;  %v2916_v31 = vld [vmem:[%s3734_s4 + $0x2b4] ss:$8 sps:$4 sm:$0xff]   ;;  %v2917_v32 = vld [vmem:[%s3736_s6 + $0xa0] ss:$8 sps:$4 sm:$0xff]  }
 0x165   : > { %v2925_v33 = vld [vmem:[%s3736_s6 + $0x94] ss:$8 sps:$4 sm:$0xff]   ;;  %v2914_v34 = vld [vmem:[%s3734_s4 + $0x2b0] ss:$8 sps:$4 sm:$0xff]   ;;  %v2922_v35 = vld [vmem:[%s3734_s4 + $0x2a4] ss:$8 sps:$4 sm:$0xff]  }
 0x166   : > { %v1191_v44 = vor.u32 %v1190_v39, %v1186_v38  ;;  %v2923_v36 = vld [vmem:[%s3736_s6 + $0x90] ss:$8 sps:$4 sm:$0xff]   ;;  %v2931_v37 = vld [vmem:[%s3736_s6 + $0x84] ss:$8 sps:$4 sm:$0xff]   ;;  %v2920_v38 = vld [vmem:[%s3734_s4 + $0x2a0] ss:$8 sps:$4 sm:$0xff]  }
 0x167   : > { %2053 = vmatpush1.bf16.msra.mxu0 %v2845_v40  ;;  %v2928_v39 = vld [vmem:[%s3734_s4 + $0x294] ss:$8 sps:$4 sm:$0xff]   ;;  %v2929_v40 = vld [vmem:[%s3736_s6 + $0x80] ss:$8 sps:$4 sm:$0xff]   ;;  %v2926_v41 = vld [vmem:[%s3734_s4 + $0x290] ss:$8 sps:$4 sm:$0xff]  }
 0x168   : > { %1386 = vmatprep.mubr.bf16.mxu1 %v1191_v44  ;;  %2054 = vmatprep.subr.bf16.mxu0 %v2853_v43  ;;  %v2935_v42 = vld [vmem:[%s3734_s4 + $0x284] ss:$8 sps:$4 sm:$0xff]   ;;  %v1107_v43 = vld [vmem:[#allocation2 + $0x10] sm:$0xfc]  ;;  %v1109_v44 = vld [vmem:[#allocation2 + $0x18] sm:$0x3] }
 0x169   : > { %1387 = vmatmul.mubr.bf16.vlgmr.msra.gmra.mxu1 %v1184_v46  ;;  %v1111_v46 = vpack.c.bf16 %v1109_v44, %v1107_v43 }
 0x16a   : > { %1796 = vmatpush1.bf16.msra.mxu1 %v2842_v45  ;;  %1827 = vmatprep.mubr.bf16.mxu1 %v1632_v49  ;;  %v2933_v45 = vld [vmem:[%s3734_s4 + $0x280] ss:$8 sps:$4 sm:$0xff]  }
 0x16b   : > { %1797 = vmatprep.subr.bf16.mxu1 %v2850_v47  ;;  %2055 = vmatpush1.bf16.msra.mxu0 %v2851_v48  ;;  %v1631_v47 = vrot.slane %v1111_v46, 1 }
 0x16c   : > { %2056 = vmatprep.subr.bf16.mxu0 %v2859_v50 }
 0x16e   : > { %1798 = vmatpush1.bf16.msra.mxu1 %v2848_v51 }
 0x16f   : > { %1799 = vmatprep.subr.bf16.mxu1 %v2856_v52  ;;  %2057 = vmatpush1.bf16.msra.mxu0 %v2857_v53 }
 0x170   : > { %2058 = vmatprep.subr.bf16.mxu0 %v2865_v54 }
 0x172   : > { %1800 = vmatpush1.bf16.msra.mxu1 %v2854_v55 }
 0x173   : > { %1801 = vmatprep.subr.bf16.mxu1 %v2862_v56  ;;  %2059 = vmatpush1.bf16.msra.mxu0 %v2863_v57  ;;  %v1871_v56 = vld [vmem:[%s3737_s7] sm:$0x3] }
 0x174   : > { %2060 = vmatprep.subr.bf16.mxu0 %v2871_v58 }
 0x176   : > { %1802 = vmatpush1.bf16.msra.mxu1 %v2860_v59  ;;  %v1876_v59 = vrot.slane %v1871_v56, %v3516_v1 }
 0x177   : > { %1803 = vmatprep.subr.bf16.mxu1 %v2868_v60  ;;  %2061 = vmatpush1.bf16.msra.mxu0 %v2869_v61 }
 0x178   : > { %2062 = vmatprep.subr.bf16.mxu0 %v2877_v62 }
 0x17a   : > { %1804 = vmatpush1.bf16.msra.mxu1 %v2866_v63  ;;  %v1880_v63 = vrot.slane %v1871_v56, %v3521_v3 }
 0x17b   : > { %1805 = vmatprep.subr.bf16.mxu1 %v2874_v0  ;;  %2063 = vmatpush1.bf16.msra.mxu0 %v2875_v2 }
 0x17c   : > { %2064 = vmatprep.subr.bf16.mxu0 %v2883_v4 }
 0x17e   : > { %1806 = vmatpush1.bf16.msra.mxu1 %v2872_v5 }
 0x17f   : > { %1807 = vmatprep.subr.bf16.mxu1 %v2880_v6  ;;  %2065 = vmatpush1.bf16.msra.mxu0 %v2881_v7 }
 0x180   : > { %2066 = vmatprep.subr.bf16.mxu0 %v2889_v8 }
 0x182   : > { %1808 = vmatpush1.bf16.msra.mxu1 %v2878_v9 }
 0x183   : > { %1809 = vmatprep.subr.bf16.mxu1 %v2886_v11  ;;  %2067 = vmatpush2.bf16.msra.mxu0 %v2887_v12 }
 0x184   : > { %2068 = vmatprep.subr.bf16.mxu0 %v2895_v13 }
 0x186   : > { %1810 = vmatpush1.bf16.msra.mxu1 %v2884_v14 }
 0x187   : > { %1811 = vmatprep.subr.bf16.mxu1 %v2892_v15  ;;  %2069 = vmatpush2.bf16.msra.mxu0 %v2893_v16 }
 0x188   : > { %2070 = vmatprep.subr.bf16.mxu0 %v2901_v17 }
 0x18a   : > { %1812 = vmatpush2.bf16.msra.mxu1 %v2890_v18 }
 0x18b   : > { %1813 = vmatprep.subr.bf16.mxu1 %v2898_v19  ;;  %2071 = vmatpush2.bf16.msra.mxu0 %v2899_v20 }
 0x18c   : > { %2072 = vmatprep.subr.bf16.mxu0 %v2907_v21 }
 0x18e   : > { %1814 = vmatpush2.bf16.msra.mxu1 %v2896_v22 }
 0x18f   : > { %1815 = vmatprep.subr.bf16.mxu1 %v2904_v23  ;;  %2073 = vmatpush2.bf16.msra.mxu0 %v2905_v24 }
 0x190   : > { %2074 = vmatprep.subr.bf16.mxu0 %v2913_v25 }
 0x192   : > { %1816 = vmatpush2.bf16.msra.mxu1 %v2902_v26 }
 0x193   : > { %1817 = vmatprep.subr.bf16.mxu1 %v2910_v27  ;;  %2075 = vmatpush2.bf16.msra.mxu0 %v2911_v28 }
 0x194   : > { %2076 = vmatprep.subr.bf16.mxu0 %v2919_v29 }
 0x196   : > { %1818 = vmatpush2.bf16.msra.mxu1 %v2908_v30 }
 0x197   : > { %1819 = vmatprep.subr.bf16.mxu1 %v2916_v31  ;;  %2077 = vmatpush2.bf16.msra.mxu0 %v2917_v32 }
 0x198   : > { %2078 = vmatprep.subr.bf16.mxu0 %v2925_v33 }
 0x19a   : > { %1820 = vmatpush2.bf16.msra.mxu1 %v2914_v34 }
 0x19b   : > { %1821 = vmatprep.subr.bf16.mxu1 %v2922_v35  ;;  %2079 = vmatpush2.bf16.msra.mxu0 %v2923_v36 }
 0x19c   : > { %2080 = vmatprep.subr.bf16.mxu0 %v2931_v37 }
 0x19e   : > { %1822 = vmatpush2.bf16.msra.mxu1 %v2920_v38 }
 0x19f   : > { %1823 = vmatprep.subr.bf16.mxu1 %v2928_v39  ;;  %2081 = vmatpush2.bf16.msra.mxu0 %v2929_v40 }
 0x1a2   : > { %1824 = vmatpush2.bf16.msra.mxu1 %v2926_v41  ;;  %2083 = vmatmul.mubr.bf16.vlgmr.msra.gmra.mxu0 %v3218_v10  ;;  %v2091_v10 = vld [vmem:[%s3735_s5] sm:$0x3] }
 0x1a3   : > { %1825 = vmatprep.subr.bf16.mxu1 %v2935_v42  ;;  %v2096_v62 = vrot.slane %v2091_v10, %v3516_v1  ;;  %v2100_v7 = vrot.slane %v2091_v10, %v3521_v3 }
 0x1a6   : > { %1826 = vmatpush2.bf16.msra.mxu1 %v2933_v45 }
 0x1a9   : > { %1828 = vmatmul.mubr.bf16.vlgmr.msra.gmra.mxu1 %v1631_v47 }
 0x222   : > { %v1589_v49 = vpop.f32.mrf.mxu0 }
 0x224   : > { %v1591_v48 = vpop.f32.mrf.mxu0 }
 0x226   : > { %v1593_v50 = vpop.f32.mrf.mxu0 }
 0x228   : > { %v1594_v52 = vpop.f32.mrf.mxu0 }
 0x229   : > { %v1388_v51 = vpop.f32.mrf.mxu1 }
 0x22a   : > { %v1590_v61 = vadd.f32 %v1589_v49, %v1388_v51 }
 0x22b   : > { %v1390_v53 = vpop.f32.mrf.mxu1 }
 0x22c   : > { %v1592_v4 = vadd.f32 %v1591_v48, %v1390_v53 }
 0x22d   : > { %v1392_v54 = vpop.f32.mrf.mxu1 }
 0x22f   : > { %v1393_v55 = vpop.f32.mrf.mxu1 }
 0x262   : > { %v2084_v57 = vpop.f32.mrf.mxu0 }
 0x263   : > { %v2085_v5 = vadd.f32 %v2084_v57, %v1876_v59 }
 0x264   : > { %v2086_v58 = vpop.f32.mrf.mxu0 }
 0x265   : > { %v2087_v13 = vadd.f32 %v2086_v58, %v1880_v63 }
 0x266   : > { %v2088_v60 = vpop.f32.mrf.mxu0 }
 0x268   : > { %v2089_v2 = vpop.f32.mrf.mxu0 }
 0x269   : > { %v1829_v0 = vpop.f32.mrf.mxu1 }
 0x26a   : > { %v1836_v6 = vadd.f32 %v1829_v0, %v1590_v61 }
 0x26b   : > { %v1831_v8 = vpop.f32.mrf.mxu1 }
 0x26c   : > { %v2103_v9 = vadd.f32 %v2096_v62, %v1836_v6  ;;  %v1837_v11 = vadd.f32 %v1831_v8, %v1592_v4 }
 0x26d   : > { %v1833_v12 = vpop.f32.mrf.mxu1 }
 0x26e   : > { %v2105_v14 = vadd.f32 %v2103_v9, %v2085_v5  ;;  %v2104_v15 = vadd.f32 %v2100_v7, %v1837_v11 }
 0x26f   : > { %v1834_v16 = vpop.f32.mrf.mxu1 }
 0x270   : > { %v2107_v17 = vmax.f32 %v2105_v14, 0.0  ;;  %v2106_v1 = vadd.f32 %v2104_v15, %v2087_v13 }
 0x272   : > { %v2111_v18 = vrot.slane %v2107_v17, 7  ;;  %v2108_v19 = vmax.f32 %v2106_v1, 0.0 }
 0x274   : > { %2115 = vst [vmem:[#allocation2 + $0x10] sm:$0xfe] %v2111_v18  ;;  %2117 = vst [vmem:[#allocation2 + $0x18] sm:$0x1] %v2111_v18  ;;  %v2112_v20 = vrot.slane %v2108_v19, 7 }
 0x276   : > { %2116 = vst [vmem:[#allocation2] sm:$0xfe] %v2112_v20  ;;  %2118 = vst [vmem:[#allocation2 + $0x8] sm:$0x1] %v2112_v20 }
 0x27b   : > { %v2119_v21 = vld [vmem:[#allocation2 + $0x10] sm:$0xff]  ;;  %v2121_v3 = vld [vmem:[#allocation2 + $0x18] sm:$0x3] }
 0x27d   : > { %v2120_v22 = vld [vmem:[#allocation2] sm:$0xff]  ;;  %v2122_v23 = vld [vmem:[#allocation2 + $0x8] sm:$0x3] }
 0x27e   : > { %v2582_v24 = vpack.c.bf16 %v2120_v22, %v2119_v21  ;;  %v2583_v25 = vpack.c.bf16 %v2122_v23, %v2121_v3 }
 0x280   : > { %2135 = vst [vmem:[%s325_s10] sm:$0xff] %v2582_v24  ;;  %2136 = vst [vmem:[%s325_s10 + $0x8] sm:$0x11] %v2583_v25 }
 0x281 PF: > { %s18_s27 = sadd.s32 1, %s2942_s27  }
 0x282   : > { %p15_p4 = scmp.ge.s32.totalorder %s18_s27, 4  }
 0x284   :  { %17 = sbr.rel (!%p15_p4) target bundleno = 1 (0x1), region = 89 }

// kernel: resnet20_forward.15
= control target key start
LH: loop header
LB: loop body
LE: loop exit
PB: predicated region body
PF: predicated region fallthrough
CT: control target
= control target key end

     0   :  { %s2545_s18 = smov 0   ;;  %s3192_s0 = inlined_call_operand.vmem [shape: bf16[2,10,256], index: 0, kind: input, shape index: {}]   ;;  %s3193_s1 = inlined_call_operand.vmem [shape: bf16[3,256,256], index: 1, kind: input, shape index: {}]   ;;  %s3194_s2 = inlined_call_operand.vmem [shape: f32[1,256], index: 2, kind: input, shape index: {}]   ;;  %s3195_s3 = inlined_call_operand.vmem [shape: bf16[3,256,256], index: 3, kind: input, shape index: {}]   ;;  %s3196_s4 = inlined_call_operand.vmem [shape: f32[1,256], index: 4, kind: input, shape index: {}]   ;;  %s3197_s5 = inlined_call_operand.vmem [shape: bf16[2,10,256], index: 5, kind: output, shape index: {}]  }
   0x1 LB: > { %s1859_s19 = sadd.s32 4294967295, %s2512_s18   ;;  %p1863_p0 = scmp.ge.s32.totalorder %s2512_s18, 1  ;;  %s2512_s18 = sphi %s2545_s18, %s15_s18  }
   0x2   : > { %p187_p1 = scmp.lt.s32.totalorder %s2512_s18, 3 }
   0x4   : > { %p188_p2 = pnand %p1863_p0, %p187_p1 }
   0x5   : > { %p215_p3 = scmp.lt.s32.totalorder (!%p188_p2), %s1859_s19, 1 }
   0x6   : > { %191 = sbr.rel (%p188_p2) target bundleno = 641 (0x281), region = 40 }
   0xb   : > { %v2211_v0 = vld [vmem:[%s3193_s1 + $0x174] ss:$8 sps:$4 sm:$0xff]   ;;  %v2215_v2 = vld [vmem:[%s3193_s1 + $0x170] ss:$8 sps:$4 sm:$0xff]   ;;  %v2217_v4 = vld [vmem:[%s3193_s1 + $0x164] ss:$8 sps:$4 sm:$0xff]  }
   0xc   : > { %v2213_v1 = vld [vmem:[%s3193_s1 + $0x74] ss:$8 sps:$4 sm:$0xff]   ;;  %477 = vmatprep.subr.bf16.mxu0 %v2211_v0  ;;  %v2216_v3 = vld [vmem:[%s3193_s1 + $0x70] ss:$8 sps:$4 sm:$0xff]   ;;  %v2219_v5 = vld [vmem:[%s3193_s1 + $0x64] ss:$8 sps:$4 sm:$0xff]  }
   0xd   : > { %682 = vmatprep.subr.bf16.mxu1 %v2213_v1  ;;  %478 = vmatpush1.bf16.msra.mxu0 %v2215_v2  ;;  %v2221_v6 = vld [vmem:[%s3193_s1 + $0x160] ss:$8 sps:$4 sm:$0xff]   ;;  %v2223_v8 = vld [vmem:[%s3193_s1 + $0x154] ss:$8 sps:$4 sm:$0xff]   ;;  %v2227_v10 = vld [vmem:[%s3193_s1 + $0x150] ss:$8 sps:$4 sm:$0xff]  }
   0xe   : > { %683 = vmatpush1.bf16.msra.mxu1 %v2216_v3  ;;  %479 = vmatprep.subr.bf16.mxu0 %v2217_v4  ;;  %v2222_v7 = vld [vmem:[%s3193_s1 + $0x60] ss:$8 sps:$4 sm:$0xff]   ;;  %v2225_v9 = vld [vmem:[%s3193_s1 + $0x54] ss:$8 sps:$4 sm:$0xff]   ;;  %v2228_v11 = vld [vmem:[%s3193_s1 + $0x50] ss:$8 sps:$4 sm:$0xff]  }
   0xf   : > { %684 = vmatprep.subr.bf16.mxu1 %v2219_v5  ;;  %v2229_v12 = vld [vmem:[%s3193_s1 + $0x144] ss:$8 sps:$4 sm:$0xff]   ;;  %v2233_v14 = vld [vmem:[%s3193_s1 + $0x140] ss:$8 sps:$4 sm:$0xff]   ;;  %v2235_v16 = vld [vmem:[%s3193_s1 + $0x134] ss:$8 sps:$4 sm:$0xff]  }
  0x10   : > { %v2231_v13 = vld [vmem:[%s3193_s1 + $0x44] ss:$8 sps:$4 sm:$0xff]   ;;  %v2234_v15 = vld [vmem:[%s3193_s1 + $0x40] ss:$8 sps:$4 sm:$0xff]   ;;  %v2237_v17 = vld [vmem:[%s3193_s1 + $0x34] ss:$8 sps:$4 sm:$0xff]  }
  0x11   : > { %480 = vmatpush1.bf16.msra.mxu0 %v2221_v6  ;;  %v2239_v18 = vld [vmem:[%s3193_s1 + $0x130] ss:$8 sps:$4 sm:$0xff]   ;;  %v2241_v20 = vld [vmem:[%s3193_s1 + $0x124] ss:$8 sps:$4 sm:$0xff]   ;;  %v2245_v22 = vld [vmem:[%s3193_s1 + $0x120] ss:$8 sps:$4 sm:$0xff]  }
  0x12   : > { %685 = vmatpush1.bf16.msra.mxu1 %v2222_v7  ;;  %481 = vmatprep.subr.bf16.mxu0 %v2223_v8  ;;  %v2240_v19 = vld [vmem:[%s3193_s1 + $0x30] ss:$8 sps:$4 sm:$0xff]   ;;  %v2243_v21 = vld [vmem:[%s3193_s1 + $0x24] ss:$8 sps:$4 sm:$0xff]   ;;  %v2246_v23 = vld [vmem:[%s3193_s1 + $0x20] ss:$8 sps:$4 sm:$0xff]  }
  0x13   : > { %686 = vmatprep.subr.bf16.mxu1 %v2225_v9  ;;  %v2247_v24 = vld [vmem:[%s3193_s1 + $0x114] ss:$8 sps:$4 sm:$0xff]   ;;  %v2251_v26 = vld [vmem:[%s3193_s1 + $0x110] ss:$8 sps:$4 sm:$0xff]   ;;  %v2253_v28 = vld [vmem:[%s3193_s1 + $0x104] ss:$8 sps:$4 sm:$0xff]  }
  0x14   : > { %v2249_v25 = vld [vmem:[%s3193_s1 + $0x14] ss:$8 sps:$4 sm:$0xff]   ;;  %v2252_v27 = vld [vmem:[%s3193_s1 + $0x10] ss:$8 sps:$4 sm:$0xff]   ;;  %v2255_v29 = vld [vmem:[%s3193_s1 + $0x4] ss:$8 sps:$4 sm:$0xff]  }
  0x15   : > { %482 = vmatpush1.bf16.msra.mxu0 %v2227_v10  ;;  %v2257_v30 = vld [vmem:[%s3193_s1 + $0x100] ss:$8 sps:$4 sm:$0xff]   ;;  %v2259_v32 = vld [vmem:[%s3193_s1 + $0x1f4] ss:$8 sps:$4 sm:$0xff]   ;;  %v2263_v34 = vld [vmem:[%s3193_s1 + $0x1f0] ss:$8 sps:$4 sm:$0xff]  }
  0x16   : > { %687 = vmatpush1.bf16.msra.mxu1 %v2228_v11  ;;  %483 = vmatprep.subr.bf16.mxu0 %v2229_v12  ;;  %v2258_v31 = vld [vmem:[%s3193_s1] ss:$8 sps:$4 sm:$0xff]   ;;  %v2261_v33 = vld [vmem:[%s3193_s1 + $0xf4] ss:$8 sps:$4 sm:$0xff]   ;;  %v2264_v35 = vld [vmem:[%s3193_s1 + $0xf0] ss:$8 sps:$4 sm:$0xff]  }
  0x17   : > { %688 = vmatprep.subr.bf16.mxu1 %v2231_v13  ;;  %v2265_v36 = vld [vmem:[%s3193_s1 + $0x1e4] ss:$8 sps:$4 sm:$0xff]   ;;  %s3199_s19 = smov (!%p215_p3, %s1859_s19), 1  ;;  %v2269_v38 = vld [vmem:[%s3193_s1 + $0x1e0] ss:$8 sps:$4 sm:$0xff]   ;;  %vm1763_vm0 = vcmask 1046528  }
  0x18   : > { %v2267_v37 = vld [vmem:[%s3193_s1 + $0xe4] ss:$8 sps:$4 sm:$0xff]   ;;  %v2270_v39 = vld [vmem:[%s3193_s1 + $0xe0] ss:$8 sps:$4 sm:$0xff]   ;;  %v2271_v40 = vld [vmem:[%s3193_s1 + $0x1d4] ss:$8 sps:$4 sm:$0xff]  }
  0x19   : > { %484 = vmatpush1.bf16.msra.mxu0 %v2233_v14  ;;  %s2198_s8 = sshll.u32 %s3199_s19, 4  ;;  %v2273_v41 = vld [vmem:[%s3193_s1 + $0xd4] ss:$8 sps:$4 sm:$0xff]   ;;  %v2275_v42 = vld [vmem:[%s3193_s1 + $0x1d0] ss:$8 sps:$4 sm:$0xff]  }
  0x1a   : > { %689 = vmatpush1.bf16.msra.mxu1 %v2234_v15  ;;  %485 = vmatprep.subr.bf16.mxu0 %v2235_v16  ;;  %v2276_v43 = vld [vmem:[%s3193_s1 + $0xd0] ss:$8 sps:$4 sm:$0xff]   ;;  %s2697_s17 = scalar_lea.vmem %s3192_s0, %s2198_s8  ;;  %v2277_v44 = vld [vmem:[%s3193_s1 + $0x1c4] ss:$8 sps:$4 sm:$0xff]   ;;  %v2281_v49 = vld [vmem:[%s3193_s1 + $0x1c0] ss:$8 sps:$4 sm:$0xff]   ;;  %s224_s27 = scalar_lea.vmem %s3197_s5, %s2198_s8 }
  0x1b   : > { %690 = vmatprep.subr.bf16.mxu1 %v2237_v17  ;;  %v2279_v45 = vld [vmem:[%s3193_s1 + $0xc4] ss:$8 sps:$4 sm:$0xff]   ;;  %v2282_v50 = vld [vmem:[%s3193_s1 + $0xc0] ss:$8 sps:$4 sm:$0xff]   ;;  %v2283_v52 = vld [vmem:[%s3193_s1 + $0x1b4] ss:$8 sps:$4 sm:$0xff]  }
  0x1c   : > { %v2706_v46 = vld [vmem:[%s2697_s17] sm:$0xff]  ;;  %v2709_v47 = vld [vmem:[%s2697_s17 + $0x8] sm:$0x11]  ;;  %v2285_v53 = vld [vmem:[%s3193_s1 + $0xb4] ss:$8 sps:$4 sm:$0xff]  }
  0x1d   : > { %486 = vmatpush1.bf16.msra.mxu0 %v2239_v18  ;;  %v1935_v48 = vcombine.high %v2706_v46, %v2706_v46  ;;  %v1901_v51 = vcombine.high %v2706_v46, %v2709_v47  ;;  %v2287_v56 = vld [vmem:[%s3193_s1 + $0x1b0] ss:$8 sps:$4 sm:$0xff]   ;;  %v2289_v59 = vld [vmem:[%s3193_s1 + $0x1a4] ss:$8 sps:$4 sm:$0xff]   ;;  %v2293_v62 = vld [vmem:[%s3193_s1 + $0x1a0] ss:$8 sps:$4 sm:$0xff]   ;;  %v1900_v63 = vcombine.low %v2706_v46, %v2709_v47  ;;  %v1934_v14 = vcombine.low %v2706_v46, %v2706_v46 }
  0x1e   : > { %691 = vmatpush1.bf16.msra.mxu1 %v2240_v19  ;;  %487 = vmatprep.subr.bf16.mxu0 %v2241_v20  ;;  %v2288_v57 = vld [vmem:[%s3193_s1 + $0xb0] ss:$8 sps:$4 sm:$0xff]   ;;  %v2291_v60 = vld [vmem:[%s3193_s1 + $0xa4] ss:$8 sps:$4 sm:$0xff]   ;;  %v2294_v0 = vld [vmem:[%s3193_s1 + $0xa0] ss:$8 sps:$4 sm:$0xff]  }
  0x1f   : > { %692 = vmatprep.subr.bf16.mxu1 %v2243_v21  ;;  %v309_v54 = vshrl.u32 %v1901_v51, 16  ;;  %v311_v55 = vshll.u32 %v1901_v51, 16  ;;  %714 = vmatprep.mubr.bf16.mxu1 %v1935_v48  ;;  %v2295_v1 = vld [vmem:[%s3193_s1 + $0x194] ss:$8 sps:$4 sm:$0xff]   ;;  %v2299_v3 = vld [vmem:[%s3193_s1 + $0x190] ss:$8 sps:$4 sm:$0xff]  }
  0x20   : > { %v2297_v2 = vld [vmem:[%s3193_s1 + $0x94] ss:$8 sps:$4 sm:$0xff]   ;;  %v304_v4 = vshll.u32 %v1900_v63, 16  ;;  %v2300_v5 = vld [vmem:[%s3193_s1 + $0x90] ss:$8 sps:$4 sm:$0xff]   ;;  %v302_v8 = vshrl.u32 %v1900_v63, 16 }
  0x21   : > { %488 = vmatpush1.bf16.msra.mxu0 %v2245_v22  ;;  %v313_v58 = vrot.slane %v311_v55, 1  ;;  %v2301_v6 = vld [vmem:[%s3193_s1 + $0x184] ss:$8 sps:$4 sm:$0xff]   ;;  %v2305_v10 = vld [vmem:[%s3193_s1 + $0x180] ss:$8 sps:$4 sm:$0xff]  }
  0x22   : > { %693 = vmatpush1.bf16.msra.mxu1 %v2246_v23  ;;  %489 = vmatprep.subr.bf16.mxu0 %v2247_v24  ;;  %v2303_v7 = vld [vmem:[%s3193_s1 + $0x84] ss:$8 sps:$4 sm:$0xff]   ;;  %v306_v9 = vrot.slane %v304_v4, 1  ;;  %v2306_v11 = vld [vmem:[%s3193_s1 + $0x80] ss:$8 sps:$4 sm:$0xff]  }
  0x23   : > { %694 = vmatprep.subr.bf16.mxu1 %v2249_v25  ;;  %v314_v61 = vor.u32 %v313_v58, %v309_v54  ;;  %v2313_v12 = vld [vmem:[%s3193_s1 + $0x274] ss:$8 sps:$4 sm:$0xff]   ;;  %v2311_v15 = vld [vmem:[%s3193_s1 + $0x270] ss:$8 sps:$4 sm:$0xff]   ;;  %v2316_v16 = vld [vmem:[%s3193_s1 + $0x264] ss:$8 sps:$4 sm:$0xff]  }
  0x24   : > { %v307_v13 = vor.u32 %v306_v9, %v302_v8  ;;  %v2783_v17 = vld [vmem:[%s2697_s17] sm:$0xee]  ;;  %v2319_v20 = vld [vmem:[%s3193_s1 + $0x254] ss:$8 sps:$4 sm:$0xff]   ;;  %v2317_v22 = vld [vmem:[%s3193_s1 + $0x250] ss:$8 sps:$4 sm:$0xff]  }
  0x25   : > { %490 = vmatpush1.bf16.msra.mxu0 %v2251_v26  ;;  %509 = vmatprep.mubr.bf16.mxu0 %v314_v61  ;;  %v2314_v18 = vld [vmem:[%s3193_s1 + $0x260] ss:$8 sps:$4 sm:$0xff]   ;;  %v2001_v19 = vcombine.high %v2783_v17, %v2709_v47  ;;  %v2322_v23 = vld [vmem:[%s3193_s1 + $0x244] ss:$8 sps:$4 sm:$0xff]   ;;  %v2325_v25 = vld [vmem:[%s3193_s1 + $0x234] ss:$8 sps:$4 sm:$0xff]  }
  0x26   : > { %695 = vmatpush1.bf16.msra.mxu1 %v2252_v27  ;;  %491 = vmatprep.subr.bf16.mxu0 %v2253_v28  ;;  %v2320_v24 = vld [vmem:[%s3193_s1 + $0x240] ss:$8 sps:$4 sm:$0xff]   ;;  %v2323_v26 = vld [vmem:[%s3193_s1 + $0x230] ss:$8 sps:$4 sm:$0xff]   ;;  %v2328_v27 = vld [vmem:[%s3193_s1 + $0x224] ss:$8 sps:$4 sm:$0xff]  }
  0x27   : > { %696 = vmatprep.subr.bf16.mxu1 %v2255_v29  ;;  %v762_v21 = vrot.slane %v2001_v19, 1  ;;  %v2326_v28 = vld [vmem:[%s3193_s1 + $0x220] ss:$8 sps:$4 sm:$0xff]   ;;  %v2331_v29 = vld [vmem:[%s3193_s1 + $0x214] ss:$8 sps:$4 sm:$0xff]  }
  0x28   : > { %v2353_v46 = vld [vmem:[%s3193_s1 + $0x290] ss:$8 sps:$4 sm:$0xff]   ;;  %v2358_v48 = vld [vmem:[%s3193_s1 + $0x284] ss:$8 sps:$4 sm:$0xff]   ;;  %v2369_v55 = vld [vmem:[%s3195_s3 + $0x174] ss:$8 sps:$4 sm:$0xff]  }
  0x29   : > { %492 = vmatpush1.bf16.msra.mxu0 %v2257_v30  ;;  %v2329_v30 = vld [vmem:[%s3193_s1 + $0x210] ss:$8 sps:$4 sm:$0xff]   ;;  %v2372_v58 = vld [vmem:[%s3195_s3 + $0x54] ss:$8 sps:$4 sm:$0xff]   ;;  %v2399_v8 = vld [vmem:[%s3195_s3 + $0x124] ss:$8 sps:$4 sm:$0xff]  }
  0x2a   : > { %697 = vmatpush1.bf16.msra.mxu1 %v2258_v31  ;;  %493 = vmatprep.subr.bf16.mxu0 %v2259_v32  ;;  %v2334_v31 = vld [vmem:[%s3193_s1 + $0x204] ss:$8 sps:$4 sm:$0xff]   ;;  %v2332_v32 = vld [vmem:[%s3193_s1 + $0x200] ss:$8 sps:$4 sm:$0xff]   ;;  %v2367_v54 = vld [vmem:[%s3195_s3 + $0x170] ss:$8 sps:$4 sm:$0xff]  }
  0x2b   : > { %698 = vmatprep.subr.bf16.mxu1 %v2261_v33  ;;  %v2337_v33 = vld [vmem:[%s3193_s1 + $0x2f4] ss:$8 sps:$4 sm:$0xff]   ;;  %v2370_v61 = vld [vmem:[%s3195_s3 + $0x50] ss:$8 sps:$4 sm:$0xff]   ;;  %v2388_v9 = vld [vmem:[%s3195_s3 + $0x20] ss:$8 sps:$4 sm:$0xff]  }
  0x2c   : > { %v2379_v63 = vld [vmem:[%s3195_s3 + $0x150] ss:$8 sps:$4 sm:$0xff]   ;;  %v2393_v4 = vld [vmem:[%s3195_s3 + $0x134] ss:$8 sps:$4 sm:$0xff]   ;;  %v2409_v19 = vld [vmem:[%s3195_s3 + $0x100] ss:$8 sps:$4 sm:$0xff]  }
  0x2d   : > { %494 = vmatpush2.bf16.msra.mxu0 %v2263_v34  ;;  %v2335_v34 = vld [vmem:[%s3193_s1 + $0x2f0] ss:$8 sps:$4 sm:$0xff]  }
  0x2e   : > { %699 = vmatpush2.bf16.msra.mxu1 %v2264_v35  ;;  %495 = vmatprep.subr.bf16.mxu0 %v2265_v36  ;;  %v2340_v35 = vld [vmem:[%s3193_s1 + $0x2e4] ss:$8 sps:$4 sm:$0xff]   ;;  %v2338_v36 = vld [vmem:[%s3193_s1 + $0x2e0] ss:$8 sps:$4 sm:$0xff]  }
  0x2f   : > { %700 = vmatprep.subr.bf16.mxu1 %v2267_v37  ;;  %v2343_v37 = vld [vmem:[%s3193_s1 + $0x2d4] ss:$8 sps:$4 sm:$0xff]  }
  0x31   : > { %496 = vmatpush2.bf16.msra.mxu0 %v2269_v38  ;;  %v2341_v38 = vld [vmem:[%s3193_s1 + $0x2d0] ss:$8 sps:$4 sm:$0xff]  }
  0x32   : > { %701 = vmatpush2.bf16.msra.mxu1 %v2270_v39  ;;  %497 = vmatprep.subr.bf16.mxu0 %v2271_v40  ;;  %v2346_v39 = vld [vmem:[%s3193_s1 + $0x2c4] ss:$8 sps:$4 sm:$0xff]   ;;  %v2344_v40 = vld [vmem:[%s3193_s1 + $0x2c0] ss:$8 sps:$4 sm:$0xff]  }
  0x33   : > { %702 = vmatprep.subr.bf16.mxu1 %v2273_v41  ;;  %v2349_v41 = vld [vmem:[%s3193_s1 + $0x2b4] ss:$8 sps:$4 sm:$0xff]  }
  0x35   : > { %498 = vmatpush2.bf16.msra.mxu0 %v2275_v42  ;;  %v2347_v42 = vld [vmem:[%s3193_s1 + $0x2b0] ss:$8 sps:$4 sm:$0xff]  }
  0x36   : > { %703 = vmatpush2.bf16.msra.mxu1 %v2276_v43  ;;  %499 = vmatprep.subr.bf16.mxu0 %v2277_v44  ;;  %v2352_v43 = vld [vmem:[%s3193_s1 + $0x2a4] ss:$8 sps:$4 sm:$0xff]   ;;  %v2350_v44 = vld [vmem:[%s3193_s1 + $0x2a0] ss:$8 sps:$4 sm:$0xff]  }
  0x37   : > { %704 = vmatprep.subr.bf16.mxu1 %v2279_v45  ;;  %v2355_v45 = vld [vmem:[%s3193_s1 + $0x294] ss:$8 sps:$4 sm:$0xff]  }
  0x39   : > { %500 = vmatpush2.bf16.msra.mxu0 %v2281_v49  ;;  %v2000_v49 = vcombine.low %v2783_v17, %v2709_v47  ;;  %v2366_v47 = vld [vmem:[%s3195_s3 + $0x64] ss:$8 sps:$4 sm:$0xff]   ;;  %v2400_v17 = vld [vmem:[%s3195_s3] ss:$8 sps:$4 sm:$0xff]  }
  0x3a   : > { %705 = vmatpush2.bf16.msra.mxu1 %v2282_v50  ;;  %501 = vmatprep.subr.bf16.mxu0 %v2283_v52  ;;  %v2356_v50 = vld [vmem:[%s3193_s1 + $0x280] ss:$8 sps:$4 sm:$0xff]   ;;  %v2361_v52 = vld [vmem:[%s3195_s3 + $0x70] ss:$8 sps:$4 sm:$0xff]  }
  0x3b   : > { %706 = vmatprep.subr.bf16.mxu1 %v2285_v53  ;;  %v761_v51 = vrot.slane %v2000_v49, 1  ;;  %v2363_v53 = vld [vmem:[%s3195_s3 + $0x74] ss:$8 sps:$4 sm:$0xff]   ;;  %v2448_v49 = vld [vmem:[%s3195_s3 + $0x80] ss:$8 sps:$4 sm:$0xff]  }
  0x3d   : > { %502 = vmatpush2.bf16.msra.mxu0 %v2287_v56  ;;  %v2364_v56 = vld [vmem:[%s3195_s3 + $0x60] ss:$8 sps:$4 sm:$0xff]  }
  0x3e   : > { %707 = vmatpush2.bf16.msra.mxu1 %v2288_v57  ;;  %503 = vmatprep.subr.bf16.mxu0 %v2289_v59  ;;  %v2375_v57 = vld [vmem:[%s3195_s3 + $0x164] ss:$8 sps:$4 sm:$0xff]   ;;  %v2373_v59 = vld [vmem:[%s3195_s3 + $0x160] ss:$8 sps:$4 sm:$0xff]  }
  0x3f   : > { %708 = vmatprep.subr.bf16.mxu1 %v2291_v60  ;;  %v2381_v60 = vld [vmem:[%s3195_s3 + $0x154] ss:$8 sps:$4 sm:$0xff]  }
  0x41   : > { %504 = vmatpush2.bf16.msra.mxu0 %v2293_v62  ;;  %v2378_v62 = vld [vmem:[%s3195_s3 + $0x44] ss:$8 sps:$4 sm:$0xff]  }
  0x42   : > { %709 = vmatpush2.bf16.msra.mxu1 %v2294_v0  ;;  %505 = vmatprep.subr.bf16.mxu0 %v2295_v1  ;;  %v2387_v0 = vld [vmem:[%s3195_s3 + $0x144] ss:$8 sps:$4 sm:$0xff]   ;;  %v2376_v1 = vld [vmem:[%s3195_s3 + $0x40] ss:$8 sps:$4 sm:$0xff]  }
  0x43   : > { %710 = vmatprep.subr.bf16.mxu1 %v2297_v2  ;;  %v2384_v2 = vld [vmem:[%s3195_s3 + $0x34] ss:$8 sps:$4 sm:$0xff]  }
  0x45   : > { %506 = vmatpush2.bf16.msra.mxu0 %v2299_v3  ;;  %v2385_v3 = vld [vmem:[%s3195_s3 + $0x140] ss:$8 sps:$4 sm:$0xff]  }
  0x46   : > { %711 = vmatpush2.bf16.msra.mxu1 %v2300_v5  ;;  %507 = vmatprep.subr.bf16.mxu0 %v2301_v6  ;;  %v2382_v5 = vld [vmem:[%s3195_s3 + $0x30] ss:$8 sps:$4 sm:$0xff]   ;;  %v2390_v6 = vld [vmem:[%s3195_s3 + $0x24] ss:$8 sps:$4 sm:$0xff]  }
  0x47   : > { %712 = vmatprep.subr.bf16.mxu1 %v2303_v7  ;;  %v2391_v7 = vld [vmem:[%s3195_s3 + $0x130] ss:$8 sps:$4 sm:$0xff]  }
  0x49   : > { %508 = vmatpush2.bf16.msra.mxu0 %v2305_v10  ;;  %v2396_v10 = vld [vmem:[%s3195_s3 + $0x14] ss:$8 sps:$4 sm:$0xff]  }
  0x4a   : > { %713 = vmatpush2.bf16.msra.mxu1 %v2306_v11  ;;  %925 = vmatprep.subr.bf16.mxu0 %v2313_v12  ;;  %v2397_v11 = vld [vmem:[%s3195_s3 + $0x120] ss:$8 sps:$4 sm:$0xff]   ;;  %v2405_v12 = vld [vmem:[%s3195_s3 + $0x114] ss:$8 sps:$4 sm:$0xff]  }
  0x4b   : > { %1255 = vmatprep.subr.bf16.mxu1 %v2369_v55 }
  0x4c   : > { %510 = vmatmul.mubr.bf16.vlgmr.msra.gmra.mxu0 %v307_v13  ;;  %v2394_v13 = vld [vmem:[%s3195_s3 + $0x10] ss:$8 sps:$4 sm:$0xff]  }
  0x4d   : > { %715 = vmatmul.mubr.bf16.vlgmr.msra.gmra.mxu1 %v1934_v14  ;;  %926 = vmatpush1.bf16.msra.mxu0 %v2311_v15  ;;  %v2402_v14 = vld [vmem:[%s3195_s3 + $0x4] ss:$8 sps:$4 sm:$0xff]   ;;  %v2403_v15 = vld [vmem:[%s3195_s3 + $0x110] ss:$8 sps:$4 sm:$0xff]  }
  0x4e   : > { %927 = vmatprep.subr.bf16.mxu0 %v2316_v16  ;;  %957 = vmatprep.mubr.bf16.mxu0 %v762_v21  ;;  %v2411_v16 = vld [vmem:[%s3195_s3 + $0x104] ss:$8 sps:$4 sm:$0xff]   ;;  %v2406_v21 = vld [vmem:[%s3195_s3 + $0xf0] ss:$8 sps:$4 sm:$0xff]  }
  0x4f   : > { %1256 = vmatpush1.bf16.msra.mxu1 %v2367_v54 }
  0x50   : > { %1257 = vmatprep.subr.bf16.mxu1 %v2375_v57 }
  0x51   : > { %928 = vmatpush1.bf16.msra.mxu0 %v2314_v18  ;;  %v2408_v18 = vld [vmem:[%s3195_s3 + $0xf4] ss:$8 sps:$4 sm:$0xff]  }
  0x52   : > { %929 = vmatprep.subr.bf16.mxu0 %v2319_v20  ;;  %v2417_v20 = vld [vmem:[%s3195_s3 + $0x1f4] ss:$8 sps:$4 sm:$0xff]  }
  0x53   : > { %1258 = vmatpush1.bf16.msra.mxu1 %v2373_v59 }
  0x54   : > { %1259 = vmatprep.subr.bf16.mxu1 %v2381_v60 }
  0x55   : > { %930 = vmatpush1.bf16.msra.mxu0 %v2317_v22  ;;  %v2414_v22 = vld [vmem:[%s3195_s3 + $0xe4] ss:$8 sps:$4 sm:$0xff]  }
  0x56   : > { %931 = vmatprep.subr.bf16.mxu0 %v2322_v23  ;;  %v2415_v23 = vld [vmem:[%s3195_s3 + $0x1f0] ss:$8 sps:$4 sm:$0xff]  }
  0x57   : > { %1260 = vmatpush1.bf16.msra.mxu1 %v2379_v63 }
  0x58   : > { %1261 = vmatprep.subr.bf16.mxu1 %v2387_v0  ;;  %v968_v0 = vld [vmem:[%s3194_s2] sm:$0x3] }
  0x59   : > { %932 = vmatpush1.bf16.msra.mxu0 %v2320_v24  ;;  %v2423_v24 = vld [vmem:[%s3195_s3 + $0x1e4] ss:$8 sps:$4 sm:$0xff]  }
  0x5a   : > { %933 = vmatprep.subr.bf16.mxu0 %v2325_v25  ;;  %v2412_v25 = vld [vmem:[%s3195_s3 + $0xe0] ss:$8 sps:$4 sm:$0xff]  }
  0x5b   : > { %1262 = vmatpush1.bf16.msra.mxu1 %v2385_v3 }
  0x5c   : > { %1263 = vmatprep.subr.bf16.mxu1 %v2393_v4 }
  0x5d   : > { %934 = vmatpush1.bf16.msra.mxu0 %v2323_v26  ;;  %v2420_v26 = vld [vmem:[%s3195_s3 + $0xd4] ss:$8 sps:$4 sm:$0xff]  }
  0x5e   : > { %935 = vmatprep.subr.bf16.mxu0 %v2328_v27  ;;  %v2421_v27 = vld [vmem:[%s3195_s3 + $0x1e0] ss:$8 sps:$4 sm:$0xff]  }
  0x5f   : > { %1264 = vmatpush1.bf16.msra.mxu1 %v2391_v7 }
  0x60   : > { %1265 = vmatprep.subr.bf16.mxu1 %v2399_v8 }
  0x61   : > { %936 = vmatpush1.bf16.msra.mxu0 %v2326_v28  ;;  %v2418_v28 = vld [vmem:[%s3195_s3 + $0xd0] ss:$8 sps:$4 sm:$0xff]  }
  0x62   : > { %937 = vmatprep.subr.bf16.mxu0 %v2331_v29  ;;  %v2426_v29 = vld [vmem:[%s3195_s3 + $0xc4] ss:$8 sps:$4 sm:$0xff]  }
  0x63   : > { %1266 = vmatpush1.bf16.msra.mxu1 %v2397_v11 }
  0x64   : > { %1267 = vmatprep.subr.bf16.mxu1 %v2405_v12 }
  0x65   : > { %938 = vmatpush1.bf16.msra.mxu0 %v2329_v30  ;;  %v2424_v30 = vld [vmem:[%s3195_s3 + $0xc0] ss:$8 sps:$4 sm:$0xff]  }
  0x66   : > { %939 = vmatprep.subr.bf16.mxu0 %v2334_v31  ;;  %v2429_v31 = vld [vmem:[%s3195_s3 + $0x1d4] ss:$8 sps:$4 sm:$0xff]  }
  0x67   : > { %1268 = vmatpush1.bf16.msra.mxu1 %v2403_v15 }
  0x68   : > { %1269 = vmatprep.subr.bf16.mxu1 %v2411_v16 }
  0x69   : > { %940 = vmatpush1.bf16.msra.mxu0 %v2332_v32  ;;  %v2427_v32 = vld [vmem:[%s3195_s3 + $0x1d0] ss:$8 sps:$4 sm:$0xff]  }
  0x6a   : > { %941 = vmatprep.subr.bf16.mxu0 %v2337_v33  ;;  %v2432_v33 = vld [vmem:[%s3195_s3 + $0xb4] ss:$8 sps:$4 sm:$0xff]  }
  0x6b   : > { %1270 = vmatpush1.bf16.msra.mxu1 %v2409_v19 }
  0x6c   : > { %1271 = vmatprep.subr.bf16.mxu1 %v2417_v20 }
  0x6d   : > { %942 = vmatpush2.bf16.msra.mxu0 %v2335_v34  ;;  %v2430_v34 = vld [vmem:[%s3195_s3 + $0xb0] ss:$8 sps:$4 sm:$0xff]  }
  0x6e   : > { %943 = vmatprep.subr.bf16.mxu0 %v2340_v35  ;;  %v2435_v35 = vld [vmem:[%s3195_s3 + $0x1c4] ss:$8 sps:$4 sm:$0xff]  }
  0x6f   : > { %1272 = vmatpush2.bf16.msra.mxu1 %v2415_v23 }
  0x70   : > { %1273 = vmatprep.subr.bf16.mxu1 %v2423_v24 }
  0x71   : > { %944 = vmatpush2.bf16.msra.mxu0 %v2338_v36  ;;  %v2514_v36 = vmov 0.0  }
  0x72   : > { %945 = vmatprep.subr.bf16.mxu0 %v2343_v37  ;;  %984 = vst [vmem:[#allocation2 + $0x10] sm:$0xff] %v2514_v36  ;;  %986 = vst [vmem:[#allocation2 + $0x18] sm:$0x3] %v2514_v36  ;;  %v2433_v37 = vld [vmem:[%s3195_s3 + $0x1c0] ss:$8 sps:$4 sm:$0xff]  }
  0x73   : > { %1274 = vmatpush2.bf16.msra.mxu1 %v2421_v27  ;;  %985 = vst [vmem:[#allocation2] sm:$0xff] %v2514_v36  ;;  %987 = vst [vmem:[#allocation2 + $0x8] sm:$0x3] %v2514_v36 }
  0x74   : > { %1275 = vmatprep.subr.bf16.mxu1 %v2429_v31 }
  0x75   : > { %946 = vmatpush2.bf16.msra.mxu0 %v2341_v38  ;;  %v2438_v38 = vld [vmem:[%s3195_s3 + $0xa4] ss:$8 sps:$4 sm:$0xff]  }
  0x76   : > { %947 = vmatprep.subr.bf16.mxu0 %v2346_v39  ;;  %v2436_v39 = vld [vmem:[%s3195_s3 + $0xa0] ss:$8 sps:$4 sm:$0xff]  }
  0x77   : > { %1276 = vmatpush2.bf16.msra.mxu1 %v2427_v32 }
  0x78   : > { %1277 = vmatprep.subr.bf16.mxu1 %v2435_v35 }
  0x79   : > { %948 = vmatpush2.bf16.msra.mxu0 %v2344_v40  ;;  %v2441_v40 = vld [vmem:[%s3195_s3 + $0x1b4] ss:$8 sps:$4 sm:$0xff]  }
  0x7a   : > { %949 = vmatprep.subr.bf16.mxu0 %v2349_v41  ;;  %v2439_v41 = vld [vmem:[%s3195_s3 + $0x1b0] ss:$8 sps:$4 sm:$0xff]  }
  0x7b   : > { %1278 = vmatpush2.bf16.msra.mxu1 %v2433_v37 }
  0x7c   : > { %1279 = vmatprep.subr.bf16.mxu1 %v2441_v40  ;;  %v2462_v40 = vld [vmem:[%s3195_s3 + $0x264] ss:$8 sps:$4 sm:$0xff]  }
  0x7d   : > { %950 = vmatpush2.bf16.msra.mxu0 %v2347_v42  ;;  %v2442_v42 = vld [vmem:[%s3195_s3 + $0x90] ss:$8 sps:$4 sm:$0xff]  }
  0x7e   : > { %951 = vmatprep.subr.bf16.mxu0 %v2352_v43  ;;  %v2444_v43 = vld [vmem:[%s3195_s3 + $0x94] ss:$8 sps:$4 sm:$0xff]  }
  0x7f   : > { %1280 = vmatpush2.bf16.msra.mxu1 %v2439_v41 }
  0x81   : > { %952 = vmatpush2.bf16.msra.mxu0 %v2350_v44  ;;  %v2445_v44 = vld [vmem:[%s3195_s3 + $0x1a0] ss:$8 sps:$4 sm:$0xff]  }
  0x82   : > { %953 = vmatprep.subr.bf16.mxu0 %v2355_v45  ;;  %v2447_v45 = vld [vmem:[%s3195_s3 + $0x1a4] ss:$8 sps:$4 sm:$0xff]  }
  0x83   : > { %1281 = vmatprep.subr.bf16.mxu1 %v2447_v45  ;;  %v2468_v45 = vld [vmem:[%s3195_s3 + $0x244] ss:$8 sps:$4 sm:$0xff]  }
  0x84   : > { %1282 = vmatpush2.bf16.msra.mxu1 %v2445_v44  ;;  %v2463_v44 = vld [vmem:[%s3195_s3 + $0x250] ss:$8 sps:$4 sm:$0xff]  }
  0x85   : > { %954 = vmatpush2.bf16.msra.mxu0 %v2353_v46  ;;  %v2450_v46 = vld [vmem:[%s3195_s3 + $0x84] ss:$8 sps:$4 sm:$0xff]  }
  0x86   : > { %955 = vmatprep.subr.bf16.mxu0 %v2358_v48  ;;  %v2453_v48 = vld [vmem:[%s3195_s3 + $0x194] ss:$8 sps:$4 sm:$0xff]  }
  0x87   : > { %1283 = vmatprep.subr.bf16.mxu1 %v2453_v48  ;;  %v2471_v48 = vld [vmem:[%s3195_s3 + $0x234] ss:$8 sps:$4 sm:$0xff]  }
  0x89   : > { %956 = vmatpush2.bf16.msra.mxu0 %v2356_v50  ;;  %v2451_v50 = vld [vmem:[%s3195_s3 + $0x190] ss:$8 sps:$4 sm:$0xff]  }
  0x8a   : > { %1456 = vmatprep.subr.bf16.mxu0 %v2363_v53  ;;  %1284 = vmatpush2.bf16.msra.mxu1 %v2451_v50  ;;  %v2459_v53 = vld [vmem:[%s3195_s3 + $0x274] ss:$8 sps:$4 sm:$0xff]   ;;  %v2474_v50 = vld [vmem:[%s3195_s3 + $0x224] ss:$8 sps:$4 sm:$0xff]  }
  0x8c   : > { %958 = vmatmul.mubr.bf16.vlgmr.msra.gmra.mxu0 %v761_v51  ;;  %v2456_v51 = vld [vmem:[%s3195_s3 + $0x184] ss:$8 sps:$4 sm:$0xff]  }
  0x8d   : > { %1457 = vmatpush1.bf16.msra.mxu0 %v2361_v52  ;;  %v2454_v52 = vld [vmem:[%s3195_s3 + $0x180] ss:$8 sps:$4 sm:$0xff]   ;;  %1285 = vmatprep.subr.bf16.mxu1 %v2456_v51 }
  0x8e   : > { %1458 = vmatprep.subr.bf16.mxu0 %v2366_v47  ;;  %1286 = vmatpush2.bf16.msra.mxu1 %v2454_v52  ;;  %v2472_v51 = vld [vmem:[%s3195_s3 + $0x220] ss:$8 sps:$4 sm:$0xff]   ;;  %v2477_v52 = vld [vmem:[%s3195_s3 + $0x214] ss:$8 sps:$4 sm:$0xff]  }
  0x8f   : > { %1696 = vmatprep.subr.bf16.mxu1 %v2459_v53  ;;  %v2475_v53 = vld [vmem:[%s3195_s3 + $0x210] ss:$8 sps:$4 sm:$0xff]  }
  0x91   : > { %1459 = vmatpush1.bf16.msra.mxu0 %v2364_v56 }
  0x92   : > { %1460 = vmatprep.subr.bf16.mxu0 %v2372_v58 }
  0x95   : > { %1461 = vmatpush1.bf16.msra.mxu0 %v2370_v61  ;;  %v970_v61 = vlaneseq }
  0x96   : > { %1462 = vmatprep.subr.bf16.mxu0 %v2378_v62 }
  0x97   : > { %v3071_v62 = vshrl.u32 %v970_v61, 7  ;;  %v2492_v61 = vld [vmem:[%s3195_s3 + $0x2c4] ss:$8 sps:$4 sm:$0xff]  }
  0x99   : > { %1463 = vmatpush1.bf16.msra.mxu0 %v2376_v1  ;;  %v972_v63 = vsub.s32 0, %v3071_v62  ;;  %v976_v1 = vsub.s32 1, %v3071_v62 }
  0x9a   : > { %1464 = vmatprep.subr.bf16.mxu0 %v2384_v2 }
  0x9b   : > { %v973_v3 = vrot.slane %v968_v0, %v972_v63  ;;  %v977_v7 = vrot.slane %v968_v0, %v976_v1  ;;  %v2490_v0 = vld [vmem:[%s3195_s3 + $0x2c0] ss:$8 sps:$4 sm:$0xff]  }
  0x9d   : > { %1465 = vmatpush1.bf16.msra.mxu0 %v2382_v5 }
  0x9e   : > { %1466 = vmatprep.subr.bf16.mxu0 %v2390_v6 }
  0xa1   : > { %1467 = vmatpush1.bf16.msra.mxu0 %v2388_v9 }
  0xa2   : > { %1468 = vmatprep.subr.bf16.mxu0 %v2396_v10 }
  0xa5   : > { %1469 = vmatpush1.bf16.msra.mxu0 %v2394_v13 }
  0xa6   : > { %1470 = vmatprep.subr.bf16.mxu0 %v2402_v14 }
  0xa9   : > { %1471 = vmatpush1.bf16.msra.mxu0 %v2400_v17 }
  0xaa   : > { %1472 = vmatprep.subr.bf16.mxu0 %v2408_v18 }
  0xad   : > { %1473 = vmatpush2.bf16.msra.mxu0 %v2406_v21 }
  0xae   : > { %1474 = vmatprep.subr.bf16.mxu0 %v2414_v22 }
  0xb1   : > { %1475 = vmatpush2.bf16.msra.mxu0 %v2412_v25 }
  0xb2   : > { %1476 = vmatprep.subr.bf16.mxu0 %v2420_v26 }
  0xb5   : > { %1477 = vmatpush2.bf16.msra.mxu0 %v2418_v28 }
  0xb6   : > { %1478 = vmatprep.subr.bf16.mxu0 %v2426_v29 }
  0xb9   : > { %1479 = vmatpush2.bf16.msra.mxu0 %v2424_v30 }
  0xba   : > { %1480 = vmatprep.subr.bf16.mxu0 %v2432_v33 }
  0xbd   : > { %1481 = vmatpush2.bf16.msra.mxu0 %v2430_v34 }
  0xbe   : > { %1482 = vmatprep.subr.bf16.mxu0 %v2438_v38  ;;  %v2457_v38 = vld [vmem:[%s3195_s3 + $0x270] ss:$8 sps:$4 sm:$0xff]  }
  0xc1   : > { %1483 = vmatpush2.bf16.msra.mxu0 %v2436_v39 }
  0xc2   : > { %1484 = vmatprep.subr.bf16.mxu0 %v2444_v43  ;;  %v2465_v43 = vld [vmem:[%s3195_s3 + $0x254] ss:$8 sps:$4 sm:$0xff]  }
  0xc5   : > { %1485 = vmatpush2.bf16.msra.mxu0 %v2442_v42  ;;  %v2460_v42 = vld [vmem:[%s3195_s3 + $0x260] ss:$8 sps:$4 sm:$0xff]  }
  0xc6   : > { %1486 = vmatprep.subr.bf16.mxu0 %v2450_v46  ;;  %v2466_v46 = vld [vmem:[%s3195_s3 + $0x240] ss:$8 sps:$4 sm:$0xff]  }
  0xc9   : > { %1487 = vmatpush2.bf16.msra.mxu0 %v2448_v49  ;;  %v2469_v49 = vld [vmem:[%s3195_s3 + $0x230] ss:$8 sps:$4 sm:$0xff]  }
 0x10c   : > { %v511_v47 = vpop.f32.mrf.mxu0 }
 0x10d   : > { %v716_v54 = vpop.f32.mrf.mxu1 }
 0x10e   : > { %v513_v55 = vpop.f32.mrf.mxu0  ;;  %v717_v2 = vadd.f32 %v716_v54, %v511_v47  ;;  %v2480_v47 = vld [vmem:[%s3195_s3 + $0x204] ss:$8 sps:$4 sm:$0xff]   ;;  %v2478_v54 = vld [vmem:[%s3195_s3 + $0x200] ss:$8 sps:$4 sm:$0xff]  }
 0x10f   : > { %v718_v56 = vpop.f32.mrf.mxu1 }
 0x110   : > { %v515_v57 = vpop.f32.mrf.mxu0  ;;  %v719_v5 = vadd.f32 %v718_v56, %v513_v55  ;;  %v2483_v55 = vld [vmem:[%s3195_s3 + $0x2f4] ss:$8 sps:$4 sm:$0xff]   ;;  %v2481_v56 = vld [vmem:[%s3195_s3 + $0x2f0] ss:$8 sps:$4 sm:$0xff]  }
 0x111   : > { %v720_v58 = vpop.f32.mrf.mxu1  ;;  %v2486_v57 = vld [vmem:[%s3195_s3 + $0x2e4] ss:$8 sps:$4 sm:$0xff]  }
 0x112   : > { %v516_v59 = vpop.f32.mrf.mxu0  ;;  %v2484_v58 = vld [vmem:[%s3195_s3 + $0x2e0] ss:$8 sps:$4 sm:$0xff]  }
 0x113   : > { %v721_v60 = vpop.f32.mrf.mxu1  ;;  %v2489_v59 = vld [vmem:[%s3195_s3 + $0x2d4] ss:$8 sps:$4 sm:$0xff]  }
 0x114   : > { %v2487_v60 = vld [vmem:[%s3195_s3 + $0x2d0] ss:$8 sps:$4 sm:$0xff]  }
 0x14c   : > { %v959_v4 = vpop.f32.mrf.mxu0 }
 0x14d   : > { %v966_v6 = vadd.f32 %v959_v4, %v717_v2  ;;  %v2495_v2 = vld [vmem:[%s3195_s3 + $0x2b4] ss:$8 sps:$4 sm:$0xff]   ;;  %v2498_v4 = vld [vmem:[%s3195_s3 + $0x2a4] ss:$8 sps:$4 sm:$0xff]  }
 0x14e   : > { %v961_v8 = vpop.f32.mrf.mxu0 }
 0x14f   : > { %v980_v9 = vadd.f32 %v973_v3, %v966_v6  ;;  %v967_v10 = vadd.f32 %v961_v8, %v719_v5  ;;  %v2493_v3 = vld [vmem:[%s3195_s3 + $0x2b0] ss:$8 sps:$4 sm:$0xff]   ;;  %v2496_v5 = vld [vmem:[%s3195_s3 + $0x2a0] ss:$8 sps:$4 sm:$0xff]   ;;  %v2501_v6 = vld [vmem:[%s3195_s3 + $0x294] ss:$8 sps:$4 sm:$0xff]  }
 0x150   : > { %v963_v11 = vpop.f32.mrf.mxu0  ;;  %v2504_v8 = vld [vmem:[%s3195_s3 + $0x284] ss:$8 sps:$4 sm:$0xff]  }
 0x151   : > { %v982_v12 = vmax.f32 %v980_v9, 0.0  ;;  %v981_v13 = vadd.f32 %v977_v7, %v967_v10  ;;  %v2499_v7 = vld [vmem:[%s3195_s3 + $0x290] ss:$8 sps:$4 sm:$0xff]   ;;  %v2502_v11 = vld [vmem:[%s3195_s3 + $0x280] ss:$8 sps:$4 sm:$0xff]  }
 0x152   : > { %v964_v14 = vpop.f32.mrf.mxu0 }
 0x153   : > { %v990_v15 = vrot.slane %v982_v12, 7  ;;  %v983_v16 = vmax.f32 %v981_v13, 0.0 }
 0x155   : > { %994 = vst [vmem:[#allocation2 + $0x10] sm:$0xfe] %v990_v15  ;;  %996 = vst [vmem:[#allocation2 + $0x18] sm:$0x1] %v990_v15  ;;  %v991_v17 = vrot.slane %v983_v16, 7 }
 0x157   : > { %995 = vst [vmem:[#allocation2] sm:$0xfe] %v991_v17  ;;  %997 = vst [vmem:[#allocation2 + $0x8] sm:$0x1] %v991_v17 }
 0x15c   : > { %v1002_v18 = vld [vmem:[#allocation2 + $0x10] sm:$0xfe]  ;;  %v1004_v19 = vld [vmem:[#allocation2 + $0x18] sm:$0x1] }
 0x15d   : > { %v998_v20 = vld [vmem:[#allocation2 + $0x10] sm:$0xff]  ;;  %v1006_v21 = vpack.c.bf16 %v1004_v19, %v1002_v18  ;;  %v1010_v10 = vld [vmem:[#allocation2 + $0x18] sm:$0x3] }
 0x15e   : > { %v999_v22 = vld [vmem:[#allocation2] sm:$0xff]  ;;  %v1005_v24 = vld [vmem:[#allocation2 + $0x8] sm:$0x1]  ;;  %v1000_v28 = vpack.c.bf16 %v998_v20, %v998_v20  ;;  %v1008_v9 = vld [vmem:[#allocation2 + $0x10] sm:$0xfc] }
 0x15f   : > { %v1003_v23 = vld [vmem:[#allocation2] sm:$0xfe]  ;;  %v1001_v25 = vpack.c.bf16 %v999_v22, %v999_v22  ;;  %v1082_v27 = vshll.u32 %v1006_v21, 16  ;;  %v1011_v30 = vld [vmem:[#allocation2 + $0x8] sm:$0x3]  ;;  %v1080_v36 = vshrl.u32 %v1006_v21, 16  ;;  %v1012_v12 = vpack.c.bf16 %v1010_v10, %v1008_v9 }
 0x160   : > { %v1007_v26 = vpack.c.bf16 %v1005_v24, %v1003_v23  ;;  %v1009_v29 = vld [vmem:[#allocation2] sm:$0xfc]  ;;  %v1740_v22 = vld [vmem:[%s2697_s17 + $0x8] sm:$0x11] }
 0x161   : > { %1488 = vmatprep.mubr.bf16.mxu0 %v1001_v25  ;;  %v1084_v32 = vrot.slane %v1082_v27, 1  ;;  %v1013_v35 = vpack.c.bf16 %v1011_v30, %v1009_v29  ;;  %v1532_v13 = vrot.slane %v1012_v12, 1  ;;  %v2505_v23 = vld [vmem:[%s2697_s17] sm:$0xff]  ;;  %v1743_v25 = vunpack.c.l.bf16 %v1740_v22 }
 0x162   : > { %v1089_v31 = vshll.u32 %v1007_v26, 16  ;;  %1489 = vmatmul.mubr.bf16.vlgmr.msra.gmra.mxu0 %v1000_v28  ;;  %v1087_v33 = vshrl.u32 %v1007_v26, 16  ;;  %v1741_v24 = vunpack.c.l.bf16 %v2505_v23  ;;  %v1745_v26 = vld [vmem:[%s3196_s4] sm:$0x3]  ;;  %v1742_v27 = vunpack.c.h.bf16 %v2505_v23 }
 0x163   : > { %v1085_v39 = vor.u32 %v1084_v32, %v1080_v36  ;;  %v1533_v41 = vrot.slane %v1013_v35, 1  ;;  %v1744_v28 = vunpack.c.h.bf16 %v1740_v22  ;;  %v1765_v30 = vrot.slane %v1743_v25, 1 }
 0x164   : > { %v1091_v34 = vrot.slane %v1089_v31, 1  ;;  %v1764_v29 = vrot.slane %v1741_v24, 1  ;;  %v1750_v32 = vrot.slane %v1745_v26, %v972_v63 }
 0x165   : > { %v1768_v35 = vrot.slane %v1744_v28, 1 }
 0x166   : > { %v1092_v37 = vor.u32 %v1091_v34, %v1087_v33  ;;  %v1767_v34 = vrot.slane %v1742_v27, 1 }
 0x168   : > { %1287 = vmatprep.mubr.bf16.mxu1 %v1092_v37 }
 0x169   : > { %1288 = vmatmul.mubr.bf16.vlgmr.msra.gmra.mxu1 %v1085_v39  ;;  %v1766_v39 = vsel %vm1763_vm0, %v1764_v29, %v1765_v30 }
 0x16a   : > { %1697 = vmatpush1.bf16.msra.mxu1 %v2457_v38  ;;  %1728 = vmatprep.mubr.bf16.mxu1 %v1533_v41  ;;  %v1754_v38 = vrot.slane %v1745_v26, %v976_v1 }
 0x16b   : > { %1698 = vmatprep.subr.bf16.mxu1 %v2462_v40 }
 0x16e   : > { %1699 = vmatpush1.bf16.msra.mxu1 %v2460_v42 }
 0x16f   : > { %1700 = vmatprep.subr.bf16.mxu1 %v2465_v43  ;;  %v1769_v43 = vsel %vm1763_vm0, %v1767_v34, %v1768_v35 }
 0x172   : > { %1701 = vmatpush1.bf16.msra.mxu1 %v2463_v44 }
 0x173   : > { %1702 = vmatprep.subr.bf16.mxu1 %v2468_v45 }
 0x176   : > { %1703 = vmatpush1.bf16.msra.mxu1 %v2466_v46 }
 0x177   : > { %1704 = vmatprep.subr.bf16.mxu1 %v2471_v48 }
 0x17a   : > { %1705 = vmatpush1.bf16.msra.mxu1 %v2469_v49 }
 0x17b   : > { %1706 = vmatprep.subr.bf16.mxu1 %v2474_v50 }
 0x17e   : > { %1707 = vmatpush1.bf16.msra.mxu1 %v2472_v51 }
 0x17f   : > { %1708 = vmatprep.subr.bf16.mxu1 %v2477_v52 }
 0x182   : > { %1709 = vmatpush1.bf16.msra.mxu1 %v2475_v53 }
 0x183   : > { %1710 = vmatprep.subr.bf16.mxu1 %v2480_v47 }
 0x186   : > { %1711 = vmatpush1.bf16.msra.mxu1 %v2478_v54 }
 0x187   : > { %1712 = vmatprep.subr.bf16.mxu1 %v2483_v55 }
 0x18a   : > { %1713 = vmatpush2.bf16.msra.mxu1 %v2481_v56 }
 0x18b   : > { %1714 = vmatprep.subr.bf16.mxu1 %v2486_v57 }
 0x18e   : > { %1715 = vmatpush2.bf16.msra.mxu1 %v2484_v58 }
 0x18f   : > { %1716 = vmatprep.subr.bf16.mxu1 %v2489_v59 }
 0x192   : > { %1717 = vmatpush2.bf16.msra.mxu1 %v2487_v60 }
 0x193   : > { %1718 = vmatprep.subr.bf16.mxu1 %v2492_v61 }
 0x196   : > { %1719 = vmatpush2.bf16.msra.mxu1 %v2490_v0 }
 0x197   : > { %1720 = vmatprep.subr.bf16.mxu1 %v2495_v2 }
 0x19a   : > { %1721 = vmatpush2.bf16.msra.mxu1 %v2493_v3 }
 0x19b   : > { %1722 = vmatprep.subr.bf16.mxu1 %v2498_v4 }
 0x19e   : > { %1723 = vmatpush2.bf16.msra.mxu1 %v2496_v5 }
 0x19f   : > { %1724 = vmatprep.subr.bf16.mxu1 %v2501_v6 }
 0x1a2   : > { %1725 = vmatpush2.bf16.msra.mxu1 %v2499_v7 }
 0x1a3   : > { %1726 = vmatprep.subr.bf16.mxu1 %v2504_v8 }
 0x1a6   : > { %1727 = vmatpush2.bf16.msra.mxu1 %v2502_v11 }
 0x1a9   : > { %1729 = vmatmul.mubr.bf16.vlgmr.msra.gmra.mxu1 %v1532_v13 }
 0x222   : > { %v1490_v14 = vpop.f32.mrf.mxu0 }
 0x224   : > { %v1492_v15 = vpop.f32.mrf.mxu0 }
 0x226   : > { %v1494_v16 = vpop.f32.mrf.mxu0 }
 0x228   : > { %v1495_v18 = vpop.f32.mrf.mxu0 }
 0x229   : > { %v1289_v17 = vpop.f32.mrf.mxu1 }
 0x22a   : > { %v1491_v31 = vadd.f32 %v1490_v14, %v1289_v17 }
 0x22b   : > { %v1291_v19 = vpop.f32.mrf.mxu1 }
 0x22c   : > { %v1493_v36 = vadd.f32 %v1492_v15, %v1291_v19 }
 0x22d   : > { %v1293_v20 = vpop.f32.mrf.mxu1 }
 0x22f   : > { %v1294_v21 = vpop.f32.mrf.mxu1 }
 0x269   : > { %v1730_v33 = vpop.f32.mrf.mxu1 }
 0x26a   : > { %v1737_v37 = vadd.f32 %v1730_v33, %v1491_v31 }
 0x26b   : > { %v1732_v40 = vpop.f32.mrf.mxu1 }
 0x26c   : > { %v1757_v41 = vadd.f32 %v1750_v32, %v1737_v37  ;;  %v1738_v42 = vadd.f32 %v1732_v40, %v1493_v36 }
 0x26d   : > { %v1734_v44 = vpop.f32.mrf.mxu1 }
 0x26e   : > { %v1772_v45 = vadd.f32 %v1766_v39, %v1757_v41  ;;  %v1758_v46 = vadd.f32 %v1754_v38, %v1738_v42 }
 0x26f   : > { %v1735_v48 = vpop.f32.mrf.mxu1 }
 0x270   : > { %v1774_v63 = vmax.f32 %v1772_v45, 0.0  ;;  %v1773_v49 = vadd.f32 %v1769_v43, %v1758_v46 }
 0x272   : > { %v1778_v50 = vrot.slane %v1774_v63, 7  ;;  %v1775_v51 = vmax.f32 %v1773_v49, 0.0 }
 0x274   : > { %1782 = vst [vmem:[#allocation2 + $0x10] sm:$0xfe] %v1778_v50  ;;  %1784 = vst [vmem:[#allocation2 + $0x18] sm:$0x1] %v1778_v50  ;;  %v1779_v52 = vrot.slane %v1775_v51, 7 }
 0x276   : > { %1783 = vst [vmem:[#allocation2] sm:$0xfe] %v1779_v52  ;;  %1785 = vst [vmem:[#allocation2 + $0x8] sm:$0x1] %v1779_v52 }
 0x27b   : > { %v1786_v62 = vld [vmem:[#allocation2 + $0x10] sm:$0xff]  ;;  %v1788_v1 = vld [vmem:[#allocation2 + $0x18] sm:$0x3] }
 0x27d   : > { %v1787_v53 = vld [vmem:[#allocation2] sm:$0xff]  ;;  %v1789_v47 = vld [vmem:[#allocation2 + $0x8] sm:$0x3] }
 0x27e   : > { %v2200_v54 = vpack.c.bf16 %v1787_v53, %v1786_v62  ;;  %v2201_v55 = vpack.c.bf16 %v1789_v47, %v1788_v1 }
 0x280   : > { %1802 = vst [vmem:[%s224_s27] sm:$0xff] %v2200_v54  ;;  %1803 = vst [vmem:[%s224_s27 + $0x8] sm:$0x11] %v2201_v55 }
 0x281 PF: > { %s15_s18 = sadd.s32 1, %s2512_s18  }
 0x282   : > { %p12_p4 = scmp.ge.s32.totalorder %s15_s18, 4  }
 0x284   :  { %14 = sbr.rel (!%p12_p4) target bundleno = 1 (0x1), region = 74 }

// kernel: resnet20_forward.17
= control target key start
LH: loop header
LB: loop body
LE: loop exit
PB: predicated region body
PF: predicated region fallthrough
CT: control target
= control target key end

     0   :  { %s2972_s27 = smov 0   ;;  %s3708_s0 = inlined_call_operand.vmem [shape: bf16[2,5,256], index: 0, kind: input, shape index: {}]   ;;  %s3709_s1 = inlined_call_operand.vmem [shape: bf16[2,5,256], index: 1, kind: input, shape index: {}]   ;;  %s3710_s2 = inlined_call_operand.vmem [shape: bf16[3,256,256], index: 2, kind: input, shape index: {}]   ;;  %s3711_s3 = inlined_call_operand.vmem [shape: f32[1,256], index: 3, kind: input, shape index: {}]   ;;  %s3712_s4 = inlined_call_operand.vmem [shape: bf16[3,256,256], index: 4, kind: input, shape index: {}]   ;;  %s3713_s5 = inlined_call_operand.vmem [shape: f32[1,256], index: 5, kind: input, shape index: {}]   ;;  %s3714_s6 = inlined_call_operand.vmem [shape: bf16[256,256], index: 6, kind: input, shape index: {}]   ;;  %s3715_s7 = inlined_call_operand.vmem [shape: f32[1,256], index: 7, kind: input, shape index: {}]   ;;  %s3716_s8 = inlined_call_operand.vmem [shape: bf16[2,6,256], index: 8, kind: output, shape index: {}]  }
   0x1 LB: > { %s2187_s28 = sadd.s32 4294967295, %s2924_s27   ;;  %p2191_p0 = scmp.ge.s32.totalorder %s2924_s27, 1  ;;  %s2924_s27 = sphi %s2972_s27, %s18_s27  }
   0x2   : > { %p272_p1 = scmp.lt.s32.totalorder %s2924_s27, 3 }
   0x4   : > { %p273_p2 = pnand %p2191_p0, %p272_p1 }
   0x5   : > { %p311_p3 = scmp.lt.s32.totalorder (!%p273_p2), %s2187_s28, 1 }
   0x6   : > { %276 = sbr.rel (%p273_p2) target bundleno = 641 (0x281), region = 52 }
   0xb   : > { %v2574_v0 = vld [vmem:[%s3710_s2 + $0x174] ss:$8 sps:$4 sm:$0xff]   ;;  %v2578_v2 = vld [vmem:[%s3710_s2 + $0x170] ss:$8 sps:$4 sm:$0xff]   ;;  %v2580_v4 = vld [vmem:[%s3710_s2 + $0x164] ss:$8 sps:$4 sm:$0xff]  }
   0xc   : > { %v2576_v1 = vld [vmem:[%s3710_s2 + $0x74] ss:$8 sps:$4 sm:$0xff]   ;;  %561 = vmatprep.subr.bf16.mxu0 %v2574_v0  ;;  %v2579_v3 = vld [vmem:[%s3710_s2 + $0x70] ss:$8 sps:$4 sm:$0xff]   ;;  %v2582_v5 = vld [vmem:[%s3710_s2 + $0x64] ss:$8 sps:$4 sm:$0xff]  }
   0xd   : > { %769 = vmatprep.subr.bf16.mxu1 %v2576_v1  ;;  %562 = vmatpush1.bf16.msra.mxu0 %v2578_v2  ;;  %v2584_v6 = vld [vmem:[%s3710_s2 + $0x160] ss:$8 sps:$4 sm:$0xff]   ;;  %v2586_v8 = vld [vmem:[%s3710_s2 + $0x154] ss:$8 sps:$4 sm:$0xff]   ;;  %v2590_v10 = vld [vmem:[%s3710_s2 + $0x150] ss:$8 sps:$4 sm:$0xff]  }
   0xe   : > { %770 = vmatpush1.bf16.msra.mxu1 %v2579_v3  ;;  %563 = vmatprep.subr.bf16.mxu0 %v2580_v4  ;;  %v2585_v7 = vld [vmem:[%s3710_s2 + $0x60] ss:$8 sps:$4 sm:$0xff]   ;;  %v2588_v9 = vld [vmem:[%s3710_s2 + $0x54] ss:$8 sps:$4 sm:$0xff]   ;;  %v2591_v11 = vld [vmem:[%s3710_s2 + $0x50] ss:$8 sps:$4 sm:$0xff]  }
   0xf   : > { %771 = vmatprep.subr.bf16.mxu1 %v2582_v5  ;;  %v2592_v12 = vld [vmem:[%s3710_s2 + $0x144] ss:$8 sps:$4 sm:$0xff]   ;;  %v2596_v14 = vld [vmem:[%s3710_s2 + $0x140] ss:$8 sps:$4 sm:$0xff]   ;;  %v2598_v16 = vld [vmem:[%s3710_s2 + $0x134] ss:$8 sps:$4 sm:$0xff]  }
  0x10   : > { %v2594_v13 = vld [vmem:[%s3710_s2 + $0x44] ss:$8 sps:$4 sm:$0xff]   ;;  %v2597_v15 = vld [vmem:[%s3710_s2 + $0x40] ss:$8 sps:$4 sm:$0xff]   ;;  %v2600_v17 = vld [vmem:[%s3710_s2 + $0x34] ss:$8 sps:$4 sm:$0xff]  }
  0x11   : > { %564 = vmatpush1.bf16.msra.mxu0 %v2584_v6  ;;  %v2602_v18 = vld [vmem:[%s3710_s2 + $0x130] ss:$8 sps:$4 sm:$0xff]   ;;  %v2604_v20 = vld [vmem:[%s3710_s2 + $0x124] ss:$8 sps:$4 sm:$0xff]   ;;  %v2608_v22 = vld [vmem:[%s3710_s2 + $0x120] ss:$8 sps:$4 sm:$0xff]  }
  0x12   : > { %772 = vmatpush1.bf16.msra.mxu1 %v2585_v7  ;;  %565 = vmatprep.subr.bf16.mxu0 %v2586_v8  ;;  %v2603_v19 = vld [vmem:[%s3710_s2 + $0x30] ss:$8 sps:$4 sm:$0xff]   ;;  %v2606_v21 = vld [vmem:[%s3710_s2 + $0x24] ss:$8 sps:$4 sm:$0xff]   ;;  %v2609_v23 = vld [vmem:[%s3710_s2 + $0x20] ss:$8 sps:$4 sm:$0xff]  }
  0x13   : > { %773 = vmatprep.subr.bf16.mxu1 %v2588_v9  ;;  %v2610_v24 = vld [vmem:[%s3710_s2 + $0x114] ss:$8 sps:$4 sm:$0xff]   ;;  %v2614_v26 = vld [vmem:[%s3710_s2 + $0x110] ss:$8 sps:$4 sm:$0xff]   ;;  %v2616_v28 = vld [vmem:[%s3710_s2 + $0x104] ss:$8 sps:$4 sm:$0xff]  }
  0x14   : > { %v2612_v25 = vld [vmem:[%s3710_s2 + $0x14] ss:$8 sps:$4 sm:$0xff]   ;;  %v2615_v27 = vld [vmem:[%s3710_s2 + $0x10] ss:$8 sps:$4 sm:$0xff]   ;;  %v2618_v29 = vld [vmem:[%s3710_s2 + $0x4] ss:$8 sps:$4 sm:$0xff]  }
  0x15   : > { %566 = vmatpush1.bf16.msra.mxu0 %v2590_v10  ;;  %v2620_v30 = vld [vmem:[%s3710_s2 + $0x100] ss:$8 sps:$4 sm:$0xff]   ;;  %v2622_v32 = vld [vmem:[%s3710_s2 + $0x1f4] ss:$8 sps:$4 sm:$0xff]   ;;  %v2626_v34 = vld [vmem:[%s3710_s2 + $0x1f0] ss:$8 sps:$4 sm:$0xff]  }
  0x16   : > { %774 = vmatpush1.bf16.msra.mxu1 %v2591_v11  ;;  %567 = vmatprep.subr.bf16.mxu0 %v2592_v12  ;;  %v2621_v31 = vld [vmem:[%s3710_s2] ss:$8 sps:$4 sm:$0xff]   ;;  %v2624_v33 = vld [vmem:[%s3710_s2 + $0xf4] ss:$8 sps:$4 sm:$0xff]   ;;  %v2627_v35 = vld [vmem:[%s3710_s2 + $0xf0] ss:$8 sps:$4 sm:$0xff]  }
  0x17   : > { %775 = vmatprep.subr.bf16.mxu1 %v2594_v13  ;;  %v2628_v36 = vld [vmem:[%s3710_s2 + $0x1e4] ss:$8 sps:$4 sm:$0xff]   ;;  %s3718_s28 = smov (!%p311_p3, %s2187_s28), 1  ;;  %v2632_v38 = vld [vmem:[%s3710_s2 + $0x1e0] ss:$8 sps:$4 sm:$0xff]  }
  0x18   : > { %v2630_v37 = vld [vmem:[%s3710_s2 + $0xe4] ss:$8 sps:$4 sm:$0xff]   ;;  %v2633_v39 = vld [vmem:[%s3710_s2 + $0xe0] ss:$8 sps:$4 sm:$0xff]   ;;  %v2634_v40 = vld [vmem:[%s3710_s2 + $0x1d4] ss:$8 sps:$4 sm:$0xff]  }
  0x19   : > { %568 = vmatpush1.bf16.msra.mxu0 %v2596_v14  ;;  %s3107_s9 = sshll.u32 %s3718_s28, 3  ;;  %v2636_v41 = vld [vmem:[%s3710_s2 + $0xd4] ss:$8 sps:$4 sm:$0xff]   ;;  %v2638_v42 = vld [vmem:[%s3710_s2 + $0x1d0] ss:$8 sps:$4 sm:$0xff]  }
  0x1a   : > { %776 = vmatpush1.bf16.msra.mxu1 %v2597_v15  ;;  %569 = vmatprep.subr.bf16.mxu0 %v2598_v16  ;;  %v2639_v43 = vld [vmem:[%s3710_s2 + $0xd0] ss:$8 sps:$4 sm:$0xff]   ;;  %s3122_s28 = scalar_lea.vmem %s3709_s1, %s3107_s9  ;;  %v2640_v44 = vld [vmem:[%s3710_s2 + $0x1c4] ss:$8 sps:$4 sm:$0xff]   ;;  %s315_s22 = scalar_lea.vmem %s3708_s0, %s3107_s9  ;;  %v2644_v47 = vld [vmem:[%s3710_s2 + $0x1c0] ss:$8 sps:$4 sm:$0xff]  }
  0x1b   : > { %777 = vmatprep.subr.bf16.mxu1 %v2600_v17  ;;  %v2642_v45 = vld [vmem:[%s3710_s2 + $0xc4] ss:$8 sps:$4 sm:$0xff]   ;;  %v2645_v48 = vld [vmem:[%s3710_s2 + $0xc0] ss:$8 sps:$4 sm:$0xff]   ;;  %v2646_v51 = vld [vmem:[%s3710_s2 + $0x1b4] ss:$8 sps:$4 sm:$0xff]   ;;  %s325_s21 = scalar_lea.vmem %s3716_s8, %s3107_s9 }
  0x1c   : > { %v327_v46 = vld [vmem:[%s3122_s28] sm:$0x33]  ;;  %v2648_v53 = vld [vmem:[%s3710_s2 + $0xb4] ss:$8 sps:$4 sm:$0xff]   ;;  %v2650_v54 = vld [vmem:[%s3710_s2 + $0x1b0] ss:$8 sps:$4 sm:$0xff]  }
  0x1d   : > { %570 = vmatpush1.bf16.msra.mxu0 %v2602_v18  ;;  %v2231_v49 = vcombine.high %v327_v46, %v327_v46  ;;  %v326_v50 = vld [vmem:[%s315_s22] sm:$0x33]  ;;  %v2651_v55 = vld [vmem:[%s3710_s2 + $0xb0] ss:$8 sps:$4 sm:$0xff]   ;;  %v2658_v62 = vld [vmem:[%s3710_s2 + $0x194] ss:$8 sps:$4 sm:$0xff]   ;;  %v2230_v10 = vcombine.low %v327_v46, %v327_v46 }
  0x1e   : > { %778 = vmatpush1.bf16.msra.mxu1 %v2603_v19  ;;  %571 = vmatprep.subr.bf16.mxu0 %v2604_v20  ;;  %v2265_v52 = vcombine.high %v326_v50, %v326_v50  ;;  %v2652_v56 = vld [vmem:[%s3710_s2 + $0x1a4] ss:$8 sps:$4 sm:$0xff]   ;;  %v2656_v59 = vld [vmem:[%s3710_s2 + $0x1a0] ss:$8 sps:$4 sm:$0xff]   ;;  %v2660_v63 = vld [vmem:[%s3710_s2 + $0x94] ss:$8 sps:$4 sm:$0xff]   ;;  %v2264_v11 = vcombine.low %v326_v50, %v326_v50 }
  0x1f   : > { %779 = vmatprep.subr.bf16.mxu1 %v2606_v21  ;;  %593 = vmatprep.mubr.bf16.mxu0 %v2231_v49  ;;  %v2654_v57 = vld [vmem:[%s3710_s2 + $0xa4] ss:$8 sps:$4 sm:$0xff]   ;;  %v2657_v60 = vld [vmem:[%s3710_s2 + $0xa0] ss:$8 sps:$4 sm:$0xff]   ;;  %v2662_v0 = vld [vmem:[%s3710_s2 + $0x190] ss:$8 sps:$4 sm:$0xff]  }
  0x20   : > { %801 = vmatprep.mubr.bf16.mxu1 %v2265_v52  ;;  %v3159_v58 = vld [vmem:[%s315_s22] sm:$0x77]  ;;  %v2663_v1 = vld [vmem:[%s3710_s2 + $0x90] ss:$8 sps:$4 sm:$0xff]   ;;  %v2679_v9 = vld [vmem:[%s3710_s2 + $0x274] ss:$8 sps:$4 sm:$0xff]  }
  0x21   : > { %572 = vmatpush1.bf16.msra.mxu0 %v2608_v22  ;;  %v2331_v61 = vcombine.high %v3159_v58, %v3159_v58  ;;  %v2664_v3 = vld [vmem:[%s3710_s2 + $0x184] ss:$8 sps:$4 sm:$0xff]   ;;  %v2668_v5 = vld [vmem:[%s3710_s2 + $0x180] ss:$8 sps:$4 sm:$0xff]   ;;  %v2677_v12 = vld [vmem:[%s3710_s2 + $0x270] ss:$8 sps:$4 sm:$0xff]  }
  0x22   : > { %780 = vmatpush1.bf16.msra.mxu1 %v2609_v23  ;;  %573 = vmatprep.subr.bf16.mxu0 %v2610_v24  ;;  %v2666_v4 = vld [vmem:[%s3710_s2 + $0x84] ss:$8 sps:$4 sm:$0xff]   ;;  %v2669_v6 = vld [vmem:[%s3710_s2 + $0x80] ss:$8 sps:$4 sm:$0xff]   ;;  %v2685_v16 = vld [vmem:[%s3710_s2 + $0x254] ss:$8 sps:$4 sm:$0xff]  }
  0x23   : > { %781 = vmatprep.subr.bf16.mxu1 %v2612_v25  ;;  %v858_v2 = vshll.u32 %v2331_v61, 16  ;;  %v856_v7 = vshrl.u32 %v2331_v61, 16  ;;  %v2682_v14 = vld [vmem:[%s3710_s2 + $0x264] ss:$8 sps:$4 sm:$0xff]   ;;  %v2680_v15 = vld [vmem:[%s3710_s2 + $0x260] ss:$8 sps:$4 sm:$0xff]  }
  0x24   : > { %v2683_v17 = vld [vmem:[%s3710_s2 + $0x250] ss:$8 sps:$4 sm:$0xff]   ;;  %v2688_v18 = vld [vmem:[%s3710_s2 + $0x244] ss:$8 sps:$4 sm:$0xff]   ;;  %v2686_v19 = vld [vmem:[%s3710_s2 + $0x240] ss:$8 sps:$4 sm:$0xff]  }
  0x25   : > { %574 = vmatpush1.bf16.msra.mxu0 %v2614_v26  ;;  %v860_v8 = vrot.slane %v858_v2, 1  ;;  %v2691_v20 = vld [vmem:[%s3710_s2 + $0x234] ss:$8 sps:$4 sm:$0xff]   ;;  %v2689_v21 = vld [vmem:[%s3710_s2 + $0x230] ss:$8 sps:$4 sm:$0xff]  }
  0x26   : > { %782 = vmatpush1.bf16.msra.mxu1 %v2615_v27  ;;  %575 = vmatprep.subr.bf16.mxu0 %v2616_v28  ;;  %v2694_v22 = vld [vmem:[%s3710_s2 + $0x224] ss:$8 sps:$4 sm:$0xff]   ;;  %v2692_v23 = vld [vmem:[%s3710_s2 + $0x220] ss:$8 sps:$4 sm:$0xff]   ;;  %v2697_v24 = vld [vmem:[%s3710_s2 + $0x214] ss:$8 sps:$4 sm:$0xff]  }
  0x27   : > { %783 = vmatprep.subr.bf16.mxu1 %v2618_v29  ;;  %v861_v13 = vor.u32 %v860_v8, %v856_v7  ;;  %v2695_v25 = vld [vmem:[%s3710_s2 + $0x210] ss:$8 sps:$4 sm:$0xff]   ;;  %v2700_v26 = vld [vmem:[%s3710_s2 + $0x204] ss:$8 sps:$4 sm:$0xff]   ;;  %v2698_v27 = vld [vmem:[%s3710_s2 + $0x200] ss:$8 sps:$4 sm:$0xff]  }
  0x28   : > { %v2703_v28 = vld [vmem:[%s3710_s2 + $0x2f4] ss:$8 sps:$4 sm:$0xff]   ;;  %v2701_v29 = vld [vmem:[%s3710_s2 + $0x2f0] ss:$8 sps:$4 sm:$0xff]   ;;  %v2752_v7 = vld [vmem:[%s3712_s4 + $0x20] ss:$8 sps:$4 sm:$0xff]  }
  0x29   : > { %576 = vmatpush1.bf16.msra.mxu0 %v2620_v30  ;;  %v2706_v30 = vld [vmem:[%s3710_s2 + $0x2e4] ss:$8 sps:$4 sm:$0xff]   ;;  %v2725_v49 = vld [vmem:[%s3712_s4 + $0x70] ss:$8 sps:$4 sm:$0xff]   ;;  %v2727_v50 = vld [vmem:[%s3712_s4 + $0x74] ss:$8 sps:$4 sm:$0xff]  }
  0x2a   : > { %784 = vmatpush1.bf16.msra.mxu1 %v2621_v31  ;;  %577 = vmatprep.subr.bf16.mxu0 %v2622_v32  ;;  %v2704_v31 = vld [vmem:[%s3710_s2 + $0x2e0] ss:$8 sps:$4 sm:$0xff]   ;;  %v2709_v32 = vld [vmem:[%s3710_s2 + $0x2d4] ss:$8 sps:$4 sm:$0xff]   ;;  %v2731_v52 = vld [vmem:[%s3712_s4 + $0x170] ss:$8 sps:$4 sm:$0xff]  }
  0x2b   : > { %785 = vmatprep.subr.bf16.mxu1 %v2624_v33  ;;  %v2707_v33 = vld [vmem:[%s3710_s2 + $0x2d0] ss:$8 sps:$4 sm:$0xff]   ;;  %v2757_v2 = vld [vmem:[%s3712_s4 + $0x134] ss:$8 sps:$4 sm:$0xff]  }
  0x2c   : > { %v2743_v61 = vld [vmem:[%s3712_s4 + $0x150] ss:$8 sps:$4 sm:$0xff]   ;;  %v2760_v8 = vld [vmem:[%s3712_s4 + $0x14] ss:$8 sps:$4 sm:$0xff]  }
  0x2d   : > { %578 = vmatpush2.bf16.msra.mxu0 %v2626_v34  ;;  %v2712_v34 = vld [vmem:[%s3710_s2 + $0x2c4] ss:$8 sps:$4 sm:$0xff]  }
  0x2e   : > { %786 = vmatpush2.bf16.msra.mxu1 %v2627_v35  ;;  %579 = vmatprep.subr.bf16.mxu0 %v2628_v36  ;;  %v2710_v35 = vld [vmem:[%s3710_s2 + $0x2c0] ss:$8 sps:$4 sm:$0xff]   ;;  %v2715_v36 = vld [vmem:[%s3710_s2 + $0x2b4] ss:$8 sps:$4 sm:$0xff]  }
  0x2f   : > { %787 = vmatprep.subr.bf16.mxu1 %v2630_v37  ;;  %v2713_v37 = vld [vmem:[%s3710_s2 + $0x2b0] ss:$8 sps:$4 sm:$0xff]  }
  0x31   : > { %580 = vmatpush2.bf16.msra.mxu0 %v2632_v38  ;;  %v2718_v38 = vld [vmem:[%s3710_s2 + $0x2a4] ss:$8 sps:$4 sm:$0xff]  }
  0x32   : > { %788 = vmatpush2.bf16.msra.mxu1 %v2633_v39  ;;  %581 = vmatprep.subr.bf16.mxu0 %v2634_v40  ;;  %v2330_v39 = vcombine.low %v3159_v58, %v3159_v58  ;;  %v2716_v40 = vld [vmem:[%s3710_s2 + $0x2a0] ss:$8 sps:$4 sm:$0xff]   ;;  %v2745_v58 = vld [vmem:[%s3712_s4 + $0x154] ss:$8 sps:$4 sm:$0xff]  }
  0x33   : > { %789 = vmatprep.subr.bf16.mxu1 %v2636_v41  ;;  %v2721_v41 = vld [vmem:[%s3710_s2 + $0x294] ss:$8 sps:$4 sm:$0xff]  }
  0x35   : > { %582 = vmatpush2.bf16.msra.mxu0 %v2638_v42  ;;  %v851_v42 = vshll.u32 %v2330_v39, 16 }
  0x36   : > { %790 = vmatpush2.bf16.msra.mxu1 %v2639_v43  ;;  %583 = vmatprep.subr.bf16.mxu0 %v2640_v44  ;;  %v2719_v43 = vld [vmem:[%s3710_s2 + $0x290] ss:$8 sps:$4 sm:$0xff]   ;;  %v2724_v44 = vld [vmem:[%s3710_s2 + $0x284] ss:$8 sps:$4 sm:$0xff]  }
  0x37   : > { %791 = vmatprep.subr.bf16.mxu1 %v2642_v45  ;;  %v849_v45 = vshrl.u32 %v2330_v39, 16  ;;  %v853_v46 = vrot.slane %v851_v42, 1  ;;  %v2803_v39 = vld [vmem:[%s3712_s4 + $0x1b0] ss:$8 sps:$4 sm:$0xff]   ;;  %v2809_v42 = vld [vmem:[%s3712_s4 + $0x1a0] ss:$8 sps:$4 sm:$0xff]  }
  0x39   : > { %584 = vmatpush2.bf16.msra.mxu0 %v2644_v47  ;;  %v2722_v47 = vld [vmem:[%s3710_s2 + $0x280] ss:$8 sps:$4 sm:$0xff]  }
  0x3a   : > { %792 = vmatpush2.bf16.msra.mxu1 %v2645_v48  ;;  %585 = vmatprep.subr.bf16.mxu0 %v2646_v51  ;;  %v854_v48 = vor.u32 %v853_v46, %v849_v45  ;;  %v2730_v51 = vld [vmem:[%s3712_s4 + $0x64] ss:$8 sps:$4 sm:$0xff]   ;;  %v2817_v45 = vld [vmem:[%s3712_s4 + $0x194] ss:$8 sps:$4 sm:$0xff]   ;;  %v2812_v46 = vld [vmem:[%s3712_s4 + $0x80] ss:$8 sps:$4 sm:$0xff]  }
  0x3b   : > { %793 = vmatprep.subr.bf16.mxu1 %v2648_v53  ;;  %v2733_v53 = vld [vmem:[%s3712_s4 + $0x174] ss:$8 sps:$4 sm:$0xff]  }
  0x3d   : > { %586 = vmatpush2.bf16.msra.mxu0 %v2650_v54  ;;  %v2728_v54 = vld [vmem:[%s3712_s4 + $0x60] ss:$8 sps:$4 sm:$0xff]  }
  0x3e   : > { %794 = vmatpush2.bf16.msra.mxu1 %v2651_v55  ;;  %587 = vmatprep.subr.bf16.mxu0 %v2652_v56  ;;  %v2739_v55 = vld [vmem:[%s3712_s4 + $0x164] ss:$8 sps:$4 sm:$0xff]   ;;  %v2736_v56 = vld [vmem:[%s3712_s4 + $0x54] ss:$8 sps:$4 sm:$0xff]  }
  0x3f   : > { %795 = vmatprep.subr.bf16.mxu1 %v2654_v57  ;;  %v2737_v57 = vld [vmem:[%s3712_s4 + $0x160] ss:$8 sps:$4 sm:$0xff]  }
  0x41   : > { %588 = vmatpush2.bf16.msra.mxu0 %v2656_v59  ;;  %v2734_v59 = vld [vmem:[%s3712_s4 + $0x50] ss:$8 sps:$4 sm:$0xff]  }
  0x42   : > { %796 = vmatpush2.bf16.msra.mxu1 %v2657_v60  ;;  %589 = vmatprep.subr.bf16.mxu0 %v2658_v62  ;;  %v2742_v60 = vld [vmem:[%s3712_s4 + $0x44] ss:$8 sps:$4 sm:$0xff]  }
  0x43   : > { %797 = vmatprep.subr.bf16.mxu1 %v2660_v63  ;;  %v2751_v62 = vld [vmem:[%s3712_s4 + $0x144] ss:$8 sps:$4 sm:$0xff]   ;;  %v2740_v63 = vld [vmem:[%s3712_s4 + $0x40] ss:$8 sps:$4 sm:$0xff]  }
  0x45   : > { %590 = vmatpush2.bf16.msra.mxu0 %v2662_v0  ;;  %v2748_v0 = vld [vmem:[%s3712_s4 + $0x34] ss:$8 sps:$4 sm:$0xff]  }
  0x46   : > { %798 = vmatpush2.bf16.msra.mxu1 %v2663_v1  ;;  %591 = vmatprep.subr.bf16.mxu0 %v2664_v3  ;;  %v2749_v1 = vld [vmem:[%s3712_s4 + $0x140] ss:$8 sps:$4 sm:$0xff]   ;;  %v2746_v3 = vld [vmem:[%s3712_s4 + $0x30] ss:$8 sps:$4 sm:$0xff]  }
  0x47   : > { %799 = vmatprep.subr.bf16.mxu1 %v2666_v4  ;;  %v2754_v4 = vld [vmem:[%s3712_s4 + $0x24] ss:$8 sps:$4 sm:$0xff]  }
  0x49   : > { %592 = vmatpush2.bf16.msra.mxu0 %v2668_v5  ;;  %v2755_v5 = vld [vmem:[%s3712_s4 + $0x130] ss:$8 sps:$4 sm:$0xff]  }
  0x4a   : > { %800 = vmatpush2.bf16.msra.mxu1 %v2669_v6  ;;  %1024 = vmatprep.subr.bf16.mxu0 %v2679_v9  ;;  %v2763_v6 = vld [vmem:[%s3712_s4 + $0x124] ss:$8 sps:$4 sm:$0xff]   ;;  %v2761_v9 = vld [vmem:[%s3712_s4 + $0x120] ss:$8 sps:$4 sm:$0xff]  }
  0x4b   : > { %1346 = vmatprep.subr.bf16.mxu1 %v2733_v53 }
  0x4c   : > { %594 = vmatmul.mubr.bf16.vlgmr.msra.gmra.mxu0 %v2230_v10  ;;  %v2769_v10 = vld [vmem:[%s3712_s4 + $0x114] ss:$8 sps:$4 sm:$0xff]  }
  0x4d   : > { %802 = vmatmul.mubr.bf16.vlgmr.msra.gmra.mxu1 %v2264_v11  ;;  %1025 = vmatpush1.bf16.msra.mxu0 %v2677_v12  ;;  %v2758_v11 = vld [vmem:[%s3712_s4 + $0x10] ss:$8 sps:$4 sm:$0xff]   ;;  %v2766_v12 = vld [vmem:[%s3712_s4 + $0x4] ss:$8 sps:$4 sm:$0xff]  }
  0x4e   : > { %1056 = vmatprep.mubr.bf16.mxu0 %v861_v13  ;;  %1026 = vmatprep.subr.bf16.mxu0 %v2682_v14  ;;  %v2767_v13 = vld [vmem:[%s3712_s4 + $0x110] ss:$8 sps:$4 sm:$0xff]   ;;  %v2775_v14 = vld [vmem:[%s3712_s4 + $0x104] ss:$8 sps:$4 sm:$0xff]  }
  0x4f   : > { %1347 = vmatpush1.bf16.msra.mxu1 %v2731_v52 }
  0x50   : > { %1348 = vmatprep.subr.bf16.mxu1 %v2739_v55 }
  0x51   : > { %1027 = vmatpush1.bf16.msra.mxu0 %v2680_v15  ;;  %v2764_v15 = vld [vmem:[%s3712_s4] ss:$8 sps:$4 sm:$0xff]  }
  0x52   : > { %1028 = vmatprep.subr.bf16.mxu0 %v2685_v16  ;;  %v2772_v16 = vld [vmem:[%s3712_s4 + $0xf4] ss:$8 sps:$4 sm:$0xff]  }
  0x53   : > { %1349 = vmatpush1.bf16.msra.mxu1 %v2737_v57 }
  0x54   : > { %1350 = vmatprep.subr.bf16.mxu1 %v2745_v58 }
  0x55   : > { %1029 = vmatpush1.bf16.msra.mxu0 %v2683_v17  ;;  %v2773_v17 = vld [vmem:[%s3712_s4 + $0x100] ss:$8 sps:$4 sm:$0xff]  }
  0x56   : > { %1030 = vmatprep.subr.bf16.mxu0 %v2688_v18  ;;  %v2781_v18 = vld [vmem:[%s3712_s4 + $0x1f4] ss:$8 sps:$4 sm:$0xff]  }
  0x57   : > { %1351 = vmatpush1.bf16.msra.mxu1 %v2743_v61 }
  0x58   : > { %1352 = vmatprep.subr.bf16.mxu1 %v2751_v62 }
  0x59   : > { %1031 = vmatpush1.bf16.msra.mxu0 %v2686_v19  ;;  %v2770_v19 = vld [vmem:[%s3712_s4 + $0xf0] ss:$8 sps:$4 sm:$0xff]  }
  0x5a   : > { %1032 = vmatprep.subr.bf16.mxu0 %v2691_v20  ;;  %v2778_v20 = vld [vmem:[%s3712_s4 + $0xe4] ss:$8 sps:$4 sm:$0xff]  }
  0x5b   : > { %1353 = vmatpush1.bf16.msra.mxu1 %v2749_v1 }
  0x5c   : > { %1354 = vmatprep.subr.bf16.mxu1 %v2757_v2 }
  0x5d   : > { %1033 = vmatpush1.bf16.msra.mxu0 %v2689_v21  ;;  %v2779_v21 = vld [vmem:[%s3712_s4 + $0x1f0] ss:$8 sps:$4 sm:$0xff]  }
  0x5e   : > { %1034 = vmatprep.subr.bf16.mxu0 %v2694_v22  ;;  %v2787_v22 = vld [vmem:[%s3712_s4 + $0x1e4] ss:$8 sps:$4 sm:$0xff]  }
  0x5f   : > { %1355 = vmatpush1.bf16.msra.mxu1 %v2755_v5 }
  0x60   : > { %1356 = vmatprep.subr.bf16.mxu1 %v2763_v6 }
  0x61   : > { %1035 = vmatpush1.bf16.msra.mxu0 %v2692_v23  ;;  %v2776_v23 = vld [vmem:[%s3712_s4 + $0xe0] ss:$8 sps:$4 sm:$0xff]  }
  0x62   : > { %1036 = vmatprep.subr.bf16.mxu0 %v2697_v24  ;;  %v2784_v24 = vld [vmem:[%s3712_s4 + $0xd4] ss:$8 sps:$4 sm:$0xff]  }
  0x63   : > { %1357 = vmatpush1.bf16.msra.mxu1 %v2761_v9 }
  0x64   : > { %1358 = vmatprep.subr.bf16.mxu1 %v2769_v10 }
  0x65   : > { %1037 = vmatpush1.bf16.msra.mxu0 %v2695_v25  ;;  %v2785_v25 = vld [vmem:[%s3712_s4 + $0x1e0] ss:$8 sps:$4 sm:$0xff]  }
  0x66   : > { %1038 = vmatprep.subr.bf16.mxu0 %v2700_v26  ;;  %v2782_v26 = vld [vmem:[%s3712_s4 + $0xd0] ss:$8 sps:$4 sm:$0xff]  }
  0x67   : > { %1359 = vmatpush1.bf16.msra.mxu1 %v2767_v13 }
  0x68   : > { %1360 = vmatprep.subr.bf16.mxu1 %v2775_v14 }
  0x69   : > { %1039 = vmatpush1.bf16.msra.mxu0 %v2698_v27  ;;  %v2790_v27 = vld [vmem:[%s3712_s4 + $0xc4] ss:$8 sps:$4 sm:$0xff]  }
  0x6a   : > { %1040 = vmatprep.subr.bf16.mxu0 %v2703_v28  ;;  %v2788_v28 = vld [vmem:[%s3712_s4 + $0xc0] ss:$8 sps:$4 sm:$0xff]  }
  0x6b   : > { %1361 = vmatpush1.bf16.msra.mxu1 %v2773_v17  ;;  %v3499_v17 = vld [vmem:[%s3122_s28] sm:$0x33] }
  0x6c   : > { %1362 = vmatprep.subr.bf16.mxu1 %v2781_v18 }
  0x6d   : > { %1041 = vmatpush2.bf16.msra.mxu0 %v2701_v29  ;;  %v2793_v29 = vld [vmem:[%s3712_s4 + $0x1d4] ss:$8 sps:$4 sm:$0xff]  }
  0x6e   : > { %1042 = vmatprep.subr.bf16.mxu0 %v2706_v30  ;;  %v2791_v30 = vld [vmem:[%s3712_s4 + $0x1d0] ss:$8 sps:$4 sm:$0xff]  }
  0x6f   : > { %1363 = vmatpush2.bf16.msra.mxu1 %v2779_v21 }
  0x70   : > { %1364 = vmatprep.subr.bf16.mxu1 %v2787_v22 }
  0x71   : > { %1043 = vmatpush2.bf16.msra.mxu0 %v2704_v31  ;;  %v2796_v31 = vld [vmem:[%s3712_s4 + $0xb4] ss:$8 sps:$4 sm:$0xff]  }
  0x72   : > { %1044 = vmatprep.subr.bf16.mxu0 %v2709_v32  ;;  %v2794_v32 = vld [vmem:[%s3712_s4 + $0xb0] ss:$8 sps:$4 sm:$0xff]  }
  0x73   : > { %1365 = vmatpush2.bf16.msra.mxu1 %v2785_v25 }
  0x74   : > { %1366 = vmatprep.subr.bf16.mxu1 %v2793_v29  ;;  %v2829_v29 = vld [vmem:[%s3714_s6 + $0x64] ss:$8 sps:$4 sm:$0xff]  }
  0x75   : > { %1045 = vmatpush2.bf16.msra.mxu0 %v2707_v33  ;;  %v2799_v33 = vld [vmem:[%s3712_s4 + $0x1c4] ss:$8 sps:$4 sm:$0xff]  }
  0x76   : > { %1046 = vmatprep.subr.bf16.mxu0 %v2712_v34  ;;  %v2926_v34 = vmov 0.0  }
  0x77   : > { %1367 = vmatpush2.bf16.msra.mxu1 %v2791_v30  ;;  %1083 = vst [vmem:[#allocation2] sm:$0x3f] %v2926_v34  ;;  %1084 = vst [vmem:[#allocation2 + $0x8] sm:$0x3f] %v2926_v34 }
  0x78   : > { %1368 = vmatprep.subr.bf16.mxu1 %v2799_v33 }
  0x79   : > { %1047 = vmatpush2.bf16.msra.mxu0 %v2710_v35  ;;  %v2797_v35 = vld [vmem:[%s3712_s4 + $0x1c0] ss:$8 sps:$4 sm:$0xff]  }
  0x7a   : > { %1048 = vmatprep.subr.bf16.mxu0 %v2715_v36  ;;  %v2802_v36 = vld [vmem:[%s3712_s4 + $0xa4] ss:$8 sps:$4 sm:$0xff]  }
  0x7b   : > { %1369 = vmatpush2.bf16.msra.mxu1 %v2797_v35  ;;  %v2827_v35 = vld [vmem:[%s3714_s6 + $0x60] ss:$8 sps:$4 sm:$0xff]  }
  0x7d   : > { %1049 = vmatpush2.bf16.msra.mxu0 %v2713_v37  ;;  %v2800_v37 = vld [vmem:[%s3712_s4 + $0xa0] ss:$8 sps:$4 sm:$0xff]  }
  0x7e   : > { %1050 = vmatprep.subr.bf16.mxu0 %v2718_v38  ;;  %v2805_v38 = vld [vmem:[%s3712_s4 + $0x1b4] ss:$8 sps:$4 sm:$0xff]  }
  0x7f   : > { %1370 = vmatprep.subr.bf16.mxu1 %v2805_v38  ;;  %v2835_v38 = vld [vmem:[%s3714_s6 + $0x54] ss:$8 sps:$4 sm:$0xff]  }
  0x80   : > { %1371 = vmatpush2.bf16.msra.mxu1 %v2803_v39 }
  0x81   : > { %1051 = vmatpush2.bf16.msra.mxu0 %v2716_v40  ;;  %v2806_v40 = vld [vmem:[%s3712_s4 + $0x90] ss:$8 sps:$4 sm:$0xff]  }
  0x82   : > { %1052 = vmatprep.subr.bf16.mxu0 %v2721_v41  ;;  %v2808_v41 = vld [vmem:[%s3712_s4 + $0x94] ss:$8 sps:$4 sm:$0xff]  }
  0x85   : > { %1053 = vmatpush2.bf16.msra.mxu0 %v2719_v43  ;;  %v2811_v43 = vld [vmem:[%s3712_s4 + $0x1a4] ss:$8 sps:$4 sm:$0xff]  }
  0x86   : > { %1054 = vmatprep.subr.bf16.mxu0 %v2724_v44  ;;  %v2814_v44 = vld [vmem:[%s3712_s4 + $0x84] ss:$8 sps:$4 sm:$0xff]   ;;  %1372 = vmatprep.subr.bf16.mxu1 %v2811_v43 }
  0x87   : > { %1373 = vmatpush2.bf16.msra.mxu1 %v2809_v42  ;;  %v2832_v42 = vld [vmem:[%s3712_s4 + $0x264] ss:$8 sps:$4 sm:$0xff]  }
  0x88   : > { %1374 = vmatprep.subr.bf16.mxu1 %v2817_v45  ;;  %v2841_v45 = vld [vmem:[%s3714_s6 + $0x44] ss:$8 sps:$4 sm:$0xff]  }
  0x89   : > { %1055 = vmatpush2.bf16.msra.mxu0 %v2722_v47  ;;  %v2815_v47 = vld [vmem:[%s3712_s4 + $0x190] ss:$8 sps:$4 sm:$0xff]  }
  0x8a   : > { %1547 = vmatprep.subr.bf16.mxu0 %v2727_v50  ;;  %v2818_v50 = vld [vmem:[%s3712_s4 + $0x180] ss:$8 sps:$4 sm:$0xff]  }
  0x8b   : > { %1375 = vmatpush2.bf16.msra.mxu1 %v2815_v47  ;;  %v2838_v47 = vld [vmem:[%s3712_s4 + $0x254] ss:$8 sps:$4 sm:$0xff]  }
  0x8c   : > { %1057 = vmatmul.mubr.bf16.vlgmr.msra.gmra.mxu0 %v854_v48  ;;  %v2820_v48 = vld [vmem:[%s3712_s4 + $0x184] ss:$8 sps:$4 sm:$0xff]  }
  0x8d   : > { %1548 = vmatpush1.bf16.msra.mxu0 %v2725_v49  ;;  %v2823_v49 = vld [vmem:[%s3714_s6 + $0x74] ss:$8 sps:$4 sm:$0xff]   ;;  %1376 = vmatprep.subr.bf16.mxu1 %v2820_v48  ;;  %v2839_v48 = vld [vmem:[%s3714_s6 + $0x40] ss:$8 sps:$4 sm:$0xff]  }
  0x8e   : > { %1549 = vmatprep.subr.bf16.mxu0 %v2730_v51  ;;  %v2826_v51 = vld [vmem:[%s3712_s4 + $0x274] ss:$8 sps:$4 sm:$0xff]  }
  0x8f   : > { %1377 = vmatpush2.bf16.msra.mxu1 %v2818_v50  ;;  %v2836_v50 = vld [vmem:[%s3712_s4 + $0x250] ss:$8 sps:$4 sm:$0xff]  }
  0x90   : > { %1787 = vmatprep.subr.bf16.mxu1 %v2826_v51  ;;  %v2844_v51 = vld [vmem:[%s3712_s4 + $0x244] ss:$8 sps:$4 sm:$0xff]  }
  0x91   : > { %1550 = vmatpush1.bf16.msra.mxu0 %v2728_v54 }
  0x92   : > { %1551 = vmatprep.subr.bf16.mxu0 %v2736_v56 }
  0x95   : > { %1552 = vmatpush1.bf16.msra.mxu0 %v2734_v59 }
  0x96   : > { %1553 = vmatprep.subr.bf16.mxu0 %v2742_v60  ;;  %v1069_v60 = vlaneseq }
  0x98   : > { %v1070_v61 = vshrl.u32 %v1069_v60, 7  ;;  %v2857_v60 = vld [vmem:[%s3714_s6 + $0x10] ss:$8 sps:$4 sm:$0xff]  }
  0x99   : > { %1554 = vmatpush1.bf16.msra.mxu0 %v2740_v63  ;;  %v1067_v63 = vld [vmem:[%s3711_s3] sm:$0x3] }
  0x9a   : > { %1555 = vmatprep.subr.bf16.mxu0 %v2748_v0  ;;  %v3489_v62 = vsub.s32 0, %v1070_v61  ;;  %v3494_v0 = vsub.s32 1, %v1070_v61  ;;  %v2865_v61 = vld [vmem:[%s3714_s6 + $0x4] ss:$8 sps:$4 sm:$0xff]  }
  0x9c   : > { %v1072_v2 = vrot.slane %v1067_v63, %v3489_v62  ;;  %v1076_v6 = vrot.slane %v1067_v63, %v3494_v0  ;;  %v2854_v63 = vld [vmem:[%s3712_s4 + $0x220] ss:$8 sps:$4 sm:$0xff]  }
  0x9d   : > { %1556 = vmatpush1.bf16.msra.mxu0 %v2746_v3 }
  0x9e   : > { %1557 = vmatprep.subr.bf16.mxu0 %v2754_v4 }
  0xa1   : > { %1558 = vmatpush1.bf16.msra.mxu0 %v2752_v7 }
  0xa2   : > { %1559 = vmatprep.subr.bf16.mxu0 %v2760_v8 }
  0xa5   : > { %1560 = vmatpush1.bf16.msra.mxu0 %v2758_v11 }
  0xa6   : > { %1561 = vmatprep.subr.bf16.mxu0 %v2766_v12 }
  0xa9   : > { %1562 = vmatpush1.bf16.msra.mxu0 %v2764_v15 }
  0xaa   : > { %1563 = vmatprep.subr.bf16.mxu0 %v2772_v16 }
  0xad   : > { %1564 = vmatpush2.bf16.msra.mxu0 %v2770_v19 }
  0xae   : > { %1565 = vmatprep.subr.bf16.mxu0 %v2778_v20 }
  0xb1   : > { %1566 = vmatpush2.bf16.msra.mxu0 %v2776_v23 }
  0xb2   : > { %1567 = vmatprep.subr.bf16.mxu0 %v2784_v24  ;;  %v2821_v24 = vld [vmem:[%s3714_s6 + $0x70] ss:$8 sps:$4 sm:$0xff]  }
  0xb5   : > { %1568 = vmatpush2.bf16.msra.mxu0 %v2782_v26 }
  0xb6   : > { %1569 = vmatprep.subr.bf16.mxu0 %v2790_v27  ;;  %v2525_v27 = vcombine.high %v3499_v17, %v3499_v17 }
  0xb9   : > { %1570 = vmatpush2.bf16.msra.mxu0 %v2788_v28 }
  0xba   : > { %1571 = vmatprep.subr.bf16.mxu0 %v2796_v31 }
  0xbd   : > { %1572 = vmatpush2.bf16.msra.mxu0 %v2794_v32 }
  0xbe   : > { %1573 = vmatprep.subr.bf16.mxu0 %v2802_v36 }
  0xc1   : > { %1574 = vmatpush2.bf16.msra.mxu0 %v2800_v37 }
  0xc2   : > { %1575 = vmatprep.subr.bf16.mxu0 %v2808_v41 }
  0xc5   : > { %1576 = vmatpush2.bf16.msra.mxu0 %v2806_v40  ;;  %v2824_v40 = vld [vmem:[%s3712_s4 + $0x270] ss:$8 sps:$4 sm:$0xff]  }
  0xc6   : > { %1577 = vmatprep.subr.bf16.mxu0 %v2814_v44  ;;  %v2833_v44 = vld [vmem:[%s3714_s6 + $0x50] ss:$8 sps:$4 sm:$0xff]  }
  0xc9   : > { %1578 = vmatpush2.bf16.msra.mxu0 %v2812_v46  ;;  %v2830_v46 = vld [vmem:[%s3712_s4 + $0x260] ss:$8 sps:$4 sm:$0xff]  }
  0xca   : > { %2042 = vmatprep.subr.bf16.mxu0 %v2823_v49  ;;  %v2847_v49 = vld [vmem:[%s3714_s6 + $0x34] ss:$8 sps:$4 sm:$0xff]  }
 0x10c   : > { %v595_v52 = vpop.f32.mrf.mxu0 }
 0x10d   : > { %v803_v53 = vpop.f32.mrf.mxu1 }
 0x10e   : > { %v597_v54 = vpop.f32.mrf.mxu0  ;;  %v804_v1 = vadd.f32 %v803_v53, %v595_v52  ;;  %v2845_v52 = vld [vmem:[%s3714_s6 + $0x30] ss:$8 sps:$4 sm:$0xff]   ;;  %v2853_v53 = vld [vmem:[%s3714_s6 + $0x24] ss:$8 sps:$4 sm:$0xff]  }
 0x10f   : > { %v805_v55 = vpop.f32.mrf.mxu1 }
 0x110   : > { %v599_v56 = vpop.f32.mrf.mxu0  ;;  %v806_v4 = vadd.f32 %v805_v55, %v597_v54  ;;  %v2842_v54 = vld [vmem:[%s3712_s4 + $0x240] ss:$8 sps:$4 sm:$0xff]   ;;  %v2850_v55 = vld [vmem:[%s3712_s4 + $0x234] ss:$8 sps:$4 sm:$0xff]  }
 0x111   : > { %v807_v57 = vpop.f32.mrf.mxu1  ;;  %v2851_v56 = vld [vmem:[%s3714_s6 + $0x20] ss:$8 sps:$4 sm:$0xff]  }
 0x112   : > { %v600_v58 = vpop.f32.mrf.mxu0  ;;  %v2859_v57 = vld [vmem:[%s3714_s6 + $0x14] ss:$8 sps:$4 sm:$0xff]  }
 0x113   : > { %v808_v59 = vpop.f32.mrf.mxu1  ;;  %v2848_v58 = vld [vmem:[%s3712_s4 + $0x230] ss:$8 sps:$4 sm:$0xff]  }
 0x114   : > { %v2856_v59 = vld [vmem:[%s3712_s4 + $0x224] ss:$8 sps:$4 sm:$0xff]  }
 0x14c   : > { %v1058_v3 = vpop.f32.mrf.mxu0 }
 0x14d   : > { %v1065_v5 = vadd.f32 %v1058_v3, %v804_v1  ;;  %v2862_v1 = vld [vmem:[%s3712_s4 + $0x214] ss:$8 sps:$4 sm:$0xff]  }
 0x14e   : > { %v1060_v7 = vpop.f32.mrf.mxu0  ;;  %v2871_v3 = vld [vmem:[%s3714_s6 + $0xf4] ss:$8 sps:$4 sm:$0xff]  }
 0x14f   : > { %v1079_v8 = vadd.f32 %v1072_v2, %v1065_v5  ;;  %v1066_v9 = vadd.f32 %v1060_v7, %v806_v4  ;;  %v2863_v2 = vld [vmem:[%s3714_s6] ss:$8 sps:$4 sm:$0xff]   ;;  %v2860_v4 = vld [vmem:[%s3712_s4 + $0x210] ss:$8 sps:$4 sm:$0xff]   ;;  %v2868_v5 = vld [vmem:[%s3712_s4 + $0x204] ss:$8 sps:$4 sm:$0xff]  }
 0x150   : > { %v1062_v10 = vpop.f32.mrf.mxu0  ;;  %v2877_v7 = vld [vmem:[%s3714_s6 + $0xe4] ss:$8 sps:$4 sm:$0xff]  }
 0x151   : > { %v1081_v11 = vmax.f32 %v1079_v8, 0.0  ;;  %v1080_v12 = vadd.f32 %v1076_v6, %v1066_v9  ;;  %v2869_v6 = vld [vmem:[%s3714_s6 + $0xf0] ss:$8 sps:$4 sm:$0xff]   ;;  %v2866_v8 = vld [vmem:[%s3712_s4 + $0x200] ss:$8 sps:$4 sm:$0xff]  }
 0x152   : > { %v1063_v13 = vpop.f32.mrf.mxu0  ;;  %v2874_v9 = vld [vmem:[%s3712_s4 + $0x2f4] ss:$8 sps:$4 sm:$0xff]   ;;  %v2875_v10 = vld [vmem:[%s3714_s6 + $0xe0] ss:$8 sps:$4 sm:$0xff]  }
 0x153   : > { %v1087_v14 = vrot.slane %v1081_v11, 7  ;;  %v1082_v15 = vmax.f32 %v1080_v12, 0.0  ;;  %v2883_v11 = vld [vmem:[%s3714_s6 + $0xd4] ss:$8 sps:$4 sm:$0xff]   ;;  %v2872_v12 = vld [vmem:[%s3712_s4 + $0x2f0] ss:$8 sps:$4 sm:$0xff]  }
 0x154   : > { %v2880_v13 = vld [vmem:[%s3712_s4 + $0x2e4] ss:$8 sps:$4 sm:$0xff]  }
 0x155   : > { %1091 = vst [vmem:[#allocation2] sm:$0x1e] %v1087_v14  ;;  %v1088_v16 = vrot.slane %v1082_v15, 7  ;;  %v2881_v14 = vld [vmem:[%s3714_s6 + $0xd0] ss:$8 sps:$4 sm:$0xff]  }
 0x156   : > { %v2889_v15 = vld [vmem:[%s3714_s6 + $0xc4] ss:$8 sps:$4 sm:$0xff]  }
 0x157   : > { %1092 = vst [vmem:[#allocation2 + $0x8] sm:$0x1e] %v1088_v16  ;;  %v2878_v16 = vld [vmem:[%s3712_s4 + $0x2e0] ss:$8 sps:$4 sm:$0xff]  }
 0x15c   : > { %v1097_v18 = vld [vmem:[#allocation2] sm:$0x1e] }
 0x15d   : > { %v1093_v19 = vld [vmem:[#allocation2] sm:$0xf]  ;;  %v1099_v20 = vpack.c.bf16 %v1097_v18, %v1097_v18  ;;  %v2886_v18 = vld [vmem:[%s3712_s4 + $0x2d4] ss:$8 sps:$4 sm:$0xff]  }
 0x15e   : > { %v1094_v21 = vld [vmem:[#allocation2 + $0x8] sm:$0xf]  ;;  %v1095_v28 = vpack.c.bf16 %v1093_v19, %v1093_v19 }
 0x15f   : > { %v1098_v22 = vld [vmem:[#allocation2 + $0x8] sm:$0x1e]  ;;  %v1096_v23 = vpack.c.bf16 %v1094_v21, %v1094_v21  ;;  %v1173_v26 = vshll.u32 %v1099_v20, 16  ;;  %v1171_v37 = vshrl.u32 %v1099_v20, 16  ;;  %v2895_v20 = vld [vmem:[%s3714_s6 + $0xb4] ss:$8 sps:$4 sm:$0xff]  }
 0x160   : > { %v1100_v25 = vpack.c.bf16 %v1098_v22, %v1098_v22  ;;  %v1102_v30 = vld [vmem:[#allocation2 + $0x8] sm:$0x3c]  ;;  %v2884_v21 = vld [vmem:[%s3712_s4 + $0x2d0] ss:$8 sps:$4 sm:$0xff]  }
 0x161   : > { %1579 = vmatprep.mubr.bf16.mxu0 %v1096_v23  ;;  %v1175_v32 = vrot.slane %v1173_v26, 1  ;;  %v1104_v36 = vpack.c.bf16 %v1102_v30, %v1102_v30  ;;  %v2887_v19 = vld [vmem:[%s3714_s6 + $0xc0] ss:$8 sps:$4 sm:$0xff]   ;;  %v2892_v22 = vld [vmem:[%s3712_s4 + $0x2c4] ss:$8 sps:$4 sm:$0xff]  }
 0x162   : > { %v1180_v31 = vshll.u32 %v1100_v25, 16  ;;  %1580 = vmatmul.mubr.bf16.vlgmr.msra.gmra.mxu0 %v1095_v28  ;;  %v1178_v33 = vshrl.u32 %v1100_v25, 16  ;;  %v2893_v23 = vld [vmem:[%s3714_s6 + $0xb0] ss:$8 sps:$4 sm:$0xff]   ;;  %v2890_v25 = vld [vmem:[%s3712_s4 + $0x2c0] ss:$8 sps:$4 sm:$0xff]  }
 0x163   : > { %2043 = vmatpush1.bf16.msra.mxu0 %v2821_v24  ;;  %2074 = vmatprep.mubr.bf16.mxu0 %v2525_v27  ;;  %v1176_v41 = vor.u32 %v1175_v32, %v1171_v37  ;;  %v1624_v43 = vrot.slane %v1104_v36, 1  ;;  %v2901_v24 = vld [vmem:[%s3714_s6 + $0xa4] ss:$8 sps:$4 sm:$0xff]   ;;  %v2898_v26 = vld [vmem:[%s3712_s4 + $0x2b4] ss:$8 sps:$4 sm:$0xff]   ;;  %v2524_v37 = vcombine.low %v3499_v17, %v3499_v17 }
 0x164   : > { %v1182_v34 = vrot.slane %v1180_v31, 1  ;;  %2044 = vmatprep.subr.bf16.mxu0 %v2829_v29  ;;  %v2899_v27 = vld [vmem:[%s3714_s6 + $0xa0] ss:$8 sps:$4 sm:$0xff]   ;;  %v2907_v28 = vld [vmem:[%s3714_s6 + $0x94] ss:$8 sps:$4 sm:$0xff]  }
 0x165   : > { %v2896_v29 = vld [vmem:[%s3712_s4 + $0x2b0] ss:$8 sps:$4 sm:$0xff]   ;;  %v2904_v30 = vld [vmem:[%s3712_s4 + $0x2a4] ss:$8 sps:$4 sm:$0xff]  }
 0x166   : > { %v1183_v39 = vor.u32 %v1182_v34, %v1178_v33  ;;  %v2905_v31 = vld [vmem:[%s3714_s6 + $0x90] ss:$8 sps:$4 sm:$0xff]   ;;  %v2913_v32 = vld [vmem:[%s3714_s6 + $0x84] ss:$8 sps:$4 sm:$0xff]   ;;  %v2902_v33 = vld [vmem:[%s3712_s4 + $0x2a0] ss:$8 sps:$4 sm:$0xff]  }
 0x167   : > { %2045 = vmatpush1.bf16.msra.mxu0 %v2827_v35  ;;  %v2910_v34 = vld [vmem:[%s3712_s4 + $0x294] ss:$8 sps:$4 sm:$0xff]   ;;  %v2911_v35 = vld [vmem:[%s3714_s6 + $0x80] ss:$8 sps:$4 sm:$0xff]   ;;  %v2908_v36 = vld [vmem:[%s3712_s4 + $0x290] ss:$8 sps:$4 sm:$0xff]  }
 0x168   : > { %1378 = vmatprep.mubr.bf16.mxu1 %v1183_v39  ;;  %2046 = vmatprep.subr.bf16.mxu0 %v2835_v38  ;;  %v2917_v38 = vld [vmem:[%s3712_s4 + $0x284] ss:$8 sps:$4 sm:$0xff]  }
 0x169   : > { %1379 = vmatmul.mubr.bf16.vlgmr.msra.gmra.mxu1 %v1176_v41  ;;  %v1101_v39 = vld [vmem:[#allocation2] sm:$0x3c] }
 0x16a   : > { %1788 = vmatpush1.bf16.msra.mxu1 %v2824_v40  ;;  %1819 = vmatprep.mubr.bf16.mxu1 %v1624_v43  ;;  %v2915_v40 = vld [vmem:[%s3712_s4 + $0x280] ss:$8 sps:$4 sm:$0xff]   ;;  %v1103_v41 = vpack.c.bf16 %v1101_v39, %v1101_v39 }
 0x16b   : > { %1789 = vmatprep.subr.bf16.mxu1 %v2832_v42  ;;  %2047 = vmatpush1.bf16.msra.mxu0 %v2833_v44 }
 0x16c   : > { %2048 = vmatprep.subr.bf16.mxu0 %v2841_v45  ;;  %v1623_v42 = vrot.slane %v1103_v41, 1 }
 0x16e   : > { %1790 = vmatpush1.bf16.msra.mxu1 %v2830_v46 }
 0x16f   : > { %1791 = vmatprep.subr.bf16.mxu1 %v2838_v47  ;;  %2049 = vmatpush1.bf16.msra.mxu0 %v2839_v48 }
 0x170   : > { %2050 = vmatprep.subr.bf16.mxu0 %v2847_v49 }
 0x172   : > { %1792 = vmatpush1.bf16.msra.mxu1 %v2836_v50  ;;  %v1863_v50 = vld [vmem:[%s3715_s7] sm:$0x3] }
 0x173   : > { %1793 = vmatprep.subr.bf16.mxu1 %v2844_v51  ;;  %2051 = vmatpush1.bf16.msra.mxu0 %v2845_v52 }
 0x174   : > { %2052 = vmatprep.subr.bf16.mxu0 %v2853_v53  ;;  %v2083_v53 = vld [vmem:[%s3713_s5] sm:$0x3] }
 0x176   : > { %1794 = vmatpush1.bf16.msra.mxu1 %v2842_v54  ;;  %v1868_v54 = vrot.slane %v1863_v50, %v3489_v62 }
 0x177   : > { %1795 = vmatprep.subr.bf16.mxu1 %v2850_v55  ;;  %2053 = vmatpush1.bf16.msra.mxu0 %v2851_v56 }
 0x178   : > { %2054 = vmatprep.subr.bf16.mxu0 %v2859_v57  ;;  %v2088_v57 = vrot.slane %v2083_v53, %v3489_v62 }
 0x17a   : > { %1796 = vmatpush1.bf16.msra.mxu1 %v2848_v58  ;;  %v1872_v58 = vrot.slane %v1863_v50, %v3494_v0 }
 0x17b   : > { %1797 = vmatprep.subr.bf16.mxu1 %v2856_v59  ;;  %2055 = vmatpush1.bf16.msra.mxu0 %v2857_v60 }
 0x17c   : > { %2056 = vmatprep.subr.bf16.mxu0 %v2865_v61 }
 0x17e   : > { %1798 = vmatpush1.bf16.msra.mxu1 %v2854_v63 }
 0x17f   : > { %1799 = vmatprep.subr.bf16.mxu1 %v2862_v1  ;;  %2057 = vmatpush1.bf16.msra.mxu0 %v2863_v2  ;;  %v2092_v2 = vrot.slane %v2083_v53, %v3494_v0 }
 0x180   : > { %2058 = vmatprep.subr.bf16.mxu0 %v2871_v3 }
 0x182   : > { %1800 = vmatpush1.bf16.msra.mxu1 %v2860_v4 }
 0x183   : > { %1801 = vmatprep.subr.bf16.mxu1 %v2868_v5  ;;  %2059 = vmatpush2.bf16.msra.mxu0 %v2869_v6 }
 0x184   : > { %2060 = vmatprep.subr.bf16.mxu0 %v2877_v7 }
 0x186   : > { %1802 = vmatpush1.bf16.msra.mxu1 %v2866_v8 }
 0x187   : > { %1803 = vmatprep.subr.bf16.mxu1 %v2874_v9  ;;  %2061 = vmatpush2.bf16.msra.mxu0 %v2875_v10 }
 0x188   : > { %2062 = vmatprep.subr.bf16.mxu0 %v2883_v11 }
 0x18a   : > { %1804 = vmatpush2.bf16.msra.mxu1 %v2872_v12 }
 0x18b   : > { %1805 = vmatprep.subr.bf16.mxu1 %v2880_v13  ;;  %2063 = vmatpush2.bf16.msra.mxu0 %v2881_v14 }
 0x18c   : > { %2064 = vmatprep.subr.bf16.mxu0 %v2889_v15 }
 0x18e   : > { %1806 = vmatpush2.bf16.msra.mxu1 %v2878_v16 }
 0x18f   : > { %1807 = vmatprep.subr.bf16.mxu1 %v2886_v18  ;;  %2065 = vmatpush2.bf16.msra.mxu0 %v2887_v19 }
 0x190   : > { %2066 = vmatprep.subr.bf16.mxu0 %v2895_v20 }
 0x192   : > { %1808 = vmatpush2.bf16.msra.mxu1 %v2884_v21 }
 0x193   : > { %1809 = vmatprep.subr.bf16.mxu1 %v2892_v22  ;;  %2067 = vmatpush2.bf16.msra.mxu0 %v2893_v23 }
 0x194   : > { %2068 = vmatprep.subr.bf16.mxu0 %v2901_v24 }
 0x196   : > { %1810 = vmatpush2.bf16.msra.mxu1 %v2890_v25 }
 0x197   : > { %1811 = vmatprep.subr.bf16.mxu1 %v2898_v26  ;;  %2069 = vmatpush2.bf16.msra.mxu0 %v2899_v27 }
 0x198   : > { %2070 = vmatprep.subr.bf16.mxu0 %v2907_v28 }
 0x19a   : > { %1812 = vmatpush2.bf16.msra.mxu1 %v2896_v29 }
 0x19b   : > { %1813 = vmatprep.subr.bf16.mxu1 %v2904_v30  ;;  %2071 = vmatpush2.bf16.msra.mxu0 %v2905_v31 }
 0x19c   : > { %2072 = vmatprep.subr.bf16.mxu0 %v2913_v32 }
 0x19e   : > { %1814 = vmatpush2.bf16.msra.mxu1 %v2902_v33 }
 0x19f   : > { %1815 = vmatprep.subr.bf16.mxu1 %v2910_v34  ;;  %2073 = vmatpush2.bf16.msra.mxu0 %v2911_v35 }
 0x1a2   : > { %1816 = vmatpush2.bf16.msra.mxu1 %v2908_v36  ;;  %2075 = vmatmul.mubr.bf16.vlgmr.msra.gmra.mxu0 %v2524_v37 }
 0x1a3   : > { %1817 = vmatprep.subr.bf16.mxu1 %v2917_v38 }
 0x1a6   : > { %1818 = vmatpush2.bf16.msra.mxu1 %v2915_v40 }
 0x1a9   : > { %1820 = vmatmul.mubr.bf16.vlgmr.msra.gmra.mxu1 %v1623_v42 }
 0x222   : > { %v1581_v43 = vpop.f32.mrf.mxu0 }
 0x224   : > { %v1583_v17 = vpop.f32.mrf.mxu0 }
 0x226   : > { %v1585_v44 = vpop.f32.mrf.mxu0 }
 0x228   : > { %v1586_v46 = vpop.f32.mrf.mxu0 }
 0x229   : > { %v1380_v45 = vpop.f32.mrf.mxu1 }
 0x22a   : > { %v1582_v56 = vadd.f32 %v1581_v43, %v1380_v45 }
 0x22b   : > { %v1382_v47 = vpop.f32.mrf.mxu1 }
 0x22c   : > { %v1584_v61 = vadd.f32 %v1583_v17, %v1382_v47 }
 0x22d   : > { %v1384_v48 = vpop.f32.mrf.mxu1 }
 0x22f   : > { %v1385_v49 = vpop.f32.mrf.mxu1 }
 0x262   : > { %v2076_v51 = vpop.f32.mrf.mxu0 }
 0x263   : > { %v2077_v63 = vadd.f32 %v2076_v51, %v1868_v54 }
 0x264   : > { %v2078_v52 = vpop.f32.mrf.mxu0 }
 0x265   : > { %v2079_v7 = vadd.f32 %v2078_v52, %v1872_v58 }
 0x266   : > { %v2080_v55 = vpop.f32.mrf.mxu0 }
 0x268   : > { %v2081_v60 = vpop.f32.mrf.mxu0 }
 0x269   : > { %v1821_v59 = vpop.f32.mrf.mxu1 }
 0x26a   : > { %v1828_v1 = vadd.f32 %v1821_v59, %v1582_v56 }
 0x26b   : > { %v1823_v3 = vpop.f32.mrf.mxu1 }
 0x26c   : > { %v2095_v4 = vadd.f32 %v2088_v57, %v1828_v1  ;;  %v1829_v5 = vadd.f32 %v1823_v3, %v1584_v61 }
 0x26d   : > { %v1825_v6 = vpop.f32.mrf.mxu1 }
 0x26e   : > { %v2097_v8 = vadd.f32 %v2095_v4, %v2077_v63  ;;  %v2096_v9 = vadd.f32 %v2092_v2, %v1829_v5 }
 0x26f   : > { %v1826_v10 = vpop.f32.mrf.mxu1 }
 0x270   : > { %v2099_v11 = vmax.f32 %v2097_v8, 0.0  ;;  %v2098_v62 = vadd.f32 %v2096_v9, %v2079_v7 }
 0x272   : > { %v2103_v12 = vrot.slane %v2099_v11, 7  ;;  %v2100_v13 = vmax.f32 %v2098_v62, 0.0 }
 0x274   : > { %2107 = vst [vmem:[#allocation2] sm:$0x1e] %v2103_v12  ;;  %v2104_v14 = vrot.slane %v2100_v13, 7 }
 0x276   : > { %2108 = vst [vmem:[#allocation2 + $0x8] sm:$0x1e] %v2104_v14 }
 0x27b   : > { %v2109_v0 = vld [vmem:[#allocation2] sm:$0x3f] }
 0x27d   : > { %v2110_v15 = vld [vmem:[#allocation2 + $0x8] sm:$0x3f] }
 0x27e   : > { %v2564_v16 = vpack.c.bf16 %v2110_v15, %v2109_v0 }
 0x280   : > { %2119 = vst [vmem:[%s325_s21] sm:$0x77] %v2564_v16 }
 0x281 PF: > { %s18_s27 = sadd.s32 1, %s2924_s27  }
 0x282   : > { %p15_p4 = scmp.ge.s32.totalorder %s18_s27, 4  }
 0x284   :  { %17 = sbr.rel (!%p15_p4) target bundleno = 1 (0x1), region = 89 }

// kernel: resnet20_forward.18
= control target key start
LH: loop header
LB: loop body
LE: loop exit
PB: predicated region body
PF: predicated region fallthrough
CT: control target
= control target key end

     0   :  { %s2515_s18 = smov 0   ;;  %s3149_s0 = inlined_call_operand.vmem [shape: bf16[2,6,256], index: 0, kind: input, shape index: {}]   ;;  %s3150_s1 = inlined_call_operand.vmem [shape: bf16[3,256,256], index: 1, kind: input, shape index: {}]   ;;  %s3151_s2 = inlined_call_operand.vmem [shape: f32[1,256], index: 2, kind: input, shape index: {}]   ;;  %s3152_s3 = inlined_call_operand.vmem [shape: bf16[3,256,256], index: 3, kind: input, shape index: {}]   ;;  %s3153_s4 = inlined_call_operand.vmem [shape: f32[1,256], index: 4, kind: input, shape index: {}]   ;;  %s3154_s5 = inlined_call_operand.vmem [shape: bf16[2,6,256], index: 5, kind: output, shape index: {}]  }
   0x1 LB: > { %s1832_s19 = sadd.s32 4294967295, %s2482_s18   ;;  %p1836_p0 = scmp.ge.s32.totalorder %s2482_s18, 1  ;;  %s2482_s18 = sphi %s2515_s18, %s15_s18  }
   0x2   : > { %p187_p1 = scmp.lt.s32.totalorder %s2482_s18, 3 }
   0x4   : > { %p188_p2 = pnand %p1836_p0, %p187_p1 }
   0x5   : > { %p215_p3 = scmp.lt.s32.totalorder (!%p188_p2), %s1832_s19, 1 }
   0x6   : > { %191 = sbr.rel (%p188_p2) target bundleno = 641 (0x281), region = 40 }
   0xb   : > { %v2182_v0 = vld [vmem:[%s3150_s1 + $0x174] ss:$8 sps:$4 sm:$0xff]   ;;  %v2186_v2 = vld [vmem:[%s3150_s1 + $0x170] ss:$8 sps:$4 sm:$0xff]   ;;  %v2188_v4 = vld [vmem:[%s3150_s1 + $0x164] ss:$8 sps:$4 sm:$0xff]  }
   0xc   : > { %v2184_v1 = vld [vmem:[%s3150_s1 + $0x74] ss:$8 sps:$4 sm:$0xff]   ;;  %474 = vmatprep.subr.bf16.mxu0 %v2182_v0  ;;  %v2187_v3 = vld [vmem:[%s3150_s1 + $0x70] ss:$8 sps:$4 sm:$0xff]   ;;  %v2190_v5 = vld [vmem:[%s3150_s1 + $0x64] ss:$8 sps:$4 sm:$0xff]  }
   0xd   : > { %682 = vmatprep.subr.bf16.mxu1 %v2184_v1  ;;  %475 = vmatpush1.bf16.msra.mxu0 %v2186_v2  ;;  %v2192_v6 = vld [vmem:[%s3150_s1 + $0x160] ss:$8 sps:$4 sm:$0xff]   ;;  %v2194_v8 = vld [vmem:[%s3150_s1 + $0x154] ss:$8 sps:$4 sm:$0xff]   ;;  %v2198_v10 = vld [vmem:[%s3150_s1 + $0x150] ss:$8 sps:$4 sm:$0xff]  }
   0xe   : > { %683 = vmatpush1.bf16.msra.mxu1 %v2187_v3  ;;  %476 = vmatprep.subr.bf16.mxu0 %v2188_v4  ;;  %v2193_v7 = vld [vmem:[%s3150_s1 + $0x60] ss:$8 sps:$4 sm:$0xff]   ;;  %v2196_v9 = vld [vmem:[%s3150_s1 + $0x54] ss:$8 sps:$4 sm:$0xff]   ;;  %v2199_v11 = vld [vmem:[%s3150_s1 + $0x50] ss:$8 sps:$4 sm:$0xff]  }
   0xf   : > { %684 = vmatprep.subr.bf16.mxu1 %v2190_v5  ;;  %v2200_v12 = vld [vmem:[%s3150_s1 + $0x144] ss:$8 sps:$4 sm:$0xff]   ;;  %v2204_v14 = vld [vmem:[%s3150_s1 + $0x140] ss:$8 sps:$4 sm:$0xff]   ;;  %v2206_v16 = vld [vmem:[%s3150_s1 + $0x134] ss:$8 sps:$4 sm:$0xff]  }
  0x10   : > { %v2202_v13 = vld [vmem:[%s3150_s1 + $0x44] ss:$8 sps:$4 sm:$0xff]   ;;  %v2205_v15 = vld [vmem:[%s3150_s1 + $0x40] ss:$8 sps:$4 sm:$0xff]   ;;  %v2208_v17 = vld [vmem:[%s3150_s1 + $0x34] ss:$8 sps:$4 sm:$0xff]  }
  0x11   : > { %477 = vmatpush1.bf16.msra.mxu0 %v2192_v6  ;;  %v2210_v18 = vld [vmem:[%s3150_s1 + $0x130] ss:$8 sps:$4 sm:$0xff]   ;;  %v2212_v20 = vld [vmem:[%s3150_s1 + $0x124] ss:$8 sps:$4 sm:$0xff]   ;;  %v2216_v22 = vld [vmem:[%s3150_s1 + $0x120] ss:$8 sps:$4 sm:$0xff]  }
  0x12   : > { %685 = vmatpush1.bf16.msra.mxu1 %v2193_v7  ;;  %478 = vmatprep.subr.bf16.mxu0 %v2194_v8  ;;  %v2211_v19 = vld [vmem:[%s3150_s1 + $0x30] ss:$8 sps:$4 sm:$0xff]   ;;  %v2214_v21 = vld [vmem:[%s3150_s1 + $0x24] ss:$8 sps:$4 sm:$0xff]   ;;  %v2217_v23 = vld [vmem:[%s3150_s1 + $0x20] ss:$8 sps:$4 sm:$0xff]  }
  0x13   : > { %686 = vmatprep.subr.bf16.mxu1 %v2196_v9  ;;  %v2218_v24 = vld [vmem:[%s3150_s1 + $0x114] ss:$8 sps:$4 sm:$0xff]   ;;  %v2222_v26 = vld [vmem:[%s3150_s1 + $0x110] ss:$8 sps:$4 sm:$0xff]   ;;  %v2224_v28 = vld [vmem:[%s3150_s1 + $0x104] ss:$8 sps:$4 sm:$0xff]  }
  0x14   : > { %v2220_v25 = vld [vmem:[%s3150_s1 + $0x14] ss:$8 sps:$4 sm:$0xff]   ;;  %v2223_v27 = vld [vmem:[%s3150_s1 + $0x10] ss:$8 sps:$4 sm:$0xff]   ;;  %v2226_v29 = vld [vmem:[%s3150_s1 + $0x4] ss:$8 sps:$4 sm:$0xff]  }
  0x15   : > { %479 = vmatpush1.bf16.msra.mxu0 %v2198_v10  ;;  %v2228_v30 = vld [vmem:[%s3150_s1 + $0x100] ss:$8 sps:$4 sm:$0xff]   ;;  %v2230_v32 = vld [vmem:[%s3150_s1 + $0x1f4] ss:$8 sps:$4 sm:$0xff]   ;;  %v2234_v34 = vld [vmem:[%s3150_s1 + $0x1f0] ss:$8 sps:$4 sm:$0xff]  }
  0x16   : > { %687 = vmatpush1.bf16.msra.mxu1 %v2199_v11  ;;  %480 = vmatprep.subr.bf16.mxu0 %v2200_v12  ;;  %v2229_v31 = vld [vmem:[%s3150_s1] ss:$8 sps:$4 sm:$0xff]   ;;  %v2232_v33 = vld [vmem:[%s3150_s1 + $0xf4] ss:$8 sps:$4 sm:$0xff]   ;;  %v2235_v35 = vld [vmem:[%s3150_s1 + $0xf0] ss:$8 sps:$4 sm:$0xff]  }
  0x17   : > { %688 = vmatprep.subr.bf16.mxu1 %v2202_v13  ;;  %v2236_v36 = vld [vmem:[%s3150_s1 + $0x1e4] ss:$8 sps:$4 sm:$0xff]   ;;  %s3156_s19 = smov (!%p215_p3, %s1832_s19), 1  ;;  %v2240_v38 = vld [vmem:[%s3150_s1 + $0x1e0] ss:$8 sps:$4 sm:$0xff]  }
  0x18   : > { %v2238_v37 = vld [vmem:[%s3150_s1 + $0xe4] ss:$8 sps:$4 sm:$0xff]   ;;  %v2241_v39 = vld [vmem:[%s3150_s1 + $0xe0] ss:$8 sps:$4 sm:$0xff]   ;;  %v2242_v40 = vld [vmem:[%s3150_s1 + $0x1d4] ss:$8 sps:$4 sm:$0xff]  }
  0x19   : > { %481 = vmatpush1.bf16.msra.mxu0 %v2204_v14  ;;  %s2170_s8 = sshll.u32 %s3156_s19, 3  ;;  %v2244_v41 = vld [vmem:[%s3150_s1 + $0xd4] ss:$8 sps:$4 sm:$0xff]   ;;  %v2246_v42 = vld [vmem:[%s3150_s1 + $0x1d0] ss:$8 sps:$4 sm:$0xff]  }
  0x1a   : > { %689 = vmatpush1.bf16.msra.mxu1 %v2205_v15  ;;  %482 = vmatprep.subr.bf16.mxu0 %v2206_v16  ;;  %v2247_v43 = vld [vmem:[%s3150_s1 + $0xd0] ss:$8 sps:$4 sm:$0xff]   ;;  %s2667_s17 = scalar_lea.vmem %s3149_s0, %s2170_s8  ;;  %v2248_v44 = vld [vmem:[%s3150_s1 + $0x1c4] ss:$8 sps:$4 sm:$0xff]   ;;  %v2252_v46 = vld [vmem:[%s3150_s1 + $0x1c0] ss:$8 sps:$4 sm:$0xff]   ;;  %s224_s27 = scalar_lea.vmem %s3154_s5, %s2170_s8 }
  0x1b   : > { %690 = vmatprep.subr.bf16.mxu1 %v2208_v17  ;;  %v2250_v45 = vld [vmem:[%s3150_s1 + $0xc4] ss:$8 sps:$4 sm:$0xff]   ;;  %v2253_v50 = vld [vmem:[%s3150_s1 + $0xc0] ss:$8 sps:$4 sm:$0xff]   ;;  %v2254_v51 = vld [vmem:[%s3150_s1 + $0x1b4] ss:$8 sps:$4 sm:$0xff]  }
  0x1c   : > { %v226_v47 = vld [vmem:[%s2667_s17] sm:$0x77]  ;;  %v2256_v53 = vld [vmem:[%s3150_s1 + $0xb4] ss:$8 sps:$4 sm:$0xff]   ;;  %v2258_v56 = vld [vmem:[%s3150_s1 + $0x1b0] ss:$8 sps:$4 sm:$0xff]  }
  0x1d   : > { %483 = vmatpush1.bf16.msra.mxu0 %v2210_v18  ;;  %v1874_v48 = vcombine.high %v226_v47, %v226_v47  ;;  %v225_v49 = vld [vmem:[%s2667_s17] sm:$0x33]  ;;  %v2259_v57 = vld [vmem:[%s3150_s1 + $0xb0] ss:$8 sps:$4 sm:$0xff]   ;;  %v1873_v0 = vcombine.low %v226_v47, %v226_v47  ;;  %v2266_v1 = vld [vmem:[%s3150_s1 + $0x194] ss:$8 sps:$4 sm:$0xff]  }
  0x1e   : > { %691 = vmatpush1.bf16.msra.mxu1 %v2211_v19  ;;  %484 = vmatprep.subr.bf16.mxu0 %v2212_v20  ;;  %v1908_v52 = vcombine.high %v225_v49, %v225_v49  ;;  %v2260_v59 = vld [vmem:[%s3150_s1 + $0x1a4] ss:$8 sps:$4 sm:$0xff]   ;;  %v2264_v62 = vld [vmem:[%s3150_s1 + $0x1a0] ss:$8 sps:$4 sm:$0xff]   ;;  %v2268_v2 = vld [vmem:[%s3150_s1 + $0x94] ss:$8 sps:$4 sm:$0xff]   ;;  %v1907_v13 = vcombine.low %v225_v49, %v225_v49 }
  0x1f   : > { %692 = vmatprep.subr.bf16.mxu1 %v2214_v21  ;;  %v306_v54 = vshrl.u32 %v1874_v48, 16  ;;  %v308_v55 = vshll.u32 %v1874_v48, 16  ;;  %v2262_v60 = vld [vmem:[%s3150_s1 + $0xa4] ss:$8 sps:$4 sm:$0xff]   ;;  %v2265_v63 = vld [vmem:[%s3150_s1 + $0xa0] ss:$8 sps:$4 sm:$0xff]  }
  0x20   : > { %714 = vmatprep.mubr.bf16.mxu1 %v1908_v52  ;;  %v2270_v3 = vld [vmem:[%s3150_s1 + $0x190] ss:$8 sps:$4 sm:$0xff]   ;;  %v301_v5 = vshll.u32 %v1873_v0, 16  ;;  %v2272_v6 = vld [vmem:[%s3150_s1 + $0x184] ss:$8 sps:$4 sm:$0xff]   ;;  %v299_v9 = vshrl.u32 %v1873_v0, 16 }
  0x21   : > { %485 = vmatpush1.bf16.msra.mxu0 %v2216_v22  ;;  %v310_v58 = vrot.slane %v308_v55, 1  ;;  %v2271_v4 = vld [vmem:[%s3150_s1 + $0x90] ss:$8 sps:$4 sm:$0xff]   ;;  %v2274_v7 = vld [vmem:[%s3150_s1 + $0x84] ss:$8 sps:$4 sm:$0xff]  }
  0x22   : > { %693 = vmatpush1.bf16.msra.mxu1 %v2217_v23  ;;  %486 = vmatprep.subr.bf16.mxu0 %v2218_v24  ;;  %v2276_v8 = vld [vmem:[%s3150_s1 + $0x180] ss:$8 sps:$4 sm:$0xff]   ;;  %v303_v10 = vrot.slane %v301_v5, 1  ;;  %v2284_v12 = vld [vmem:[%s3150_s1 + $0x274] ss:$8 sps:$4 sm:$0xff]  }
  0x23   : > { %694 = vmatprep.subr.bf16.mxu1 %v2220_v25  ;;  %v311_v61 = vor.u32 %v310_v58, %v306_v54  ;;  %v2277_v11 = vld [vmem:[%s3150_s1 + $0x80] ss:$8 sps:$4 sm:$0xff]   ;;  %v2282_v15 = vld [vmem:[%s3150_s1 + $0x270] ss:$8 sps:$4 sm:$0xff]   ;;  %v2287_v16 = vld [vmem:[%s3150_s1 + $0x264] ss:$8 sps:$4 sm:$0xff]  }
  0x24   : > { %v304_v14 = vor.u32 %v303_v10, %v299_v9  ;;  %v2741_v17 = vld [vmem:[%s2667_s17] sm:$0x66]  ;;  %v2290_v20 = vld [vmem:[%s3150_s1 + $0x254] ss:$8 sps:$4 sm:$0xff]   ;;  %v2288_v22 = vld [vmem:[%s3150_s1 + $0x250] ss:$8 sps:$4 sm:$0xff]  }
  0x25   : > { %487 = vmatpush1.bf16.msra.mxu0 %v2222_v26  ;;  %506 = vmatprep.mubr.bf16.mxu0 %v311_v61  ;;  %v2285_v18 = vld [vmem:[%s3150_s1 + $0x260] ss:$8 sps:$4 sm:$0xff]   ;;  %v1974_v19 = vcombine.high %v2741_v17, %v2741_v17  ;;  %v2293_v23 = vld [vmem:[%s3150_s1 + $0x244] ss:$8 sps:$4 sm:$0xff]   ;;  %v2296_v25 = vld [vmem:[%s3150_s1 + $0x234] ss:$8 sps:$4 sm:$0xff]   ;;  %v1973_v48 = vcombine.low %v2741_v17, %v2741_v17 }
  0x26   : > { %695 = vmatpush1.bf16.msra.mxu1 %v2223_v27  ;;  %488 = vmatprep.subr.bf16.mxu0 %v2224_v28  ;;  %v2291_v24 = vld [vmem:[%s3150_s1 + $0x240] ss:$8 sps:$4 sm:$0xff]   ;;  %v2294_v26 = vld [vmem:[%s3150_s1 + $0x230] ss:$8 sps:$4 sm:$0xff]   ;;  %v2299_v27 = vld [vmem:[%s3150_s1 + $0x224] ss:$8 sps:$4 sm:$0xff]  }
  0x27   : > { %696 = vmatprep.subr.bf16.mxu1 %v2226_v29  ;;  %v762_v21 = vrot.slane %v1974_v19, 1  ;;  %v2297_v28 = vld [vmem:[%s3150_s1 + $0x220] ss:$8 sps:$4 sm:$0xff]   ;;  %v2302_v29 = vld [vmem:[%s3150_s1 + $0x214] ss:$8 sps:$4 sm:$0xff]  }
  0x28   : > { %v2329_v47 = vld [vmem:[%s3150_s1 + $0x284] ss:$8 sps:$4 sm:$0xff]   ;;  %v2327_v49 = vld [vmem:[%s3150_s1 + $0x280] ss:$8 sps:$4 sm:$0xff]   ;;  %v2334_v52 = vld [vmem:[%s3152_s3 + $0x74] ss:$8 sps:$4 sm:$0xff]  }
  0x29   : > { %489 = vmatpush1.bf16.msra.mxu0 %v2228_v30  ;;  %v2300_v30 = vld [vmem:[%s3150_s1 + $0x210] ss:$8 sps:$4 sm:$0xff]   ;;  %v2340_v55 = vld [vmem:[%s3152_s3 + $0x174] ss:$8 sps:$4 sm:$0xff]   ;;  %v2358_v0 = vld [vmem:[%s3152_s3 + $0x144] ss:$8 sps:$4 sm:$0xff]  }
  0x2a   : > { %697 = vmatpush1.bf16.msra.mxu1 %v2229_v31  ;;  %490 = vmatprep.subr.bf16.mxu0 %v2230_v32  ;;  %v2305_v31 = vld [vmem:[%s3150_s1 + $0x204] ss:$8 sps:$4 sm:$0xff]   ;;  %v2303_v32 = vld [vmem:[%s3150_s1 + $0x200] ss:$8 sps:$4 sm:$0xff]   ;;  %v2338_v54 = vld [vmem:[%s3152_s3 + $0x170] ss:$8 sps:$4 sm:$0xff]  }
  0x2b   : > { %698 = vmatprep.subr.bf16.mxu1 %v2232_v33  ;;  %v2308_v33 = vld [vmem:[%s3150_s1 + $0x2f4] ss:$8 sps:$4 sm:$0xff]   ;;  %v2341_v61 = vld [vmem:[%s3152_s3 + $0x50] ss:$8 sps:$4 sm:$0xff]   ;;  %v2359_v9 = vld [vmem:[%s3152_s3 + $0x20] ss:$8 sps:$4 sm:$0xff]  }
  0x2c   : > { %v2343_v58 = vld [vmem:[%s3152_s3 + $0x54] ss:$8 sps:$4 sm:$0xff]   ;;  %v2353_v5 = vld [vmem:[%s3152_s3 + $0x30] ss:$8 sps:$4 sm:$0xff]   ;;  %v2371_v17 = vld [vmem:[%s3152_s3] ss:$8 sps:$4 sm:$0xff]  }
  0x2d   : > { %491 = vmatpush2.bf16.msra.mxu0 %v2234_v34  ;;  %v2306_v34 = vld [vmem:[%s3150_s1 + $0x2f0] ss:$8 sps:$4 sm:$0xff]   ;;  %v2367_v10 = vld [vmem:[%s3152_s3 + $0x14] ss:$8 sps:$4 sm:$0xff]   ;;  %v2380_v19 = vld [vmem:[%s3152_s3 + $0x100] ss:$8 sps:$4 sm:$0xff]  }
  0x2e   : > { %699 = vmatpush2.bf16.msra.mxu1 %v2235_v35  ;;  %492 = vmatprep.subr.bf16.mxu0 %v2236_v36  ;;  %v2311_v35 = vld [vmem:[%s3150_s1 + $0x2e4] ss:$8 sps:$4 sm:$0xff]   ;;  %v2309_v36 = vld [vmem:[%s3150_s1 + $0x2e0] ss:$8 sps:$4 sm:$0xff]  }
  0x2f   : > { %700 = vmatprep.subr.bf16.mxu1 %v2238_v37  ;;  %v2314_v37 = vld [vmem:[%s3150_s1 + $0x2d4] ss:$8 sps:$4 sm:$0xff]  }
  0x31   : > { %493 = vmatpush2.bf16.msra.mxu0 %v2240_v38  ;;  %v2312_v38 = vld [vmem:[%s3150_s1 + $0x2d0] ss:$8 sps:$4 sm:$0xff]  }
  0x32   : > { %701 = vmatpush2.bf16.msra.mxu1 %v2241_v39  ;;  %494 = vmatprep.subr.bf16.mxu0 %v2242_v40  ;;  %v2317_v39 = vld [vmem:[%s3150_s1 + $0x2c4] ss:$8 sps:$4 sm:$0xff]   ;;  %v2315_v40 = vld [vmem:[%s3150_s1 + $0x2c0] ss:$8 sps:$4 sm:$0xff]  }
  0x33   : > { %702 = vmatprep.subr.bf16.mxu1 %v2244_v41  ;;  %v2320_v41 = vld [vmem:[%s3150_s1 + $0x2b4] ss:$8 sps:$4 sm:$0xff]  }
  0x35   : > { %495 = vmatpush2.bf16.msra.mxu0 %v2246_v42  ;;  %v2318_v42 = vld [vmem:[%s3150_s1 + $0x2b0] ss:$8 sps:$4 sm:$0xff]  }
  0x36   : > { %703 = vmatpush2.bf16.msra.mxu1 %v2247_v43  ;;  %496 = vmatprep.subr.bf16.mxu0 %v2248_v44  ;;  %v2323_v43 = vld [vmem:[%s3150_s1 + $0x2a4] ss:$8 sps:$4 sm:$0xff]   ;;  %v2321_v44 = vld [vmem:[%s3150_s1 + $0x2a0] ss:$8 sps:$4 sm:$0xff]  }
  0x37   : > { %704 = vmatprep.subr.bf16.mxu1 %v2250_v45  ;;  %v2326_v45 = vld [vmem:[%s3150_s1 + $0x294] ss:$8 sps:$4 sm:$0xff]  }
  0x39   : > { %497 = vmatpush2.bf16.msra.mxu0 %v2252_v46  ;;  %v2324_v46 = vld [vmem:[%s3150_s1 + $0x290] ss:$8 sps:$4 sm:$0xff]  }
  0x3a   : > { %705 = vmatpush2.bf16.msra.mxu1 %v2253_v50  ;;  %498 = vmatprep.subr.bf16.mxu0 %v2254_v51  ;;  %v761_v50 = vrot.slane %v1973_v48, 1  ;;  %v2332_v51 = vld [vmem:[%s3152_s3 + $0x70] ss:$8 sps:$4 sm:$0xff]   ;;  %v2419_v48 = vld [vmem:[%s3152_s3 + $0x80] ss:$8 sps:$4 sm:$0xff]  }
  0x3b   : > { %706 = vmatprep.subr.bf16.mxu1 %v2256_v53  ;;  %v2337_v53 = vld [vmem:[%s3152_s3 + $0x64] ss:$8 sps:$4 sm:$0xff]  }
  0x3d   : > { %499 = vmatpush2.bf16.msra.mxu0 %v2258_v56  ;;  %v2335_v56 = vld [vmem:[%s3152_s3 + $0x60] ss:$8 sps:$4 sm:$0xff]  }
  0x3e   : > { %707 = vmatpush2.bf16.msra.mxu1 %v2259_v57  ;;  %500 = vmatprep.subr.bf16.mxu0 %v2260_v59  ;;  %v2346_v57 = vld [vmem:[%s3152_s3 + $0x164] ss:$8 sps:$4 sm:$0xff]   ;;  %v2344_v59 = vld [vmem:[%s3152_s3 + $0x160] ss:$8 sps:$4 sm:$0xff]  }
  0x3f   : > { %708 = vmatprep.subr.bf16.mxu1 %v2262_v60  ;;  %v2352_v60 = vld [vmem:[%s3152_s3 + $0x154] ss:$8 sps:$4 sm:$0xff]  }
  0x41   : > { %501 = vmatpush2.bf16.msra.mxu0 %v2264_v62  ;;  %v2349_v62 = vld [vmem:[%s3152_s3 + $0x44] ss:$8 sps:$4 sm:$0xff]  }
  0x42   : > { %709 = vmatpush2.bf16.msra.mxu1 %v2265_v63  ;;  %502 = vmatprep.subr.bf16.mxu0 %v2266_v1  ;;  %v2350_v63 = vld [vmem:[%s3152_s3 + $0x150] ss:$8 sps:$4 sm:$0xff]   ;;  %v2347_v1 = vld [vmem:[%s3152_s3 + $0x40] ss:$8 sps:$4 sm:$0xff]  }
  0x43   : > { %710 = vmatprep.subr.bf16.mxu1 %v2268_v2  ;;  %v2355_v2 = vld [vmem:[%s3152_s3 + $0x34] ss:$8 sps:$4 sm:$0xff]  }
  0x45   : > { %503 = vmatpush2.bf16.msra.mxu0 %v2270_v3  ;;  %v2356_v3 = vld [vmem:[%s3152_s3 + $0x140] ss:$8 sps:$4 sm:$0xff]  }
  0x46   : > { %711 = vmatpush2.bf16.msra.mxu1 %v2271_v4  ;;  %504 = vmatprep.subr.bf16.mxu0 %v2272_v6  ;;  %v2364_v4 = vld [vmem:[%s3152_s3 + $0x134] ss:$8 sps:$4 sm:$0xff]   ;;  %v2361_v6 = vld [vmem:[%s3152_s3 + $0x24] ss:$8 sps:$4 sm:$0xff]  }
  0x47   : > { %712 = vmatprep.subr.bf16.mxu1 %v2274_v7  ;;  %v2362_v7 = vld [vmem:[%s3152_s3 + $0x130] ss:$8 sps:$4 sm:$0xff]  }
  0x49   : > { %505 = vmatpush2.bf16.msra.mxu0 %v2276_v8  ;;  %v2370_v8 = vld [vmem:[%s3152_s3 + $0x124] ss:$8 sps:$4 sm:$0xff]  }
  0x4a   : > { %713 = vmatpush2.bf16.msra.mxu1 %v2277_v11  ;;  %925 = vmatprep.subr.bf16.mxu0 %v2284_v12  ;;  %v2368_v11 = vld [vmem:[%s3152_s3 + $0x120] ss:$8 sps:$4 sm:$0xff]   ;;  %v2376_v12 = vld [vmem:[%s3152_s3 + $0x114] ss:$8 sps:$4 sm:$0xff]  }
  0x4b   : > { %1247 = vmatprep.subr.bf16.mxu1 %v2340_v55 }
  0x4c   : > { %507 = vmatmul.mubr.bf16.vlgmr.msra.gmra.mxu0 %v304_v14  ;;  %v2373_v14 = vld [vmem:[%s3152_s3 + $0x4] ss:$8 sps:$4 sm:$0xff]  }
  0x4d   : > { %715 = vmatmul.mubr.bf16.vlgmr.msra.gmra.mxu1 %v1907_v13  ;;  %926 = vmatpush1.bf16.msra.mxu0 %v2282_v15  ;;  %v2365_v13 = vld [vmem:[%s3152_s3 + $0x10] ss:$8 sps:$4 sm:$0xff]  }
  0x4e   : > { %927 = vmatprep.subr.bf16.mxu0 %v2287_v16  ;;  %957 = vmatprep.mubr.bf16.mxu0 %v762_v21  ;;  %v2374_v15 = vld [vmem:[%s3152_s3 + $0x110] ss:$8 sps:$4 sm:$0xff]   ;;  %v2382_v16 = vld [vmem:[%s3152_s3 + $0x104] ss:$8 sps:$4 sm:$0xff]  }
  0x4f   : > { %1248 = vmatpush1.bf16.msra.mxu1 %v2338_v54  ;;  %v2377_v21 = vld [vmem:[%s3152_s3 + $0xf0] ss:$8 sps:$4 sm:$0xff]  }
  0x50   : > { %1249 = vmatprep.subr.bf16.mxu1 %v2346_v57 }
  0x51   : > { %928 = vmatpush1.bf16.msra.mxu0 %v2285_v18  ;;  %v2379_v18 = vld [vmem:[%s3152_s3 + $0xf4] ss:$8 sps:$4 sm:$0xff]  }
  0x52   : > { %929 = vmatprep.subr.bf16.mxu0 %v2290_v20  ;;  %v2388_v20 = vld [vmem:[%s3152_s3 + $0x1f4] ss:$8 sps:$4 sm:$0xff]  }
  0x53   : > { %1250 = vmatpush1.bf16.msra.mxu1 %v2344_v59 }
  0x54   : > { %1251 = vmatprep.subr.bf16.mxu1 %v2352_v60 }
  0x55   : > { %930 = vmatpush1.bf16.msra.mxu0 %v2288_v22  ;;  %v2385_v22 = vld [vmem:[%s3152_s3 + $0xe4] ss:$8 sps:$4 sm:$0xff]  }
  0x56   : > { %931 = vmatprep.subr.bf16.mxu0 %v2293_v23  ;;  %v2386_v23 = vld [vmem:[%s3152_s3 + $0x1f0] ss:$8 sps:$4 sm:$0xff]  }
  0x57   : > { %1252 = vmatpush1.bf16.msra.mxu1 %v2350_v63 }
  0x58   : > { %1253 = vmatprep.subr.bf16.mxu1 %v2358_v0  ;;  %v968_v0 = vld [vmem:[%s3151_s2] sm:$0x3] }
  0x59   : > { %932 = vmatpush1.bf16.msra.mxu0 %v2291_v24  ;;  %v2394_v24 = vld [vmem:[%s3152_s3 + $0x1e4] ss:$8 sps:$4 sm:$0xff]  }
  0x5a   : > { %933 = vmatprep.subr.bf16.mxu0 %v2296_v25  ;;  %v2383_v25 = vld [vmem:[%s3152_s3 + $0xe0] ss:$8 sps:$4 sm:$0xff]  }
  0x5b   : > { %1254 = vmatpush1.bf16.msra.mxu1 %v2356_v3 }
  0x5c   : > { %1255 = vmatprep.subr.bf16.mxu1 %v2364_v4 }
  0x5d   : > { %934 = vmatpush1.bf16.msra.mxu0 %v2294_v26  ;;  %v2391_v26 = vld [vmem:[%s3152_s3 + $0xd4] ss:$8 sps:$4 sm:$0xff]  }
  0x5e   : > { %935 = vmatprep.subr.bf16.mxu0 %v2299_v27  ;;  %v2392_v27 = vld [vmem:[%s3152_s3 + $0x1e0] ss:$8 sps:$4 sm:$0xff]  }
  0x5f   : > { %1256 = vmatpush1.bf16.msra.mxu1 %v2362_v7 }
  0x60   : > { %1257 = vmatprep.subr.bf16.mxu1 %v2370_v8 }
  0x61   : > { %936 = vmatpush1.bf16.msra.mxu0 %v2297_v28  ;;  %v2389_v28 = vld [vmem:[%s3152_s3 + $0xd0] ss:$8 sps:$4 sm:$0xff]  }
  0x62   : > { %937 = vmatprep.subr.bf16.mxu0 %v2302_v29  ;;  %v2397_v29 = vld [vmem:[%s3152_s3 + $0xc4] ss:$8 sps:$4 sm:$0xff]  }
  0x63   : > { %1258 = vmatpush1.bf16.msra.mxu1 %v2368_v11 }
  0x64   : > { %1259 = vmatprep.subr.bf16.mxu1 %v2376_v12 }
  0x65   : > { %938 = vmatpush1.bf16.msra.mxu0 %v2300_v30  ;;  %v2395_v30 = vld [vmem:[%s3152_s3 + $0xc0] ss:$8 sps:$4 sm:$0xff]  }
  0x66   : > { %939 = vmatprep.subr.bf16.mxu0 %v2305_v31  ;;  %v2400_v31 = vld [vmem:[%s3152_s3 + $0x1d4] ss:$8 sps:$4 sm:$0xff]  }
  0x67   : > { %1260 = vmatpush1.bf16.msra.mxu1 %v2374_v15 }
  0x68   : > { %1261 = vmatprep.subr.bf16.mxu1 %v2382_v16 }
  0x69   : > { %940 = vmatpush1.bf16.msra.mxu0 %v2303_v32  ;;  %v2398_v32 = vld [vmem:[%s3152_s3 + $0x1d0] ss:$8 sps:$4 sm:$0xff]  }
  0x6a   : > { %941 = vmatprep.subr.bf16.mxu0 %v2308_v33  ;;  %v2403_v33 = vld [vmem:[%s3152_s3 + $0xb4] ss:$8 sps:$4 sm:$0xff]  }
  0x6b   : > { %1262 = vmatpush1.bf16.msra.mxu1 %v2380_v19 }
  0x6c   : > { %1263 = vmatprep.subr.bf16.mxu1 %v2388_v20 }
  0x6d   : > { %942 = vmatpush2.bf16.msra.mxu0 %v2306_v34  ;;  %v2401_v34 = vld [vmem:[%s3152_s3 + $0xb0] ss:$8 sps:$4 sm:$0xff]  }
  0x6e   : > { %943 = vmatprep.subr.bf16.mxu0 %v2311_v35  ;;  %v2406_v35 = vld [vmem:[%s3152_s3 + $0x1c4] ss:$8 sps:$4 sm:$0xff]  }
  0x6f   : > { %1264 = vmatpush2.bf16.msra.mxu1 %v2386_v23 }
  0x70   : > { %1265 = vmatprep.subr.bf16.mxu1 %v2394_v24 }
  0x71   : > { %944 = vmatpush2.bf16.msra.mxu0 %v2309_v36  ;;  %v2484_v36 = vmov 0.0  }
  0x72   : > { %945 = vmatprep.subr.bf16.mxu0 %v2314_v37  ;;  %984 = vst [vmem:[#allocation2] sm:$0x3f] %v2484_v36  ;;  %985 = vst [vmem:[#allocation2 + $0x8] sm:$0x3f] %v2484_v36  ;;  %v2404_v37 = vld [vmem:[%s3152_s3 + $0x1c0] ss:$8 sps:$4 sm:$0xff]  }
  0x73   : > { %1266 = vmatpush2.bf16.msra.mxu1 %v2392_v27 }
  0x74   : > { %1267 = vmatprep.subr.bf16.mxu1 %v2400_v31 }
  0x75   : > { %946 = vmatpush2.bf16.msra.mxu0 %v2312_v38  ;;  %v2409_v38 = vld [vmem:[%s3152_s3 + $0xa4] ss:$8 sps:$4 sm:$0xff]  }
  0x76   : > { %947 = vmatprep.subr.bf16.mxu0 %v2317_v39  ;;  %v2407_v39 = vld [vmem:[%s3152_s3 + $0xa0] ss:$8 sps:$4 sm:$0xff]  }
  0x77   : > { %1268 = vmatpush2.bf16.msra.mxu1 %v2398_v32 }
  0x78   : > { %1269 = vmatprep.subr.bf16.mxu1 %v2406_v35  ;;  %v2428_v35 = vld [vmem:[%s3152_s3 + $0x270] ss:$8 sps:$4 sm:$0xff]  }
  0x79   : > { %948 = vmatpush2.bf16.msra.mxu0 %v2315_v40  ;;  %v2412_v40 = vld [vmem:[%s3152_s3 + $0x1b4] ss:$8 sps:$4 sm:$0xff]  }
  0x7a   : > { %949 = vmatprep.subr.bf16.mxu0 %v2320_v41  ;;  %v2410_v41 = vld [vmem:[%s3152_s3 + $0x1b0] ss:$8 sps:$4 sm:$0xff]  }
  0x7b   : > { %1270 = vmatpush2.bf16.msra.mxu1 %v2404_v37  ;;  %v2433_v37 = vld [vmem:[%s3152_s3 + $0x264] ss:$8 sps:$4 sm:$0xff]  }
  0x7c   : > { %1271 = vmatprep.subr.bf16.mxu1 %v2412_v40  ;;  %v2436_v40 = vld [vmem:[%s3152_s3 + $0x254] ss:$8 sps:$4 sm:$0xff]  }
  0x7d   : > { %950 = vmatpush2.bf16.msra.mxu0 %v2318_v42  ;;  %v2413_v42 = vld [vmem:[%s3152_s3 + $0x90] ss:$8 sps:$4 sm:$0xff]  }
  0x7e   : > { %951 = vmatprep.subr.bf16.mxu0 %v2323_v43  ;;  %v2415_v43 = vld [vmem:[%s3152_s3 + $0x94] ss:$8 sps:$4 sm:$0xff]  }
  0x7f   : > { %1272 = vmatpush2.bf16.msra.mxu1 %v2410_v41  ;;  %v2434_v41 = vld [vmem:[%s3152_s3 + $0x250] ss:$8 sps:$4 sm:$0xff]  }
  0x81   : > { %952 = vmatpush2.bf16.msra.mxu0 %v2321_v44  ;;  %v2416_v44 = vld [vmem:[%s3152_s3 + $0x1a0] ss:$8 sps:$4 sm:$0xff]  }
  0x82   : > { %953 = vmatprep.subr.bf16.mxu0 %v2326_v45  ;;  %v2418_v45 = vld [vmem:[%s3152_s3 + $0x1a4] ss:$8 sps:$4 sm:$0xff]  }
  0x83   : > { %1273 = vmatprep.subr.bf16.mxu1 %v2418_v45  ;;  %v2440_v45 = vld [vmem:[%s3152_s3 + $0x230] ss:$8 sps:$4 sm:$0xff]  }
  0x84   : > { %1274 = vmatpush2.bf16.msra.mxu1 %v2416_v44  ;;  %v2442_v44 = vld [vmem:[%s3152_s3 + $0x234] ss:$8 sps:$4 sm:$0xff]  }
  0x85   : > { %954 = vmatpush2.bf16.msra.mxu0 %v2324_v46  ;;  %v2421_v46 = vld [vmem:[%s3152_s3 + $0x84] ss:$8 sps:$4 sm:$0xff]  }
  0x86   : > { %955 = vmatprep.subr.bf16.mxu0 %v2329_v47  ;;  %v2424_v47 = vld [vmem:[%s3152_s3 + $0x194] ss:$8 sps:$4 sm:$0xff]  }
  0x87   : > { %1275 = vmatprep.subr.bf16.mxu1 %v2424_v47  ;;  %v2443_v47 = vld [vmem:[%s3152_s3 + $0x220] ss:$8 sps:$4 sm:$0xff]  }
  0x89   : > { %956 = vmatpush2.bf16.msra.mxu0 %v2327_v49  ;;  %v2422_v49 = vld [vmem:[%s3152_s3 + $0x190] ss:$8 sps:$4 sm:$0xff]  }
  0x8a   : > { %1448 = vmatprep.subr.bf16.mxu0 %v2334_v52  ;;  %1276 = vmatpush2.bf16.msra.mxu1 %v2422_v49  ;;  %v2430_v52 = vld [vmem:[%s3152_s3 + $0x274] ss:$8 sps:$4 sm:$0xff]   ;;  %v2446_v49 = vld [vmem:[%s3152_s3 + $0x210] ss:$8 sps:$4 sm:$0xff]  }
  0x8c   : > { %958 = vmatmul.mubr.bf16.vlgmr.msra.gmra.mxu0 %v761_v50  ;;  %v2427_v50 = vld [vmem:[%s3152_s3 + $0x184] ss:$8 sps:$4 sm:$0xff]  }
  0x8d   : > { %1449 = vmatpush1.bf16.msra.mxu0 %v2332_v51  ;;  %v2425_v51 = vld [vmem:[%s3152_s3 + $0x180] ss:$8 sps:$4 sm:$0xff]   ;;  %1277 = vmatprep.subr.bf16.mxu1 %v2427_v50  ;;  %v2451_v50 = vld [vmem:[%s3152_s3 + $0x204] ss:$8 sps:$4 sm:$0xff]  }
  0x8e   : > { %1450 = vmatprep.subr.bf16.mxu0 %v2337_v53  ;;  %1278 = vmatpush2.bf16.msra.mxu1 %v2425_v51  ;;  %v2449_v51 = vld [vmem:[%s3152_s3 + $0x200] ss:$8 sps:$4 sm:$0xff]  }
  0x8f   : > { %1688 = vmatprep.subr.bf16.mxu1 %v2430_v52  ;;  %v2454_v52 = vld [vmem:[%s3152_s3 + $0x2f4] ss:$8 sps:$4 sm:$0xff]  }
  0x91   : > { %1451 = vmatpush1.bf16.msra.mxu0 %v2335_v56 }
  0x92   : > { %1452 = vmatprep.subr.bf16.mxu0 %v2343_v58 }
  0x95   : > { %1453 = vmatpush1.bf16.msra.mxu0 %v2341_v61  ;;  %v970_v61 = vlaneseq }
  0x96   : > { %1454 = vmatprep.subr.bf16.mxu0 %v2349_v62 }
  0x97   : > { %v3029_v62 = vshrl.u32 %v970_v61, 7  ;;  %v2464_v61 = vld [vmem:[%s3152_s3 + $0x2b0] ss:$8 sps:$4 sm:$0xff]  }
  0x99   : > { %1455 = vmatpush1.bf16.msra.mxu0 %v2347_v1  ;;  %v972_v63 = vsub.s32 0, %v3029_v62  ;;  %v976_v1 = vsub.s32 1, %v3029_v62 }
  0x9a   : > { %1456 = vmatprep.subr.bf16.mxu0 %v2355_v2 }
  0x9b   : > { %v973_v3 = vrot.slane %v968_v0, %v972_v63  ;;  %v977_v7 = vrot.slane %v968_v0, %v976_v1  ;;  %v2469_v0 = vld [vmem:[%s3152_s3 + $0x2a4] ss:$8 sps:$4 sm:$0xff]  }
  0x9d   : > { %1457 = vmatpush1.bf16.msra.mxu0 %v2353_v5 }
  0x9e   : > { %1458 = vmatprep.subr.bf16.mxu0 %v2361_v6 }
  0xa1   : > { %1459 = vmatpush1.bf16.msra.mxu0 %v2359_v9 }
  0xa2   : > { %1460 = vmatprep.subr.bf16.mxu0 %v2367_v10 }
  0xa5   : > { %1461 = vmatpush1.bf16.msra.mxu0 %v2365_v13 }
  0xa6   : > { %1462 = vmatprep.subr.bf16.mxu0 %v2373_v14 }
  0xa9   : > { %1463 = vmatpush1.bf16.msra.mxu0 %v2371_v17 }
  0xaa   : > { %1464 = vmatprep.subr.bf16.mxu0 %v2379_v18 }
  0xad   : > { %1465 = vmatpush2.bf16.msra.mxu0 %v2377_v21 }
  0xae   : > { %1466 = vmatprep.subr.bf16.mxu0 %v2385_v22 }
  0xb1   : > { %1467 = vmatpush2.bf16.msra.mxu0 %v2383_v25 }
  0xb2   : > { %1468 = vmatprep.subr.bf16.mxu0 %v2391_v26 }
  0xb5   : > { %1469 = vmatpush2.bf16.msra.mxu0 %v2389_v28 }
  0xb6   : > { %1470 = vmatprep.subr.bf16.mxu0 %v2397_v29 }
  0xb9   : > { %1471 = vmatpush2.bf16.msra.mxu0 %v2395_v30 }
  0xba   : > { %1472 = vmatprep.subr.bf16.mxu0 %v2403_v33 }
  0xbd   : > { %1473 = vmatpush2.bf16.msra.mxu0 %v2401_v34 }
  0xbe   : > { %1474 = vmatprep.subr.bf16.mxu0 %v2409_v38 }
  0xc1   : > { %1475 = vmatpush2.bf16.msra.mxu0 %v2407_v39  ;;  %v2431_v39 = vld [vmem:[%s3152_s3 + $0x260] ss:$8 sps:$4 sm:$0xff]  }
  0xc2   : > { %1476 = vmatprep.subr.bf16.mxu0 %v2415_v43  ;;  %v2437_v43 = vld [vmem:[%s3152_s3 + $0x240] ss:$8 sps:$4 sm:$0xff]  }
  0xc5   : > { %1477 = vmatpush2.bf16.msra.mxu0 %v2413_v42  ;;  %v2439_v42 = vld [vmem:[%s3152_s3 + $0x244] ss:$8 sps:$4 sm:$0xff]  }
  0xc6   : > { %1478 = vmatprep.subr.bf16.mxu0 %v2421_v46  ;;  %v2445_v46 = vld [vmem:[%s3152_s3 + $0x224] ss:$8 sps:$4 sm:$0xff]  }
  0xc9   : > { %1479 = vmatpush2.bf16.msra.mxu0 %v2419_v48  ;;  %v2448_v48 = vld [vmem:[%s3152_s3 + $0x214] ss:$8 sps:$4 sm:$0xff]  }
 0x10c   : > { %v508_v53 = vpop.f32.mrf.mxu0 }
 0x10d   : > { %v716_v54 = vpop.f32.mrf.mxu1 }
 0x10e   : > { %v510_v55 = vpop.f32.mrf.mxu0  ;;  %v717_v2 = vadd.f32 %v716_v54, %v508_v53  ;;  %v2452_v53 = vld [vmem:[%s3152_s3 + $0x2f0] ss:$8 sps:$4 sm:$0xff]   ;;  %v2457_v54 = vld [vmem:[%s3152_s3 + $0x2e4] ss:$8 sps:$4 sm:$0xff]  }
 0x10f   : > { %v718_v56 = vpop.f32.mrf.mxu1 }
 0x110   : > { %v512_v57 = vpop.f32.mrf.mxu0  ;;  %v719_v5 = vadd.f32 %v718_v56, %v510_v55  ;;  %v2455_v55 = vld [vmem:[%s3152_s3 + $0x2e0] ss:$8 sps:$4 sm:$0xff]   ;;  %v2460_v56 = vld [vmem:[%s3152_s3 + $0x2d4] ss:$8 sps:$4 sm:$0xff]  }
 0x111   : > { %v720_v58 = vpop.f32.mrf.mxu1  ;;  %v2458_v57 = vld [vmem:[%s3152_s3 + $0x2d0] ss:$8 sps:$4 sm:$0xff]  }
 0x112   : > { %v513_v59 = vpop.f32.mrf.mxu0  ;;  %v2463_v58 = vld [vmem:[%s3152_s3 + $0x2c4] ss:$8 sps:$4 sm:$0xff]  }
 0x113   : > { %v721_v60 = vpop.f32.mrf.mxu1  ;;  %v2461_v59 = vld [vmem:[%s3152_s3 + $0x2c0] ss:$8 sps:$4 sm:$0xff]  }
 0x114   : > { %v2466_v60 = vld [vmem:[%s3152_s3 + $0x2b4] ss:$8 sps:$4 sm:$0xff]  }
 0x14c   : > { %v959_v4 = vpop.f32.mrf.mxu0 }
 0x14d   : > { %v966_v6 = vadd.f32 %v959_v4, %v717_v2  ;;  %v2467_v2 = vld [vmem:[%s3152_s3 + $0x2a0] ss:$8 sps:$4 sm:$0xff]   ;;  %v2470_v4 = vld [vmem:[%s3152_s3 + $0x290] ss:$8 sps:$4 sm:$0xff]  }
 0x14e   : > { %v961_v8 = vpop.f32.mrf.mxu0 }
 0x14f   : > { %v980_v9 = vadd.f32 %v973_v3, %v966_v6  ;;  %v967_v10 = vadd.f32 %v961_v8, %v719_v5  ;;  %v2472_v3 = vld [vmem:[%s3152_s3 + $0x294] ss:$8 sps:$4 sm:$0xff]   ;;  %v2475_v5 = vld [vmem:[%s3152_s3 + $0x284] ss:$8 sps:$4 sm:$0xff]  }
 0x150   : > { %v963_v11 = vpop.f32.mrf.mxu0 }
 0x151   : > { %v982_v12 = vmax.f32 %v980_v9, 0.0  ;;  %v981_v13 = vadd.f32 %v977_v7, %v967_v10  ;;  %v2473_v7 = vld [vmem:[%s3152_s3 + $0x280] ss:$8 sps:$4 sm:$0xff]  }
 0x152   : > { %v964_v14 = vpop.f32.mrf.mxu0 }
 0x153   : > { %v988_v15 = vrot.slane %v982_v12, 7  ;;  %v983_v16 = vmax.f32 %v981_v13, 0.0 }
 0x155   : > { %992 = vst [vmem:[#allocation2] sm:$0x1e] %v988_v15  ;;  %v989_v17 = vrot.slane %v983_v16, 7 }
 0x157   : > { %993 = vst [vmem:[#allocation2 + $0x8] sm:$0x1e] %v989_v17 }
 0x15c   : > { %v998_v18 = vld [vmem:[#allocation2] sm:$0x1e] }
 0x15d   : > { %v994_v19 = vld [vmem:[#allocation2] sm:$0xf]  ;;  %v1000_v20 = vpack.c.bf16 %v998_v18, %v998_v18 }
 0x15e   : > { %v995_v21 = vld [vmem:[#allocation2 + $0x8] sm:$0xf]  ;;  %v996_v26 = vpack.c.bf16 %v994_v19, %v994_v19  ;;  %v1002_v6 = vld [vmem:[#allocation2] sm:$0x3c]  ;;  %v1734_v19 = vld [vmem:[%s3153_s4] sm:$0x3] }
 0x15f   : > { %v999_v22 = vld [vmem:[#allocation2 + $0x8] sm:$0x1e]  ;;  %v997_v23 = vpack.c.bf16 %v995_v21, %v995_v21  ;;  %v1074_v25 = vshll.u32 %v1000_v20, 16  ;;  %v1072_v33 = vshrl.u32 %v1000_v20, 16  ;;  %v1004_v8 = vpack.c.bf16 %v1002_v6, %v1002_v6  ;;  %v1731_v18 = vld [vmem:[%s2667_s17] sm:$0x77] }
 0x160   : > { %v1001_v24 = vpack.c.bf16 %v999_v22, %v999_v22  ;;  %v1003_v27 = vld [vmem:[#allocation2 + $0x8] sm:$0x3c]  ;;  %v1732_v20 = vunpack.c.l.bf16 %v1731_v18  ;;  %v1739_v22 = vrot.slane %v1734_v19, %v972_v63 }
 0x161   : > { %1480 = vmatprep.mubr.bf16.mxu0 %v997_v23  ;;  %v1076_v29 = vrot.slane %v1074_v25, 1  ;;  %v1005_v32 = vpack.c.bf16 %v1003_v27, %v1003_v27  ;;  %v1524_v9 = vrot.slane %v1004_v8, 1  ;;  %v1733_v23 = vunpack.c.h.bf16 %v1731_v18 }
 0x162   : > { %v1081_v28 = vshll.u32 %v1001_v24, 16  ;;  %1481 = vmatmul.mubr.bf16.vlgmr.msra.gmra.mxu0 %v996_v26  ;;  %v1079_v30 = vshrl.u32 %v1001_v24, 16  ;;  %v1750_v27 = vrot.slane %v1732_v20, 1 }
 0x163   : > { %v1077_v36 = vor.u32 %v1076_v29, %v1072_v33  ;;  %v1525_v38 = vrot.slane %v1005_v32, 1  ;;  %v1751_v32 = vrot.slane %v1733_v23, 1 }
 0x164   : > { %v1083_v31 = vrot.slane %v1081_v28, 1  ;;  %v1743_v28 = vrot.slane %v1734_v19, %v976_v1 }
 0x166   : > { %v1084_v34 = vor.u32 %v1083_v31, %v1079_v30 }
 0x168   : > { %1279 = vmatprep.mubr.bf16.mxu1 %v1084_v34 }
 0x169   : > { %1280 = vmatmul.mubr.bf16.vlgmr.msra.gmra.mxu1 %v1077_v36 }
 0x16a   : > { %1689 = vmatpush1.bf16.msra.mxu1 %v2428_v35  ;;  %1720 = vmatprep.mubr.bf16.mxu1 %v1525_v38 }
 0x16b   : > { %1690 = vmatprep.subr.bf16.mxu1 %v2433_v37 }
 0x16e   : > { %1691 = vmatpush1.bf16.msra.mxu1 %v2431_v39 }
 0x16f   : > { %1692 = vmatprep.subr.bf16.mxu1 %v2436_v40 }
 0x172   : > { %1693 = vmatpush1.bf16.msra.mxu1 %v2434_v41 }
 0x173   : > { %1694 = vmatprep.subr.bf16.mxu1 %v2439_v42 }
 0x176   : > { %1695 = vmatpush1.bf16.msra.mxu1 %v2437_v43 }
 0x177   : > { %1696 = vmatprep.subr.bf16.mxu1 %v2442_v44 }
 0x17a   : > { %1697 = vmatpush1.bf16.msra.mxu1 %v2440_v45 }
 0x17b   : > { %1698 = vmatprep.subr.bf16.mxu1 %v2445_v46 }
 0x17e   : > { %1699 = vmatpush1.bf16.msra.mxu1 %v2443_v47 }
 0x17f   : > { %1700 = vmatprep.subr.bf16.mxu1 %v2448_v48 }
 0x182   : > { %1701 = vmatpush1.bf16.msra.mxu1 %v2446_v49 }
 0x183   : > { %1702 = vmatprep.subr.bf16.mxu1 %v2451_v50 }
 0x186   : > { %1703 = vmatpush1.bf16.msra.mxu1 %v2449_v51 }
 0x187   : > { %1704 = vmatprep.subr.bf16.mxu1 %v2454_v52 }
 0x18a   : > { %1705 = vmatpush2.bf16.msra.mxu1 %v2452_v53 }
 0x18b   : > { %1706 = vmatprep.subr.bf16.mxu1 %v2457_v54 }
 0x18e   : > { %1707 = vmatpush2.bf16.msra.mxu1 %v2455_v55 }
 0x18f   : > { %1708 = vmatprep.subr.bf16.mxu1 %v2460_v56 }
 0x192   : > { %1709 = vmatpush2.bf16.msra.mxu1 %v2458_v57 }
 0x193   : > { %1710 = vmatprep.subr.bf16.mxu1 %v2463_v58 }
 0x196   : > { %1711 = vmatpush2.bf16.msra.mxu1 %v2461_v59 }
 0x197   : > { %1712 = vmatprep.subr.bf16.mxu1 %v2466_v60 }
 0x19a   : > { %1713 = vmatpush2.bf16.msra.mxu1 %v2464_v61 }
 0x19b   : > { %1714 = vmatprep.subr.bf16.mxu1 %v2469_v0 }
 0x19e   : > { %1715 = vmatpush2.bf16.msra.mxu1 %v2467_v2 }
 0x19f   : > { %1716 = vmatprep.subr.bf16.mxu1 %v2472_v3 }
 0x1a2   : > { %1717 = vmatpush2.bf16.msra.mxu1 %v2470_v4 }
 0x1a3   : > { %1718 = vmatprep.subr.bf16.mxu1 %v2475_v5 }
 0x1a6   : > { %1719 = vmatpush2.bf16.msra.mxu1 %v2473_v7 }
 0x1a9   : > { %1721 = vmatmul.mubr.bf16.vlgmr.msra.gmra.mxu1 %v1524_v9 }
 0x222   : > { %v1482_v10 = vpop.f32.mrf.mxu0 }
 0x224   : > { %v1484_v11 = vpop.f32.mrf.mxu0 }
 0x226   : > { %v1486_v12 = vpop.f32.mrf.mxu0 }
 0x228   : > { %v1487_v14 = vpop.f32.mrf.mxu0 }
 0x229   : > { %v1281_v13 = vpop.f32.mrf.mxu1 }
 0x22a   : > { %v1483_v21 = vadd.f32 %v1482_v10, %v1281_v13 }
 0x22b   : > { %v1283_v15 = vpop.f32.mrf.mxu1 }
 0x22c   : > { %v1485_v25 = vadd.f32 %v1484_v11, %v1283_v15 }
 0x22d   : > { %v1285_v16 = vpop.f32.mrf.mxu1 }
 0x22f   : > { %v1286_v17 = vpop.f32.mrf.mxu1 }
 0x269   : > { %v1722_v24 = vpop.f32.mrf.mxu1 }
 0x26a   : > { %v1729_v26 = vadd.f32 %v1722_v24, %v1483_v21 }
 0x26b   : > { %v1724_v29 = vpop.f32.mrf.mxu1 }
 0x26c   : > { %v1746_v30 = vadd.f32 %v1739_v22, %v1729_v26  ;;  %v1730_v31 = vadd.f32 %v1724_v29, %v1485_v25 }
 0x26d   : > { %v1726_v33 = vpop.f32.mrf.mxu1 }
 0x26e   : > { %v1754_v34 = vadd.f32 %v1750_v27, %v1746_v30  ;;  %v1747_v35 = vadd.f32 %v1743_v28, %v1730_v31 }
 0x26f   : > { %v1727_v36 = vpop.f32.mrf.mxu1 }
 0x270   : > { %v1756_v37 = vmax.f32 %v1754_v34, 0.0  ;;  %v1755_v38 = vadd.f32 %v1751_v32, %v1747_v35 }
 0x272   : > { %v1760_v63 = vrot.slane %v1756_v37, 7  ;;  %v1757_v39 = vmax.f32 %v1755_v38, 0.0 }
 0x274   : > { %1764 = vst [vmem:[#allocation2] sm:$0x1e] %v1760_v63  ;;  %v1761_v40 = vrot.slane %v1757_v39, 7 }
 0x276   : > { %1765 = vst [vmem:[#allocation2 + $0x8] sm:$0x1e] %v1761_v40 }
 0x27b   : > { %v1766_v62 = vld [vmem:[#allocation2] sm:$0x3f] }
 0x27d   : > { %v1767_v1 = vld [vmem:[#allocation2 + $0x8] sm:$0x3f] }
 0x27e   : > { %v2172_v41 = vpack.c.bf16 %v1767_v1, %v1766_v62 }
 0x280   : > { %1776 = vst [vmem:[%s224_s27] sm:$0x77] %v2172_v41 }
 0x281 PF: > { %s15_s18 = sadd.s32 1, %s2482_s18  }
 0x282   : > { %p12_p4 = scmp.ge.s32.totalorder %s15_s18, 4  }
 0x284   :  { %14 = sbr.rel (!%p12_p4) target bundleno = 1 (0x1), region = 74 }

// kernel: resnet20_forward.19
= control target key start
LH: loop header
LB: loop body
LE: loop exit
PB: predicated region body
PF: predicated region fallthrough
CT: control target
= control target key end

     0   :  { %12 = vsyncpa [#allocation4], 0  ;;  %s3598_s0 = inlined_call_operand.vmem [shape: bf16[2,6,256], index: 0, kind: input, shape index: {}]   ;;  %s3599_s1 = inlined_call_operand.vmem [shape: bf16[3,256,256], index: 1, kind: input, shape index: {}]   ;;  %s3600_s2 = inlined_call_operand.vmem [shape: f32[1,256], index: 2, kind: input, shape index: {}]   ;;  %s3601_s3 = inlined_call_operand.vmem [shape: bf16[3,256,256], index: 3, kind: input, shape index: {}]   ;;  %s3602_s4 = inlined_call_operand.vmem [shape: f32[1,256], index: 4, kind: input, shape index: {}]   ;;  %s3603_s5 = inlined_call_operand.vmem [shape: f32[256,100], index: 5, kind: input, shape index: {}]   ;;  %s3604_s6 = inlined_call_operand.vmem [shape: f32[1,100], index: 6, kind: input, shape index: {}]   ;;  %s3605_s7 = inlined_call_operand.hbm [shape: f32[2,1,100], index: 7, kind: output, shape index: {}]  }
   0x1   :  { %14 = vsyncpa [#allocation4 + $0x1], 0  ;;  %s2806_s24 = smov 0   ;;  %s2808_s25 = smov 0  }
   0x2   :  { %s2810_s26 = smov 0   ;;  %s2812_s27 = smov 0  }
   0x3 LB: > { %s2827_s28 = sadd.s32 4294967295, %s2762_s27   ;;  %s1997_s29 = sadd.s32 4294967294, %s2762_s27   ;;  %s2762_s27 = sphi %s2812_s27, %s3611_s27   ;;  %s2758_s26 = sphi %s2810_s26, %s3610_s26   ;;  %s2754_s25 = sphi %s2808_s25, %s3609_s25   ;;  %s2750_s24 = sphi %s2806_s24, %s3608_s24  }
   0x4   : > { %s2831_s30 = sadd.s32 1, %s2762_s27   ;;  %s179_s8 = sadd.s32 1, %s2758_s26 }
   0x5   : > { %s176_s9 = ssub.s32 %s2762_s27, %s2831_s30  ;;  %p189_p0 = scmp.ne.s32.totalorder %s2758_s26, %s2754_s25 }
   0x6   : > { %p177_p1 = scmp.eq.s32.totalorder %s176_s9, 0  ;;  %p190_p2 = scmp.eq.s32.totalorder %s2827_s28, 1 }
   0x7   : > { %p195_p3 = scmp.ne.s32.totalorder %s2754_s25, %s2750_s24  ;;  %p196_p4 = scmp.eq.s32.totalorder %s1997_s29, 1 }
   0x8   : > { %s2842_s10 = scalar_select %p177_p1, %s2758_s26, %s179_s8  }
   0x9   : > { %p2844_p5 = por %p190_p2, %p189_p0  ;;  %p2848_p6 = por %p196_p4, %p195_p3 }
   0xa   : > { %p2000_p7 = scmp.ge.s32.totalorder %s2762_s27, 1  ;;  %p240_p8 = scmp.lt.s32.totalorder %s2762_s27, 3 }
   0xc   : > { %p241_p9 = pnand %p2000_p7, %p240_p8 }
   0xd   : > { %p271_p10 = scmp.lt.s32.totalorder (!%p241_p9), %s2827_s28, 1  ;;  %s2329_s29 = sshll.u32 (!%p241_p9), %s2827_s28, 4 }
   0xe   : > { %244 = sbr.rel (%p241_p9) target bundleno = 862 (0x35e), region = 48  ;;  %s1940_s15 = scalar_lea.hbm (!%p241_p9), %s3605_s7, %s2329_s29 }
   0xf   : > { %s2765_s19 = smov (!%p241_p9), [#allocation3]  }
  0x10   : > { %s2706_s20 = sshll.u32 (!%p241_p9), %s2765_s19, 4  ;;  %s2707_s20 = int_to_ptr.vmem [resolvable:$false] %s2706_s20 }
  0x13   : > { %v2408_v0 = vld [vmem:[%s3599_s1 + $0x174] ss:$8 sps:$4 sm:$0xff]   ;;  %v2412_v2 = vld [vmem:[%s3599_s1 + $0x170] ss:$8 sps:$4 sm:$0xff]   ;;  %v2414_v4 = vld [vmem:[%s3599_s1 + $0x164] ss:$8 sps:$4 sm:$0xff]  }
  0x14   : > { %v2410_v1 = vld [vmem:[%s3599_s1 + $0x74] ss:$8 sps:$4 sm:$0xff]   ;;  %525 = vmatprep.subr.bf16.mxu0 %v2408_v0  ;;  %v2413_v3 = vld [vmem:[%s3599_s1 + $0x70] ss:$8 sps:$4 sm:$0xff]   ;;  %v2416_v5 = vld [vmem:[%s3599_s1 + $0x64] ss:$8 sps:$4 sm:$0xff]  }
  0x15   : > { %733 = vmatprep.subr.bf16.mxu1 %v2410_v1  ;;  %526 = vmatpush1.bf16.msra.mxu0 %v2412_v2  ;;  %v2418_v6 = vld [vmem:[%s3599_s1 + $0x160] ss:$8 sps:$4 sm:$0xff]   ;;  %v2420_v8 = vld [vmem:[%s3599_s1 + $0x154] ss:$8 sps:$4 sm:$0xff]   ;;  %v2424_v10 = vld [vmem:[%s3599_s1 + $0x150] ss:$8 sps:$4 sm:$0xff]  }
  0x16   : > { %734 = vmatpush1.bf16.msra.mxu1 %v2413_v3  ;;  %527 = vmatprep.subr.bf16.mxu0 %v2414_v4  ;;  %v2419_v7 = vld [vmem:[%s3599_s1 + $0x60] ss:$8 sps:$4 sm:$0xff]   ;;  %v2422_v9 = vld [vmem:[%s3599_s1 + $0x54] ss:$8 sps:$4 sm:$0xff]   ;;  %v2425_v11 = vld [vmem:[%s3599_s1 + $0x50] ss:$8 sps:$4 sm:$0xff]  }
  0x17   : > { %735 = vmatprep.subr.bf16.mxu1 %v2416_v5  ;;  %v2426_v12 = vld [vmem:[%s3599_s1 + $0x144] ss:$8 sps:$4 sm:$0xff]   ;;  %v2430_v14 = vld [vmem:[%s3599_s1 + $0x140] ss:$8 sps:$4 sm:$0xff]   ;;  %v2432_v16 = vld [vmem:[%s3599_s1 + $0x134] ss:$8 sps:$4 sm:$0xff]  }
  0x18   : > { %v2428_v13 = vld [vmem:[%s3599_s1 + $0x44] ss:$8 sps:$4 sm:$0xff]   ;;  %v2431_v15 = vld [vmem:[%s3599_s1 + $0x40] ss:$8 sps:$4 sm:$0xff]   ;;  %v2434_v17 = vld [vmem:[%s3599_s1 + $0x34] ss:$8 sps:$4 sm:$0xff]  }
  0x19   : > { %528 = vmatpush1.bf16.msra.mxu0 %v2418_v6  ;;  %v2436_v18 = vld [vmem:[%s3599_s1 + $0x130] ss:$8 sps:$4 sm:$0xff]   ;;  %v2438_v20 = vld [vmem:[%s3599_s1 + $0x124] ss:$8 sps:$4 sm:$0xff]   ;;  %v2442_v22 = vld [vmem:[%s3599_s1 + $0x120] ss:$8 sps:$4 sm:$0xff]  }
  0x1a   : > { %736 = vmatpush1.bf16.msra.mxu1 %v2419_v7  ;;  %529 = vmatprep.subr.bf16.mxu0 %v2420_v8  ;;  %v2437_v19 = vld [vmem:[%s3599_s1 + $0x30] ss:$8 sps:$4 sm:$0xff]   ;;  %v2440_v21 = vld [vmem:[%s3599_s1 + $0x24] ss:$8 sps:$4 sm:$0xff]   ;;  %v2443_v23 = vld [vmem:[%s3599_s1 + $0x20] ss:$8 sps:$4 sm:$0xff]  }
  0x1b   : > { %737 = vmatprep.subr.bf16.mxu1 %v2422_v9  ;;  %v2444_v24 = vld [vmem:[%s3599_s1 + $0x114] ss:$8 sps:$4 sm:$0xff]   ;;  %v2448_v26 = vld [vmem:[%s3599_s1 + $0x110] ss:$8 sps:$4 sm:$0xff]   ;;  %v2450_v28 = vld [vmem:[%s3599_s1 + $0x104] ss:$8 sps:$4 sm:$0xff]  }
  0x1c   : > { %v2446_v25 = vld [vmem:[%s3599_s1 + $0x14] ss:$8 sps:$4 sm:$0xff]   ;;  %v2449_v27 = vld [vmem:[%s3599_s1 + $0x10] ss:$8 sps:$4 sm:$0xff]   ;;  %v2452_v29 = vld [vmem:[%s3599_s1 + $0x4] ss:$8 sps:$4 sm:$0xff]  }
  0x1d   : > { %530 = vmatpush1.bf16.msra.mxu0 %v2424_v10  ;;  %v2454_v30 = vld [vmem:[%s3599_s1 + $0x100] ss:$8 sps:$4 sm:$0xff]   ;;  %v2456_v32 = vld [vmem:[%s3599_s1 + $0x1f4] ss:$8 sps:$4 sm:$0xff]   ;;  %v2460_v34 = vld [vmem:[%s3599_s1 + $0x1f0] ss:$8 sps:$4 sm:$0xff]  }
  0x1e   : > { %738 = vmatpush1.bf16.msra.mxu1 %v2425_v11  ;;  %531 = vmatprep.subr.bf16.mxu0 %v2426_v12  ;;  %v2455_v31 = vld [vmem:[%s3599_s1] ss:$8 sps:$4 sm:$0xff]   ;;  %v2458_v33 = vld [vmem:[%s3599_s1 + $0xf4] ss:$8 sps:$4 sm:$0xff]   ;;  %v2461_v35 = vld [vmem:[%s3599_s1 + $0xf0] ss:$8 sps:$4 sm:$0xff]  }
  0x1f   : > { %739 = vmatprep.subr.bf16.mxu1 %v2428_v13  ;;  %v2462_v36 = vld [vmem:[%s3599_s1 + $0x1e4] ss:$8 sps:$4 sm:$0xff]   ;;  %s272_s17 = scalar_select %p271_p10, %s2827_s28, 1  ;;  %v2466_v38 = vld [vmem:[%s3599_s1 + $0x1e0] ss:$8 sps:$4 sm:$0xff]   ;;  %vm1809_vm0 = vcmask 1043456  }
  0x20   : > { %v2464_v37 = vld [vmem:[%s3599_s1 + $0xe4] ss:$8 sps:$4 sm:$0xff]   ;;  %v2467_v39 = vld [vmem:[%s3599_s1 + $0xe0] ss:$8 sps:$4 sm:$0xff]   ;;  %v2468_v40 = vld [vmem:[%s3599_s1 + $0x1d4] ss:$8 sps:$4 sm:$0xff]  }
  0x21   : > { %532 = vmatpush1.bf16.msra.mxu0 %v2430_v14  ;;  %s2332_s9 = sshll.u32 %s272_s17, 3  ;;  %v2470_v41 = vld [vmem:[%s3599_s1 + $0xd4] ss:$8 sps:$4 sm:$0xff]   ;;  %v2472_v42 = vld [vmem:[%s3599_s1 + $0x1d0] ss:$8 sps:$4 sm:$0xff]   ;;  %vm1927_vm1 = vcmask 811008  }
  0x22   : > { %740 = vmatpush1.bf16.msra.mxu1 %v2431_v15  ;;  %533 = vmatprep.subr.bf16.mxu0 %v2432_v16  ;;  %v2473_v43 = vld [vmem:[%s3599_s1 + $0xd0] ss:$8 sps:$4 sm:$0xff]   ;;  %s2991_s22 = scalar_lea.vmem %s3598_s0, %s2332_s9  ;;  %v2474_v44 = vld [vmem:[%s3599_s1 + $0x1c4] ss:$8 sps:$4 sm:$0xff]   ;;  %v2478_v46 = vld [vmem:[%s3599_s1 + $0x1c0] ss:$8 sps:$4 sm:$0xff]  }
  0x23   : > { %741 = vmatprep.subr.bf16.mxu1 %v2434_v17  ;;  %v2476_v45 = vld [vmem:[%s3599_s1 + $0xc4] ss:$8 sps:$4 sm:$0xff]   ;;  %v2479_v50 = vld [vmem:[%s3599_s1 + $0xc0] ss:$8 sps:$4 sm:$0xff]   ;;  %v2480_v51 = vld [vmem:[%s3599_s1 + $0x1b4] ss:$8 sps:$4 sm:$0xff]  }
  0x24   : > { %v277_v47 = vld [vmem:[%s2991_s22] sm:$0x77]  ;;  %v2482_v53 = vld [vmem:[%s3599_s1 + $0xb4] ss:$8 sps:$4 sm:$0xff]   ;;  %v2484_v56 = vld [vmem:[%s3599_s1 + $0x1b0] ss:$8 sps:$4 sm:$0xff]  }
  0x25   : > { %534 = vmatpush1.bf16.msra.mxu0 %v2436_v18  ;;  %v2036_v48 = vcombine.high %v277_v47, %v277_v47  ;;  %v276_v49 = vld [vmem:[%s2991_s22] sm:$0x33]  ;;  %v2485_v57 = vld [vmem:[%s3599_s1 + $0xb0] ss:$8 sps:$4 sm:$0xff]   ;;  %v2035_v0 = vcombine.low %v277_v47, %v277_v47  ;;  %v2492_v1 = vld [vmem:[%s3599_s1 + $0x194] ss:$8 sps:$4 sm:$0xff]  }
  0x26   : > { %742 = vmatpush1.bf16.msra.mxu1 %v2437_v19  ;;  %535 = vmatprep.subr.bf16.mxu0 %v2438_v20  ;;  %v2070_v52 = vcombine.high %v276_v49, %v276_v49  ;;  %v2486_v59 = vld [vmem:[%s3599_s1 + $0x1a4] ss:$8 sps:$4 sm:$0xff]   ;;  %v2490_v62 = vld [vmem:[%s3599_s1 + $0x1a0] ss:$8 sps:$4 sm:$0xff]   ;;  %v2494_v2 = vld [vmem:[%s3599_s1 + $0x94] ss:$8 sps:$4 sm:$0xff]   ;;  %v2069_v13 = vcombine.low %v276_v49, %v276_v49 }
  0x27   : > { %743 = vmatprep.subr.bf16.mxu1 %v2440_v21  ;;  %v357_v54 = vshrl.u32 %v2036_v48, 16  ;;  %v359_v55 = vshll.u32 %v2036_v48, 16  ;;  %v2488_v60 = vld [vmem:[%s3599_s1 + $0xa4] ss:$8 sps:$4 sm:$0xff]   ;;  %v2491_v63 = vld [vmem:[%s3599_s1 + $0xa0] ss:$8 sps:$4 sm:$0xff]  }
  0x28   : > { %765 = vmatprep.mubr.bf16.mxu1 %v2070_v52  ;;  %v2496_v3 = vld [vmem:[%s3599_s1 + $0x190] ss:$8 sps:$4 sm:$0xff]   ;;  %v352_v5 = vshll.u32 %v2035_v0, 16  ;;  %v2498_v6 = vld [vmem:[%s3599_s1 + $0x184] ss:$8 sps:$4 sm:$0xff]   ;;  %v350_v9 = vshrl.u32 %v2035_v0, 16 }
  0x29   : > { %536 = vmatpush1.bf16.msra.mxu0 %v2442_v22  ;;  %v361_v58 = vrot.slane %v359_v55, 1  ;;  %v2497_v4 = vld [vmem:[%s3599_s1 + $0x90] ss:$8 sps:$4 sm:$0xff]   ;;  %v2500_v7 = vld [vmem:[%s3599_s1 + $0x84] ss:$8 sps:$4 sm:$0xff]   ;;  %s2708_s28 = scalar_lea.vmem %s2707_s20, 32 }
  0x2a   : > { %744 = vmatpush1.bf16.msra.mxu1 %v2443_v23  ;;  %537 = vmatprep.subr.bf16.mxu0 %v2444_v24  ;;  %v2502_v8 = vld [vmem:[%s3599_s1 + $0x180] ss:$8 sps:$4 sm:$0xff]   ;;  %v354_v10 = vrot.slane %v352_v5, 1  ;;  %v2510_v12 = vld [vmem:[%s3599_s1 + $0x274] ss:$8 sps:$4 sm:$0xff]  }
  0x2b   : > { %745 = vmatprep.subr.bf16.mxu1 %v2446_v25  ;;  %v362_v61 = vor.u32 %v361_v58, %v357_v54  ;;  %v2503_v11 = vld [vmem:[%s3599_s1 + $0x80] ss:$8 sps:$4 sm:$0xff]   ;;  %v2508_v15 = vld [vmem:[%s3599_s1 + $0x270] ss:$8 sps:$4 sm:$0xff]   ;;  %v2513_v16 = vld [vmem:[%s3599_s1 + $0x264] ss:$8 sps:$4 sm:$0xff]  }
  0x2c   : > { %v355_v14 = vor.u32 %v354_v10, %v350_v9  ;;  %v3065_v17 = vld [vmem:[%s2991_s22] sm:$0x66]  ;;  %v2516_v20 = vld [vmem:[%s3599_s1 + $0x254] ss:$8 sps:$4 sm:$0xff]   ;;  %v2514_v22 = vld [vmem:[%s3599_s1 + $0x250] ss:$8 sps:$4 sm:$0xff]  }
  0x2d   : > { %538 = vmatpush1.bf16.msra.mxu0 %v2448_v26  ;;  %557 = vmatprep.mubr.bf16.mxu0 %v362_v61  ;;  %v2511_v18 = vld [vmem:[%s3599_s1 + $0x260] ss:$8 sps:$4 sm:$0xff]   ;;  %v2136_v19 = vcombine.high %v3065_v17, %v3065_v17  ;;  %v2519_v23 = vld [vmem:[%s3599_s1 + $0x244] ss:$8 sps:$4 sm:$0xff]   ;;  %v2522_v25 = vld [vmem:[%s3599_s1 + $0x234] ss:$8 sps:$4 sm:$0xff]   ;;  %v2135_v48 = vcombine.low %v3065_v17, %v3065_v17 }
  0x2e   : > { %746 = vmatpush1.bf16.msra.mxu1 %v2449_v27  ;;  %539 = vmatprep.subr.bf16.mxu0 %v2450_v28  ;;  %v2517_v24 = vld [vmem:[%s3599_s1 + $0x240] ss:$8 sps:$4 sm:$0xff]   ;;  %v2520_v26 = vld [vmem:[%s3599_s1 + $0x230] ss:$8 sps:$4 sm:$0xff]   ;;  %v2525_v27 = vld [vmem:[%s3599_s1 + $0x224] ss:$8 sps:$4 sm:$0xff]  }
  0x2f   : > { %747 = vmatprep.subr.bf16.mxu1 %v2452_v29  ;;  %v813_v21 = vrot.slane %v2136_v19, 1  ;;  %v2523_v28 = vld [vmem:[%s3599_s1 + $0x220] ss:$8 sps:$4 sm:$0xff]   ;;  %v2528_v29 = vld [vmem:[%s3599_s1 + $0x214] ss:$8 sps:$4 sm:$0xff]  }
  0x30   : > { %v2555_v47 = vld [vmem:[%s3599_s1 + $0x284] ss:$8 sps:$4 sm:$0xff]   ;;  %v2553_v49 = vld [vmem:[%s3599_s1 + $0x280] ss:$8 sps:$4 sm:$0xff]   ;;  %v2560_v52 = vld [vmem:[%s3601_s3 + $0x74] ss:$8 sps:$4 sm:$0xff]  }
  0x31   : > { %540 = vmatpush1.bf16.msra.mxu0 %v2454_v30  ;;  %v2526_v30 = vld [vmem:[%s3599_s1 + $0x210] ss:$8 sps:$4 sm:$0xff]   ;;  %v2566_v55 = vld [vmem:[%s3601_s3 + $0x174] ss:$8 sps:$4 sm:$0xff]   ;;  %v2584_v0 = vld [vmem:[%s3601_s3 + $0x144] ss:$8 sps:$4 sm:$0xff]  }
  0x32   : > { %748 = vmatpush1.bf16.msra.mxu1 %v2455_v31  ;;  %541 = vmatprep.subr.bf16.mxu0 %v2456_v32  ;;  %v2531_v31 = vld [vmem:[%s3599_s1 + $0x204] ss:$8 sps:$4 sm:$0xff]   ;;  %v2529_v32 = vld [vmem:[%s3599_s1 + $0x200] ss:$8 sps:$4 sm:$0xff]   ;;  %v2564_v54 = vld [vmem:[%s3601_s3 + $0x170] ss:$8 sps:$4 sm:$0xff]  }
  0x33   : > { %749 = vmatprep.subr.bf16.mxu1 %v2458_v33  ;;  %v2534_v33 = vld [vmem:[%s3599_s1 + $0x2f4] ss:$8 sps:$4 sm:$0xff]   ;;  %v2567_v61 = vld [vmem:[%s3601_s3 + $0x50] ss:$8 sps:$4 sm:$0xff]   ;;  %v2585_v9 = vld [vmem:[%s3601_s3 + $0x20] ss:$8 sps:$4 sm:$0xff]  }
  0x34   : > { %v2569_v58 = vld [vmem:[%s3601_s3 + $0x54] ss:$8 sps:$4 sm:$0xff]   ;;  %v2579_v5 = vld [vmem:[%s3601_s3 + $0x30] ss:$8 sps:$4 sm:$0xff]   ;;  %v2597_v17 = vld [vmem:[%s3601_s3] ss:$8 sps:$4 sm:$0xff]  }
  0x35   : > { %542 = vmatpush2.bf16.msra.mxu0 %v2460_v34  ;;  %v2532_v34 = vld [vmem:[%s3599_s1 + $0x2f0] ss:$8 sps:$4 sm:$0xff]   ;;  %v2593_v10 = vld [vmem:[%s3601_s3 + $0x14] ss:$8 sps:$4 sm:$0xff]   ;;  %v2606_v19 = vld [vmem:[%s3601_s3 + $0x100] ss:$8 sps:$4 sm:$0xff]  }
  0x36   : > { %750 = vmatpush2.bf16.msra.mxu1 %v2461_v35  ;;  %543 = vmatprep.subr.bf16.mxu0 %v2462_v36  ;;  %v2537_v35 = vld [vmem:[%s3599_s1 + $0x2e4] ss:$8 sps:$4 sm:$0xff]   ;;  %v2535_v36 = vld [vmem:[%s3599_s1 + $0x2e0] ss:$8 sps:$4 sm:$0xff]  }
  0x37   : > { %751 = vmatprep.subr.bf16.mxu1 %v2464_v37  ;;  %v2540_v37 = vld [vmem:[%s3599_s1 + $0x2d4] ss:$8 sps:$4 sm:$0xff]  }
  0x39   : > { %544 = vmatpush2.bf16.msra.mxu0 %v2466_v38  ;;  %v2538_v38 = vld [vmem:[%s3599_s1 + $0x2d0] ss:$8 sps:$4 sm:$0xff]  }
  0x3a   : > { %752 = vmatpush2.bf16.msra.mxu1 %v2467_v39  ;;  %545 = vmatprep.subr.bf16.mxu0 %v2468_v40  ;;  %v2543_v39 = vld [vmem:[%s3599_s1 + $0x2c4] ss:$8 sps:$4 sm:$0xff]   ;;  %v2541_v40 = vld [vmem:[%s3599_s1 + $0x2c0] ss:$8 sps:$4 sm:$0xff]  }
  0x3b   : > { %753 = vmatprep.subr.bf16.mxu1 %v2470_v41  ;;  %v2546_v41 = vld [vmem:[%s3599_s1 + $0x2b4] ss:$8 sps:$4 sm:$0xff]  }
  0x3d   : > { %546 = vmatpush2.bf16.msra.mxu0 %v2472_v42  ;;  %v2544_v42 = vld [vmem:[%s3599_s1 + $0x2b0] ss:$8 sps:$4 sm:$0xff]  }
  0x3e   : > { %754 = vmatpush2.bf16.msra.mxu1 %v2473_v43  ;;  %547 = vmatprep.subr.bf16.mxu0 %v2474_v44  ;;  %v2549_v43 = vld [vmem:[%s3599_s1 + $0x2a4] ss:$8 sps:$4 sm:$0xff]   ;;  %v2547_v44 = vld [vmem:[%s3599_s1 + $0x2a0] ss:$8 sps:$4 sm:$0xff]  }
  0x3f   : > { %755 = vmatprep.subr.bf16.mxu1 %v2476_v45  ;;  %v2552_v45 = vld [vmem:[%s3599_s1 + $0x294] ss:$8 sps:$4 sm:$0xff]  }
  0x41   : > { %548 = vmatpush2.bf16.msra.mxu0 %v2478_v46  ;;  %v2550_v46 = vld [vmem:[%s3599_s1 + $0x290] ss:$8 sps:$4 sm:$0xff]  }
  0x42   : > { %756 = vmatpush2.bf16.msra.mxu1 %v2479_v50  ;;  %549 = vmatprep.subr.bf16.mxu0 %v2480_v51  ;;  %v812_v50 = vrot.slane %v2135_v48, 1  ;;  %v2558_v51 = vld [vmem:[%s3601_s3 + $0x70] ss:$8 sps:$4 sm:$0xff]   ;;  %v2645_v48 = vld [vmem:[%s3601_s3 + $0x80] ss:$8 sps:$4 sm:$0xff]  }
  0x43   : > { %757 = vmatprep.subr.bf16.mxu1 %v2482_v53  ;;  %v2563_v53 = vld [vmem:[%s3601_s3 + $0x64] ss:$8 sps:$4 sm:$0xff]  }
  0x45   : > { %550 = vmatpush2.bf16.msra.mxu0 %v2484_v56  ;;  %v2561_v56 = vld [vmem:[%s3601_s3 + $0x60] ss:$8 sps:$4 sm:$0xff]  }
  0x46   : > { %758 = vmatpush2.bf16.msra.mxu1 %v2485_v57  ;;  %551 = vmatprep.subr.bf16.mxu0 %v2486_v59  ;;  %v2572_v57 = vld [vmem:[%s3601_s3 + $0x164] ss:$8 sps:$4 sm:$0xff]   ;;  %v2570_v59 = vld [vmem:[%s3601_s3 + $0x160] ss:$8 sps:$4 sm:$0xff]  }
  0x47   : > { %759 = vmatprep.subr.bf16.mxu1 %v2488_v60  ;;  %v2578_v60 = vld [vmem:[%s3601_s3 + $0x154] ss:$8 sps:$4 sm:$0xff]  }
  0x49   : > { %552 = vmatpush2.bf16.msra.mxu0 %v2490_v62  ;;  %v2575_v62 = vld [vmem:[%s3601_s3 + $0x44] ss:$8 sps:$4 sm:$0xff]  }
  0x4a   : > { %760 = vmatpush2.bf16.msra.mxu1 %v2491_v63  ;;  %553 = vmatprep.subr.bf16.mxu0 %v2492_v1  ;;  %v2576_v63 = vld [vmem:[%s3601_s3 + $0x150] ss:$8 sps:$4 sm:$0xff]   ;;  %v2573_v1 = vld [vmem:[%s3601_s3 + $0x40] ss:$8 sps:$4 sm:$0xff]  }
  0x4b   : > { %761 = vmatprep.subr.bf16.mxu1 %v2494_v2  ;;  %v2581_v2 = vld [vmem:[%s3601_s3 + $0x34] ss:$8 sps:$4 sm:$0xff]  }
  0x4d   : > { %554 = vmatpush2.bf16.msra.mxu0 %v2496_v3  ;;  %v2582_v3 = vld [vmem:[%s3601_s3 + $0x140] ss:$8 sps:$4 sm:$0xff]  }
  0x4e   : > { %762 = vmatpush2.bf16.msra.mxu1 %v2497_v4  ;;  %555 = vmatprep.subr.bf16.mxu0 %v2498_v6  ;;  %v2590_v4 = vld [vmem:[%s3601_s3 + $0x134] ss:$8 sps:$4 sm:$0xff]   ;;  %v2587_v6 = vld [vmem:[%s3601_s3 + $0x24] ss:$8 sps:$4 sm:$0xff]  }
  0x4f   : > { %763 = vmatprep.subr.bf16.mxu1 %v2500_v7  ;;  %v2588_v7 = vld [vmem:[%s3601_s3 + $0x130] ss:$8 sps:$4 sm:$0xff]  }
  0x51   : > { %556 = vmatpush2.bf16.msra.mxu0 %v2502_v8  ;;  %v2596_v8 = vld [vmem:[%s3601_s3 + $0x124] ss:$8 sps:$4 sm:$0xff]  }
  0x52   : > { %764 = vmatpush2.bf16.msra.mxu1 %v2503_v11  ;;  %976 = vmatprep.subr.bf16.mxu0 %v2510_v12  ;;  %v2594_v11 = vld [vmem:[%s3601_s3 + $0x120] ss:$8 sps:$4 sm:$0xff]   ;;  %v2602_v12 = vld [vmem:[%s3601_s3 + $0x114] ss:$8 sps:$4 sm:$0xff]  }
  0x53   : > { %1298 = vmatprep.subr.bf16.mxu1 %v2566_v55 }
  0x54   : > { %558 = vmatmul.mubr.bf16.vlgmr.msra.gmra.mxu0 %v355_v14  ;;  %v2599_v14 = vld [vmem:[%s3601_s3 + $0x4] ss:$8 sps:$4 sm:$0xff]  }
  0x55   : > { %766 = vmatmul.mubr.bf16.vlgmr.msra.gmra.mxu1 %v2069_v13  ;;  %977 = vmatpush1.bf16.msra.mxu0 %v2508_v15  ;;  %v2591_v13 = vld [vmem:[%s3601_s3 + $0x10] ss:$8 sps:$4 sm:$0xff]  }
  0x56   : > { %978 = vmatprep.subr.bf16.mxu0 %v2513_v16  ;;  %1008 = vmatprep.mubr.bf16.mxu0 %v813_v21  ;;  %v2600_v15 = vld [vmem:[%s3601_s3 + $0x110] ss:$8 sps:$4 sm:$0xff]   ;;  %v2608_v16 = vld [vmem:[%s3601_s3 + $0x104] ss:$8 sps:$4 sm:$0xff]  }
  0x57   : > { %1299 = vmatpush1.bf16.msra.mxu1 %v2564_v54  ;;  %v2603_v21 = vld [vmem:[%s3601_s3 + $0xf0] ss:$8 sps:$4 sm:$0xff]  }
  0x58   : > { %1300 = vmatprep.subr.bf16.mxu1 %v2572_v57 }
  0x59   : > { %979 = vmatpush1.bf16.msra.mxu0 %v2511_v18  ;;  %v2605_v18 = vld [vmem:[%s3601_s3 + $0xf4] ss:$8 sps:$4 sm:$0xff]  }
  0x5a   : > { %980 = vmatprep.subr.bf16.mxu0 %v2516_v20  ;;  %v2614_v20 = vld [vmem:[%s3601_s3 + $0x1f4] ss:$8 sps:$4 sm:$0xff]  }
  0x5b   : > { %1301 = vmatpush1.bf16.msra.mxu1 %v2570_v59 }
  0x5c   : > { %1302 = vmatprep.subr.bf16.mxu1 %v2578_v60 }
  0x5d   : > { %981 = vmatpush1.bf16.msra.mxu0 %v2514_v22  ;;  %v2611_v22 = vld [vmem:[%s3601_s3 + $0xe4] ss:$8 sps:$4 sm:$0xff]  }
  0x5e   : > { %982 = vmatprep.subr.bf16.mxu0 %v2519_v23  ;;  %v2612_v23 = vld [vmem:[%s3601_s3 + $0x1f0] ss:$8 sps:$4 sm:$0xff]  }
  0x5f   : > { %1303 = vmatpush1.bf16.msra.mxu1 %v2576_v63 }
  0x60   : > { %1304 = vmatprep.subr.bf16.mxu1 %v2584_v0  ;;  %v1019_v0 = vld [vmem:[%s3600_s2] sm:$0x3] }
  0x61   : > { %983 = vmatpush1.bf16.msra.mxu0 %v2517_v24  ;;  %v2620_v24 = vld [vmem:[%s3601_s3 + $0x1e4] ss:$8 sps:$4 sm:$0xff]  }
  0x62   : > { %984 = vmatprep.subr.bf16.mxu0 %v2522_v25  ;;  %v2609_v25 = vld [vmem:[%s3601_s3 + $0xe0] ss:$8 sps:$4 sm:$0xff]  }
  0x63   : > { %1305 = vmatpush1.bf16.msra.mxu1 %v2582_v3 }
  0x64   : > { %1306 = vmatprep.subr.bf16.mxu1 %v2590_v4 }
  0x65   : > { %985 = vmatpush1.bf16.msra.mxu0 %v2520_v26  ;;  %v2617_v26 = vld [vmem:[%s3601_s3 + $0xd4] ss:$8 sps:$4 sm:$0xff]  }
  0x66   : > { %986 = vmatprep.subr.bf16.mxu0 %v2525_v27  ;;  %v2618_v27 = vld [vmem:[%s3601_s3 + $0x1e0] ss:$8 sps:$4 sm:$0xff]  }
  0x67   : > { %1307 = vmatpush1.bf16.msra.mxu1 %v2588_v7 }
  0x68   : > { %1308 = vmatprep.subr.bf16.mxu1 %v2596_v8 }
  0x69   : > { %987 = vmatpush1.bf16.msra.mxu0 %v2523_v28  ;;  %v2615_v28 = vld [vmem:[%s3601_s3 + $0xd0] ss:$8 sps:$4 sm:$0xff]  }
  0x6a   : > { %988 = vmatprep.subr.bf16.mxu0 %v2528_v29  ;;  %v2623_v29 = vld [vmem:[%s3601_s3 + $0xc4] ss:$8 sps:$4 sm:$0xff]  }
  0x6b   : > { %1309 = vmatpush1.bf16.msra.mxu1 %v2594_v11 }
  0x6c   : > { %1310 = vmatprep.subr.bf16.mxu1 %v2602_v12 }
  0x6d   : > { %989 = vmatpush1.bf16.msra.mxu0 %v2526_v30  ;;  %v2621_v30 = vld [vmem:[%s3601_s3 + $0xc0] ss:$8 sps:$4 sm:$0xff]  }
  0x6e   : > { %990 = vmatprep.subr.bf16.mxu0 %v2531_v31  ;;  %v2626_v31 = vld [vmem:[%s3601_s3 + $0x1d4] ss:$8 sps:$4 sm:$0xff]  }
  0x6f   : > { %1311 = vmatpush1.bf16.msra.mxu1 %v2600_v15 }
  0x70   : > { %1312 = vmatprep.subr.bf16.mxu1 %v2608_v16 }
  0x71   : > { %991 = vmatpush1.bf16.msra.mxu0 %v2529_v32  ;;  %v2624_v32 = vld [vmem:[%s3601_s3 + $0x1d0] ss:$8 sps:$4 sm:$0xff]  }
  0x72   : > { %992 = vmatprep.subr.bf16.mxu0 %v2534_v33  ;;  %v2629_v33 = vld [vmem:[%s3601_s3 + $0xb4] ss:$8 sps:$4 sm:$0xff]  }
  0x73   : > { %1313 = vmatpush1.bf16.msra.mxu1 %v2606_v19 }
  0x74   : > { %1314 = vmatprep.subr.bf16.mxu1 %v2614_v20 }
  0x75   : > { %993 = vmatpush2.bf16.msra.mxu0 %v2532_v34  ;;  %v2627_v34 = vld [vmem:[%s3601_s3 + $0xb0] ss:$8 sps:$4 sm:$0xff]  }
  0x76   : > { %994 = vmatprep.subr.bf16.mxu0 %v2537_v35  ;;  %v2632_v35 = vld [vmem:[%s3601_s3 + $0x1c4] ss:$8 sps:$4 sm:$0xff]  }
  0x77   : > { %1315 = vmatpush2.bf16.msra.mxu1 %v2612_v23 }
  0x78   : > { %1316 = vmatprep.subr.bf16.mxu1 %v2620_v24 }
  0x79   : > { %995 = vmatpush2.bf16.msra.mxu0 %v2535_v36  ;;  %v2764_v36 = vmov 0.0  }
  0x7a   : > { %996 = vmatprep.subr.bf16.mxu0 %v2540_v37  ;;  %1035 = vst [vmem:[#allocation2] sm:$0x3f] %v2764_v36  ;;  %1036 = vst [vmem:[#allocation2 + $0x8] sm:$0x3f] %v2764_v36  ;;  %v2630_v37 = vld [vmem:[%s3601_s3 + $0x1c0] ss:$8 sps:$4 sm:$0xff]  }
  0x7b   : > { %1317 = vmatpush2.bf16.msra.mxu1 %v2618_v27 }
  0x7c   : > { %1318 = vmatprep.subr.bf16.mxu1 %v2626_v31 }
  0x7d   : > { %997 = vmatpush2.bf16.msra.mxu0 %v2538_v38  ;;  %v2635_v38 = vld [vmem:[%s3601_s3 + $0xa4] ss:$8 sps:$4 sm:$0xff]  }
  0x7e   : > { %998 = vmatprep.subr.bf16.mxu0 %v2543_v39  ;;  %v2633_v39 = vld [vmem:[%s3601_s3 + $0xa0] ss:$8 sps:$4 sm:$0xff]  }
  0x7f   : > { %1319 = vmatpush2.bf16.msra.mxu1 %v2624_v32 }
  0x80   : > { %1320 = vmatprep.subr.bf16.mxu1 %v2632_v35  ;;  %v2654_v35 = vld [vmem:[%s3601_s3 + $0x270] ss:$8 sps:$4 sm:$0xff]  }
  0x81   : > { %999 = vmatpush2.bf16.msra.mxu0 %v2541_v40  ;;  %v2638_v40 = vld [vmem:[%s3601_s3 + $0x1b4] ss:$8 sps:$4 sm:$0xff]  }
  0x82   : > { %1000 = vmatprep.subr.bf16.mxu0 %v2546_v41  ;;  %v2636_v41 = vld [vmem:[%s3601_s3 + $0x1b0] ss:$8 sps:$4 sm:$0xff]  }
  0x83   : > { %1321 = vmatpush2.bf16.msra.mxu1 %v2630_v37  ;;  %v2659_v37 = vld [vmem:[%s3601_s3 + $0x264] ss:$8 sps:$4 sm:$0xff]  }
  0x84   : > { %1322 = vmatprep.subr.bf16.mxu1 %v2638_v40  ;;  %v2662_v40 = vld [vmem:[%s3601_s3 + $0x254] ss:$8 sps:$4 sm:$0xff]  }
  0x85   : > { %1001 = vmatpush2.bf16.msra.mxu0 %v2544_v42  ;;  %v2639_v42 = vld [vmem:[%s3601_s3 + $0x90] ss:$8 sps:$4 sm:$0xff]  }
  0x86   : > { %1002 = vmatprep.subr.bf16.mxu0 %v2549_v43  ;;  %v2641_v43 = vld [vmem:[%s3601_s3 + $0x94] ss:$8 sps:$4 sm:$0xff]  }
  0x87   : > { %1323 = vmatpush2.bf16.msra.mxu1 %v2636_v41  ;;  %v2660_v41 = vld [vmem:[%s3601_s3 + $0x250] ss:$8 sps:$4 sm:$0xff]  }
  0x89   : > { %1003 = vmatpush2.bf16.msra.mxu0 %v2547_v44  ;;  %v2642_v44 = vld [vmem:[%s3601_s3 + $0x1a0] ss:$8 sps:$4 sm:$0xff]  }
  0x8a   : > { %1004 = vmatprep.subr.bf16.mxu0 %v2552_v45  ;;  %v2644_v45 = vld [vmem:[%s3601_s3 + $0x1a4] ss:$8 sps:$4 sm:$0xff]  }
  0x8b   : > { %1324 = vmatprep.subr.bf16.mxu1 %v2644_v45  ;;  %v2666_v45 = vld [vmem:[%s3601_s3 + $0x230] ss:$8 sps:$4 sm:$0xff]  }
  0x8c   : > { %1325 = vmatpush2.bf16.msra.mxu1 %v2642_v44  ;;  %v2668_v44 = vld [vmem:[%s3601_s3 + $0x234] ss:$8 sps:$4 sm:$0xff]  }
  0x8d   : > { %1005 = vmatpush2.bf16.msra.mxu0 %v2550_v46  ;;  %v2647_v46 = vld [vmem:[%s3601_s3 + $0x84] ss:$8 sps:$4 sm:$0xff]  }
  0x8e   : > { %1006 = vmatprep.subr.bf16.mxu0 %v2555_v47  ;;  %v2650_v47 = vld [vmem:[%s3601_s3 + $0x194] ss:$8 sps:$4 sm:$0xff]  }
  0x8f   : > { %1326 = vmatprep.subr.bf16.mxu1 %v2650_v47  ;;  %v2669_v47 = vld [vmem:[%s3601_s3 + $0x220] ss:$8 sps:$4 sm:$0xff]  }
  0x91   : > { %1007 = vmatpush2.bf16.msra.mxu0 %v2553_v49  ;;  %v2648_v49 = vld [vmem:[%s3601_s3 + $0x190] ss:$8 sps:$4 sm:$0xff]  }
  0x92   : > { %1499 = vmatprep.subr.bf16.mxu0 %v2560_v52  ;;  %1327 = vmatpush2.bf16.msra.mxu1 %v2648_v49  ;;  %v2656_v52 = vld [vmem:[%s3601_s3 + $0x274] ss:$8 sps:$4 sm:$0xff]   ;;  %v2672_v49 = vld [vmem:[%s3601_s3 + $0x210] ss:$8 sps:$4 sm:$0xff]  }
  0x94   : > { %1009 = vmatmul.mubr.bf16.vlgmr.msra.gmra.mxu0 %v812_v50  ;;  %v2653_v50 = vld [vmem:[%s3601_s3 + $0x184] ss:$8 sps:$4 sm:$0xff]  }
  0x95   : > { %1500 = vmatpush1.bf16.msra.mxu0 %v2558_v51  ;;  %v2651_v51 = vld [vmem:[%s3601_s3 + $0x180] ss:$8 sps:$4 sm:$0xff]   ;;  %1328 = vmatprep.subr.bf16.mxu1 %v2653_v50  ;;  %v2677_v50 = vld [vmem:[%s3601_s3 + $0x204] ss:$8 sps:$4 sm:$0xff]  }
  0x96   : > { %1501 = vmatprep.subr.bf16.mxu0 %v2563_v53  ;;  %1329 = vmatpush2.bf16.msra.mxu1 %v2651_v51  ;;  %v2675_v51 = vld [vmem:[%s3601_s3 + $0x200] ss:$8 sps:$4 sm:$0xff]  }
  0x97   : > { %1739 = vmatprep.subr.bf16.mxu1 %v2656_v52  ;;  %v2680_v52 = vld [vmem:[%s3601_s3 + $0x2f4] ss:$8 sps:$4 sm:$0xff]  }
  0x99   : > { %1502 = vmatpush1.bf16.msra.mxu0 %v2561_v56 }
  0x9a   : > { %1503 = vmatprep.subr.bf16.mxu0 %v2569_v58 }
  0x9d   : > { %1504 = vmatpush1.bf16.msra.mxu0 %v2567_v61  ;;  %v1021_v61 = vlaneseq }
  0x9e   : > { %1505 = vmatprep.subr.bf16.mxu0 %v2575_v62 }
  0x9f   : > { %v3353_v62 = vshrl.u32 %v1021_v61, 7  ;;  %v2690_v61 = vld [vmem:[%s3601_s3 + $0x2b0] ss:$8 sps:$4 sm:$0xff]  }
  0xa1   : > { %1506 = vmatpush1.bf16.msra.mxu0 %v2573_v1  ;;  %v1023_v63 = vsub.s32 0, %v3353_v62  ;;  %v1027_v1 = vsub.s32 1, %v3353_v62 }
  0xa2   : > { %1507 = vmatprep.subr.bf16.mxu0 %v2581_v2 }
  0xa3   : > { %v1024_v3 = vrot.slane %v1019_v0, %v1023_v63  ;;  %v1028_v7 = vrot.slane %v1019_v0, %v1027_v1  ;;  %v2695_v0 = vld [vmem:[%s3601_s3 + $0x2a4] ss:$8 sps:$4 sm:$0xff]  }
  0xa5   : > { %1508 = vmatpush1.bf16.msra.mxu0 %v2579_v5 }
  0xa6   : > { %1509 = vmatprep.subr.bf16.mxu0 %v2587_v6 }
  0xa9   : > { %1510 = vmatpush1.bf16.msra.mxu0 %v2585_v9 }
  0xaa   : > { %1511 = vmatprep.subr.bf16.mxu0 %v2593_v10 }
  0xad   : > { %1512 = vmatpush1.bf16.msra.mxu0 %v2591_v13 }
  0xae   : > { %1513 = vmatprep.subr.bf16.mxu0 %v2599_v14 }
  0xb1   : > { %1514 = vmatpush1.bf16.msra.mxu0 %v2597_v17 }
  0xb2   : > { %1515 = vmatprep.subr.bf16.mxu0 %v2605_v18 }
  0xb5   : > { %1516 = vmatpush2.bf16.msra.mxu0 %v2603_v21 }
  0xb6   : > { %1517 = vmatprep.subr.bf16.mxu0 %v2611_v22 }
  0xb9   : > { %1518 = vmatpush2.bf16.msra.mxu0 %v2609_v25 }
  0xba   : > { %1519 = vmatprep.subr.bf16.mxu0 %v2617_v26 }
  0xbd   : > { %1520 = vmatpush2.bf16.msra.mxu0 %v2615_v28 }
  0xbe   : > { %1521 = vmatprep.subr.bf16.mxu0 %v2623_v29 }
  0xc1   : > { %1522 = vmatpush2.bf16.msra.mxu0 %v2621_v30 }
  0xc2   : > { %1523 = vmatprep.subr.bf16.mxu0 %v2629_v33 }
  0xc5   : > { %1524 = vmatpush2.bf16.msra.mxu0 %v2627_v34 }
  0xc6   : > { %1525 = vmatprep.subr.bf16.mxu0 %v2635_v38 }
  0xc9   : > { %1526 = vmatpush2.bf16.msra.mxu0 %v2633_v39  ;;  %v2657_v39 = vld [vmem:[%s3601_s3 + $0x260] ss:$8 sps:$4 sm:$0xff]  }
  0xca   : > { %1527 = vmatprep.subr.bf16.mxu0 %v2641_v43  ;;  %v2663_v43 = vld [vmem:[%s3601_s3 + $0x240] ss:$8 sps:$4 sm:$0xff]  }
  0xcd   : > { %1528 = vmatpush2.bf16.msra.mxu0 %v2639_v42  ;;  %v2665_v42 = vld [vmem:[%s3601_s3 + $0x244] ss:$8 sps:$4 sm:$0xff]  }
  0xce   : > { %1529 = vmatprep.subr.bf16.mxu0 %v2647_v46  ;;  %v2671_v46 = vld [vmem:[%s3601_s3 + $0x224] ss:$8 sps:$4 sm:$0xff]  }
  0xd1   : > { %1530 = vmatpush2.bf16.msra.mxu0 %v2645_v48  ;;  %v2674_v48 = vld [vmem:[%s3601_s3 + $0x214] ss:$8 sps:$4 sm:$0xff]  }
 0x114   : > { %v559_v53 = vpop.f32.mrf.mxu0 }
 0x115   : > { %v767_v54 = vpop.f32.mrf.mxu1 }
 0x116   : > { %v561_v55 = vpop.f32.mrf.mxu0  ;;  %v768_v2 = vadd.f32 %v767_v54, %v559_v53  ;;  %v2678_v53 = vld [vmem:[%s3601_s3 + $0x2f0] ss:$8 sps:$4 sm:$0xff]   ;;  %v2683_v54 = vld [vmem:[%s3601_s3 + $0x2e4] ss:$8 sps:$4 sm:$0xff]  }
 0x117   : > { %v769_v56 = vpop.f32.mrf.mxu1 }
 0x118   : > { %v563_v57 = vpop.f32.mrf.mxu0  ;;  %v770_v5 = vadd.f32 %v769_v56, %v561_v55  ;;  %v2681_v55 = vld [vmem:[%s3601_s3 + $0x2e0] ss:$8 sps:$4 sm:$0xff]   ;;  %v2686_v56 = vld [vmem:[%s3601_s3 + $0x2d4] ss:$8 sps:$4 sm:$0xff]  }
 0x119   : > { %v771_v58 = vpop.f32.mrf.mxu1  ;;  %v2684_v57 = vld [vmem:[%s3601_s3 + $0x2d0] ss:$8 sps:$4 sm:$0xff]  }
 0x11a   : > { %v564_v59 = vpop.f32.mrf.mxu0  ;;  %v2689_v58 = vld [vmem:[%s3601_s3 + $0x2c4] ss:$8 sps:$4 sm:$0xff]  }
 0x11b   : > { %v772_v60 = vpop.f32.mrf.mxu1  ;;  %v2687_v59 = vld [vmem:[%s3601_s3 + $0x2c0] ss:$8 sps:$4 sm:$0xff]  }
 0x11c   : > { %v2692_v60 = vld [vmem:[%s3601_s3 + $0x2b4] ss:$8 sps:$4 sm:$0xff]  }
 0x154   : > { %v1010_v4 = vpop.f32.mrf.mxu0 }
 0x155   : > { %v1017_v6 = vadd.f32 %v1010_v4, %v768_v2  ;;  %v2693_v2 = vld [vmem:[%s3601_s3 + $0x2a0] ss:$8 sps:$4 sm:$0xff]   ;;  %v2696_v4 = vld [vmem:[%s3601_s3 + $0x290] ss:$8 sps:$4 sm:$0xff]  }
 0x156   : > { %v1012_v8 = vpop.f32.mrf.mxu0 }
 0x157   : > { %v1031_v9 = vadd.f32 %v1024_v3, %v1017_v6  ;;  %v1018_v10 = vadd.f32 %v1012_v8, %v770_v5  ;;  %v2698_v3 = vld [vmem:[%s3601_s3 + $0x294] ss:$8 sps:$4 sm:$0xff]   ;;  %v2701_v5 = vld [vmem:[%s3601_s3 + $0x284] ss:$8 sps:$4 sm:$0xff]  }
 0x158   : > { %v1014_v11 = vpop.f32.mrf.mxu0 }
 0x159   : > { %v1033_v12 = vmax.f32 %v1031_v9, 0.0  ;;  %v1032_v13 = vadd.f32 %v1028_v7, %v1018_v10  ;;  %v2699_v7 = vld [vmem:[%s3601_s3 + $0x280] ss:$8 sps:$4 sm:$0xff]   ;;  %v1855_v10 = vld [vmem:[%s3603_s5 + $0xf8] sm:$0xff] }
 0x15a   : > { %v1015_v14 = vpop.f32.mrf.mxu0  ;;  %v1839_v11 = vld [vmem:[%s3603_s5 + $0x78] sm:$0xff]  ;;  %2333 = vmatprep.subr.mxu0 %v1855_v10 }
 0x15b   : > { %v1039_v15 = vrot.slane %v1033_v12, 7  ;;  %v1034_v16 = vmax.f32 %v1032_v13, 0.0  ;;  %v1854_v12 = vld [vmem:[%s3603_s5 + $0xf0] sm:$0xff]  ;;  %v1853_v14 = vld [vmem:[%s3603_s5 + $0xe8] sm:$0xff] }
 0x15c   : > { %v1838_v13 = vld [vmem:[%s3603_s5 + $0x70] sm:$0xff] }
 0x15d   : > { %1043 = vst [vmem:[#allocation2] sm:$0x1e] %v1039_v15  ;;  %v1040_v17 = vrot.slane %v1034_v16, 7  ;;  %v1837_v15 = vld [vmem:[%s3603_s5 + $0x68] sm:$0xff]  ;;  %v1852_v16 = vld [vmem:[%s3603_s5 + $0xe0] sm:$0xff] }
 0x15f   : > { %1044 = vst [vmem:[#allocation2 + $0x8] sm:$0x1e] %v1040_v17  ;;  %v1836_v17 = vld [vmem:[%s3603_s5 + $0x60] sm:$0xff] }
 0x164   : > { %v1049_v18 = vld [vmem:[#allocation2] sm:$0x1e] }
 0x165   : > { %v1045_v19 = vld [vmem:[#allocation2] sm:$0xf]  ;;  %v1051_v20 = vpack.c.bf16 %v1049_v18, %v1049_v18  ;;  %v1851_v18 = vld [vmem:[%s3603_s5 + $0xd8] sm:$0xff] }
 0x166   : > { %v1046_v21 = vld [vmem:[#allocation2 + $0x8] sm:$0xf]  ;;  %v1047_v26 = vpack.c.bf16 %v1045_v19, %v1045_v19  ;;  %v1053_v6 = vld [vmem:[#allocation2] sm:$0x3c]  ;;  %v1835_v19 = vld [vmem:[%s3603_s5 + $0x58] sm:$0xff] }
 0x167   : > { %v1050_v22 = vld [vmem:[#allocation2 + $0x8] sm:$0x1e]  ;;  %v1048_v23 = vpack.c.bf16 %v1046_v21, %v1046_v21  ;;  %v1125_v25 = vshll.u32 %v1051_v20, 16  ;;  %v1123_v33 = vshrl.u32 %v1051_v20, 16  ;;  %v1055_v8 = vpack.c.bf16 %v1053_v6, %v1053_v6  ;;  %v1850_v20 = vld [vmem:[%s3603_s5 + $0xd0] sm:$0xff] }
 0x168   : > { %v1052_v24 = vpack.c.bf16 %v1050_v22, %v1050_v22  ;;  %v1054_v27 = vld [vmem:[#allocation2 + $0x8] sm:$0x3c]  ;;  %v1834_v21 = vld [vmem:[%s3603_s5 + $0x50] sm:$0xff] }
 0x169   : > { %1531 = vmatprep.mubr.bf16.mxu0 %v1048_v23  ;;  %v1127_v29 = vrot.slane %v1125_v25, 1  ;;  %v1056_v32 = vpack.c.bf16 %v1054_v27, %v1054_v27  ;;  %v1575_v9 = vrot.slane %v1055_v8, 1  ;;  %v1849_v22 = vld [vmem:[%s3603_s5 + $0xc8] sm:$0xff]  ;;  %v1832_v25 = vld [vmem:[%s3603_s5 + $0x40] sm:$0xff]  ;;  %v1831_v27 = vld [vmem:[%s3603_s5 + $0x38] sm:$0xff] }
 0x16a   : > { %v1132_v28 = vshll.u32 %v1052_v24, 16  ;;  %1532 = vmatmul.mubr.bf16.vlgmr.msra.gmra.mxu0 %v1047_v26  ;;  %v1130_v30 = vshrl.u32 %v1052_v24, 16  ;;  %v1833_v23 = vld [vmem:[%s3603_s5 + $0x48] sm:$0xff]  ;;  %v1848_v24 = vld [vmem:[%s3603_s5 + $0xc0] sm:$0xff]  ;;  %v1847_v26 = vld [vmem:[%s3603_s5 + $0xb8] sm:$0xff] }
 0x16b   : > { %v1128_v36 = vor.u32 %v1127_v29, %v1123_v33  ;;  %v1576_v38 = vrot.slane %v1056_v32, 1  ;;  %2334 = vmatpush3.msra.mxu0 %v1839_v11  ;;  %v1830_v29 = vld [vmem:[%s3603_s5 + $0x30] sm:$0xff]  ;;  %v1844_v32 = vld [vmem:[%s3603_s5 + $0xa0] sm:$0xff] }
 0x16c   : > { %v1134_v31 = vrot.slane %v1132_v28, 1  ;;  %2335 = vmatprep.subr.mxu0 %v1854_v12  ;;  %v1846_v28 = vld [vmem:[%s3603_s5 + $0xb0] sm:$0xff]  ;;  %v1828_v33 = vld [vmem:[%s3603_s5 + $0x20] sm:$0xff] }
 0x16d   : > { %2336 = vmatpush3.msra.mxu0 %v1838_v13 }
 0x16e   : > { %v1135_v34 = vor.u32 %v1134_v31, %v1130_v30  ;;  %2337 = vmatprep.subr.mxu0 %v1853_v14  ;;  %v1845_v30 = vld [vmem:[%s3603_s5 + $0xa8] sm:$0xff] }
 0x16f   : > { %2338 = vmatpush3.msra.mxu0 %v1837_v15  ;;  %v1829_v31 = vld [vmem:[%s3603_s5 + $0x28] sm:$0xff] }
 0x170   : > { %1330 = vmatprep.mubr.bf16.mxu1 %v1135_v34  ;;  %2339 = vmatprep.subr.mxu0 %v1852_v16  ;;  %v1843_v34 = vld [vmem:[%s3603_s5 + $0x98] sm:$0xff] }
 0x171   : > { %1331 = vmatmul.mubr.bf16.vlgmr.msra.gmra.mxu1 %v1128_v36  ;;  %2340 = vmatpush3.msra.mxu0 %v1836_v17  ;;  %v1842_v36 = vld [vmem:[%s3603_s5 + $0x90] sm:$0xff] }
 0x172   : > { %1740 = vmatpush1.bf16.msra.mxu1 %v2654_v35  ;;  %1771 = vmatprep.mubr.bf16.mxu1 %v1576_v38  ;;  %v1827_v35 = vld [vmem:[%s3603_s5 + $0x18] sm:$0xff]  ;;  %v1841_v38 = vld [vmem:[%s3603_s5 + $0x88] sm:$0xff] }
 0x173   : > { %1741 = vmatprep.subr.bf16.mxu1 %v2659_v37  ;;  %2341 = vmatprep.subr.mxu0 %v1851_v18  ;;  %v1826_v37 = vld [vmem:[%s3603_s5 + $0x10] sm:$0xff] }
 0x174   : > { %2342 = vmatpush3.msra.mxu0 %v1835_v19 }
 0x175   : > { %2343 = vmatprep.subr.mxu0 %v1850_v20 }
 0x176   : > { %1742 = vmatpush1.bf16.msra.mxu1 %v2657_v39  ;;  %2344 = vmatpush3.msra.mxu0 %v1834_v21  ;;  %v1825_v39 = vld [vmem:[%s3603_s5 + $0x8] sm:$0xff] }
 0x177   : > { %1743 = vmatprep.subr.bf16.mxu1 %v2662_v40  ;;  %2345 = vmatprep.subr.mxu0 %v1849_v22  ;;  %v1840_v40 = vld [vmem:[%s3603_s5 + $0x80] sm:$0xff] }
 0x178   : > { %2346 = vmatpush3.msra.mxu0 %v1833_v23  ;;  %v1856_v23 = vld [vmem:[%s3604_s6] sm:$0x1] }
 0x179   : > { %2347 = vmatprep.subr.mxu0 %v1848_v24 }
 0x17a   : > { %1744 = vmatpush1.bf16.msra.mxu1 %v2660_v41  ;;  %2348 = vmatpush3.msra.mxu0 %v1832_v25  ;;  %v1824_v41 = vld [vmem:[%s3603_s5] sm:$0xff] }
 0x17b   : > { %1745 = vmatprep.subr.bf16.mxu1 %v2665_v42  ;;  %2349 = vmatprep.subr.mxu0 %v1847_v26 }
 0x17c   : > { %2350 = vmatpush3.msra.mxu0 %v1831_v27 }
 0x17d   : > { %2351 = vmatprep.subr.mxu0 %v1846_v28 }
 0x17e   : > { %1746 = vmatpush1.bf16.msra.mxu1 %v2663_v43  ;;  %2352 = vmatpush3.msra.mxu0 %v1830_v29 }
 0x17f   : > { %1747 = vmatprep.subr.bf16.mxu1 %v2668_v44  ;;  %2353 = vmatprep.subr.mxu0 %v1845_v30 }
 0x180   : > { %2354 = vmatpush3.msra.mxu0 %v1829_v31 }
 0x181   : > { %2355 = vmatprep.subr.mxu0 %v1844_v32 }
 0x182   : > { %1748 = vmatpush1.bf16.msra.mxu1 %v2666_v45  ;;  %2356 = vmatpush3.msra.mxu0 %v1828_v33 }
 0x183   : > { %1749 = vmatprep.subr.bf16.mxu1 %v2671_v46  ;;  %2357 = vmatprep.subr.mxu0 %v1843_v34 }
 0x184   : > { %2358 = vmatpush3.msra.mxu0 %v1827_v35 }
 0x185   : > { %2359 = vmatprep.subr.mxu0 %v1842_v36 }
 0x186   : > { %1750 = vmatpush1.bf16.msra.mxu1 %v2669_v47  ;;  %2360 = vmatpush3.msra.mxu0 %v1826_v37 }
 0x187   : > { %1751 = vmatprep.subr.bf16.mxu1 %v2674_v48  ;;  %2361 = vmatprep.subr.mxu0 %v1841_v38 }
 0x188   : > { %2362 = vmatpush3.msra.mxu0 %v1825_v39 }
 0x189   : > { %2363 = vmatprep.subr.mxu0 %v1840_v40 }
 0x18a   : > { %1752 = vmatpush1.bf16.msra.mxu1 %v2672_v49  ;;  %2364 = vmatpush3.msra.mxu0 %v1824_v41 }
 0x18b   : > { %1753 = vmatprep.subr.bf16.mxu1 %v2677_v50 }
 0x18e   : > { %1754 = vmatpush1.bf16.msra.mxu1 %v2675_v51  ;;  %v1782_v51 = vld [vmem:[%s2991_s22] sm:$0x77]  ;;  %s269_s22 = sand.u32 1, %s2754_s25  }
 0x18f   : > { %1755 = vmatprep.subr.bf16.mxu1 %v2680_v52  ;;  %v1785_v52 = vld [vmem:[%s3602_s4] sm:$0x3]  ;;  %s270_s8 = scalar_lea.vmem [#allocation3], %s269_s22  ;;  %s1930_s16 = scalar_lea.sflag [#allocation4], %s269_s22 }
 0x190   : > { %s1942_s13 = sshll.u32 %s270_s8, 4  ;;  %s1943_s13 = int_to_ptr.vmem [resolvable:$true] %s1942_s13 }
 0x191   : > { %s2702_s18 = scalar_lea.vmem %s1943_s13, 16  ;;  %p2709_p0 = scmp.lt.s32.totalorder %s1943_s13, %s2707_s20 }
 0x192   : > { %1756 = vmatpush2.bf16.msra.mxu1 %v2678_v53  ;;  %v1783_v53 = vunpack.c.l.bf16 %v1782_v51  ;;  %p2703_p11 = scmp.ne.s32.totalorder %s1943_s13, %s2702_s18  ;;  %p2710_p1 = scmp.lt.s32.totalorder %s2708_s28, %s2702_s18 }
 0x193   : > { %1757 = vmatprep.subr.bf16.mxu1 %v2683_v54  ;;  %v1790_v54 = vrot.slane %v1785_v52, %v1023_v63 }
 0x194   : > { %p2704_p12 = pnand %p2703_p11, %p2844_p5  ;;  %p2711_p2 = por %p2710_p1, %p2709_p0 }
 0x196   : > { %1758 = vmatpush2.bf16.msra.mxu1 %v2681_v55  ;;  %v1784_v55 = vunpack.c.h.bf16 %v1782_v51  ;;  %p2705_p13 = pneg %p2704_p12 }
 0x197   : > { %1759 = vmatprep.subr.bf16.mxu1 %v2686_v56 }
 0x198   : > { %p2712_p3 = pnand %p2711_p2, %p2705_p13 }
 0x19a   : > { %1760 = vmatpush2.bf16.msra.mxu1 %v2684_v57 }
 0x19b   : > { %1761 = vmatprep.subr.bf16.mxu1 %v2689_v58 }
 0x19e   : > { %1762 = vmatpush2.bf16.msra.mxu1 %v2687_v59  ;;  %v1801_v59 = vrot.slane %v1783_v53, 1 }
 0x19f   : > { %1763 = vmatprep.subr.bf16.mxu1 %v2692_v60  ;;  %v1794_v60 = vrot.slane %v1785_v52, %v1027_v1 }
 0x1a2   : > { %1764 = vmatpush2.bf16.msra.mxu1 %v2690_v61 }
 0x1a3   : > { %1765 = vmatprep.subr.bf16.mxu1 %v2695_v0 }
 0x1a6   : > { %1766 = vmatpush2.bf16.msra.mxu1 %v2693_v2 }
 0x1a7   : > { %1767 = vmatprep.subr.bf16.mxu1 %v2698_v3  ;;  %v1802_v3 = vrot.slane %v1784_v55, 1 }
 0x1aa   : > { %1768 = vmatpush2.bf16.msra.mxu1 %v2696_v4 }
 0x1ab   : > { %1769 = vmatprep.subr.bf16.mxu1 %v2701_v5 }
 0x1ae   : > { %1770 = vmatpush2.bf16.msra.mxu1 %v2699_v7 }
 0x1b1   : > { %1772 = vmatmul.mubr.bf16.vlgmr.msra.gmra.mxu1 %v1575_v9 }
 0x22a   : > { %v1533_v42 = vpop.f32.mrf.mxu0 }
 0x22c   : > { %v1535_v43 = vpop.f32.mrf.mxu0 }
 0x22e   : > { %v1537_v44 = vpop.f32.mrf.mxu0 }
 0x230   : > { %v1538_v46 = vpop.f32.mrf.mxu0 }
 0x231   : > { %v1332_v45 = vpop.f32.mrf.mxu1 }
 0x232   : > { %v1534_v47 = vadd.f32 %v1533_v42, %v1332_v45 }
 0x233   : > { %v1334_v48 = vpop.f32.mrf.mxu1 }
 0x234   : > { %v1536_v57 = vadd.f32 %v1535_v43, %v1334_v48 }
 0x235   : > { %v1336_v49 = vpop.f32.mrf.mxu1 }
 0x237   : > { %v1337_v50 = vpop.f32.mrf.mxu1 }
 0x271   : > { %v1773_v56 = vpop.f32.mrf.mxu1 }
 0x272   : > { %v1780_v58 = vadd.f32 %v1773_v56, %v1534_v47 }
 0x273   : > { %v1775_v61 = vpop.f32.mrf.mxu1 }
 0x274   : > { %v1797_v0 = vadd.f32 %v1790_v54, %v1780_v58  ;;  %v1781_v2 = vadd.f32 %v1775_v61, %v1536_v57 }
 0x275   : > { %v1777_v4 = vpop.f32.mrf.mxu1 }
 0x276   : > { %v1805_v5 = vadd.f32 %v1801_v59, %v1797_v0  ;;  %v1798_v6 = vadd.f32 %v1794_v60, %v1781_v2 }
 0x277   : > { %v1778_v7 = vpop.f32.mrf.mxu1 }
 0x278   : > { %v1807_v8 = vmax.f32 %v1805_v5, 0.0  ;;  %v1806_v9 = vadd.f32 %v1802_v3, %v1798_v6 }
 0x27a   : > { %v1810_v63 = vsel %vm1809_vm0, %v1807_v8, 0.0  ;;  %v1808_v10 = vmax.f32 %v1806_v9, 0.0 }
 0x27b   : > { %v1811_v11 = vrot.slane %v1810_v63, 4 }
 0x27c   : > { %v1817_v12 = vsel %vm1809_vm0, %v1808_v10, 0.0 }
 0x27d   : > { %v1812_v13 = vadd.f32 %v1811_v11, %v1810_v63  ;;  %v1818_v14 = vrot.slane %v1817_v12, 4 }
 0x27f   : > { %v1813_v62 = vrot.slane %v1812_v13, 2  ;;  %v1819_v1 = vadd.f32 %v1818_v14, %v1817_v12 }
 0x281   : > { %v1820_v15 = vrot.slane %v1819_v1, 2  ;;  %v1814_v16 = vadd.f32 %v1813_v62, %v1812_v13 }
 0x283   : > { %v1821_v17 = vadd.f32 %v1820_v15, %v1819_v1  ;;  %v1815_v18 = vrot.slane %v1814_v16, 1 }
 0x285   : > { %v1822_v19 = vrot.slane %v1821_v17, 1  ;;  %v1816_v21 = vadd.f32 %v1815_v18, %v1814_v16 }
 0x287   : > { %v1823_v20 = vadd.f32 %v1822_v19, %v1821_v17 }
 0x289   : > { %1921 = vmatprep.mubr.f32.mxu0 %v1823_v20 }
 0x28a   : > { %1922 = vmatmul.mubr.f32.vlgmr.msra.gmra.mxu0 %v1816_v21 }
 0x34a   : > { %v2365_v22 = vpop.f32.mrf.mxu0 }
 0x34c   : > { %v2366_v24 = vpop.f32.mrf.mxu0 }
 0x34d   : > { %v2367_v25 = vadd.f32 %v2366_v24, %v2365_v22 }
 0x34f   : > { %v1924_v26 = vadd.f32 %v2367_v25, %v1856_v23 }
 0x351   : > { %1928 = vst.msk [vmem:[%s270_s8] sm:$0x1] %vm1927_vm1, %v1924_v26 }
 0x352   : > { %2715 = shalt.err (!%p2712_p3)
}
 0x353   : > { %s2716_s21 = scalar_lea.hbm %s1940_s15, 16  ;;  %s2720_s23 = scalar_lea.hbm %s3605_s7, 32 }
 0x354   : > { %p2717_p4 = scmp.ne.s32.totalorder %s1940_s15, %s2716_s21  ;;  %p2721_p9 = scmp.lt.s32.totalorder %s1940_s15, %s3605_s7 }
 0x355   : > { %p2722_p10 = scmp.lt.s32.totalorder %s2720_s23, %s2716_s21 }
 0x356   : > { %p2718_p7 = pnand %p2717_p4, %p2844_p5 }
 0x357   : > { %p2723_p11 = por %p2722_p10, %p2721_p9 }
 0x358   : > { %p2719_p8 = pneg %p2718_p7 }
 0x35a   : > { %p2724_p12 = pnand %p2723_p11, %p2719_p8 }
 0x35c   : > { %2727 = shalt.err (!%p2724_p12)
}
 0x35d   : > { %2368 = dma.vmem_to_hbm [thread:$0]  (%p2844_p5), %s1943_s13, 16, %s1940_s15, %s1930_s16  }
 0x35e PF: > { %p2374_p13 = scmp.ge.s32.totalorder %s2762_s27, 2  ;;  %s1954_s14 = sand.u32 1, %s2750_s24  }
 0x35f   : > { %s1955_s9 = scalar_lea.sflag [#allocation4], %s1954_s14 }
 0x360   : > { %p2371_p0 = pnand %p2374_p13, %p2848_p6 }
 0x362   : > { %p2372_p1 = pneg %p2371_p0 }
 0x364   : > { %2745 = dma.done.wait (%p2372_p1), %s1955_s9, 16  }
 0x365   : > { %2747 = vsyncadd (%p2372_p1), %s1955_s9, 4294967280  ;;  %p17_p2 = scmp.ge.s32.totalorder %s2831_s30, 4   ;;  %s3608_s24 = smov %s2754_s25 }
 0x366   : > { %s3609_s25 = smov %s2758_s26  ;;  %s3610_s26 = smov %s2842_s10 }
 0x367   : > { %s3611_s27 = smov %s2831_s30  ;;  %19 = sbr.rel (!%p17_p2) target bundleno = 3 (0x3), region = 87 }
 0x36c   :  { %1959 = vsyncpa [#allocation4], 1 }
 0x36d   :  { %1961 = vsyncpa [#allocation4 + $0x1], 1 }

</bundles_post_ra>
